<compile_context>
chip_gen: v5e
topology: v5e:2x2
jax: 0.10.0
libtpu: 0.0.40
codegen_flags: <defaults>
</compile_context>

<pallas_src>
import jax
import jax.numpy as jnp
from jax import lax
from jax.experimental import pallas as pl
from jax.experimental.pallas import tpu as pltpu

# ----------------------------- configuration -------------------------------
IN_CHS = 8
NUM_1X1_A = 8
NUM_3X3_B = 8
NUM_1X1_C = 8
INC = 4
GROUPS = 2
B, H, W = 2, 16, 16
BN_EPS = 1e-3

R = B * H                       # 32 row-slabs (one image row per sublane row)
X_LANES = W * IN_CHS            # 128 input lanes per row-slab
A_LANES = W * NUM_1X1_A         # 128
B_LANES = W * NUM_3X3_B         # 128
PPC = 24                        # packed per-pixel output channels: [resid(8)|x_s2(8)|out2(4)|pad(4)]
OUT_LANES = W * PPC             # 384
K_PATCH = 9 * A_LANES           # 1152
MXU_PREC = lax.Precision.HIGHEST

assert X_LANES == 128 and A_LANES == 128 and B_LANES == 128


# ------------------------------- fused kernel --------------------------------
def dpn_dual_path_kernel(x_ref, bn_ref, w1_ref, w2_ref, w3_ref, w4_ref, out_ref):
    x = x_ref[...]                                       # (R, 128): rows=(b,h), lanes=w*8+c_in

    s1 = bn_ref[0:1, :]
    t1 = bn_ref[1:2, :]
    s2 = bn_ref[2:3, :]
    t2 = bn_ref[3:4, :]
    t3 = bn_ref[4:5, :]
    t4 = bn_ref[5:6, :]

    # ---- projection branch: BN1 -> ReLU -> 1x1 (packed to PPC cols per pixel)
    a1 = jnp.maximum(x * s1 + t1, 0.0)
    proj = jnp.dot(a1, w1_ref[...], precision=MXU_PREC,
                   preferred_element_type=jnp.float32)                      # (R, 384)

    # ---- main branch: BN2 -> ReLU -> 1x1 (BN3 scale folded into weight) -> +t3 -> ReLU
    a2 = jnp.maximum(x * s2 + t2, 0.0)
    yb = jnp.maximum(
        jnp.dot(a2, w2_ref[...], precision=MXU_PREC,
                preferred_element_type=jnp.float32) + t3, 0.0)              # (R, 128)

    # ---- horizontal neighbours: lane-shifted copies, zero-filled at w=0 / w=W-1
    #      (each sublane row is exactly one image row, so the lane border IS the image border)
    zc = jnp.zeros((R, NUM_1X1_A), jnp.float32)
    ybh = jnp.concatenate(
        [zc, yb[:, :A_LANES - NUM_1X1_A],        # kw=0 : left  neighbour (dw=-1)
         yb,                                     # kw=1 : centre
         yb[:, NUM_1X1_A:], zc],                 # kw=2 : right neighbour (dw=+1)
        axis=1)                                                              # (R, 384)

    # ---- vertical neighbours: permutation matmuls (row r-1 / r+1, zero at image top/bottom).
    #      Built from in-kernel iota; alignment-safe and the MXU has plenty of slack.
    rr = lax.broadcasted_iota(jnp.int32, (R, R), 0)
    cc = lax.broadcasted_iota(jnp.int32, (R, R), 1)
    s_up = ((cc == rr - 1) & (rr % H != 0)).astype(jnp.float32)
    s_dn = ((cc == rr + 1) & (rr % H != H - 1)).astype(jnp.float32)
    ybh_u = jnp.dot(s_up, ybh, precision=MXU_PREC, preferred_element_type=jnp.float32)
    ybh_d = jnp.dot(s_dn, ybh, precision=MXU_PREC, preferred_element_type=jnp.float32)

    # ---- grouped 3x3 conv (+ folded BN4 scale) as ONE matmul over the (R, 1152) patch slab
    #      patch lane index = kh*384 + kw*128 + w*8 + c_in
    patch = jnp.concatenate([ybh_u, ybh, ybh_d], axis=1)                    # (R, 1152)
    a4 = jnp.maximum(
        jnp.dot(patch, w3_ref[...], precision=MXU_PREC,
                preferred_element_type=jnp.float32) + t4, 0.0)              # (R, 128)

    # ---- c1x1_c (packed per-pixel layout) + dual-path combine: ONE final store.
    #      per-pixel cols [0:8)=x_s1+out1 (resid), [8:16)=x_s2, [16:20)=out2, [20:24)=pad
    out_ref[...] = proj + jnp.dot(a4, w4_ref[...], precision=MXU_PREC,
                                  preferred_element_type=jnp.float32)


# ------------------------------ param packing --------------------------------
def bn_fold(gamma, beta, mean, var, eps=BN_EPS):
    s = gamma / jnp.sqrt(var + eps)
    return s, beta - mean * s


def conv1x1_mat(w_oihw):
    # PyTorch (Cout, Cin, 1, 1) -> matmul form (Cin, Cout)
    return jnp.transpose(w_oihw[:, :, 0, 0], (1, 0))


def per_pixel_blockdiag(w_io):
    # (cin, cout) per-pixel 1x1 weight -> (W*cin, W*cout) block-diagonal row-layout weight
    eye_w = jnp.eye(W, dtype=jnp.float32)
    cin, cout = w_io.shape
    return jnp.einsum('io,wv->wivo', w_io, eye_w).reshape(W * cin, W * cout)


def pack_params(p):
    s1, t1 = bn_fold(*p["w_s1_bn"])
    s2, t2 = bn_fold(*p["a_bn"])
    s3, t3 = bn_fold(*p["b_bn"])
    s4, t4 = bn_fold(*p["c_bn"])

    # One packed BN table: rows = [s1, t1, s2, t2, t3, t4] tiled over the W pixels of a row.
    bn_rows = jnp.stack([jnp.tile(v, W) for v in (s1, t1, s2, t2, t3, t4)])
    bn_pack = jnp.zeros((8, X_LANES), jnp.float32).at[:6].set(bn_rows)

    # c1x1_w_s1: x_s1 -> packed cols [0:8), x_s2 -> [8:16) of each 24-wide per-pixel block.
    w1 = conv1x1_mat(p["w_s1_w"])                                            # (8, 16)
    w1p = jnp.zeros((IN_CHS, PPC), jnp.float32).at[:, :NUM_1X1_C + 2 * INC].set(w1)
    w1_row = per_pixel_blockdiag(w1p)                                        # (128, 384)

    # c1x1_a with BN3 scale folded into its output columns.
    w2 = conv1x1_mat(p["a_w"]) * s3[None, :]                                 # (8, 8)
    w2_row = per_pixel_blockdiag(w2)                                         # (128, 128)

    # Grouped 3x3 taps -> dense per-tap block-diagonal (over groups) weights, BN4 scale
    # folded into output channels, stacked into the (1152, 128) row-layout patch weight.
    wb = p["b_w"]                                                            # (8, 4, 3, 3)
    cout_g = NUM_3X3_B // GROUPS
    cin_g = NUM_1X1_A // GROUPS
    td = jnp.zeros((3, 3, NUM_1X1_A, NUM_3X3_B), jnp.float32)
    for g in range(GROUPS):
        wg = jnp.transpose(wb[g * cout_g:(g + 1) * cout_g], (2, 3, 1, 0))    # (3,3,cin_g,cout_g)
        td = td.at[:, :, g * cin_g:(g + 1) * cin_g,
                   g * cout_g:(g + 1) * cout_g].set(wg)
    td = td * s4[None, None, None, :]
    eye_w = jnp.eye(W, dtype=jnp.float32)
    w3_row = jnp.einsum('ktic,wv->ktwivc', td, eye_w).reshape(K_PATCH, B_LANES)  # (1152, 128)

    # c1x1_c: out1 -> packed cols [0:8), out2 -> [16:20) of each 24-wide per-pixel block.
    w4 = conv1x1_mat(p["c_w"])                                               # (8, 12)
    w4p = jnp.zeros((NUM_3X3_B, PPC), jnp.float32)
    w4p = w4p.at[:, :NUM_1X1_C].set(w4[:, :NUM_1X1_C])
    w4p = w4p.at[:, NUM_1X1_C + 2 * INC:NUM_1X1_C + 2 * INC + INC].set(w4[:, NUM_1X1_C:])
    w4_row = per_pixel_blockdiag(w4p)                                        # (128, 384)

    return bn_pack, w1_row, w2_row, w3_row, w4_row


# ------------------------------- forward -------------------------------------
def dual_path_block_forward(x_nchw, p):
    assert x_nchw.shape == (B, IN_CHS, H, W)
    # NCHW -> row-slab layout: sublane rows = (b, h) image rows, lanes = w * C + c.
    x_rows = jnp.transpose(x_nchw, (0, 2, 3, 1)).reshape(R, X_LANES)

    bn_pack, w1_row, w2_row, w3_row, w4_row = pack_params(p)

    full = lambda a: pl.BlockSpec(a.shape, lambda i: (0, 0))
    out = pl.pallas_call(
        dpn_dual_path_kernel,
        out_shape=jax.ShapeDtypeStruct((R, OUT_LANES), jnp.float32),
        grid=(1,),                                   # single step: whole block fits in VMEM
        in_specs=[full(x_rows), full(bn_pack), full(w1_row), full(w2_row),
                  full(w3_row), full(w4_row)],
        out_specs=pl.BlockSpec((R, OUT_LANES), lambda i: (0, 0)),
        compiler_params=pltpu.CompilerParams(dimension_semantics=("arbitrary",)),
    )(x_rows, bn_pack, w1_row, w2_row, w3_row, w4_row)

    # Unpack the lane-dense output slab (only done once; stacked blocks would chain packed).
    out_px = out.reshape(B, H, W, PPC)
    resid = jnp.transpose(out_px[..., :NUM_1X1_C], (0, 3, 1, 2))
    dense = jnp.transpose(out_px[..., NUM_1X1_C:NUM_1X1_C + 2 * INC + INC], (0, 3, 1, 2))
    return resid, dense


# ------------------------------ reference ------------------------------------
def ref_forward(x_nchw, p):
    def bn_relu(x, bn):
        s, sh = bn_fold(*bn)
        return jnp.maximum(x * s[None, :, None, None] + sh[None, :, None, None], 0.0)

    def conv(x, w, pad, groups):
        return lax.conv_general_dilated(
            x, w, (1, 1), [(pad, pad), (pad, pad)],
            dimension_numbers=("NCHW", "OIHW", "NCHW"),
            feature_group_count=groups,
            precision=lax.Precision.HIGHEST,
        )

    x_s = conv(bn_relu(x_nchw, p["w_s1_bn"]), p["w_s1_w"], 0, 1)
    x_s1, x_s2 = x_s[:, :NUM_1X1_C], x_s[:, NUM_1X1_C:]
    x_a = conv(bn_relu(x_nchw, p["a_bn"]), p["a_w"], 0, 1)
    x_b = conv(bn_relu(x_a, p["b_bn"]), p["b_w"], 1, GROUPS)
    x_c = conv(bn_relu(x_b, p["c_bn"]), p["c_w"], 0, 1)
    out1, out2 = x_c[:, :NUM_1X1_C], x_c[:, NUM_1X1_C:]
    return x_s1 + out1, jnp.concatenate([x_s2, out2], axis=1)


# ------------------------------ params ---------------------------------------
def init_params(key):
    def bn_params(k, c):
        k1, k2, k3, k4 = jax.random.split(k, 4)
        gamma = jax.random.uniform(k1, (c,), jnp.float32, 0.5, 1.5)
        beta = 0.1 * jax.random.normal(k2, (c,), jnp.float32)
        mean = 0.1 * jax.random.normal(k3, (c,), jnp.float32)
        var = jax.random.uniform(k4, (c,), jnp.float32, 0.5, 1.5)
        return (gamma, beta, mean, var)

    def conv_w(k, cout, cin, kh, kw):
        return 0.05 * jax.random.normal(k, (cout, cin, kh, kw), jnp.float32)

    ks = jax.random.split(key, 8)
    return {
        "w_s1_bn": bn_params(ks[0], IN_CHS),
        "w_s1_w": conv_w(ks[1], NUM_1X1_C + 2 * INC, IN_CHS, 1, 1),
        "a_bn": bn_params(ks[2], IN_CHS),
        "a_w": conv_w(ks[3], NUM_1X1_A, IN_CHS, 1, 1),
        "b_bn": bn_params(ks[4], NUM_1X1_A),
        "b_w": conv_w(ks[5], NUM_3X3_B, NUM_1X1_A // GROUPS, 3, 3),
        "c_bn": bn_params(ks[6], NUM_3X3_B),
        "c_w": conv_w(ks[7], NUM_1X1_C + INC, NUM_3X3_B, 1, 1),
    }


# -------------------------------- main ----------------------------------------
if __name__ == "__main__":
    key = jax.random.PRNGKey(0)
    kx, kp = jax.random.split(key)
    x = jax.random.normal(kx, (B, IN_CHS, H, W), jnp.float32)
    params = init_params(kp)

    resid, dense = jax.jit(dual_path_block_forward)(x, params)
    jax.block_until_ready((resid, dense))

    r_ref, d_ref = ref_forward(x, params)
    assert resid.shape == (B, NUM_1X1_C, H, W)
    assert dense.shape == (B, 3 * INC, H, W)
    assert jnp.allclose(resid, r_ref, rtol=2e-3, atol=2e-3)
    assert jnp.allclose(dense, d_ref, rtol=2e-3, atol=2e-3)

    print("KERNEL_OK")
</pallas_src>

<mosaic_0001>
module attributes {stable_mosaic.version = 11 : i64} {
  func.func @dpn_dual_path_kernel(%arg0: i32, %arg1: memref<32x128xf32, #tpu.memory_space<vmem>>, %arg2: memref<8x128xf32, #tpu.memory_space<vmem>>, %arg3: memref<128x384xf32, #tpu.memory_space<vmem>>, %arg4: memref<128x128xf32, #tpu.memory_space<vmem>>, %arg5: memref<1152x128xf32, #tpu.memory_space<vmem>>, %arg6: memref<128x384xf32, #tpu.memory_space<vmem>>, %arg7: memref<32x384xf32, #tpu.memory_space<vmem>>) attributes {dimension_semantics = [#tpu.dimension_semantics<arbitrary>], iteration_bounds = array<i64: 1>, scalar_prefetch = 0 : i64, scratch_operands = 0 : i64, tpu.core_type = #tpu.core_type<tc>, window_params = [{pipeline_mode = #tpu.pipeline_mode<synchronous>, transform_indices = @transform_0, window_bounds = array<i64: 32, 128>}, {pipeline_mode = #tpu.pipeline_mode<synchronous>, transform_indices = @transform_1, window_bounds = array<i64: 8, 128>}, {pipeline_mode = #tpu.pipeline_mode<synchronous>, transform_indices = @transform_2, window_bounds = array<i64: 128, 384>}, {pipeline_mode = #tpu.pipeline_mode<synchronous>, transform_indices = @transform_3, window_bounds = array<i64: 128, 128>}, {pipeline_mode = #tpu.pipeline_mode<synchronous>, transform_indices = @transform_4, window_bounds = array<i64: 1152, 128>}, {pipeline_mode = #tpu.pipeline_mode<synchronous>, transform_indices = @transform_5, window_bounds = array<i64: 128, 384>}, {pipeline_mode = #tpu.pipeline_mode<synchronous>, transform_indices = @transform_6, window_bounds = array<i64: 32, 384>}]} {
    %c0 = arith.constant 0 : index
    %c0_0 = arith.constant 0 : index
    %0 = vector.load %arg1[%c0, %c0_0] : memref<32x128xf32, #tpu.memory_space<vmem>>, vector<32x128xf32>
    %c0_1 = arith.constant 0 : index
    %c0_2 = arith.constant 0 : index
    %1 = vector.load %arg2[%c0_1, %c0_2] : memref<8x128xf32, #tpu.memory_space<vmem>>, vector<1x128xf32>
    %c1 = arith.constant 1 : index
    %c0_3 = arith.constant 0 : index
    %2 = vector.load %arg2[%c1, %c0_3] : memref<8x128xf32, #tpu.memory_space<vmem>>, vector<1x128xf32>
    %c2 = arith.constant 2 : index
    %c0_4 = arith.constant 0 : index
    %3 = vector.load %arg2[%c2, %c0_4] : memref<8x128xf32, #tpu.memory_space<vmem>>, vector<1x128xf32>
    %c3 = arith.constant 3 : index
    %c0_5 = arith.constant 0 : index
    %4 = vector.load %arg2[%c3, %c0_5] : memref<8x128xf32, #tpu.memory_space<vmem>>, vector<1x128xf32>
    %c4 = arith.constant 4 : index
    %c0_6 = arith.constant 0 : index
    %5 = vector.load %arg2[%c4, %c0_6] : memref<8x128xf32, #tpu.memory_space<vmem>>, vector<1x128xf32>
    %c5 = arith.constant 5 : index
    %c0_7 = arith.constant 0 : index
    %6 = vector.load %arg2[%c5, %c0_7] : memref<8x128xf32, #tpu.memory_space<vmem>>, vector<1x128xf32>
    %7 = vector.broadcast %1 : vector<1x128xf32> to vector<32x128xf32>
    %8 = arith.mulf %0, %7 : vector<32x128xf32>
    %9 = vector.broadcast %2 : vector<1x128xf32> to vector<32x128xf32>
    %10 = arith.addf %8, %9 : vector<32x128xf32>
    %cst = arith.constant 0.000000e+00 : f32
    %11 = vector.broadcast %cst : f32 to vector<32x128xf32>
    %12 = arith.maximumf %10, %11 : vector<32x128xf32>
    %c0_8 = arith.constant 0 : index
    %c0_9 = arith.constant 0 : index
    %13 = vector.load %arg3[%c0_8, %c0_9] : memref<128x384xf32, #tpu.memory_space<vmem>>, vector<128x384xf32>
    %cst_10 = arith.constant dense<0.000000e+00> : vector<32x384xf32>
    %14 = tpu.matmul %12, %13, %cst_10 {dimension_numbers = #tpu.dot_dimension_numbers<[1], [0], [0], [1], [0, 0, 1, 1], [], []>, precision = #tpu.contract_precision<fp32>} : vector<32x128xf32>, vector<128x384xf32>, vector<32x384xf32> -> vector<32x384xf32>
    %15 = vector.broadcast %3 : vector<1x128xf32> to vector<32x128xf32>
    %16 = arith.mulf %0, %15 : vector<32x128xf32>
    %17 = vector.broadcast %4 : vector<1x128xf32> to vector<32x128xf32>
    %18 = arith.addf %16, %17 : vector<32x128xf32>
    %cst_11 = arith.constant 0.000000e+00 : f32
    %19 = vector.broadcast %cst_11 : f32 to vector<32x128xf32>
    %20 = arith.maximumf %18, %19 : vector<32x128xf32>
    %c0_12 = arith.constant 0 : index
    %c0_13 = arith.constant 0 : index
    %21 = vector.load %arg4[%c0_12, %c0_13] : memref<128x128xf32, #tpu.memory_space<vmem>>, vector<128x128xf32>
    %cst_14 = arith.constant dense<0.000000e+00> : vector<32x128xf32>
    %22 = tpu.matmul %20, %21, %cst_14 {dimension_numbers = #tpu.dot_dimension_numbers<[1], [0], [0], [1], [0, 0, 1, 1], [], []>, precision = #tpu.contract_precision<fp32>} : vector<32x128xf32>, vector<128x128xf32>, vector<32x128xf32> -> vector<32x128xf32>
    %23 = vector.broadcast %5 : vector<1x128xf32> to vector<32x128xf32>
    %24 = arith.addf %22, %23 : vector<32x128xf32>
    %cst_15 = arith.constant 0.000000e+00 : f32
    %25 = vector.broadcast %cst_15 : f32 to vector<32x128xf32>
    %26 = arith.maximumf %24, %25 : vector<32x128xf32>
    %cst_16 = arith.constant 0.000000e+00 : f32
    %27 = vector.broadcast %cst_16 : f32 to vector<32x8xf32>
    %28 = vector.extract_strided_slice %26 {offsets = [0, 0], sizes = [32, 120], strides = [1, 1]} : vector<32x128xf32> to vector<32x120xf32>
    %29 = vector.extract_strided_slice %26 {offsets = [0, 8], sizes = [32, 120], strides = [1, 1]} : vector<32x128xf32> to vector<32x120xf32>
    %30 = tpu.concatenate %27, %28, %26, %29, %27 in 1 : vector<32x8xf32>, vector<32x120xf32>, vector<32x128xf32>, vector<32x120xf32>, vector<32x8xf32> -> vector<32x384xf32>
    %31 = tpu.iota {dimensions = array<i32: 0>} : vector<32x32xi32>
    %32 = tpu.iota {dimensions = array<i32: 1>} : vector<32x32xi32>
    %c1_i32 = arith.constant 1 : i32
    %33 = vector.broadcast %c1_i32 : i32 to vector<32x32xi32>
    %34 = arith.subi %31, %33 : vector<32x32xi32>
    %35 = arith.cmpi eq, %32, %34 : vector<32x32xi32>
    %c16_i32 = arith.constant 16 : i32
    %c0_i32 = arith.constant 0 : i32
    %36 = arith.cmpi eq, %c16_i32, %c0_i32 : i32
    %c1_i32_17 = arith.constant 1 : i32
    %37 = arith.select %36, %c1_i32_17, %c16_i32 : i32
    %38 = vector.broadcast %37 : i32 to vector<32x32xi32>
    %39 = arith.remsi %31, %38 : vector<32x32xi32>
    %c0_i32_18 = arith.constant 0 : i32
    %40 = vector.broadcast %c0_i32_18 : i32 to vector<32x32xi32>
    %41 = arith.cmpi ne, %39, %40 : vector<32x32xi32>
    %c0_i32_19 = arith.constant 0 : i32
    %42 = vector.broadcast %c0_i32_19 : i32 to vector<32x32xi32>
    %43 = arith.cmpi slt, %39, %42 : vector<32x32xi32>
    %c0_i32_20 = arith.constant 0 : i32
    %44 = arith.cmpi slt, %37, %c0_i32_20 : i32
    %45 = vector.broadcast %44 : i1 to vector<32x32xi1>
    %46 = vector.broadcast %45 : vector<32x32xi1> to vector<32x32xi1>
    %47 = arith.xori %43, %46 : vector<32x32xi1>
    %48 = arith.andi %47, %41 : vector<32x32xi1>
    %49 = vector.broadcast %37 : i32 to vector<32x32xi32>
    %50 = arith.addi %39, %49 : vector<32x32xi32>
    %51 = arith.select %48, %50, %39 : vector<32x32xi1>, vector<32x32xi32>
    %c0_i32_21 = arith.constant 0 : i32
    %52 = vector.broadcast %c0_i32_21 : i32 to vector<32x32xi32>
    %53 = arith.cmpi ne, %51, %52 : vector<32x32xi32>
    %54 = arith.andi %35, %53 : vector<32x32xi1>
    %55 = arith.extui %54 : vector<32x32xi1> to vector<32x32xi32>
    %56 = arith.sitofp %55 : vector<32x32xi32> to vector<32x32xf32>
    %c1_i32_22 = arith.constant 1 : i32
    %57 = vector.broadcast %c1_i32_22 : i32 to vector<32x32xi32>
    %58 = arith.addi %31, %57 : vector<32x32xi32>
    %59 = arith.cmpi eq, %32, %58 : vector<32x32xi32>
    %c16_i32_23 = arith.constant 16 : i32
    %c0_i32_24 = arith.constant 0 : i32
    %60 = arith.cmpi eq, %c16_i32_23, %c0_i32_24 : i32
    %c1_i32_25 = arith.constant 1 : i32
    %61 = arith.select %60, %c1_i32_25, %c16_i32_23 : i32
    %62 = vector.broadcast %61 : i32 to vector<32x32xi32>
    %63 = arith.remsi %31, %62 : vector<32x32xi32>
    %c0_i32_26 = arith.constant 0 : i32
    %64 = vector.broadcast %c0_i32_26 : i32 to vector<32x32xi32>
    %65 = arith.cmpi ne, %63, %64 : vector<32x32xi32>
    %c0_i32_27 = arith.constant 0 : i32
    %66 = vector.broadcast %c0_i32_27 : i32 to vector<32x32xi32>
    %67 = arith.cmpi slt, %63, %66 : vector<32x32xi32>
    %c0_i32_28 = arith.constant 0 : i32
    %68 = arith.cmpi slt, %61, %c0_i32_28 : i32
    %69 = vector.broadcast %68 : i1 to vector<32x32xi1>
    %70 = vector.broadcast %69 : vector<32x32xi1> to vector<32x32xi1>
    %71 = arith.xori %67, %70 : vector<32x32xi1>
    %72 = arith.andi %71, %65 : vector<32x32xi1>
    %73 = vector.broadcast %61 : i32 to vector<32x32xi32>
    %74 = arith.addi %63, %73 : vector<32x32xi32>
    %75 = arith.select %72, %74, %63 : vector<32x32xi1>, vector<32x32xi32>
    %c15_i32 = arith.constant 15 : i32
    %76 = vector.broadcast %c15_i32 : i32 to vector<32x32xi32>
    %77 = arith.cmpi ne, %75, %76 : vector<32x32xi32>
    %78 = arith.andi %59, %77 : vector<32x32xi1>
    %79 = arith.extui %78 : vector<32x32xi1> to vector<32x32xi32>
    %80 = arith.sitofp %79 : vector<32x32xi32> to vector<32x32xf32>
    %cst_29 = arith.constant dense<0.000000e+00> : vector<32x384xf32>
    %81 = tpu.matmul %56, %30, %cst_29 {dimension_numbers = #tpu.dot_dimension_numbers<[1], [0], [0], [1], [0, 0, 1, 1], [], []>, precision = #tpu.contract_precision<fp32>} : vector<32x32xf32>, vector<32x384xf32>, vector<32x384xf32> -> vector<32x384xf32>
    %cst_30 = arith.constant dense<0.000000e+00> : vector<32x384xf32>
    %82 = tpu.matmul %80, %30, %cst_30 {dimension_numbers = #tpu.dot_dimension_numbers<[1], [0], [0], [1], [0, 0, 1, 1], [], []>, precision = #tpu.contract_precision<fp32>} : vector<32x32xf32>, vector<32x384xf32>, vector<32x384xf32> -> vector<32x384xf32>
    %83 = tpu.concatenate %81, %30, %82 in 1 : vector<32x384xf32>, vector<32x384xf32>, vector<32x384xf32> -> vector<32x1152xf32>
    %c0_31 = arith.constant 0 : index
    %c0_32 = arith.constant 0 : index
    %84 = vector.load %arg5[%c0_31, %c0_32] : memref<1152x128xf32, #tpu.memory_space<vmem>>, vector<1152x128xf32>
    %cst_33 = arith.constant dense<0.000000e+00> : vector<32x128xf32>
    %85 = tpu.matmul %83, %84, %cst_33 {dimension_numbers = #tpu.dot_dimension_numbers<[1], [0], [0], [1], [0, 0, 1, 1], [], []>, precision = #tpu.contract_precision<fp32>} : vector<32x1152xf32>, vector<1152x128xf32>, vector<32x128xf32> -> vector<32x128xf32>
    %86 = vector.broadcast %6 : vector<1x128xf32> to vector<32x128xf32>
    %87 = arith.addf %85, %86 : vector<32x128xf32>
    %cst_34 = arith.constant 0.000000e+00 : f32
    %88 = vector.broadcast %cst_34 : f32 to vector<32x128xf32>
    %89 = arith.maximumf %87, %88 : vector<32x128xf32>
    %c0_35 = arith.constant 0 : index
    %c0_36 = arith.constant 0 : index
    %90 = vector.load %arg6[%c0_35, %c0_36] : memref<128x384xf32, #tpu.memory_space<vmem>>, vector<128x384xf32>
    %cst_37 = arith.constant dense<0.000000e+00> : vector<32x384xf32>
    %91 = tpu.matmul %89, %90, %cst_37 {dimension_numbers = #tpu.dot_dimension_numbers<[1], [0], [0], [1], [0, 0, 1, 1], [], []>, precision = #tpu.contract_precision<fp32>} : vector<32x128xf32>, vector<128x384xf32>, vector<32x384xf32> -> vector<32x384xf32>
    %92 = arith.addf %14, %91 : vector<32x384xf32>
    %c0_38 = arith.constant 0 : index
    %c0_39 = arith.constant 0 : index
    %93 = vector.load %arg7[%c0_38, %c0_39] : memref<32x384xf32, #tpu.memory_space<vmem>>, vector<32x384xf32>
    tpu.vector_store %arg7[%c0_38, %c0_39], %92 {strides = array<i32>} : memref<32x384xf32, #tpu.memory_space<vmem>>, vector<32x384xf32>,
    return
  }
  func.func @transform_0(%arg0: i32) -> (i32, i32) {
    %c0_i32 = arith.constant 0 : i32
    %c0_i32_0 = arith.constant 0 : i32
    %c0_i32_1 = arith.constant 0 : i32
    return %c0_i32, %c0_i32_0 : i32, i32
  }
  func.func @transform_1(%arg0: i32) -> (i32, i32) {
    %c0_i32 = arith.constant 0 : i32
    %c0_i32_0 = arith.constant 0 : i32
    %c0_i32_1 = arith.constant 0 : i32
    return %c0_i32, %c0_i32_0 : i32, i32
  }
  func.func @transform_2(%arg0: i32) -> (i32, i32) {
    %c0_i32 = arith.constant 0 : i32
    %c0_i32_0 = arith.constant 0 : i32
    %c0_i32_1 = arith.constant 0 : i32
    return %c0_i32, %c0_i32_0 : i32, i32
  }
  func.func @transform_3(%arg0: i32) -> (i32, i32) {
    %c0_i32 = arith.constant 0 : i32
    %c0_i32_0 = arith.constant 0 : i32
    %c0_i32_1 = arith.constant 0 : i32
    return %c0_i32, %c0_i32_0 : i32, i32
  }
  func.func @transform_4(%arg0: i32) -> (i32, i32) {
    %c0_i32 = arith.constant 0 : i32
    %c0_i32_0 = arith.constant 0 : i32
    %c0_i32_1 = arith.constant 0 : i32
    return %c0_i32, %c0_i32_0 : i32, i32
  }
  func.func @transform_5(%arg0: i32) -> (i32, i32) {
    %c0_i32 = arith.constant 0 : i32
    %c0_i32_0 = arith.constant 0 : i32
    %c0_i32_1 = arith.constant 0 : i32
    return %c0_i32, %c0_i32_0 : i32, i32
  }
  func.func @transform_6(%arg0: i32) -> (i32, i32) {
    %c0_i32 = arith.constant 0 : i32
    %c0_i32_0 = arith.constant 0 : i32
    %c0_i32_1 = arith.constant 0 : i32
    return %c0_i32, %c0_i32_0 : i32, i32
  }
}

</mosaic_0001>

<bundles_post_ra>
// kernel: tile.33
= control target key start
LH: loop header
LB: loop body
LE: loop exit
PB: predicated region body
PF: predicated region fallthrough
CT: control target
= control target key end

     0   :  { %s28_s0 = inlined_call_operand.vmem [shape: f32[8], index: 0, kind: input, shape index: {}]   ;;  %s29_s1 = inlined_call_operand.vmem [shape: f32[16,8], index: 1, kind: output, shape index: {}]  }
   0x1   :  { %v4_v0 = vld [vmem:[%s28_s0] ss:$0 sm:$0xff] }
   0x2   :  { %5 = vst [vmem:[%s29_s1] sm:$0xff] %v4_v0 }
   0x3   :  { %8 = vst [vmem:[%s29_s1 + $0x8] sm:$0xff] %v4_v0 }

// kernel: tile.54
= control target key start
LH: loop header
LB: loop body
LE: loop exit
PB: predicated region body
PF: predicated region fallthrough
CT: control target
= control target key end

     0   :  { %s131_s10 = smov 120   ;;  %s132_s11 = smov 104   ;;  %vm3_vm0 = vcmask 64512   ;;  %vm9_vm1 = vcmask 1048512   ;;  %vm15_vm2 = vcmask 982912   ;;  %vm21_vm3 = vcmask 917312   ;;  %s207_s0 = inlined_call_operand.vmem [shape: f32[16,8], index: 0, kind: input, shape index: {}]   ;;  %s208_s1 = inlined_call_operand.vmem [shape: f32[1,128], index: 1, kind: output, shape index: {}]  }
   0x1   :  { %v101_v0 = vld [vmem:[%s207_s0 + $0xf] sm:$0x1]   ;;  %v103_v1 = vld [vmem:[%s207_s0 + $0xd] sm:$0x1]   ;;  %v105_v2 = vld [vmem:[%s207_s0 + $0xb] sm:$0x1]  }
   0x2   :  { %7 = vrot.lane.b32.xlu0 %v101_v0, %s131_s10  ;;  %19 = vrot.lane.b32.xlu1 %v103_v1, %s132_s11  ;;  %s133_s14 = smov 88   ;;  %v102_v3 = vld [vmem:[%s207_s0 + $0xe] sm:$0x1]   ;;  %v104_v4 = vld [vmem:[%s207_s0 + $0xc] sm:$0x1]   ;;  %s134_s19 = smov 112  }
   0x3   :  { %31 = vrot.lane.b32.xlu2 %v105_v2, %s133_s14  ;;  %s135_s20 = smov 96   ;;  %v106_v5 = vld [vmem:[%s207_s0 + $0xa] sm:$0x1]   ;;  %s136_s23 = smov 80   ;;  %v107_v6 = vld [vmem:[%s207_s0 + $0x9] sm:$0x1]  }
   0x4   :  { %v108_v7 = vld [vmem:[%s207_s0 + $0x8] sm:$0x1]   ;;  %s137_s28 = smov 72   ;;  %s138_s29 = smov 64   ;;  %v109_v8 = vld [vmem:[%s207_s0 + $0x7] sm:$0x1]  }
   0x5   :  { %s139_s3 = smov 56   ;;  %v110_v9 = vld [vmem:[%s207_s0 + $0x6] sm:$0x1]   ;;  %v111_v10 = vld [vmem:[%s207_s0 + $0x5] sm:$0x1]   ;;  %s140_s8 = smov 48  }
   0x6   :  { %s141_s9 = smov 40   ;;  %v112_v11 = vld [vmem:[%s207_s0 + $0x4] sm:$0x1]   ;;  %s142_s12 = smov 32   ;;  %v113_v12 = vld [vmem:[%s207_s0 + $0x3] sm:$0x1]  }
   0x7   :  { %v114_v13 = vld [vmem:[%s207_s0 + $0x2] sm:$0x1]   ;;  %s143_s17 = smov 24   ;;  %s144_s18 = smov 16   ;;  %v115_v14 = vld [vmem:[%s207_s0 + $0x1] sm:$0x1]  }
   0x8   :  { %s145_s21 = smov 8   ;;  %v2_v15 = vld [vmem:[%s207_s0] sm:$0x1]   ;;  %vm27_vm4 = vcmask 851712   ;;  %vm33_vm5 = vcmask 786112   ;;  %vm39_vm6 = vcmask 720512  }
   0x9   :  { %4 = vst.msk [vmem:[#allocation0] sm:$0x1] %vm3_vm0, %v2_v15   ;;  %vm45_vm7 = vcmask 654912   ;;  %vm51_vm8 = vcmask 589312   ;;  %vm57_vm9 = vcmask 523712   ;;  %vm63_vm10 = vcmask 458112  }
   0xa   :  { %13 = vrot.lane.b32.xlu0 %v102_v3, %s134_s19  ;;  %25 = vrot.lane.b32.xlu1 %v104_v4, %s135_s20  ;;  %vm69_vm11 = vcmask 392512   ;;  %vm75_vm12 = vcmask 326912   ;;  %vm81_vm13 = vcmask 261312   ;;  %vm87_vm14 = vcmask 195712  }
   0xb   :  { %37 = vrot.lane.b32.xlu2 %v106_v5, %s136_s23  ;;  %vm93_vm15 = vcmask 130112  }
  0x12   :  { %43 = vrot.lane.b32.xlu0 %v107_v6, %s137_s28  ;;  %49 = vrot.lane.b32.xlu1 %v108_v7, %s138_s29 }
  0x13   :  { %55 = vrot.lane.b32.xlu2 %v109_v8, %s139_s3 }
  0x1a   :  { %61 = vrot.lane.b32.xlu0 %v110_v9, %s140_s8  ;;  %67 = vrot.lane.b32.xlu1 %v111_v10, %s141_s9 }
  0x1b   :  { %73 = vrot.lane.b32.xlu2 %v112_v11, %s142_s12 }
  0x22   :  { %79 = vrot.lane.b32.xlu0 %v113_v12, %s143_s17  ;;  %85 = vrot.lane.b32.xlu1 %v114_v13, %s144_s18 }
  0x23   :  { %91 = vrot.lane.b32.xlu2 %v115_v14, %s145_s21 }
  0x5d   :  { %v32_v16 = vpop.permute.xlu2 %31  }
  0x65   :  { %v38_v17 = vpop.permute.xlu2 %37  }
  0x6d   :  { %v56_v18 = vpop.permute.xlu2 %55  }
  0x74   :  { %v8_v19 = vpop.permute.xlu0 %7   ;;  %v20_v20 = vpop.permute.xlu1 %19  }
  0x75   :  { %10 = vst.msk [vmem:[#allocation0] sm:$0x1] %vm9_vm1, %v8_v19   ;;  %v74_v21 = vpop.permute.xlu2 %73  }
  0x7c   :  { %v14_v22 = vpop.permute.xlu0 %13   ;;  %v26_v23 = vpop.permute.xlu1 %25  }
  0x7d   :  { %16 = vst.msk [vmem:[#allocation0] sm:$0x1] %vm15_vm2, %v14_v22   ;;  %v92_v24 = vpop.permute.xlu2 %91  }
  0x7e   :  { %22 = vst.msk [vmem:[#allocation0] sm:$0x1] %vm21_vm3, %v20_v20  }
  0x7f   :  { %28 = vst.msk [vmem:[#allocation0] sm:$0x1] %vm27_vm4, %v26_v23  }
  0x80   :  { %34 = vst.msk [vmem:[#allocation0] sm:$0x1] %vm33_vm5, %v32_v16  }
  0x81   :  { %40 = vst.msk [vmem:[#allocation0] sm:$0x1] %vm39_vm6, %v38_v17  }
  0x84   :  { %v44_v25 = vpop.permute.xlu0 %43   ;;  %v50_v26 = vpop.permute.xlu1 %49  }
  0x85   :  { %46 = vst.msk [vmem:[#allocation0] sm:$0x1] %vm45_vm7, %v44_v25  }
  0x86   :  { %52 = vst.msk [vmem:[#allocation0] sm:$0x1] %vm51_vm8, %v50_v26  }
  0x87   :  { %58 = vst.msk [vmem:[#allocation0] sm:$0x1] %vm57_vm9, %v56_v18  }
  0x8c   :  { %v62_v27 = vpop.permute.xlu0 %61   ;;  %v68_v28 = vpop.permute.xlu1 %67  }
  0x8d   :  { %64 = vst.msk [vmem:[#allocation0] sm:$0x1] %vm63_vm10, %v62_v27  }
  0x8e   :  { %70 = vst.msk [vmem:[#allocation0] sm:$0x1] %vm69_vm11, %v68_v28  }
  0x8f   :  { %76 = vst.msk [vmem:[#allocation0] sm:$0x1] %vm75_vm12, %v74_v21  }
  0x94   :  { %v80_v29 = vpop.permute.xlu0 %79   ;;  %v86_v30 = vpop.permute.xlu1 %85  }
  0x95   :  { %82 = vst.msk [vmem:[#allocation0] sm:$0x1] %vm81_vm13, %v80_v29  }
  0x96   :  { %88 = vst.msk [vmem:[#allocation0] sm:$0x1] %vm87_vm14, %v86_v30  }
  0x97   :  { %94 = vst.msk [vmem:[#allocation0] sm:$0x1] %vm93_vm15, %v92_v24  }
  0x9e   :  { %v97_v31 = vld [vmem:[#allocation0] sm:$0x1] }
  0x9f   :  { %100 = vst [vmem:[%s208_s1] sm:$0x1] %v97_v31 }

// kernel: dual_path_block_forward.1
= control target key start
LH: loop header
LB: loop body
LE: loop exit
PB: predicated region body
PF: predicated region fallthrough
CT: control target
= control target key end

     0   :  { %s9218_s18 = smov 8   ;;  %s9219_s19 = smov 120   ;;  %vm705_vm3 = vcmask 261120   ;;  %vm592_vm4 = vcmask 64512   ;;  %vm597_vm10 = vcmask 982016   ;;  %s16422_s3 = inlined_call_operand.vmem [shape: f32[128,128], index: 3, kind: input, shape index: {}]   ;;  %s16423_s1 = inlined_call_operand.vmem [shape: f32[8,128], index: 1, kind: input, shape index: {}]   ;;  %s16424_s0 = inlined_call_operand.vmem [shape: f32[32,128], index: 0, kind: input, shape index: {}]   ;;  %s16425_s4 = inlined_call_operand.vmem [shape: f32[1152,128], index: 4, kind: input, shape index: {}]   ;;  %s16426_s5 = inlined_call_operand.vmem [shape: f32[128,384], index: 5, kind: input, shape index: {}]   ;;  %s16427_s2 = inlined_call_operand.vmem [shape: f32[128,384], index: 2, kind: input, shape index: {}]   ;;  %s16428_s6 = inlined_call_operand.vmem [shape: f32[32,384], index: 6, kind: output, shape index: {}]  }
   0x1   :  { %v124_v0 = vld [vmem:[%s16422_s3 + $0x78] sm:$0xff]  ;;  %v123_v1 = vld [vmem:[%s16422_s3 + $0x70] sm:$0xff]  ;;  %v122_v2 = vld [vmem:[%s16422_s3 + $0x68] sm:$0xff] }
   0x2   :  { %v9265_v3 = vand.u32 4294901760, %v124_v0  ;;  %v9267_v4 = vand.u32 4294901760, %v123_v1  ;;  %v9269_v5 = vand.u32 4294901760, %v122_v2  ;;  %v121_v6 = vld [vmem:[%s16422_s3 + $0x60] sm:$0xff]  ;;  %v120_v7 = vld [vmem:[%s16422_s3 + $0x58] sm:$0xff]  ;;  %v119_v8 = vld [vmem:[%s16422_s3 + $0x50] sm:$0xff] }
   0x3   :  { %v9280_v9 = vand.u32 4294901760, %v121_v6  ;;  %v9282_v10 = vand.u32 4294901760, %v120_v7  ;;  %v9284_v11 = vand.u32 4294901760, %v119_v8  ;;  %v118_v12 = vld [vmem:[%s16422_s3 + $0x48] sm:$0xff]  ;;  %v117_v13 = vld [vmem:[%s16422_s3 + $0x40] sm:$0xff]  ;;  %v116_v18 = vld [vmem:[%s16422_s3 + $0x38] sm:$0xff] }
   0x4   :  { %127 = vmatpush.msra.mxu0 %v9265_v3  ;;  %v9294_v14 = vsub.f32 %v124_v0, %v9265_v3  ;;  %v9297_v15 = vsub.f32 %v123_v1, %v9267_v4  ;;  %374 = vmatpush.msra.mxu3 %v9265_v3  ;;  %v9301_v16 = vsub.f32 %v122_v2, %v9269_v5  ;;  %v9303_v17 = vand.u32 4294901760, %v118_v12  ;;  %v115_v26 = vld [vmem:[%s16422_s3 + $0x30] sm:$0xff]  ;;  %v114_v34 = vld [vmem:[%s16422_s3 + $0x28] sm:$0xff]  ;;  %v113_v43 = vld [vmem:[%s16422_s3 + $0x20] sm:$0xff] }
   0x5   :  { %v9309_v19 = vsub.f32 %v121_v6, %v9280_v9  ;;  %v9312_v20 = vsub.f32 %v120_v7, %v9282_v10  ;;  %v9314_v21 = vand.u32 4294901760, %v117_v13  ;;  %v9322_v25 = vsub.f32 %v119_v8, %v9284_v11  ;;  %v112_v49 = vld [vmem:[%s16422_s3 + $0x18] sm:$0xff]  ;;  %v9393_v53 = vld [vmem:[%s16423_s1 + $0x2] ss:$0 sm:$0xff]  ;;  %v111_v56 = vld [vmem:[%s16422_s3 + $0x10] sm:$0xff] }
   0x6   :  { %129 = vmatpush.msra.mxu0 %v9267_v4  ;;  %306 = vmatpush.msra.mxu2 %v9294_v14  ;;  %v193_v22 = vand.u32 4294901760, %v9294_v14  ;;  %v199_v23 = vand.u32 4294901760, %v9297_v15  ;;  %v205_v24 = vand.u32 4294901760, %v9301_v16  ;;  %v9329_v28 = vand.u32 4294901760, %v116_v18  ;;  %v23_v57 = vld [vmem:[%s16424_s0] sm:$0xff]  ;;  %v110_v0 = vld [vmem:[%s16422_s3 + $0x8] sm:$0xff] }
   0x7   :  { %376 = vmatpush.msra.mxu3 %v9267_v4  ;;  %v211_v27 = vand.u32 4294901760, %v9309_v19  ;;  %v9332_v29 = vsub.f32 %v118_v12, %v9303_v17  ;;  %v217_v33 = vand.u32 4294901760, %v9312_v20  ;;  %v9350_v35 = vand.u32 4294901760, %v115_v26  ;;  %v9416_v61 = vld [vmem:[%s16423_s1 + $0x3] ss:$0 sm:$0xff] }
   0x8   :  { %131 = vmatpush.msra.mxu0 %v9269_v5  ;;  %309 = vmatpush.msra.mxu2 %v9297_v15  ;;  %v194_v30 = vsub.f32 %v9294_v14, %v193_v22  ;;  %v200_v31 = vsub.f32 %v9297_v15, %v199_v23  ;;  %v206_v32 = vsub.f32 %v9301_v16, %v205_v24  ;;  %v223_v40 = vand.u32 4294901760, %v9322_v25 }
   0x9   :  { %378 = vmatpush.msra.mxu3 %v9269_v5  ;;  %v9353_v36 = vsub.f32 %v117_v13, %v9314_v21  ;;  %v212_v39 = vsub.f32 %v9309_v19, %v211_v27  ;;  %v9362_v41 = vand.u32 4294901760, %v114_v34  ;;  %v229_v42 = vand.u32 4294901760, %v9332_v29  ;;  %v109_v13 = vld [vmem:[%s16422_s3] sm:$0xff] }
   0xa   :  { %133 = vmatpush.msra.mxu0 %v9280_v9  ;;  %v195_v37 = vand.u32 4294901760, %v194_v30  ;;  %312 = vmatpush.msra.mxu2 %v9301_v16  ;;  %v201_v38 = vand.u32 4294901760, %v200_v31  ;;  %v207_v44 = vand.u32 4294901760, %v206_v32  ;;  %v218_v45 = vsub.f32 %v9312_v20, %v217_v33  ;;  %v24_v32 = vld [vmem:[%s16424_s0 + $0x8] sm:$0xff] }
   0xb   :  { %380 = vmatpush.msra.mxu3 %v9280_v9  ;;  %v9373_v46 = vsub.f32 %v116_v18, %v9329_v28  ;;  %v235_v47 = vand.u32 4294901760, %v9353_v36  ;;  %v9379_v48 = vsub.f32 %v115_v26, %v9350_v35  ;;  %v213_v50 = vand.u32 4294901760, %v212_v39 }
   0xc   :  { %135 = vmatpush.msra.mxu0 %v9282_v10  ;;  %196 = vmatpush.msra.mxu1 %v195_v37  ;;  %v224_v51 = vsub.f32 %v9322_v25, %v223_v40  ;;  %v9388_v52 = vand.u32 4294901760, %v113_v43  ;;  %v230_v54 = vsub.f32 %v9332_v29, %v229_v42  ;;  %v9401_v55 = vsub.f32 %v114_v34, %v9362_v41 }
   0xd   :  { %315 = vmatpush.msra.mxu2 %v9309_v19  ;;  %382 = vmatpush.msra.mxu3 %v9282_v10  ;;  %v219_v58 = vand.u32 4294901760, %v218_v45  ;;  %v9410_v59 = vand.u32 4294901760, %v112_v49  ;;  %v241_v60 = vand.u32 4294901760, %v9373_v46  ;;  %v236_v62 = vsub.f32 %v9353_v36, %v235_v47  ;;  %v25_v45 = vld [vmem:[%s16424_s0 + $0x10] sm:$0xff] }
   0xe   :  { %137 = vmatpush.msra.mxu0 %v9284_v11  ;;  %202 = vmatpush.msra.mxu1 %v201_v38  ;;  %v247_v63 = vand.u32 4294901760, %v9379_v48  ;;  %v225_v1 = vand.u32 4294901760, %v224_v51  ;;  %v9428_v2 = vand.u32 4294901760, %v111_v56  ;;  %v9431_v6 = vsub.f32 %v113_v43, %v9388_v52 }
   0xf   :  { %318 = vmatpush.msra.mxu2 %v9312_v20  ;;  %384 = vmatpush.msra.mxu3 %v9284_v11  ;;  %v96_v7 = vmul.f32 %v9393_v53, %v23_v57  ;;  %v231_v8 = vand.u32 4294901760, %v230_v54  ;;  %v16432_v12 = vand.u32 4294901760, %v9401_v55  ;;  %v242_v18 = vsub.f32 %v9373_v46, %v241_v60 }
  0x10   :  { %139 = vmatpush.msra.mxu0 %v9303_v17  ;;  %208 = vmatpush.msra.mxu1 %v207_v44  ;;  %v9444_v26 = vand.u32 4294901760, %v110_v0  ;;  %v9447_v30 = vsub.f32 %v112_v49, %v9410_v59  ;;  %v237_v34 = vand.u32 4294901760, %v236_v62  ;;  %v248_v37 = vsub.f32 %v9379_v48, %v247_v63 }
  0x11   :  { %321 = vmatpush.msra.mxu2 %v9322_v25  ;;  %386 = vmatpush.msra.mxu3 %v9303_v17  ;;  %v101_v31 = vadd.f32 %v9416_v61, %v96_v7  ;;  %v9459_v38 = vand.u32 4294901760, %v109_v13  ;;  %v16430_v39 = vand.u32 4294901760, %v9431_v6  ;;  %v9463_v43 = vsub.f32 %v111_v56, %v9428_v2  ;;  %v26_v7 = vld [vmem:[%s16424_s0 + $0x18] sm:$0xff] }
  0x12   :  { %141 = vmatpush.msra.mxu0 %v9314_v21  ;;  %214 = vmatpush.msra.mxu1 %v213_v50  ;;  %v254_v49 = vsub.f32 %v9401_v55, %v16432_v12  ;;  %v97_v50 = vmul.f32 %v9393_v53, %v24_v32  ;;  %v243_v51 = vand.u32 4294901760, %v242_v18  ;;  %v16429_v56 = vand.u32 4294901760, %v9447_v30 }
  0x13   :  { %324 = vmatpush.msra.mxu2 %v9332_v29  ;;  %388 = vmatpush.msra.mxu3 %v9314_v21  ;;  %v105_v44 = vmax.f32 %v101_v31, 0.0  ;;  %v9479_v57 = vsub.f32 %v110_v0, %v9444_v26  ;;  %v260_v0 = vsub.f32 %v9431_v6, %v16430_v39  ;;  %v16431_v18 = vand.u32 4294901760, %v9463_v43  ;;  %v9212_v29 = vld [vmem:[%s16423_s1 + $0x4] ss:$0 sm:$0xff] }
  0x14   :  { %143 = vmatpush.msra.mxu0 %v9329_v28  ;;  %220 = vmatpush.msra.mxu1 %v219_v58  ;;  %v249_v58 = vand.u32 4294901760, %v248_v37  ;;  %v102_v62 = vadd.f32 %v9416_v61, %v97_v50  ;;  %v9495_v31 = vsub.f32 %v109_v13, %v9459_v38  ;;  %v255_v32 = vand.u32 4294901760, %v254_v49 }
  0x15   :  { %327 = vmatpush.msra.mxu2 %v9353_v36  ;;  %390 = vmatpush.msra.mxu3 %v9329_v28  ;;  %v9475_v54 = vand.u32 4294901760, %v105_v44  ;;  %v277_v50 = vand.u32 4294901760, %v9479_v57  ;;  %v99_v13 = vmul.f32 %v9393_v53, %v26_v7 }
  0x16   :  { %145 = vmatpush.msra.mxu0 %v9350_v35  ;;  %226 = vmatpush.msra.mxu1 %v225_v1  ;;  %v98_v1 = vmul.f32 %v9393_v53, %v25_v45  ;;  %v106_v37 = vmax.f32 %v102_v62, 0.0  ;;  %v283_v39 = vand.u32 4294901760, %v9495_v31 }
  0x17   :  { %330 = vmatpush.msra.mxu2 %v9373_v46  ;;  %392 = vmatpush.msra.mxu3 %v9350_v35 }
  0x18   :  { %147 = vmatpush.msra.mxu0 %v9362_v41  ;;  %232 = vmatpush.msra.mxu1 %v231_v8  ;;  %v159_v8 = vsub.f32 %v105_v44, %v9475_v54  ;;  %v103_v45 = vadd.f32 %v9416_v61, %v98_v1  ;;  %v266_v44 = vsub.f32 %v9447_v30, %v16429_v56  ;;  %v9508_v49 = vand.u32 4294901760, %v106_v37 }
  0x19   :  { %333 = vmatpush.msra.mxu2 %v9379_v48  ;;  %394 = vmatpush.msra.mxu3 %v9362_v41  ;;  %v272_v56 = vsub.f32 %v9463_v43, %v16431_v18  ;;  %v278_v18 = vsub.f32 %v9479_v57, %v277_v50 }
  0x1a   :  { %149 = vmatpush.msra.mxu0 %v9388_v52  ;;  %238 = vmatpush.msra.mxu1 %v237_v34  ;;  %v160_v34 = vand.u32 4294901760, %v159_v8  ;;  %v107_v62 = vmax.f32 %v103_v45, 0.0  ;;  %v167_v53 = vsub.f32 %v106_v37, %v9508_v49  ;;  %v104_v45 = vadd.f32 %v9416_v61, %v99_v13 }
  0x1b   :  { %336 = vmatpush.msra.mxu2 %v9401_v55  ;;  %396 = vmatpush.msra.mxu3 %v9388_v52  ;;  %v273_v37 = vand.u32 4294901760, %v272_v56  ;;  %v284_v61 = vsub.f32 %v9495_v31, %v283_v39 }
  0x1c   :  { %151 = vmatpush.msra.mxu0 %v9410_v59  ;;  %244 = vmatpush.msra.mxu1 %v243_v51  ;;  %v261_v51 = vand.u32 4294901760, %v260_v0  ;;  %v161_v1 = vsub.f32 %v159_v8, %v160_v34  ;;  %v9518_v7 = vand.u32 4294901760, %v107_v62  ;;  %v267_v0 = vand.u32 4294901760, %v266_v44 }
  0x1d   :  { %339 = vmatpush.msra.mxu2 %v9431_v6  ;;  %398 = vmatpush.msra.mxu3 %v9410_v59  ;;  %v168_v12 = vand.u32 4294901760, %v167_v53  ;;  %v108_v13 = vmax.f32 %v104_v45, 0.0  ;;  %v285_v56 = vand.u32 4294901760, %v284_v61 }
  0x1e   :  { %153 = vmatpush.msra.mxu0 %v9428_v2  ;;  %250 = vmatpush.msra.mxu1 %v249_v58  ;;  %v162_v58 = vand.u32 4294901760, %v161_v1  ;;  %v175_v44 = vsub.f32 %v107_v62, %v9518_v7  ;;  %v279_v1 = vand.u32 4294901760, %v278_v18 }
  0x1f   :  { %342 = vmatpush.msra.mxu2 %v9447_v30  ;;  %400 = vmatpush.msra.mxu3 %v9428_v2  ;;  %v182_v62 = vand.u32 4294901760, %v108_v13 }
  0x20   :  { %155 = vmatpush.msra.mxu0 %v9444_v26  ;;  %256 = vmatpush.msra.mxu1 %v255_v32  ;;  %v169_v32 = vsub.f32 %v167_v53, %v168_v12 }
  0x21   :  { %345 = vmatpush.msra.mxu2 %v9463_v43  ;;  %402 = vmatpush.msra.mxu3 %v9444_v26  ;;  %v183_v15 = vsub.f32 %v108_v13, %v182_v62 }
  0x22   :  { %157 = vmatpush.msra.mxu0 %v9459_v38  ;;  %262 = vmatpush.msra.mxu1 %v261_v51  ;;  %v170_v51 = vand.u32 4294901760, %v169_v32 }
  0x23   :  { %163 = vmatmul.f32.vlgmr.msra.gmra.mxu0 %v162_v58  ;;  %348 = vmatpush.msra.mxu2 %v9479_v57  ;;  %v176_v58 = vand.u32 4294901760, %v175_v44  ;;  %v184_v19 = vand.u32 4294901760, %v183_v15 }
  0x24   :  { %268 = vmatpush.msra.mxu1 %v267_v0  ;;  %433 = vmatpush.msrb.mxu0 %v193_v22 }
  0x25   :  { %351 = vmatpush.msra.mxu2 %v9495_v31  ;;  %404 = vmatpush.msra.mxu3 %v9459_v38  ;;  %v177_v14 = vsub.f32 %v175_v44, %v176_v58 }
  0x26   :  { %274 = vmatpush.msra.mxu1 %v273_v37  ;;  %437 = vmatpush.msrb.mxu0 %v199_v23 }
  0x27   :  { %354 = vmatmul.f32.vlgmr.msra.gmra.mxu2 %v159_v8  ;;  %408 = vmatmul.f32.vlgmr.msra.gmra.mxu3 %v160_v34  ;;  %v178_v16 = vand.u32 4294901760, %v177_v14 }
  0x28   :  { %280 = vmatpush.msra.mxu1 %v279_v1  ;;  %441 = vmatpush.msrb.mxu0 %v205_v24 }
  0x2a   :  { %286 = vmatpush.msra.mxu1 %v285_v56  ;;  %445 = vmatpush.msrb.mxu0 %v211_v27 }
  0x2b   :  { %171 = vmatmul.f32.gmra.mxu0 %v170_v51  ;;  %288 = vmatmul.f32.vlgmr.msra.gmra.mxu1 %v9475_v54 }
  0x2c   :  { %449 = vmatpush.msrb.mxu0 %v217_v33  ;;  %512 = vmatpush.msrb.mxu1 %v9265_v3  ;;  %v185_v3 = vsub.f32 %v183_v15, %v184_v19 }
  0x2e   :  { %453 = vmatpush.msrb.mxu0 %v223_v40  ;;  %514 = vmatpush.msrb.mxu1 %v9267_v4  ;;  %v186_v4 = vand.u32 4294901760, %v185_v3 }
  0x2f   :  { %359 = vmatmul.f32.gmra.mxu2 %v167_v53  ;;  %414 = vmatmul.f32.gmra.mxu3 %v168_v12 }
  0x30   :  { %457 = vmatpush.msrb.mxu0 %v229_v42  ;;  %516 = vmatpush.msrb.mxu1 %v9269_v5  ;;  %v16727_v5 = vand.u32 4294901760, %v9401_v55 }
  0x32   :  { %461 = vmatpush.msrb.mxu0 %v235_v47  ;;  %518 = vmatpush.msrb.mxu1 %v9280_v9  ;;  %v16728_v9 = vand.u32 4294901760, %v9431_v6 }
  0x33   :  { %179 = vmatmul.f32.gmra.mxu0 %v178_v16  ;;  %292 = vmatmul.f32.gmra.mxu1 %v9508_v49 }
  0x34   :  { %465 = vmatpush.msrb.mxu0 %v241_v60  ;;  %520 = vmatpush.msrb.mxu1 %v9282_v10  ;;  %v16729_v10 = vand.u32 4294901760, %v9447_v30 }
  0x36   :  { %469 = vmatpush.msrb.mxu0 %v247_v63  ;;  %522 = vmatpush.msrb.mxu1 %v9284_v11  ;;  %v16730_v11 = vand.u32 4294901760, %v9463_v43 }
  0x37   :  { %364 = vmatmul.f32.gmra.mxu2 %v175_v44  ;;  %420 = vmatmul.f32.gmra.mxu3 %v176_v58 }
  0x38   :  { %473 = vmatpush.msrb.mxu0 %v16727_v5  ;;  %524 = vmatpush.msrb.mxu1 %v9303_v17  ;;  %v16433_v5 = vmov 0.0  }
  0x3a   :  { %477 = vmatpush.msrb.mxu0 %v16728_v9  ;;  %526 = vmatpush.msrb.mxu1 %v9314_v21 }
  0x3b   :  { %187 = vmatmul.f32.gmra.mxu0 %v186_v4  ;;  %296 = vmatmul.f32.gmra.mxu1 %v9518_v7 }
  0x3c   :  { %481 = vmatpush.msrb.mxu0 %v16729_v10  ;;  %528 = vmatpush.msrb.mxu1 %v9329_v28 }
  0x3e   :  { %485 = vmatpush.msrb.mxu0 %v16730_v11  ;;  %530 = vmatpush.msrb.mxu1 %v9350_v35 }
  0x3f   :  { %369 = vmatmul.f32.gmra.mxu2 %v183_v15  ;;  %426 = vmatmul.f32.gmra.mxu3 %v184_v19 }
  0x40   :  { %489 = vmatpush.msrb.mxu0 %v277_v50  ;;  %532 = vmatpush.msrb.mxu1 %v9362_v41 }
  0x42   :  { %493 = vmatpush.msrb.mxu0 %v283_v39  ;;  %534 = vmatpush.msrb.mxu1 %v9388_v52 }
  0x43   :  { %300 = vmatmul.f32.gmra.mxu1 %v182_v62  ;;  %495 = vmatmul.f32.vlgmr.msrb.gmra.mxu0 %v9475_v54 }
  0x44   :  { %536 = vmatpush.msrb.mxu1 %v9410_v59 }
  0x46   :  { %538 = vmatpush.msrb.mxu1 %v9428_v2 }
  0x48   :  { %540 = vmatpush.msrb.mxu1 %v9444_v26 }
  0x4a   :  { %542 = vmatpush.msrb.mxu1 %v9459_v38 }
  0x4b   :  { %499 = vmatmul.f32.gmra.mxu0 %v9508_v49  ;;  %544 = vmatmul.f32.vlgmr.msrb.gmra.mxu1 %v9475_v54 }
  0x53   :  { %503 = vmatmul.f32.gmra.mxu0 %v9518_v7  ;;  %548 = vmatmul.f32.gmra.mxu1 %v9508_v49 }
  0x5b   :  { %507 = vmatmul.f32.gmra.mxu0 %v182_v62  ;;  %552 = vmatmul.f32.gmra.mxu1 %v9518_v7 }
  0x63   :  { %556 = vmatmul.f32.gmra.mxu1 %v182_v62  ;;  %v602_v62 = vlaneseq }
  0x65   :  { %v9603_v14 = vshrl.u32 %v602_v62, 7  ;;  %v9605_v15 = vand.u32 127, %v602_v62 }
  0x67   :  { %v9121_v16 = vadd.s32 4294967295, %v9603_v14  ;;  %v621_v19 = vand.u32 15, %v9603_v14  ;;  %v9611_v4 = vadd.s32 8, %v9603_v14 }
  0x69   :  { %vm613_vm0 = vcmp.eq.s32.totalorder %v9605_v15, %v9121_v16  ;;  %vm665_vm1 = vcmp.ne.s32.totalorder %v621_v19, 0  ;;  %v9122_v10 = vadd.s32 4294967295, %v9611_v4 }
  0x6a   :  { %vm669_vm2 = vmand %vm613_vm0, %vm665_vm1 }
  0x6b   :  { %v9614_v9 = vsel %vm669_vm2, 1.0, %v16433_v5  ;;  %vm614_vm5 = vcmp.eq.s32.totalorder %v9605_v15, %v9122_v10 }
  0x6c   :  { %v707_v11 = vsel %vm705_vm3, %v9614_v9, 0 }
  0xa0   :  { %v164_v17 = vpop.f32.mrf.mxu0 }
  0xa1   :  { %v165_v46 = vadd.f32 %v9212_v29, %v164_v17 }
  0xa8   :  { %v172_v20 = vpop.f32.mrf.mxu0  ;;  %v289_v21 = vpop.f32.mrf.mxu1 }
  0xa9   :  { %v173_v36 = vadd.f32 %v9212_v29, %v172_v20  ;;  %v290_v55 = vadd.f32 %v289_v21, %v165_v46  ;;  %v9620_v20 = vadd.s32 16, %v9603_v14 }
  0xaa   :  { %v355_v24 = vpop.f32.mrf.mxu2  ;;  %v409_v28 = vpop.f32.mrf.mxu3 }
  0xab   :  { %v356_v63 = vadd.f32 %v355_v24, %v290_v55 }
  0xad   :  { %v410_v39 = vadd.f32 %v409_v28, %v356_v63 }
  0xb0   :  { %v180_v22 = vpop.f32.mrf.mxu0  ;;  %v293_v23 = vpop.f32.mrf.mxu1 }
  0xb1   :  { %v294_v41 = vadd.f32 %v293_v23, %v173_v36  ;;  %v181_v18 = vadd.f32 %v9212_v29, %v180_v22  ;;  %v9625_v23 = vsub.f32 %v707_v11, %v707_v11  ;;  %v635_v36 = vand.u32 15, %v9620_v20 }
  0xb2   :  { %v360_v40 = vpop.f32.mrf.mxu2  ;;  %v415_v42 = vpop.f32.mrf.mxu3 }
  0xb3   :  { %v361_v52 = vadd.f32 %v360_v40, %v294_v41  ;;  %v9651_v46 = vand.u32 4294901760, %v9625_v23  ;;  %vm667_vm7 = vcmp.ne.s32.totalorder %v635_v36, 0 }
  0xb5   :  { %v416_v60 = vadd.f32 %v415_v42, %v361_v52 }
  0xb8   :  { %v188_v25 = vpop.f32.mrf.mxu0  ;;  %v297_v27 = vpop.f32.mrf.mxu1 }
  0xb9   :  { %v189_v26 = vadd.f32 %v9212_v29, %v188_v25  ;;  %v298_v53 = vadd.f32 %v297_v27, %v181_v18  ;;  %v9699_v18 = vadd.s32 24, %v9603_v14 }
  0xba   :  { %v365_v59 = vpop.f32.mrf.mxu2  ;;  %v421_v6 = vpop.f32.mrf.mxu3 }
  0xbb   :  { %v366_v37 = vadd.f32 %v365_v59, %v298_v53 }
  0xbd   :  { %v422_v13 = vadd.f32 %v421_v6, %v366_v37 }
  0xc0   :  { %v301_v33 = vpop.f32.mrf.mxu1  ;;  %v496_v35 = vpop.f32.mrf.mxu0 }
  0xc1   :  { %v302_v54 = vadd.f32 %v301_v33, %v189_v26  ;;  %v497_v57 = vadd.f32 %v496_v35, %v410_v39  ;;  %v9639_v33 = vsel %vm614_vm5, 1.0, %v16433_v5  ;;  %v9123_v35 = vadd.s32 4294967295, %v9620_v20 }
  0xc2   :  { %v370_v8 = vpop.f32.mrf.mxu2  ;;  %v427_v49 = vpop.f32.mrf.mxu3  ;;  %v710_v59 = vsel %vm705_vm3, %v9639_v33, 0  ;;  %v741_v26 = vsub.f32 %v9625_v23, %v9651_v46 }
  0xc3   :  { %v371_v50 = vadd.f32 %v370_v8, %v302_v54  ;;  %vm615_vm6 = vcmp.eq.s32.totalorder %v9605_v15, %v9123_v35  ;;  %v9696_v8 = vsub.f32 %v710_v59, %v710_v59 }
  0xc4   :  { %vm671_vm8 = vmand %vm615_vm6, %vm667_vm7 }
  0xc5   :  { %v428_v0 = vadd.f32 %v427_v49, %v371_v50  ;;  %v9710_v50 = vand.u32 4294901760, %v741_v26 }
  0xc8   :  { %v500_v47 = vpop.f32.mrf.mxu0  ;;  %v545_v48 = vpop.f32.mrf.mxu1 }
  0xc9   :  { %v501_v2 = vadd.f32 %v500_v47, %v416_v60  ;;  %v546_v31 = vadd.f32 %v545_v48, %v497_v57 }
  0xcb   :  { %v9598_v7 = vmax.f32 %v546_v31, 0.0 }
  0xcd   :  { %v9660_v52 = vand.u32 4294901760, %v9598_v7 }
  0xcf   :  { %16739 = vst [vmem:[#allocation10_spill] sm:$0xff] %v9660_v52  ;;  %v9691_v57 = vsub.f32 %v9598_v7, %v9660_v52 }
  0xd0   :  { %v549_v12 = vpop.f32.mrf.mxu1  ;;  %v504_v38 = vpop.f32.mrf.mxu0 }
  0xd1   :  { %v550_v30 = vadd.f32 %v549_v12, %v501_v2  ;;  %v505_v56 = vadd.f32 %v504_v38, %v422_v13  ;;  %16747 = vst [vmem:[#allocation18_spill] sm:$0xff] %v9691_v57 }
  0xd3   :  { %v9595_v43 = vmax.f32 %v550_v30, 0.0 }
  0xd5   :  { %570 = vrot.lane.b32.xlu1 %v9595_v43, %s9218_s18  ;;  %v9644_v40 = vand.u32 4294901760, %v9595_v43 }
  0xd7   :  { %16735 = vst [vmem:[#allocation6_spill] sm:$0xff] %v9644_v40  ;;  %v9674_v6 = vsub.f32 %v9595_v43, %v9644_v40 }
  0xd8   :  { %v553_v34 = vpop.f32.mrf.mxu1  ;;  %v508_v45 = vpop.f32.mrf.mxu0 }
  0xd9   :  { %v509_v61 = vadd.f32 %v508_v45, %v428_v0  ;;  %v554_v51 = vadd.f32 %v553_v34, %v505_v56  ;;  %16742 = vst [vmem:[#allocation13_spill] sm:$0xff] %v9674_v6  ;;  %v9715_v53 = vand.u32 4294901760, %v9674_v6  ;;  %v9726_v0 = vsel %vm671_vm8, 1.0, %v16433_v5 }
  0xdb   :  { %v562_v58 = vmax.f32 %v554_v51, 0.0  ;;  %16751 = vst [vmem:[#allocation22_spill] sm:$0xff] %v9715_v53  ;;  %v1076_v51 = vsub.f32 %v9674_v6, %v9715_v53 }
  0xdd   :  { %568 = vrot.lane.b32.xlu1 %v9598_v7, %s9218_s18  ;;  %v9630_v27 = vand.u32 4294901760, %v562_v58 }
  0xdf   :  { %16733 = vst [vmem:[#allocation4_spill] sm:$0xff] %v9630_v27  ;;  %v9663_v55 = vsub.f32 %v562_v58, %v9630_v27 }
  0xe0   :  { %v557_v32 = vpop.f32.mrf.mxu1 }
  0xe1   :  { %v558_v44 = vadd.f32 %v557_v32, %v509_v61  ;;  %16740 = vst [vmem:[#allocation11_spill] sm:$0xff] %v9663_v55  ;;  %v9732_v61 = vand.u32 4294901760, %v9691_v57  ;;  %v9735_v32 = vand.u32 4294901760, %v9696_v8 }
  0xe3   :  { %v563_v1 = vmax.f32 %v558_v44, 0.0  ;;  %16754 = vst [vmem:[#allocation25_spill] sm:$0xff] %v9732_v61  ;;  %v9124_v44 = vadd.s32 4294967295, %v9699_v18  ;;  %v749_v10 = vsub.f32 %v9696_v8, %v9735_v32 }
  0xe5   :  { %586 = vrot.lane.b32.xlu2 %v563_v1, %s9219_s19  ;;  %574 = vrot.lane.b32.xlu0 %v563_v1, %s9218_s18  ;;  %v9622_v21 = vand.u32 4294901760, %v563_v1  ;;  %vm616_vm9 = vcmp.eq.s32.totalorder %v9605_v15, %v9124_v44  ;;  %v9789_v36 = vand.u32 4294901760, %v749_v10 }
  0xe6   :  { %580 = vrot.lane.b32.xlu1 %v9598_v7, %s9219_s19 }
  0xe7   :  { %16731 = vst [vmem:[#allocation2_spill] sm:$0xff] %v9622_v21  ;;  %v9647_v41 = vsub.f32 %v563_v1, %v9622_v21 }
  0xe9   :  { %16736 = vst [vmem:[#allocation7_spill] sm:$0xff] %v9647_v41  ;;  %v9680_v30 = vand.u32 4294901760, %v9647_v41 }
  0xeb   :  { %16743 = vst [vmem:[#allocation14_spill] sm:$0xff] %v9680_v30  ;;  %v1064_v49 = vsub.f32 %v9647_v41, %v9680_v30 }
  0xed   :  { %584 = vrot.lane.b32.xlu2 %v562_v58, %s9219_s19  ;;  %572 = vrot.lane.b32.xlu0 %v562_v58, %s9218_s18  ;;  %v9747_v56 = vand.u32 4294901760, %v1064_v49  ;;  %v713_v58 = vsel %vm705_vm3, %v9726_v0, 0 }
  0xef   :  { %16756 = vst [vmem:[#allocation27_spill] sm:$0xff] %v9747_v56 }
  0xf5   :  { %582 = vrot.lane.b32.xlu0 %v9595_v43, %s9219_s19  ;;  %v9694_v43 = vand.u32 4294901760, %v9663_v55 }
  0xf7   :  { %16748 = vst [vmem:[#allocation19_spill] sm:$0xff] %v9694_v43  ;;  %v1070_v37 = vsub.f32 %v9663_v55, %v9694_v43 }
  0xf9   :  { %v9761_v19 = vand.u32 4294901760, %v1070_v37 }
  0xfb   :  { %16758 = vst [vmem:[#allocation29_spill] sm:$0xff] %v9761_v19 }
 0x13f   :  { %v587_v26 = vpop.permute.xlu2 %586 }
 0x147   :  { %v571_v3 = vpop.permute.xlu1 %570 }
 0x148   :  { %v594_v28 = vsel %vm592_vm4, 0.0, %v571_v3  ;;  %v1082_v3 = vsub.f32 %v9691_v57, %v9732_v61 }
 0x149   :  { %v9653_v47 = vand.u32 4294901760, %v594_v28 }
 0x14a   :  { %v9787_v35 = vand.u32 4294901760, %v1082_v3 }
 0x14b   :  { %16737 = vst [vmem:[#allocation8_spill] sm:$0xff] %v9653_v47  ;;  %v9683_v38 = vsub.f32 %v594_v28, %v9653_v47  ;;  %v9783_v28 = vsel %vm616_vm9, 1.0, %v16433_v5 }
 0x14c   :  { %16761 = vst [vmem:[#allocation32_spill] sm:$0xff] %v9787_v35 }
 0x14d   :  { %16744 = vst [vmem:[#allocation15_spill] sm:$0xff] %v9683_v38  ;;  %v9723_v45 = vand.u32 4294901760, %v9683_v38 }
 0x14f   :  { %v569_v24 = vpop.permute.xlu1 %568  ;;  %16753 = vst [vmem:[#allocation24_spill] sm:$0xff] %v9723_v45  ;;  %v798_v16 = vsub.f32 %v9683_v38, %v9723_v45 }
 0x150   :  { %v593_v42 = vsel %vm592_vm4, 0.0, %v569_v24 }
 0x151   :  { %v9667_v60 = vand.u32 4294901760, %v593_v42  ;;  %v9780_v24 = vand.u32 4294901760, %v798_v16 }
 0x153   :  { %16741 = vst [vmem:[#allocation12_spill] sm:$0xff] %v9667_v60  ;;  %v9702_v31 = vsub.f32 %v593_v42, %v9667_v60 }
 0x154   :  { %16760 = vst [vmem:[#allocation31_spill] sm:$0xff] %v9780_v24 }
 0x155   :  { %16749 = vst [vmem:[#allocation20_spill] sm:$0xff] %v9702_v31  ;;  %v9743_v1 = vand.u32 4294901760, %v9702_v31 }
 0x157   :  { %v575_v17 = vpop.permute.xlu0 %574  ;;  %16755 = vst [vmem:[#allocation26_spill] sm:$0xff] %v9743_v1  ;;  %v804_v11 = vsub.f32 %v9702_v31, %v9743_v1 }
 0x158   :  { %v596_v22 = vsel %vm592_vm4, 0.0, %v575_v17  ;;  %v9772_v17 = vsub.f32 %v713_v58, %v713_v58  ;;  %v601_v58 = vsel %vm597_vm10, %v587_v26, 0.0 }
 0x159   :  { %v9628_v25 = vand.u32 4294901760, %v596_v22  ;;  %v9793_v42 = vand.u32 4294901760, %v804_v11  ;;  %v9850_v10 = vand.u32 4294901760, %v601_v58  ;;  %v581_v11 = vpop.permute.xlu1 %580 }
 0x15a   :  { %v9796_v59 = vand.u32 4294901760, %v9772_v17  ;;  %v598_v26 = vsel %vm597_vm10, %v581_v11, 0.0 }
 0x15b   :  { %16732 = vst [vmem:[#allocation3_spill] sm:$0xff] %v9628_v25  ;;  %v9634_v29 = vsub.f32 %v596_v22, %v9628_v25  ;;  %731 = vmatpush.msrb.mxu2 %v9628_v25  ;;  %882 = vmatpush.msra.mxu1 %v9628_v25  ;;  %v9776_v22 = vand.u32 4294901760, %v1076_v51  ;;  %v585_v51 = vpop.permute.xlu2 %584 }
 0x15c   :  { %16762 = vst [vmem:[#allocation33_spill] sm:$0xff] %v9793_v42  ;;  %v600_v3 = vsel %vm597_vm10, %v585_v51, 0.0 }
 0x15d   :  { %16734 = vst [vmem:[#allocation5_spill] sm:$0xff] %v9634_v29  ;;  %838 = vmatpush.msra.mxu0 %v9634_v29  ;;  %v9657_v48 = vand.u32 4294901760, %v9634_v29 }
 0x15e   :  { %16759 = vst [vmem:[#allocation30_spill] sm:$0xff] %v9776_v22 }
 0x15f   :  { %16738 = vst [vmem:[#allocation9_spill] sm:$0xff] %v9657_v48  ;;  %v573_v63 = vpop.permute.xlu0 %572  ;;  %v786_v2 = vsub.f32 %v9634_v29, %v9657_v48 }
 0x160   :  { %v595_v12 = vsel %vm592_vm4, 0.0, %v573_v63  ;;  %v716_v63 = vsel %vm705_vm3, %v9783_v28, 0  ;;  %16763 = vst [vmem:[#allocation34_spill] sm:$0xff] %v9850_v10 }
 0x161   :  { %v9685_v39 = vand.u32 4294901760, %v595_v12  ;;  %v9687_v54 = vand.u32 4294901760, %v786_v2  ;;  %v757_v2 = vsub.f32 %v9772_v17, %v9796_v59 }
 0x163   :  { %16745 = vst [vmem:[#allocation16_spill] sm:$0xff] %v9685_v39  ;;  %v9705_v34 = vsub.f32 %v595_v12, %v9685_v39  ;;  %733 = vmatpush.msrb.mxu2 %v9685_v39  ;;  %788 = vmatpush.msrb.mxu3 %v9687_v54  ;;  %v9811_v12 = vsub.f32 %v716_v63, %v716_v63  ;;  %v9821_v49 = vand.u32 4294901760, %v757_v2  ;;  %v9856_v2 = vand.u32 4294901760, %v600_v3 }
 0x164   :  { %16746 = vst [vmem:[#allocation17_spill] sm:$0xff] %v9687_v54  ;;  %884 = vmatpush.msra.mxu1 %v9685_v39 }
 0x165   :  { %16750 = vst [vmem:[#allocation21_spill] sm:$0xff] %v9705_v34  ;;  %735 = vmatpush.msrb.mxu2 %v9653_v47  ;;  %841 = vmatpush.msra.mxu0 %v9705_v34  ;;  %v9720_v7 = vand.u32 4294901760, %v9705_v34  ;;  %v9824_v37 = vand.u32 4294901760, %v9811_v12  ;;  %v9866_v5 = vsub.f32 %v600_v3, %v9856_v2 }
 0x166   :  { %886 = vmatpush.msra.mxu1 %v9653_v47  ;;  %16764 = vst [vmem:[#allocation35_spill] sm:$0xff] %v9856_v2 }
 0x167   :  { %16752 = vst [vmem:[#allocation23_spill] sm:$0xff] %v9720_v7  ;;  %737 = vmatpush.msrb.mxu2 %v9667_v60  ;;  %844 = vmatpush.msra.mxu0 %v9683_v38  ;;  %v792_v13 = vsub.f32 %v9705_v34, %v9720_v7  ;;  %v765_v44 = vsub.f32 %v9811_v12, %v9824_v37  ;;  %v583_v16 = vpop.permute.xlu0 %582  ;;  %v9889_v3 = vand.u32 4294901760, %v9866_v5 }
 0x168   :  { %888 = vmatpush.msra.mxu1 %v9667_v60  ;;  %743 = vmatmul.f32.vlgmr.msrb.gmra.mxu2 %v9710_v50  ;;  %v599_v63 = vsel %vm597_vm10, %v583_v16, 0.0  ;;  %16767 = vst [vmem:[#allocation38_spill] sm:$0xff] %v9866_v5  ;;  %v9868_v16 = vand.u32 4294901760, %v598_v26 }
 0x169   :  { %892 = vmatmul.f32.vlgmr.msra.gmra.mxu1 %v9651_v46  ;;  %929 = vmatpush.msra.mxu2 %v9657_v48  ;;  %v9755_v62 = vand.u32 4294901760, %v792_v13  ;;  %v9843_v13 = vand.u32 4294901760, %v765_v44  ;;  %v9861_v44 = vsub.f32 %v601_v58, %v9850_v10  ;;  %v9863_v51 = vand.u32 4294901760, %v599_v63  ;;  %16772 = vst [vmem:[#allocation43_spill] sm:$0xff] %v9889_v3 }
 0x16a   :  { %1066 = vmatpush.msrb.mxu1 %v9747_v56  ;;  %847 = vmatpush.msra.mxu0 %v9702_v31  ;;  %16768 = vst [vmem:[#allocation39_spill] sm:$0xff] %v9868_v16  ;;  %v9884_v58 = vsub.f32 %v598_v26, %v9868_v16  ;;  %v1348_v26 = vsub.f32 %v9866_v5, %v9889_v3 }
 0x16b   :  { %16757 = vst [vmem:[#allocation28_spill] sm:$0xff] %v9755_v62  ;;  %850 = vmatmul.f32.vlgmr.msra.gmra.mxu0 %v9625_v23  ;;  %933 = vmatpush.msra.mxu2 %v9720_v7 }
 0x16c   :  { %1009 = vmatpush.msrb.mxu0 %v9622_v21  ;;  %1072 = vmatpush.msrb.mxu1 %v9761_v19  ;;  %16765 = vst [vmem:[#allocation36_spill] sm:$0xff] %v9861_v44 }
 0x16d   :  { %794 = vmatpush.msrb.mxu3 %v9755_v62  ;;  %937 = vmatpush.msra.mxu2 %v9723_v45  ;;  %16766 = vst [vmem:[#allocation37_spill] sm:$0xff] %v9863_v51 }
 0x16e   :  { %1011 = vmatpush.msrb.mxu0 %v9630_v27  ;;  %1078 = vmatpush.msrb.mxu1 %v9776_v22  ;;  %16771 = vst [vmem:[#allocation42_spill] sm:$0xff] %v9884_v58 }
 0x16f   :  { %800 = vmatpush.msrb.mxu3 %v9780_v24  ;;  %941 = vmatpush.msra.mxu2 %v9743_v1 }
 0x170   :  { %1013 = vmatpush.msrb.mxu0 %v9644_v40  ;;  %1084 = vmatpush.msrb.mxu1 %v9787_v35 }
 0x171   :  { %806 = vmatpush.msrb.mxu3 %v9793_v42  ;;  %1116 = vmatpush.msrb.mxu2 %v9647_v41 }
 0x172   :  { %1250 = vmatpush.msra.mxu1 %v9622_v21  ;;  %751 = vmatmul.f32.gmra.mxu2 %v9789_v36 }
 0x173   :  { %9133 = vmatmul.msk.f32.vlgmr.msrb.gmra.mxu3 %vm705_vm3, %v9614_v9  ;;  %898 = vmatmul.f32.gmra.mxu1 %v9735_v32 }
 0x174   :  { %972 = vmatpush.msra.mxu3 %v9628_v25  ;;  %1015 = vmatpush.msrb.mxu0 %v9660_v52 }
 0x175   :  { %1119 = vmatpush.msrb.mxu2 %v9663_v55  ;;  %1252 = vmatpush.msra.mxu1 %v9630_v27 }
 0x176   :  { %1207 = vmatpush.msra.mxu0 %v9680_v30  ;;  %974 = vmatpush.msra.mxu3 %v9685_v39 }
 0x177   :  { %855 = vmatmul.f32.gmra.mxu0 %v9696_v8  ;;  %1122 = vmatpush.msrb.mxu2 %v9674_v6 }
 0x178   :  { %1211 = vmatpush.msra.mxu0 %v9694_v43  ;;  %1254 = vmatpush.msra.mxu1 %v9644_v40  ;;  %v9905_v43 = vand.u32 4294901760, %v9884_v58 }
 0x179   :  { %976 = vmatpush.msra.mxu3 %v9653_v47  ;;  %1125 = vmatpush.msrb.mxu2 %v9691_v57 }
 0x17a   :  { %1215 = vmatpush.msra.mxu0 %v9715_v53  ;;  %1256 = vmatpush.msra.mxu1 %v9660_v52  ;;  %v9876_v53 = vsub.f32 %v599_v63, %v9863_v51  ;;  %16774 = vst [vmem:[#allocation45_spill] sm:$0xff] %v9905_v43  ;;  %v1360_v35 = vsub.f32 %v9884_v58, %v9905_v43 }
 0x17b   :  { %978 = vmatpush.msra.mxu3 %v9667_v60  ;;  %759 = vmatmul.f32.gmra.mxu2 %v9821_v49 }
 0x17c   :  { %1219 = vmatpush.msra.mxu0 %v9732_v61  ;;  %9134 = vmatmul.msk.f32.gmra.mxu3 %vm705_vm3, %v9639_v33  ;;  %v9873_v61 = vand.u32 4294901760, %v9861_v44  ;;  %16770 = vst [vmem:[#allocation41_spill] sm:$0xff] %v9876_v53  ;;  %v9897_v63 = vand.u32 4294901760, %v9876_v53 }
 0x17d   :  { %1160 = vmatpush.msrb.mxu3 %v9622_v21  ;;  %904 = vmatmul.f32.gmra.mxu1 %v9796_v59 }
 0x17e   :  { %16769 = vst [vmem:[#allocation40_spill] sm:$0xff] %v9873_v61  ;;  %v1342_v11 = vsub.f32 %v9861_v44, %v9873_v61  ;;  %v1354_v30 = vsub.f32 %v9876_v53, %v9897_v63 }
 0x17f   :  { %1162 = vmatpush.msrb.mxu3 %v9630_v27  ;;  %860 = vmatmul.f32.gmra.mxu0 %v9772_v17  ;;  %16773 = vst [vmem:[#allocation44_spill] sm:$0xff] %v9897_v63 }
 0x181   :  { %1164 = vmatpush.msrb.mxu3 %v9644_v40 }
 0x183   :  { %1166 = vmatpush.msrb.mxu3 %v9660_v52  ;;  %767 = vmatmul.f32.gmra.mxu2 %v9843_v13 }
 0x184   :  { %9135 = vmatmul.msk.f32.gmra.mxu3 %vm705_vm3, %v9726_v0 }
 0x185   :  { %910 = vmatmul.f32.gmra.mxu1 %v9824_v37 }
 0x187   :  { %865 = vmatmul.f32.gmra.mxu0 %v9811_v12 }
 0x18b   :  { %9137 = vmatmul.msk.f32.vlgmr.msra.gmra.mxu2 %vm705_vm3, %v9614_v9 }
 0x18c   :  { %1287 = vmatpush.msra.mxu2 %v9850_v10  ;;  %9136 = vmatmul.msk.f32.gmra.mxu3 %vm705_vm3, %v9783_v28 }
 0x18d   :  { %9145 = vmatmul.msk.f32.vlgmr.msrb.gmra.mxu1 %vm705_vm3, %v9614_v9 }
 0x18e   :  { %1438 = vmatpush.msrb.mxu1 %v9850_v10  ;;  %1289 = vmatpush.msra.mxu2 %v9856_v2 }
 0x18f   :  { %1021 = vmatmul.f32.vlgmr.msrb.gmra.mxu0 %v9710_v50 }
 0x190   :  { %1394 = vmatpush.msrb.mxu0 %v9861_v44  ;;  %1440 = vmatpush.msrb.mxu1 %v9856_v2  ;;  %v9912_v44 = vand.u32 4294901760, %v1342_v11  ;;  %v9928_v11 = vand.u32 4294901760, %v1354_v30  ;;  %v16779_v30 = vmov 0.0  }
 0x191   :  { %1291 = vmatpush.msra.mxu2 %v9863_v51 }
 0x192   :  { %1397 = vmatpush.msrb.mxu0 %v9866_v5  ;;  %1442 = vmatpush.msrb.mxu1 %v9863_v51  ;;  %16775 = vst [vmem:[#allocation46_spill] sm:$0xff] %v9912_v44  ;;  %v9922_v5 = vand.u32 4294901760, %v1348_v26 }
 0x193   :  { %1293 = vmatpush.msra.mxu2 %v9868_v16  ;;  %16777 = vst [vmem:[#allocation48_spill] sm:$0xff] %v9928_v11 }
 0x194   :  { %1400 = vmatpush.msrb.mxu0 %v9876_v53  ;;  %1444 = vmatpush.msrb.mxu1 %v9868_v16  ;;  %16776 = vst [vmem:[#allocation47_spill] sm:$0xff] %v9922_v5  ;;  %v9931_v53 = vand.u32 4294901760, %v1360_v35 }
 0x195   :  { %9138 = vmatmul.msk.f32.gmra.mxu2 %vm705_vm3, %v9639_v33  ;;  %9141 = vmatmul.msk.f32.vlgmr.msra.gmra.mxu3 %vm705_vm3, %v9614_v9 }
 0x196   :  { %9146 = vmatmul.msk.f32.gmra.mxu1 %vm705_vm3, %v9639_v33  ;;  %1344 = vmatpush.msra.mxu3 %v9912_v44  ;;  %16778 = vst [vmem:[#allocation49_spill] sm:$0xff] %v9931_v53 }
 0x197   :  { %1403 = vmatpush.msrb.mxu0 %v9884_v58 }
 0x198   :  { %1029 = vmatmul.f32.gmra.mxu0 %v9789_v36  ;;  %1350 = vmatpush.msra.mxu3 %v9922_v5 }
 0x19a   :  { %1356 = vmatpush.msra.mxu3 %v9928_v11 }
 0x19c   :  { %1362 = vmatpush.msra.mxu3 %v9931_v53 }
 0x19d   :  { %9139 = vmatmul.msk.f32.gmra.mxu2 %vm705_vm3, %v9726_v0  ;;  %9142 = vmatmul.msk.f32.gmra.mxu3 %vm705_vm3, %v9639_v33 }
 0x19e   :  { %9147 = vmatmul.msk.f32.gmra.mxu1 %vm705_vm3, %v9726_v0 }
 0x1a0   :  { %1037 = vmatmul.f32.gmra.mxu0 %v9821_v49 }
 0x1a5   :  { %9140 = vmatmul.msk.f32.gmra.mxu2 %vm705_vm3, %v9783_v28  ;;  %9143 = vmatmul.msk.f32.gmra.mxu3 %vm705_vm3, %v9726_v0 }
 0x1a6   :  { %9148 = vmatmul.msk.f32.gmra.mxu1 %vm705_vm3, %v9783_v28 }
 0x1a8   :  { %1045 = vmatmul.f32.gmra.mxu0 %v9843_v13 }
 0x1ad   :  { %1128 = vmatmul.f32.vlgmr.msrb.gmra.mxu2 %v9625_v23  ;;  %9144 = vmatmul.msk.f32.gmra.mxu3 %vm705_vm3, %v9783_v28 }
 0x1ae   :  { %9153 = vmatmul.msk.f32.vlgmr.msra.gmra.mxu1 %vm705_vm3, %v9614_v9  ;;  %1485 = vmatpush.msrb.mxu2 %v9873_v61 }
 0x1af   :  { %1634 = vmatpush.msra.mxu1 %v9687_v54  ;;  %v2413_v54 = vld [vmem:[%s16425_s4 + $0x78] sm:$0xff] }
 0x1b0   :  { %9149 = vmatmul.msk.f32.vlgmr.msra.gmra.mxu0 %vm705_vm3, %v9614_v9  ;;  %1489 = vmatpush.msrb.mxu2 %v9889_v3 }
 0x1b1   :  { %1577 = vmatpush.msra.mxu0 %v9628_v25  ;;  %1640 = vmatpush.msra.mxu1 %v9755_v62  ;;  %v2412_v62 = vld [vmem:[%s16425_s4 + $0x70] sm:$0xff] }
 0x1b2   :  { %1493 = vmatpush.msrb.mxu2 %v9897_v63 }
 0x1b3   :  { %1579 = vmatpush.msra.mxu0 %v9685_v39  ;;  %1646 = vmatpush.msra.mxu1 %v9780_v24  ;;  %v10304_v24 = vand.u32 4294901760, %v2412_v62 }
 0x1b4   :  { %1497 = vmatpush.msrb.mxu2 %v9905_v43 }
 0x1b5   :  { %1581 = vmatpush.msra.mxu0 %v9653_v47  ;;  %1652 = vmatpush.msra.mxu1 %v9793_v42  ;;  %v2411_v42 = vld [vmem:[%s16425_s4 + $0x68] sm:$0xff] }
 0x1b6   :  { %1133 = vmatmul.f32.gmra.mxu2 %v9696_v8  ;;  %1170 = vmatmul.f32.vlgmr.msrb.gmra.mxu3 %v9651_v46 }
 0x1b7   :  { %9154 = vmatmul.msk.f32.gmra.mxu1 %vm705_vm3, %v9639_v33  ;;  %1528 = vmatpush.msrb.mxu3 %v9850_v10 }
 0x1b8   :  { %1583 = vmatpush.msra.mxu0 %v9667_v60 }
 0x1b9   :  { %9150 = vmatmul.msk.f32.gmra.mxu0 %vm705_vm3, %v9639_v33  ;;  %1530 = vmatpush.msrb.mxu3 %v9856_v2 }
 0x1bb   :  { %1532 = vmatpush.msrb.mxu3 %v9863_v51 }
 0x1bd   :  { %1534 = vmatpush.msrb.mxu3 %v9868_v16 }
 0x1be   :  { %1138 = vmatmul.f32.gmra.mxu2 %v9772_v17  ;;  %1176 = vmatmul.f32.gmra.mxu3 %v9735_v32 }
 0x1bf   :  { %9155 = vmatmul.msk.f32.gmra.mxu1 %vm705_vm3, %v9726_v0 }
 0x1c1   :  { %9151 = vmatmul.msk.f32.gmra.mxu0 %vm705_vm3, %v9726_v0 }
 0x1c6   :  { %1143 = vmatmul.f32.gmra.mxu2 %v9811_v12  ;;  %1182 = vmatmul.f32.gmra.mxu3 %v9796_v59 }
 0x1c7   :  { %9156 = vmatmul.msk.f32.gmra.mxu1 %vm705_vm3, %v9783_v28 }
 0x1c9   :  { %9152 = vmatmul.msk.f32.gmra.mxu0 %vm705_vm3, %v9783_v28 }
 0x1ce   :  { %1299 = vmatmul.f32.vlgmr.msra.gmra.mxu2 %v9710_v50  ;;  %1188 = vmatmul.f32.gmra.mxu3 %v9824_v37 }
 0x1cf   :  { %1448 = vmatmul.f32.vlgmr.msrb.gmra.mxu1 %v9651_v46  ;;  %1684 = vmatpush.msra.mxu2 %v9634_v29  ;;  %v681_v46 = vadd.s32 1, %v9603_v14  ;;  %v628_v14 = vand.u32 15, %v9611_v4 }
 0x1d0   :  { %1818 = vmatpush.msrb.mxu1 %v9628_v25 }
 0x1d1   :  { %1406 = vmatmul.f32.vlgmr.msrb.gmra.mxu0 %v9625_v23  ;;  %1687 = vmatpush.msra.mxu2 %v9705_v34  ;;  %vm685_vm11 = vcmp.eq.s32.totalorder %v9605_v15, %v681_v46  ;;  %v682_v23 = vadd.s32 1, %v9611_v4  ;;  %vm690_vm13 = vcmp.ne.s32.totalorder %v628_v14, 15  ;;  %v684_v46 = vadd.s32 1, %v9699_v18 }
 0x1d2   :  { %1775 = vmatpush.msrb.mxu0 %v9657_v48  ;;  %1820 = vmatpush.msrb.mxu1 %v9685_v39  ;;  %v10017_v50 = vsel %vm685_vm11, 1.0, %v16779_v30 }
 0x1d3   :  { %1690 = vmatpush.msra.mxu2 %v9683_v38  ;;  %vm686_vm12 = vcmp.eq.s32.totalorder %v9605_v15, %v682_v23  ;;  %vm688_vm0 = vcmp.eq.s32.totalorder %v9605_v15, %v684_v46 }
 0x1d4   :  { %1779 = vmatpush.msrb.mxu0 %v9720_v7  ;;  %1822 = vmatpush.msrb.mxu1 %v9653_v47  ;;  %vm694_vm14 = vmand %vm686_vm12, %vm690_vm13 }
 0x1d5   :  { %1693 = vmatpush.msra.mxu2 %v9702_v31 }
 0x1d6   :  { %1783 = vmatpush.msrb.mxu0 %v9723_v45  ;;  %1824 = vmatpush.msrb.mxu1 %v9667_v60 }
 0x1d7   :  { %1307 = vmatmul.f32.gmra.mxu2 %v9789_v36  ;;  %9157 = vmatmul.msk.f32.vlgmr.msra.gmra.mxu3 %vm705_vm3, %v9614_v9  ;;  %v683_v36 = vadd.s32 1, %v9620_v20 }
 0x1d8   :  { %1454 = vmatmul.f32.gmra.mxu1 %v9735_v32  ;;  %1728 = vmatpush.msra.mxu3 %v9628_v25  ;;  %v1553_v32 = vsel %vm705_vm3, %v10017_v50, 0  ;;  %v10295_v25 = vand.u32 4294901760, %v2413_v54 }
 0x1d9   :  { %1787 = vmatpush.msrb.mxu0 %v9743_v1  ;;  %v10029_v4 = vsub.f32 %v1553_v32, %v1553_v32  ;;  %vm687_vm15 = vcmp.eq.s32.totalorder %v9605_v15, %v683_v36  ;;  %v16802_v1 = vld [vmem:[#allocation41_spill] sm:$0xff] }
 0x1da   :  { %1411 = vmatmul.f32.gmra.mxu0 %v9696_v8  ;;  %1730 = vmatpush.msra.mxu3 %v9685_v39  ;;  %v10032_v8 = vsel %vm694_vm14, 1.0, %v16779_v30 }
 0x1db   :  { %v10035_v35 = vand.u32 4294901760, %v10029_v4 }
 0x1dc   :  { %1732 = vmatpush.msra.mxu3 %v9653_v47  ;;  %v10307_v47 = vsub.f32 %v2413_v54, %v10295_v25 }
 0x1dd   :  { %v1587_v26 = vsub.f32 %v10029_v4, %v10035_v35 }
 0x1de   :  { %1734 = vmatpush.msra.mxu3 %v9667_v60  ;;  %v16503_v54 = vand.u32 4294901760, %v10307_v47 }
 0x1df   :  { %1315 = vmatmul.f32.gmra.mxu2 %v9821_v49  ;;  %9158 = vmatmul.msk.f32.gmra.mxu3 %vm705_vm3, %v9639_v33  ;;  %v10057_v23 = vand.u32 4294901760, %v1587_v26 }
 0x1e0   :  { %1460 = vmatmul.f32.gmra.mxu1 %v9796_v59 }
 0x1e2   :  { %1416 = vmatmul.f32.gmra.mxu0 %v9772_v17  ;;  %v1556_v17 = vsel %vm705_vm3, %v10032_v8, 0 }
 0x1e3   :  { %v10050_v20 = vsub.f32 %v1556_v17, %v1556_v17 }
 0x1e6   :  { %v10039_v49 = vpop.f32.mrf.mxu1 }
 0x1e7   :  { %1323 = vmatmul.f32.gmra.mxu2 %v9843_v13  ;;  %9159 = vmatmul.msk.f32.gmra.mxu3 %vm705_vm3, %v9726_v0  ;;  %v642_v13 = vand.u32 15, %v9699_v18 }
 0x1e8   :  { %1466 = vmatmul.f32.gmra.mxu1 %v9824_v37  ;;  %v851_v59 = vpop.f32.mrf.mxu0  ;;  %v10055_v37 = vsel %vm687_vm15, 1.0, %v16779_v30 }
 0x1e9   :  { %vm692_vm1 = vcmp.ne.s32.totalorder %v642_v13, 15  ;;  %v1559_v18 = vsel %vm705_vm3, %v10055_v37, 0 }
 0x1ea   :  { %1421 = vmatmul.f32.gmra.mxu0 %v9811_v12  ;;  %v10062_v12 = vand.u32 4294901760, %v10050_v20  ;;  %vm696_vm2 = vmand %vm688_vm0, %vm692_vm1  ;;  %v10078_v36 = vsub.f32 %v1559_v18, %v1559_v18 }
 0x1eb   :  { %v744_v14 = vpop.f32.mrf.mxu2  ;;  %v10084_v26 = vsel %vm696_vm2, 1.0, %v16779_v30 }
 0x1ec   :  { %v1595_v15 = vsub.f32 %v10050_v20, %v10062_v12 }
 0x1ee   :  { %v10089_v46 = vand.u32 4294901760, %v1595_v15 }
 0x1ef   :  { %9161 = vmatmul.msk.f32.vlgmr.msrb.gmra.mxu2 %vm705_vm3, %v9614_v9  ;;  %9160 = vmatmul.msk.f32.gmra.mxu3 %vm705_vm3, %v9783_v28 }
 0x1f0   :  { %9169 = vmatmul.msk.f32.vlgmr.msra.gmra.mxu1 %vm705_vm3, %v10017_v50  ;;  %1855 = vmatpush.msrb.mxu2 %v9622_v21  ;;  %v899_v32 = vpop.f32.mrf.mxu1 }
 0x1f1   :  { %2006 = vmatpush.msra.mxu1 %v9622_v21 }
 0x1f2   :  { %1589 = vmatmul.f32.vlgmr.msra.gmra.mxu0 %v10057_v23  ;;  %1857 = vmatpush.msrb.mxu2 %v9630_v27 }
 0x1f3   :  { %1962 = vmatpush.msra.mxu0 %v9647_v41  ;;  %2008 = vmatpush.msra.mxu1 %v9630_v27  ;;  %v10092_v41 = vand.u32 4294901760, %v10078_v36 }
 0x1f4   :  { %v856_v17 = vpop.f32.mrf.mxu0  ;;  %1859 = vmatpush.msrb.mxu2 %v9644_v40 }
 0x1f5   :  { %1965 = vmatpush.msra.mxu0 %v9663_v55  ;;  %2010 = vmatpush.msra.mxu1 %v9644_v40  ;;  %v752_v13 = vpop.f32.mrf.mxu2  ;;  %v1562_v55 = vsel %vm705_vm3, %v10084_v26, 0 }
 0x1f6   :  { %1861 = vmatpush.msrb.mxu2 %v9660_v52  ;;  %v809_v18 = vpop.f32.mrf.mxu3 }
 0x1f7   :  { %1968 = vmatpush.msra.mxu0 %v9674_v6  ;;  %2012 = vmatpush.msra.mxu1 %v9660_v52  ;;  %v810_v30 = vadd.f32 %v809_v18, %v744_v14  ;;  %v1603_v14 = vsub.f32 %v10078_v36, %v10092_v41  ;;  %v10110_v18 = vsub.f32 %v1562_v55, %v1562_v55 }
 0x1f8   :  { %9162 = vmatmul.msk.f32.gmra.mxu2 %vm705_vm3, %v9639_v33  ;;  %9165 = vmatmul.msk.f32.vlgmr.msrb.gmra.mxu3 %vm705_vm3, %v9614_v9 }
 0x1f9   :  { %9170 = vmatmul.msk.f32.gmra.mxu1 %vm705_vm3, %v10032_v8  ;;  %1912 = vmatpush.msrb.mxu3 %v9747_v56  ;;  %v10105_v15 = vadd.f32 %v851_v59, %v810_v30  ;;  %v10114_v48 = vand.u32 4294901760, %v1603_v14  ;;  %v16781_v59 = vld [vmem:[#allocation32_spill] sm:$0xff] }
 0x1fa   :  { %1971 = vmatpush.msra.mxu0 %v9691_v57  ;;  %v905_v6 = vpop.f32.mrf.mxu1  ;;  %v10117_v57 = vand.u32 4294901760, %v10110_v18 }
 0x1fb   :  { %1597 = vmatmul.f32.gmra.mxu0 %v10089_v46  ;;  %1918 = vmatpush.msrb.mxu3 %v9761_v19 }
 0x1fc   :  { %v861_v9 = vpop.f32.mrf.mxu0  ;;  %16780 = vst [vmem:[#allocation50_spill] sm:$0xff] %v10117_v57  ;;  %v1611_v19 = vsub.f32 %v10110_v18, %v10117_v57 }
 0x1fd   :  { %1924 = vmatpush.msrb.mxu3 %v9776_v22 }
 0x1fe   :  { %v760_v56 = vpop.f32.mrf.mxu2  ;;  %v10131_v29 = vand.u32 4294901760, %v1611_v19 }
 0x1ff   :  { %1930 = vmatpush.msrb.mxu3 %v16781_v59  ;;  %v813_v55 = vpop.f32.mrf.mxu3 }
 0x200   :  { %9163 = vmatmul.msk.f32.gmra.mxu2 %vm705_vm3, %v9726_v0  ;;  %9166 = vmatmul.msk.f32.gmra.mxu3 %vm705_vm3, %v9639_v33  ;;  %v814_v30 = vadd.f32 %v813_v55, %v752_v13 }
 0x201   :  { %9171 = vmatmul.msk.f32.gmra.mxu1 %vm705_vm3, %v10055_v37 }
 0x202   :  { %v911_v14 = vpop.f32.mrf.mxu1  ;;  %v857_v22 = vadd.f32 %v856_v17, %v814_v30  ;;  %v16784_v30 = vld [vmem:[#allocation19_spill] sm:$0xff] }
 0x203   :  { %1605 = vmatmul.f32.gmra.mxu0 %v10114_v48 }
 0x204   :  { %v866_v7 = vpop.f32.mrf.mxu0  ;;  %v10129_v59 = vadd.f32 %v899_v32, %v857_v22 }
 0x206   :  { %v768_v45 = vpop.f32.mrf.mxu2 }
 0x207   :  { %v817_v33 = vpop.f32.mrf.mxu3 }
 0x208   :  { %9164 = vmatmul.msk.f32.gmra.mxu2 %vm705_vm3, %v9783_v28  ;;  %9167 = vmatmul.msk.f32.gmra.mxu3 %vm705_vm3, %v9726_v0  ;;  %v818_v13 = vadd.f32 %v817_v33, %v760_v56  ;;  %v16782_v56 = vld [vmem:[#allocation14_spill] sm:$0xff] }
 0x209   :  { %9172 = vmatmul.msk.f32.gmra.mxu1 %vm705_vm3, %v10084_v26 }
 0x20a   :  { %v10140_v17 = vpop.f32.mrf.mxu1  ;;  %v862_v22 = vadd.f32 %v861_v9, %v818_v13  ;;  %v16786_v13 = vld [vmem:[#allocation22_spill] sm:$0xff] }
 0x20b   :  { %1613 = vmatmul.f32.gmra.mxu0 %v10131_v29 }
 0x20c   :  { %v10142_v32 = vpop.f32.mrf.mxu0  ;;  %v10144_v19 = vadd.f32 %v905_v6, %v862_v22 }
 0x20e   :  { %v10146_v55 = vpop.f32.mrf.mxu2 }
 0x20f   :  { %v821_v0 = vpop.f32.mrf.mxu3 }
 0x210   :  { %1696 = vmatmul.f32.vlgmr.msra.gmra.mxu2 %v10029_v4  ;;  %9168 = vmatmul.msk.f32.gmra.mxu3 %vm705_vm3, %v9783_v28  ;;  %v822_v9 = vadd.f32 %v821_v0, %v768_v45  ;;  %v16788_v45 = vld [vmem:[#allocation25_spill] sm:$0xff] }
 0x211   :  { %9177 = vmatmul.msk.f32.vlgmr.msrb.gmra.mxu1 %vm705_vm3, %v10017_v50  ;;  %2053 = vmatpush.msra.mxu2 %v16782_v56 }
 0x212   :  { %2190 = vmatpush.msrb.mxu1 %v9912_v44  ;;  %v867_v33 = vadd.f32 %v866_v7, %v822_v9 }
 0x213   :  { %9173 = vmatmul.msk.f32.vlgmr.msrb.gmra.mxu0 %vm705_vm3, %v10017_v50  ;;  %v10157_v6 = vpop.f32.mrf.mxu1  ;;  %2057 = vmatpush.msra.mxu2 %v16784_v30 }
 0x214   :  { %16783 = vst [vmem:[#allocation51_spill] sm:$0xff] %v10157_v6  ;;  %2133 = vmatpush.msrb.mxu0 %v9850_v10  ;;  %2196 = vmatpush.msrb.mxu1 %v9922_v5  ;;  %v10166_v22 = vadd.f32 %v911_v14, %v867_v33  ;;  %v2404_v6 = vld [vmem:[%s16425_s4 + $0x30] sm:$0xff] }
 0x215   :  { %v10162_v28 = vpop.f32.mrf.mxu0  ;;  %2061 = vmatpush.msra.mxu2 %v16786_v13  ;;  %v16798_v13 = vld [vmem:[#allocation36_spill] sm:$0xff] }
 0x216   :  { %16785 = vst [vmem:[#allocation52_spill] sm:$0xff] %v10162_v28  ;;  %2135 = vmatpush.msrb.mxu0 %v9856_v2  ;;  %2202 = vmatpush.msrb.mxu1 %v9928_v11 }
 0x217   :  { %16787 = vst [vmem:[#allocation53_spill] sm:$0xff] %v10166_v22  ;;  %2065 = vmatpush.msra.mxu2 %v16788_v45  ;;  %v16800_v45 = vld [vmem:[#allocation38_spill] sm:$0xff] }
 0x218   :  { %2137 = vmatpush.msrb.mxu0 %v9863_v51  ;;  %v10171_v0 = vpop.f32.mrf.mxu2  ;;  %2208 = vmatpush.msrb.mxu1 %v9931_v53  ;;  %v10175_v7 = vpop.f32.mrf.mxu3 }
 0x219   :  { %1701 = vmatmul.f32.gmra.mxu2 %v10050_v20  ;;  %1738 = vmatmul.f32.vlgmr.msra.gmra.mxu3 %v10035_v35 }
 0x21a   :  { %9178 = vmatmul.msk.f32.gmra.mxu1 %vm705_vm3, %v10032_v8  ;;  %2096 = vmatpush.msra.mxu3 %v9622_v21 }
 0x21b   :  { %2139 = vmatpush.msrb.mxu0 %v9868_v16  ;;  %v10182_v14 = vpop.f32.mrf.mxu1 }
 0x21c   :  { %16789 = vst [vmem:[#allocation54_spill] sm:$0xff] %v10182_v14  ;;  %9174 = vmatmul.msk.f32.gmra.mxu0 %vm705_vm3, %v10032_v8  ;;  %2098 = vmatpush.msra.mxu3 %v9630_v27 }
 0x21d   :  { %v10187_v9 = vpop.f32.mrf.mxu0 }
 0x21e   :  { %16790 = vst [vmem:[#allocation55_spill] sm:$0xff] %v10187_v9  ;;  %2100 = vmatpush.msra.mxu3 %v9644_v40 }
 0x220   :  { %v10190_v33 = vpop.f32.mrf.mxu2  ;;  %2102 = vmatpush.msra.mxu3 %v9660_v52  ;;  %v10194_v44 = vpop.f32.mrf.mxu3 }
 0x221   :  { %1706 = vmatmul.f32.gmra.mxu2 %v10078_v36  ;;  %1744 = vmatmul.f32.gmra.mxu3 %v10062_v12 }
 0x222   :  { %9179 = vmatmul.msk.f32.gmra.mxu1 %vm705_vm3, %v10055_v37 }
 0x223   :  { %v10199_v5 = vpop.f32.mrf.mxu1 }
 0x224   :  { %16791 = vst [vmem:[#allocation56_spill] sm:$0xff] %v10199_v5  ;;  %9175 = vmatmul.msk.f32.gmra.mxu0 %vm705_vm3, %v10055_v37  ;;  %v2409_v5 = vld [vmem:[%s16425_s4 + $0x58] sm:$0xff] }
 0x225   :  { %v10203_v11 = vpop.f32.mrf.mxu0 }
 0x226   :  { %16792 = vst [vmem:[#allocation57_spill] sm:$0xff] %v10203_v11 }
 0x228   :  { %v10205_v53 = vpop.f32.mrf.mxu2  ;;  %v10208_v21 = vpop.f32.mrf.mxu3 }
 0x229   :  { %16793 = vst [vmem:[#allocation58_spill] sm:$0xff] %v10205_v53  ;;  %1711 = vmatmul.f32.gmra.mxu2 %v10110_v18  ;;  %1750 = vmatmul.f32.gmra.mxu3 %v10092_v41  ;;  %v2428_v53 = vld [vmem:[%s16425_s4 + $0xf0] sm:$0xff] }
 0x22a   :  { %9180 = vmatmul.msk.f32.gmra.mxu1 %vm705_vm3, %v10084_v26 }
 0x22b   :  { %v10213_v56 = vpop.f32.mrf.mxu1 }
 0x22c   :  { %16794 = vst [vmem:[#allocation59_spill] sm:$0xff] %v10213_v56  ;;  %9176 = vmatmul.msk.f32.gmra.mxu0 %vm705_vm3, %v10084_v26 }
 0x22d   :  { %v10217_v27 = vpop.f32.mrf.mxu0 }
 0x22e   :  { %16795 = vst [vmem:[#allocation60_spill] sm:$0xff] %v10217_v27 }
 0x230   :  { %v10219_v30 = vpop.f32.mrf.mxu2  ;;  %v10222_v40 = vpop.f32.mrf.mxu3 }
 0x231   :  { %16796 = vst [vmem:[#allocation61_spill] sm:$0xff] %v10219_v30  ;;  %1867 = vmatmul.f32.vlgmr.msrb.gmra.mxu2 %v10057_v23  ;;  %1756 = vmatmul.f32.gmra.mxu3 %v10117_v57 }
 0x232   :  { %16797 = vst [vmem:[#allocation62_spill] sm:$0xff] %v10222_v40  ;;  %2016 = vmatmul.f32.vlgmr.msra.gmra.mxu1 %v10035_v35  ;;  %2240 = vmatpush.msrb.mxu2 %v16798_v13  ;;  %v2400_v40 = vld [vmem:[%s16425_s4 + $0x10] sm:$0xff] }
 0x233   :  { %2374 = vmatpush.msra.mxu1 %v9850_v10 }
 0x234   :  { %1974 = vmatmul.f32.vlgmr.msra.gmra.mxu0 %v10029_v4  ;;  %v10229_v52 = vpop.f32.mrf.mxu1  ;;  %2243 = vmatpush.msrb.mxu2 %v16800_v45 }
 0x235   :  { %16799 = vst [vmem:[#allocation63_spill] sm:$0xff] %v10229_v52  ;;  %2331 = vmatpush.msra.mxu0 %v9873_v61  ;;  %2376 = vmatpush.msra.mxu1 %v9856_v2 }
 0x236   :  { %v10234_v34 = vpop.f32.mrf.mxu0  ;;  %2246 = vmatpush.msrb.mxu2 %v16802_v1 }
 0x237   :  { %16801 = vst [vmem:[#allocation64_spill] sm:$0xff] %v10234_v34  ;;  %2335 = vmatpush.msra.mxu0 %v9889_v3  ;;  %2378 = vmatpush.msra.mxu1 %v9863_v51  ;;  %v2408_v34 = vld [vmem:[%s16425_s4 + $0x50] sm:$0xff] }
 0x238   :  { %2249 = vmatpush.msrb.mxu2 %v9884_v58 }
 0x239   :  { %2339 = vmatpush.msra.mxu0 %v9897_v63  ;;  %v10241_v13 = vpop.f32.mrf.mxu2  ;;  %2380 = vmatpush.msra.mxu1 %v9868_v16  ;;  %v10245_v61 = vpop.f32.mrf.mxu3 }
 0x23a   :  { %16803 = vst [vmem:[#allocation65_spill] sm:$0xff] %v10241_v13  ;;  %1875 = vmatmul.f32.gmra.mxu2 %v10089_v46  ;;  %9181 = vmatmul.msk.f32.vlgmr.msrb.gmra.mxu3 %vm705_vm3, %v10017_v50  ;;  %v2406_v13 = vld [vmem:[%s16425_s4 + $0x40] sm:$0xff] }
 0x23b   :  { %16804 = vst [vmem:[#allocation66_spill] sm:$0xff] %v10245_v61  ;;  %2022 = vmatmul.f32.gmra.mxu1 %v10062_v12  ;;  %2284 = vmatpush.msrb.mxu3 %v9850_v10 }
 0x23c   :  { %2343 = vmatpush.msra.mxu0 %v9905_v43  ;;  %v10252_v3 = vpop.f32.mrf.mxu1 }
 0x23d   :  { %16805 = vst [vmem:[#allocation67_spill] sm:$0xff] %v10252_v3  ;;  %1979 = vmatmul.f32.gmra.mxu0 %v10050_v20  ;;  %2286 = vmatpush.msrb.mxu3 %v9856_v2 }
 0x23e   :  { %v10256_v63 = vpop.f32.mrf.mxu0 }
 0x23f   :  { %16806 = vst [vmem:[#allocation68_spill] sm:$0xff] %v10256_v63  ;;  %2288 = vmatpush.msrb.mxu3 %v9863_v51 }
 0x241   :  { %v10259_v45 = vpop.f32.mrf.mxu2  ;;  %2290 = vmatpush.msrb.mxu3 %v9868_v16  ;;  %v10263_v1 = vpop.f32.mrf.mxu3 }
 0x242   :  { %16807 = vst [vmem:[#allocation69_spill] sm:$0xff] %v10259_v45  ;;  %1883 = vmatmul.f32.gmra.mxu2 %v10114_v48  ;;  %9182 = vmatmul.msk.f32.gmra.mxu3 %vm705_vm3, %v10032_v8 }
 0x243   :  { %16808 = vst [vmem:[#allocation70_spill] sm:$0xff] %v10263_v1  ;;  %2028 = vmatmul.f32.gmra.mxu1 %v10092_v41 }
 0x244   :  { %v10268_v43 = vpop.f32.mrf.mxu1 }
 0x245   :  { %16809 = vst [vmem:[#allocation71_spill] sm:$0xff] %v10268_v43  ;;  %1984 = vmatmul.f32.gmra.mxu0 %v10078_v36  ;;  %v10320_v43 = vsub.f32 %v2412_v62, %v10304_v24  ;;  %v2611_v62 = vsub.f32 %v10307_v47, %v16503_v54  ;;  %v10348_v54 = vand.u32 4294901760, %v2409_v5 }
 0x246   :  { %v10271_v58 = vpop.f32.mrf.mxu0 }
 0x247   :  { %16810 = vst [vmem:[#allocation72_spill] sm:$0xff] %v10271_v58  ;;  %v2410_v58 = vld [vmem:[%s16425_s4 + $0x60] sm:$0xff] }
 0x248   :  { %16815 = vst [vmem:[#allocation77_spill] sm:$0xff] %v10348_v54 }
 0x249   :  { %v10273_v10 = vpop.f32.mrf.mxu2  ;;  %v10276_v2 = vpop.f32.mrf.mxu3 }
 0x24a   :  { %16811 = vst [vmem:[#allocation73_spill] sm:$0xff] %v10273_v10  ;;  %1891 = vmatmul.f32.gmra.mxu2 %v10131_v29  ;;  %9183 = vmatmul.msk.f32.gmra.mxu3 %vm705_vm3, %v10055_v37  ;;  %v2612_v10 = vand.u32 4294901760, %v2611_v62 }
 0x24b   :  { %16812 = vst [vmem:[#allocation74_spill] sm:$0xff] %v10276_v2  ;;  %2034 = vmatmul.f32.gmra.mxu1 %v10117_v57  ;;  %v16816_v2 = vand.u32 4294901760, %v10320_v43 }
 0x24c   :  { %v10281_v51 = vpop.f32.mrf.mxu1 }
 0x24d   :  { %1989 = vmatmul.f32.gmra.mxu0 %v10110_v18  ;;  %v2617_v52 = vsub.f32 %v10320_v43, %v16816_v2 }
 0x24e   :  { %v1407_v16 = vpop.f32.mrf.mxu0 }
 0x24f   :  { %v2618_v2 = vand.u32 4294901760, %v2617_v52 }
 0x251   :  { %v1300_v38 = vpop.f32.mrf.mxu2  ;;  %v10286_v31 = vpop.f32.mrf.mxu3 }
 0x252   :  { %9185 = vmatmul.msk.f32.vlgmr.msra.gmra.mxu2 %vm705_vm3, %v10017_v50  ;;  %16813 = vst [vmem:[#allocation75_spill] sm:$0xff] %v10286_v31  ;;  %9184 = vmatmul.msk.f32.gmra.mxu3 %vm705_vm3, %v10084_v26  ;;  %v10329_v31 = vand.u32 4294901760, %v2410_v58 }
 0x253   :  { %9193 = vmatmul.msk.f32.vlgmr.msrb.gmra.mxu1 %vm705_vm3, %v10017_v50  ;;  %2544 = vmatpush.msra.mxu2 %v10295_v25 }
 0x254   :  { %2791 = vmatpush.msrb.mxu1 %v10295_v25  ;;  %16814 = vst [vmem:[#allocation76_spill] sm:$0xff] %v10329_v31  ;;  %v10351_v11 = vsub.f32 %v2410_v58, %v10329_v31  ;;  %v10366_v58 = vand.u32 4294901760, %v2408_v34 }
 0x255   :  { %2145 = vmatmul.f32.vlgmr.msrb.gmra.mxu0 %v10057_v23  ;;  %v10301_v39 = vpop.f32.mrf.mxu1  ;;  %2546 = vmatpush.msra.mxu2 %v10304_v24  ;;  %v10317_v23 = vand.u32 4294901760, %v2411_v42 }
 0x256   :  { %2723 = vmatpush.msrb.mxu0 %v10307_v47  ;;  %2793 = vmatpush.msrb.mxu1 %v10304_v24  ;;  %16817 = vst [vmem:[#allocation78_spill] sm:$0xff] %v10366_v58  ;;  %v10386_v52 = vsub.f32 %v2408_v34, %v10366_v58  ;;  %v10401_v34 = vand.u32 4294901760, %v2406_v13 }
 0x257   :  { %v10313_v60 = vpop.f32.mrf.mxu0  ;;  %2548 = vmatpush.msra.mxu2 %v10317_v23  ;;  %v10332_v3 = vsub.f32 %v2411_v42, %v10317_v23 }
 0x258   :  { %2726 = vmatpush.msrb.mxu0 %v10320_v43  ;;  %2795 = vmatpush.msrb.mxu1 %v10317_v23  ;;  %16820 = vst [vmem:[#allocation81_spill] sm:$0xff] %v10401_v34  ;;  %v10422_v27 = vsub.f32 %v2406_v13, %v10401_v34  ;;  %v16822_v28 = vand.u32 4294901760, %v10386_v52 }
 0x259   :  { %2550 = vmatpush.msra.mxu2 %v10329_v31  ;;  %v16504_v14 = vand.u32 4294901760, %v10332_v3 }
 0x25a   :  { %9186 = vmatmul.msk.f32.gmra.mxu2 %vm705_vm3, %v10032_v8  ;;  %v1308_v63 = vpop.f32.mrf.mxu2  ;;  %9189 = vmatmul.msk.f32.vlgmr.msra.gmra.mxu3 %vm705_vm3, %v10017_v50  ;;  %v1365_v42 = vpop.f32.mrf.mxu3 }
 0x25b   :  { %9194 = vmatmul.msk.f32.gmra.mxu1 %vm705_vm3, %v10032_v8  ;;  %v1366_v45 = vadd.f32 %v1365_v42, %v1300_v38  ;;  %2729 = vmatpush.msrb.mxu0 %v10332_v3  ;;  %v10369_v38 = vsub.f32 %v2409_v5, %v10348_v54  ;;  %v16505_v42 = vand.u32 4294901760, %v10351_v11  ;;  %v2623_v1 = vsub.f32 %v10332_v3, %v16504_v14 }
 0x25c   :  { %2797 = vmatpush.msrb.mxu1 %v10329_v31  ;;  %2552 = vmatpush.msra.mxu2 %v10348_v54 }
 0x25d   :  { %2153 = vmatmul.f32.gmra.mxu0 %v10089_v46  ;;  %v10363_v62 = vpop.f32.mrf.mxu1  ;;  %v1408_v9 = vadd.f32 %v1407_v16, %v1366_v45  ;;  %2613 = vmatpush.msra.mxu3 %v2612_v10  ;;  %v2407_v46 = vld [vmem:[%s16425_s4 + $0x48] sm:$0xff]  ;;  %v2629_v10 = vsub.f32 %v10351_v11, %v16505_v42  ;;  %v16506_v16 = vand.u32 4294901760, %v10369_v38  ;;  %v2624_v14 = vand.u32 4294901760, %v2623_v1 }
 0x25e   :  { %2732 = vmatpush.msrb.mxu0 %v10351_v11  ;;  %2799 = vmatpush.msrb.mxu1 %v10348_v54  ;;  %v10383_v5 = vand.u32 4294901760, %v2407_v46 }
 0x25f   :  { %v10379_v56 = vpop.f32.mrf.mxu0  ;;  %v10393_v45 = vadd.f32 %v10281_v51, %v1408_v9  ;;  %2554 = vmatpush.msra.mxu2 %v10366_v58  ;;  %2619 = vmatpush.msra.mxu3 %v2618_v2  ;;  %v2635_v51 = vsub.f32 %v10369_v38, %v16506_v16  ;;  %v2630_v9 = vand.u32 4294901760, %v2629_v10  ;;  %v2405_v2 = vld [vmem:[%s16425_s4 + $0x38] sm:$0xff] }
 0x260   :  { %16818 = vst [vmem:[#allocation79_spill] sm:$0xff] %v10383_v5  ;;  %2735 = vmatpush.msrb.mxu0 %v10369_v38  ;;  %2801 = vmatpush.msrb.mxu1 %v10366_v58  ;;  %v10404_v42 = vsub.f32 %v2407_v46, %v10383_v5  ;;  %v10419_v16 = vand.u32 4294901760, %v2405_v2  ;;  %v2641_v58 = vsub.f32 %v10386_v52, %v16822_v28 }
 0x261   :  { %16819 = vst [vmem:[#allocation80_spill] sm:$0xff] %v10393_v45  ;;  %2625 = vmatpush.msra.mxu3 %v2624_v14  ;;  %2556 = vmatpush.msra.mxu2 %v10383_v5  ;;  %v2636_v45 = vand.u32 4294901760, %v2635_v51  ;;  %v16509_v51 = vand.u32 4294901760, %v10422_v27 }
 0x262   :  { %9187 = vmatmul.msk.f32.gmra.mxu2 %vm705_vm3, %v10055_v37  ;;  %v1316_v1 = vpop.f32.mrf.mxu2  ;;  %9190 = vmatmul.msk.f32.gmra.mxu3 %vm705_vm3, %v10032_v8  ;;  %v1369_v46 = vpop.f32.mrf.mxu3  ;;  %16821 = vst [vmem:[#allocation82_spill] sm:$0xff] %v10419_v16  ;;  %v2642_v61 = vand.u32 4294901760, %v2641_v58  ;;  %v16825_v28 = vand.u32 4294901760, %v10404_v42 }
 0x263   :  { %9195 = vmatmul.msk.f32.gmra.mxu1 %vm705_vm3, %v10055_v37  ;;  %v1370_v10 = vadd.f32 %v1369_v46, %v1308_v63  ;;  %2738 = vmatpush.msrb.mxu0 %v10386_v52  ;;  %v10437_v63 = vand.u32 4294901760, %v2404_v6  ;;  %v10440_v46 = vsub.f32 %v2405_v2, %v10419_v16 }
 0x264   :  { %2803 = vmatpush.msrb.mxu1 %v10383_v5  ;;  %2558 = vmatpush.msra.mxu2 %v10401_v34  ;;  %v2647_v5 = vsub.f32 %v10404_v42, %v16825_v28 }
 0x265   :  { %2161 = vmatmul.f32.gmra.mxu0 %v10114_v48  ;;  %v10434_v13 = vpop.f32.mrf.mxu1  ;;  %16823 = vst [vmem:[#allocation83_spill] sm:$0xff] %v10437_v63  ;;  %v1413_v14 = vadd.f32 %v10313_v60, %v1370_v10  ;;  %2631 = vmatpush.msra.mxu3 %v2630_v9  ;;  %v2403_v48 = vld [vmem:[%s16425_s4 + $0x28] sm:$0xff]  ;;  %v10458_v60 = vsub.f32 %v2404_v6, %v10437_v63  ;;  %v2402_v9 = vld [vmem:[%s16425_s4 + $0x20] sm:$0xff]  ;;  %v16512_v28 = vand.u32 4294901760, %v10440_v46 }
 0x266   :  { %16824 = vst [vmem:[#allocation84_spill] sm:$0xff] %v10440_v46  ;;  %2741 = vmatpush.msrb.mxu0 %v10404_v42  ;;  %2805 = vmatpush.msrb.mxu1 %v10401_v34  ;;  %v10455_v2 = vand.u32 4294901760, %v2403_v48  ;;  %v2653_v10 = vsub.f32 %v10422_v27, %v16509_v51  ;;  %v10473_v6 = vand.u32 4294901760, %v2402_v9  ;;  %v2401_v51 = vld [vmem:[%s16425_s4 + $0x18] sm:$0xff] }
 0x267   :  { %v10451_v30 = vpop.f32.mrf.mxu0  ;;  %16827 = vst [vmem:[#allocation86_spill] sm:$0xff] %v10458_v60  ;;  %v10461_v58 = vadd.f32 %v10301_v39, %v1413_v14  ;;  %2560 = vmatpush.msra.mxu2 %v10419_v16  ;;  %2637 = vmatpush.msra.mxu3 %v2636_v45 }
 0x268   :  { %16826 = vst [vmem:[#allocation85_spill] sm:$0xff] %v10455_v2  ;;  %2744 = vmatpush.msrb.mxu0 %v10422_v27  ;;  %2807 = vmatpush.msrb.mxu1 %v10419_v16  ;;  %v10476_v39 = vsub.f32 %v2403_v48, %v10455_v2  ;;  %v2659_v16 = vsub.f32 %v10440_v46, %v16512_v28  ;;  %v2429_v48 = vld [vmem:[%s16425_s4 + $0xf8] sm:$0xff]  ;;  %v2654_v28 = vand.u32 4294901760, %v2653_v10  ;;  %v16834_v10 = vand.u32 4294901760, %v10458_v60 }
 0x269   :  { %16828 = vst [vmem:[#allocation87_spill] sm:$0xff] %v10461_v58  ;;  %2643 = vmatpush.msra.mxu3 %v2642_v61  ;;  %v2648_v58 = vand.u32 4294901760, %v2647_v5  ;;  %v10494_v5 = vand.u32 4294901760, %v2401_v51  ;;  %v10497_v45 = vsub.f32 %v2402_v9, %v10473_v6  ;;  %2562 = vmatpush.msra.mxu2 %v10437_v63  ;;  %v10505_v54 = vand.u32 4294901760, %v2429_v48 }
 0x26a   :  { %16829 = vst [vmem:[#allocation88_spill] sm:$0xff] %v10473_v6  ;;  %9188 = vmatmul.msk.f32.gmra.mxu2 %vm705_vm3, %v10084_v26  ;;  %v1324_v14 = vpop.f32.mrf.mxu2  ;;  %9191 = vmatmul.msk.f32.gmra.mxu3 %vm705_vm3, %v10055_v37  ;;  %v1373_v61 = vpop.f32.mrf.mxu3  ;;  %v10514_v9 = vand.u32 4294901760, %v2400_v40  ;;  %v2660_v22 = vand.u32 4294901760, %v2659_v16  ;;  %v2427_v16 = vld [vmem:[%s16425_s4 + $0xe8] sm:$0xff] }
 0x26b   :  { %16830 = vst [vmem:[#allocation89_spill] sm:$0xff] %v10476_v39  ;;  %9196 = vmatmul.msk.f32.gmra.mxu1 %vm705_vm3, %v10084_v26  ;;  %v1374_v34 = vadd.f32 %v1373_v61, %v1316_v1  ;;  %2747 = vmatpush.msrb.mxu0 %v10440_v46  ;;  %v2665_v61 = vsub.f32 %v10458_v60, %v16834_v10 }
 0x26c   :  { %16831 = vst [vmem:[#allocation90_spill] sm:$0xff] %v10494_v5  ;;  %2809 = vmatpush.msrb.mxu1 %v10437_v63  ;;  %v10520_v57 = vsub.f32 %v2401_v51, %v10494_v5  ;;  %2564 = vmatpush.msra.mxu2 %v10455_v2  ;;  %v10550_v63 = vsub.f32 %v2400_v40, %v10514_v9 }
 0x26d   :  { %2169 = vmatmul.f32.gmra.mxu0 %v10131_v29  ;;  %v10511_v1 = vpop.f32.mrf.mxu1  ;;  %16833 = vst [vmem:[#allocation92_spill] sm:$0xff] %v10514_v9  ;;  %v1418_v46 = vadd.f32 %v10379_v56, %v1374_v34  ;;  %2649 = vmatpush.msra.mxu3 %v2648_v58  ;;  %v2399_v29 = vld [vmem:[%s16425_s4 + $0x8] sm:$0xff]  ;;  %v10537_v56 = vsub.f32 %v2429_v48, %v10505_v54  ;;  %v16837_v58 = vand.u32 4294901760, %v10476_v39  ;;  %v2398_v48 = vld [vmem:[%s16425_s4] sm:$0xff] }
 0x26e   :  { %16832 = vst [vmem:[#allocation91_spill] sm:$0xff] %v10511_v1  ;;  %v10528_v1 = vand.u32 4294901760, %v2428_v53  ;;  %2750 = vmatpush.msrb.mxu0 %v10458_v60  ;;  %2811 = vmatpush.msrb.mxu1 %v10455_v2  ;;  %v10534_v51 = vand.u32 4294901760, %v2399_v29  ;;  %v10564_v40 = vand.u32 4294901760, %v2398_v48 }
 0x26f   :  { %v10530_v31 = vpop.f32.mrf.mxu0  ;;  %v10543_v34 = vadd.f32 %v10363_v62, %v1418_v46  ;;  %2566 = vmatpush.msra.mxu2 %v10473_v6  ;;  %2655 = vmatpush.msra.mxu3 %v2654_v28  ;;  %v2671_v10 = vsub.f32 %v10476_v39, %v16837_v58  ;;  %v2666_v62 = vand.u32 4294901760, %v2665_v61  ;;  %v16838_v46 = vand.u32 4294901760, %v10497_v45 }
 0x270   :  { %16835 = vst [vmem:[#allocation93_spill] sm:$0xff] %v10530_v31  ;;  %2753 = vmatpush.msrb.mxu0 %v10476_v39  ;;  %2813 = vmatpush.msrb.mxu1 %v10473_v6  ;;  %v10567_v2 = vsub.f32 %v2399_v29, %v10534_v51  ;;  %v10570_v39 = vsub.f32 %v2428_v53, %v10528_v1  ;;  %v10572_v61 = vand.u32 4294901760, %v2427_v16  ;;  %v2425_v53 = vld [vmem:[%s16425_s4 + $0xd8] sm:$0xff]  ;;  %v16842_v31 = vand.u32 4294901760, %v10520_v57 }
 0x271   :  { %16836 = vst [vmem:[#allocation94_spill] sm:$0xff] %v10543_v34  ;;  %v2677_v28 = vsub.f32 %v10497_v45, %v16838_v46  ;;  %2661 = vmatpush.msra.mxu3 %v2660_v22  ;;  %v2426_v46 = vld [vmem:[%s16425_s4 + $0xe0] sm:$0xff]  ;;  %2568 = vmatpush.msra.mxu2 %v10494_v5  ;;  %v2672_v34 = vand.u32 4294901760, %v2671_v10  ;;  %v10608_v6 = vand.u32 4294901760, %v2425_v53 }
 0x272   :  { %2252 = vmatmul.f32.vlgmr.msrb.gmra.mxu2 %v10029_v4  ;;  %v10562_v58 = vpop.f32.mrf.mxu2  ;;  %16840 = vst [vmem:[#allocation96_spill] sm:$0xff] %v10564_v40  ;;  %9192 = vmatmul.msk.f32.gmra.mxu3 %vm705_vm3, %v10084_v26  ;;  %v1377_v4 = vpop.f32.mrf.mxu3  ;;  %v2683_v60 = vsub.f32 %v10520_v57, %v16842_v31  ;;  %v2424_v31 = vld [vmem:[%s16425_s4 + $0xd0] sm:$0xff] }
 0x273   :  { %16839 = vst [vmem:[#allocation95_spill] sm:$0xff] %v10562_v58  ;;  %9201 = vmatmul.msk.f32.vlgmr.msra.gmra.mxu1 %vm705_vm3, %v10017_v50  ;;  %v1378_v29 = vadd.f32 %v1377_v4, %v1324_v14  ;;  %2756 = vmatpush.msrb.mxu0 %v10497_v45  ;;  %v2678_v22 = vand.u32 4294901760, %v2677_v28  ;;  %v10596_v14 = vsub.f32 %v2427_v16, %v10572_v61  ;;  %v10598_v4 = vand.u32 4294901760, %v2426_v46 }
 0x274   :  { %16841 = vst [vmem:[#allocation97_spill] sm:$0xff] %v10570_v39  ;;  %2815 = vmatpush.msrb.mxu1 %v10494_v5  ;;  %2570 = vmatpush.msra.mxu2 %v10514_v9  ;;  %v894_v16 = vadd.f32 %v10039_v49, %v10105_v15  ;;  %v16846_v49 = vand.u32 4294901760, %v10550_v63 }
 0x275   :  { %9197 = vmatmul.msk.f32.vlgmr.msra.gmra.mxu0 %vm705_vm3, %v10017_v50  ;;  %16843 = vst [vmem:[#allocation98_spill] sm:$0xff] %v10596_v14  ;;  %v1423_v10 = vadd.f32 %v10451_v30, %v1378_v29  ;;  %2667 = vmatpush.msra.mxu3 %v2666_v62  ;;  %v10605_v50 = vsub.f32 %v2398_v48, %v10564_v40  ;;  %v16844_v30 = vand.u32 4294901760, %v10537_v56 }
 0x276   :  { %v10601_v58 = vpop.f32.mrf.mxu1  ;;  %2759 = vmatpush.msrb.mxu0 %v10520_v57  ;;  %2817 = vmatpush.msrb.mxu1 %v10514_v9  ;;  %v10621_v62 = vsub.f32 %v2426_v46, %v10598_v4  ;;  %v2689_v15 = vsub.f32 %v10550_v63, %v16846_v49  ;;  %v16847_v9 = vand.u32 4294901760, %v10570_v39  ;;  %v2423_v46 = vld [vmem:[%s16425_s4 + $0xc8] sm:$0xff]  ;;  %v16848_v49 = vand.u32 4294901760, %v10567_v2 }
 0x277   :  { %v3045_v48 = vsub.f32 %v10537_v56, %v16844_v30  ;;  %v10626_v28 = vadd.f32 %v10434_v13, %v1423_v10  ;;  %2572 = vmatpush.msra.mxu2 %v10534_v51  ;;  %2673 = vmatpush.msra.mxu3 %v2672_v34  ;;  %v10642_v34 = vsub.f32 %v2425_v53, %v10608_v6  ;;  %v10644_v10 = vand.u32 4294901760, %v2424_v31  ;;  %v2422_v13 = vld [vmem:[%s16425_s4 + $0xc0] sm:$0xff] }
 0x278   :  { %v10623_v29 = vpop.f32.mrf.mxu0  ;;  %v3051_v5 = vsub.f32 %v10570_v39, %v16847_v9  ;;  %2762 = vmatpush.msrb.mxu0 %v10550_v63  ;;  %2819 = vmatpush.msrb.mxu1 %v10534_v51  ;;  %v945_v30 = vadd.f32 %v10146_v55, %v894_v16  ;;  %v2684_v9 = vand.u32 4294901760, %v2683_v60  ;;  %v16853_v39 = vand.u32 4294901760, %v10307_v47 }
 0x279   :  { %16845 = vst [vmem:[#allocation99_spill] sm:$0xff] %v10626_v28  ;;  %2679 = vmatpush.msra.mxu3 %v2678_v22  ;;  %v2695_v28 = vsub.f32 %v10567_v2, %v16848_v49  ;;  %v10661_v22 = vand.u32 4294901760, %v2423_v46  ;;  %2574 = vmatpush.msra.mxu2 %v10564_v40  ;;  %v2690_v49 = vand.u32 4294901760, %v2689_v15 }
 0x27a   :  { %2257 = vmatmul.f32.gmra.mxu2 %v10050_v20  ;;  %2294 = vmatmul.f32.vlgmr.msrb.gmra.mxu3 %v10035_v35  ;;  %v3046_v20 = vand.u32 4294901760, %v3045_v48  ;;  %v982_v53 = vadd.f32 %v10175_v7, %v945_v30  ;;  %v3052_v35 = vand.u32 4294901760, %v3051_v5  ;;  %v16851_v48 = vand.u32 4294901760, %v10596_v14  ;;  %v2421_v5 = vld [vmem:[%s16425_s4 + $0xb8] sm:$0xff] }
 0x27b   :  { %9202 = vmatmul.msk.f32.gmra.mxu1 %vm705_vm3, %v10032_v8  ;;  %v10658_v55 = vpop.f32.mrf.mxu2  ;;  %v10664_v16 = vpop.f32.mrf.mxu3  ;;  %2765 = vmatpush.msrb.mxu0 %v10567_v2  ;;  %v10676_v7 = vsub.f32 %v2424_v31, %v10644_v10  ;;  %v10678_v30 = vand.u32 4294901760, %v2422_v13  ;;  %v16854_v31 = vand.u32 4294901760, %v10621_v62  ;;  %v10704_v47 = vand.u32 4294901760, %v2421_v5 }
 0x27c   :  { %16849 = vst [vmem:[#allocation100_spill] sm:$0xff] %v10658_v55  ;;  %2821 = vmatpush.msrb.mxu1 %v10564_v40  ;;  %v3057_v60 = vsub.f32 %v10596_v14, %v16851_v48  ;;  %2685 = vmatpush.msra.mxu3 %v2684_v9  ;;  %v16852_v55 = vand.u32 4294901760, %v10605_v50  ;;  %v10695_v40 = vsub.f32 %v2423_v46, %v10661_v22  ;;  %v10699_v14 = vand.u32 4294901760, %v982_v53 }
 0x27d   :  { %16850 = vst [vmem:[#allocation101_spill] sm:$0xff] %v10664_v16  ;;  %9198 = vmatmul.msk.f32.gmra.mxu0 %vm705_vm3, %v10032_v8  ;;  %v2696_v8 = vand.u32 4294901760, %v2695_v28  ;;  %2850 = vmatpush.msrb.mxu2 %v16853_v39  ;;  %v3063_v16 = vsub.f32 %v10621_v62, %v16854_v31  ;;  %v949_v9 = vadd.f32 %v10171_v0, %v10129_v59  ;;  %v2420_v39 = vld [vmem:[%s16425_s4 + $0xb0] sm:$0xff]  ;;  %v16857_v59 = vand.u32 4294901760, %v10642_v34 }
 0x27e   :  { %v10683_v15 = vpop.f32.mrf.mxu1  ;;  %2768 = vmatpush.msrb.mxu0 %v10605_v50  ;;  %v2701_v48 = vsub.f32 %v10605_v50, %v16852_v55  ;;  %3047 = vmatpush.msra.mxu1 %v3046_v20  ;;  %16855 = vst [vmem:[#allocation102_spill] sm:$0xff] %v10704_v47  ;;  %v16856_v55 = vand.u32 4294901760, %v10320_v43  ;;  %v3058_v46 = vand.u32 4294901760, %v3057_v60  ;;  %v16529_v20 = vand.u32 4294901760, %v10676_v7  ;;  %v2419_v43 = vld [vmem:[%s16425_s4 + $0xa8] sm:$0xff] }
 0x27f   :  { %2691 = vmatpush.msra.mxu3 %v2690_v49  ;;  %v3069_v0 = vsub.f32 %v10642_v34, %v16857_v59  ;;  %v10716_v49 = vsub.f32 %v2422_v13, %v10678_v30  ;;  %v16530_v13 = vand.u32 4294901760, %v10695_v40  ;;  %v10729_v59 = vand.u32 4294901760, %v2420_v39 }
 0x280   :  { %v10701_v28 = vpop.f32.mrf.mxu0  ;;  %2978 = vmatpush.msra.mxu0 %v10505_v54  ;;  %2854 = vmatpush.msrb.mxu2 %v16856_v55  ;;  %v2702_v31 = vand.u32 4294901760, %v2701_v48  ;;  %v3064_v55 = vand.u32 4294901760, %v3063_v16  ;;  %v16860_v48 = vand.u32 4294901760, %v10332_v3 }
 0x281   :  { %3053 = vmatpush.msra.mxu1 %v3052_v35  ;;  %2697 = vmatpush.msra.mxu3 %v2696_v8  ;;  %v986_v35 = vadd.f32 %v10194_v44, %v949_v9  ;;  %v10740_v44 = vsub.f32 %v2421_v5, %v10704_v47  ;;  %v16531_v16 = vand.u32 4294901760, %v10716_v49  ;;  %v10748_v9 = vand.u32 4294901760, %v2419_v43 }
 0x282   :  { %2262 = vmatmul.f32.gmra.mxu2 %v10078_v36  ;;  %2300 = vmatmul.f32.gmra.mxu3 %v10062_v12  ;;  %v10732_v36 = vsub.f32 %v982_v53, %v10699_v14  ;;  %v3070_v12 = vand.u32 4294901760, %v3069_v0  ;;  %v3075_v53 = vsub.f32 %v10676_v7, %v16529_v20  ;;  %v10764_v0 = vsub.f32 %v2420_v39, %v10729_v59 }
 0x283   :  { %9203 = vmatmul.msk.f32.gmra.mxu1 %vm705_vm3, %v10055_v37  ;;  %v10726_v60 = vpop.f32.mrf.mxu2  ;;  %v10734_v8 = vpop.f32.mrf.mxu3  ;;  %2858 = vmatpush.msrb.mxu2 %v16860_v48  ;;  %16861 = vst [vmem:[#allocation105_spill] sm:$0xff] %v10740_v44  ;;  %v16864_v48 = vand.u32 4294901760, %v10351_v11  ;;  %v10757_v5 = vand.u32 4294901760, %v986_v35  ;;  %v16532_v20 = vand.u32 4294901760, %v10740_v44 }
 0x284   :  { %16858 = vst [vmem:[#allocation103_spill] sm:$0xff] %v10726_v60  ;;  %2980 = vmatpush.msra.mxu0 %v10528_v1  ;;  %3059 = vmatpush.msra.mxu1 %v3058_v46  ;;  %v3081_v46 = vsub.f32 %v10695_v40, %v16530_v13  ;;  %v3076_v39 = vand.u32 4294901760, %v3075_v53  ;;  %v3087_v13 = vsub.f32 %v10716_v49, %v16531_v16 }
 0x285   :  { %16859 = vst [vmem:[#allocation104_spill] sm:$0xff] %v10734_v8  ;;  %9199 = vmatmul.msk.f32.gmra.mxu0 %vm705_vm3, %v10055_v37  ;;  %2703 = vmatpush.msra.mxu3 %v2702_v31  ;;  %v2418_v37 = vld [vmem:[%s16425_s4 + $0xa0] sm:$0xff]  ;;  %v2577_v31 = vand.u32 4294901760, %v10732_v36  ;;  %v10793_v53 = vsub.f32 %v986_v35, %v10757_v5  ;;  %v16871_v35 = vand.u32 4294901760, %v10386_v52 }
 0x286   :  { %16862 = vst [vmem:[#allocation106_spill] sm:$0xff] %v10748_v9  ;;  %v10750_v3 = vpop.f32.mrf.mxu1  ;;  %2862 = vmatpush.msrb.mxu2 %v16864_v48  ;;  %2982 = vmatpush.msra.mxu0 %v10572_v61  ;;  %v16867_v48 = vand.u32 4294901760, %v10369_v38  ;;  %v10783_v38 = vand.u32 4294901760, %v2418_v37 }
 0x287   :  { %16863 = vst [vmem:[#allocation107_spill] sm:$0xff] %v10750_v3  ;;  %3065 = vmatpush.msra.mxu1 %v3064_v55  ;;  %2929 = vmatpush.msrb.mxu3 %v10295_v25  ;;  %v2417_v55 = vld [vmem:[%s16425_s4 + $0x98] sm:$0xff]  ;;  %v10781_v3 = vsub.f32 %v2419_v43, %v10748_v9  ;;  %v953_v25 = vadd.f32 %v10190_v33, %v10144_v19  ;;  %v16884_v60 = vand.u32 4294901760, %v10793_v53 }
 0x288   :  { %16865 = vst [vmem:[#allocation108_spill] sm:$0xff] %v10764_v0  ;;  %v10767_v11 = vpop.f32.mrf.mxu0  ;;  %2866 = vmatpush.msrb.mxu2 %v16867_v48  ;;  %2984 = vmatpush.msra.mxu0 %v10598_v4  ;;  %v3082_v48 = vand.u32 4294901760, %v3081_v46  ;;  %v3088_v46 = vand.u32 4294901760, %v3087_v13  ;;  %v16876_v13 = vand.u32 4294901760, %v10422_v27 }
 0x289   :  { %16866 = vst [vmem:[#allocation109_spill] sm:$0xff] %v10767_v11  ;;  %3071 = vmatpush.msra.mxu1 %v3070_v12  ;;  %2931 = vmatpush.msrb.mxu3 %v10304_v24  ;;  %v2416_v12 = vld [vmem:[%s16425_s4 + $0x90] sm:$0xff]  ;;  %v2578_v24 = vsub.f32 %v10732_v36, %v2577_v31  ;;  %v990_v33 = vadd.f32 %v10208_v21, %v953_v25 }
 0x28a   :  { %16868 = vst [vmem:[#allocation110_spill] sm:$0xff] %v10781_v3  ;;  %2267 = vmatmul.f32.gmra.mxu2 %v10110_v18  ;;  %2306 = vmatmul.f32.gmra.mxu3 %v10092_v41  ;;  %v10801_v18 = vand.u32 4294901760, %v2417_v55  ;;  %v3093_v41 = vsub.f32 %v10740_v44, %v16532_v20  ;;  %v10817_v21 = vsub.f32 %v2418_v37, %v10783_v38  ;;  %v10819_v25 = vand.u32 4294901760, %v2416_v12  ;;  %v16877_v11 = vld [vmem:[#allocation76_spill] sm:$0xff] }
 0x28b   :  { %9204 = vmatmul.msk.f32.gmra.mxu1 %vm705_vm3, %v10084_v26  ;;  %v10798_v43 = vpop.f32.mrf.mxu2  ;;  %v10805_v16 = vpop.f32.mrf.mxu3  ;;  %2870 = vmatpush.msrb.mxu2 %v16871_v35  ;;  %v16873_v35 = vand.u32 4294901760, %v10404_v42  ;;  %v16874_v37 = vand.u32 4294901760, %v10764_v0  ;;  %v1088_v42 = vadd.f32 %v10140_v17, %v10142_v32  ;;  %v16878_v17 = vand.u32 4294901760, %v10781_v3 }
 0x28c   :  { %16869 = vst [vmem:[#allocation111_spill] sm:$0xff] %v10798_v43  ;;  %2986 = vmatpush.msra.mxu0 %v10608_v6  ;;  %3077 = vmatpush.msra.mxu1 %v3076_v39  ;;  %v10835_v20 = vsub.f32 %v2417_v55, %v10801_v18  ;;  %v16882_v43 = vld [vmem:[#allocation77_spill] sm:$0xff] }
 0x28d   :  { %16870 = vst [vmem:[#allocation112_spill] sm:$0xff] %v10805_v16  ;;  %9200 = vmatmul.msk.f32.gmra.mxu0 %vm705_vm3, %v10084_v26  ;;  %2874 = vmatpush.msrb.mxu2 %v16873_v35  ;;  %v2415_v26 = vld [vmem:[%s16425_s4 + $0x88] sm:$0xff]  ;;  %v3099_v39 = vsub.f32 %v10764_v0, %v16874_v37  ;;  %v10839_v35 = vand.u32 4294901760, %v990_v33  ;;  %v2414_v37 = vld [vmem:[%s16425_s4 + $0x80] sm:$0xff]  ;;  %v3105_v32 = vsub.f32 %v10781_v3, %v16878_v17 }
 0x28e   :  { %16872 = vst [vmem:[#allocation113_spill] sm:$0xff] %v10817_v21  ;;  %v10821_v52 = vpop.f32.mrf.mxu1  ;;  %2933 = vmatpush.msrb.mxu3 %v10317_v23  ;;  %2988 = vmatpush.msra.mxu0 %v10644_v10  ;;  %v2579_v23 = vand.u32 4294901760, %v2578_v24  ;;  %v10855_v24 = vsub.f32 %v2416_v12, %v10819_v25  ;;  %v10857_v27 = vand.u32 4294901760, %v2415_v26  ;;  %v16883_v16 = vld [vmem:[#allocation50_spill] sm:$0xff]  ;;  %v2586_v17 = vsub.f32 %v10793_v53, %v16884_v60 }
 0x28f   :  { %3083 = vmatpush.msra.mxu1 %v3082_v48  ;;  %16875 = vst [vmem:[#allocation114_spill] sm:$0xff] %v10835_v20  ;;  %2878 = vmatpush.msrb.mxu2 %v16876_v13  ;;  %v3094_v48 = vand.u32 4294901760, %v3093_v41  ;;  %v16881_v41 = vld [vmem:[#allocation58_spill] sm:$0xff]  ;;  %v3100_v55 = vand.u32 4294901760, %v3099_v39  ;;  %v10867_v8 = vand.u32 4294901760, %v2414_v37  ;;  %v10870_v3 = vsub.f32 %v990_v33, %v10839_v35 }
 0x290   :  { %v10841_v19 = vpop.f32.mrf.mxu0  ;;  %2935 = vmatpush.msrb.mxu3 %v16877_v11  ;;  %2990 = vmatpush.msra.mxu0 %v10661_v22  ;;  %16879 = vst [vmem:[#allocation76_spill] sm:$0xff] %v10855_v24  ;;  %v16880_v11 = vld [vmem:[#allocation53_spill] sm:$0xff]  ;;  %v3106_v60 = vand.u32 4294901760, %v3105_v32  ;;  %v16890_v39 = vand.u32 4294901760, %v10817_v21 }
 0x291   :  { %3089 = vmatpush.msra.mxu1 %v3088_v46  ;;  %v957_v13 = vadd.f32 %v16881_v41, %v16880_v11  ;;  %v16885_v11 = vld [vmem:[#allocation62_spill] sm:$0xff]  ;;  %v16886_v41 = vld [vmem:[#allocation61_spill] sm:$0xff]  ;;  %v10898_v32 = vsub.f32 %v2414_v37, %v10867_v8 }
 0x292   :  { %2580 = vmatmul.f32.vlgmr.msra.gmra.mxu2 %v2579_v23  ;;  %2937 = vmatpush.msrb.mxu3 %v16882_v43  ;;  %v1130_v43 = vadd.f32 %v16886_v41, %v1088_v42  ;;  %v3111_v33 = vsub.f32 %v10817_v21, %v16890_v39  ;;  %v16891_v42 = vld [vmem:[#allocation66_spill] sm:$0xff]  ;;  %v16897_v39 = vld [vmem:[#allocation91_spill] sm:$0xff] }
 0x293   :  { %2312 = vmatmul.f32.gmra.mxu3 %v16883_v16  ;;  %2825 = vmatmul.f32.vlgmr.msrb.gmra.mxu1 %v2577_v31  ;;  %v1697_v46 = vpop.f32.mrf.mxu2  ;;  %v994_v23 = vadd.f32 %v16885_v11, %v957_v13  ;;  %v10874_v0 = vpop.f32.mrf.mxu3  ;;  %v16888_v16 = vld [vmem:[#allocation84_spill] sm:$0xff]  ;;  %v10885_v13 = vsub.f32 %v2415_v26, %v10857_v27  ;;  %v16892_v41 = vld [vmem:[#allocation86_spill] sm:$0xff]  ;;  %v16900_v21 = vld [vmem:[#allocation79_spill] sm:$0xff] }
 0x294   :  { %16887 = vst [vmem:[#allocation53_spill] sm:$0xff] %v10874_v0  ;;  %v16889_v31 = vand.u32 4294901760, %v16888_v16  ;;  %2992 = vmatpush.msra.mxu0 %v10678_v30  ;;  %3095 = vmatpush.msra.mxu1 %v3094_v48  ;;  %v1172_v11 = vadd.f32 %v16891_v42, %v1130_v43  ;;  %v16893_v16 = vand.u32 4294901760, %v16892_v41  ;;  %v16896_v43 = vld [vmem:[#allocation93_spill] sm:$0xff]  ;;  %v2587_v41 = vand.u32 4294901760, %v2586_v17 }
 0x295   :  { %2771 = vmatmul.f32.vlgmr.msrb.gmra.mxu0 %v10732_v36  ;;  %v16895_v36 = vand.u32 4294901760, %v10835_v20  ;;  %v10900_v26 = vand.u32 4294901760, %v994_v23  ;;  %v1656_v42 = vadd.f32 %v16897_v39, %v16896_v43  ;;  %v3112_v37 = vand.u32 4294901760, %v3111_v33  ;;  %v16904_v39 = vld [vmem:[#allocation60_spill] sm:$0xff] }
 0x296   :  { %2882 = vmatpush.msrb.mxu2 %v16889_v31  ;;  %v16894_v31 = vld [vmem:[#allocation78_spill] sm:$0xff]  ;;  %2994 = vmatpush.msra.mxu0 %v10704_v47  ;;  %v16902_v47 = vld [vmem:[#allocation51_spill] sm:$0xff] }
 0x297   :  { %2939 = vmatpush.msrb.mxu3 %v16894_v31  ;;  %v10891_v0 = vpop.f32.mrf.mxu1  ;;  %3101 = vmatpush.msra.mxu1 %v3100_v55  ;;  %v3117_v48 = vsub.f32 %v10835_v20, %v16895_v36  ;;  %v16898_v31 = vld [vmem:[#allocation89_spill] sm:$0xff]  ;;  %v16901_v55 = vld [vmem:[#allocation52_spill] sm:$0xff]  ;;  %v16903_v20 = vand.u32 4294901760, %v10855_v24  ;;  %v10924_v33 = vsub.f32 %v994_v23, %v10900_v26 }
 0x298   :  { %2886 = vmatpush.msrb.mxu2 %v16893_v16  ;;  %v2593_v16 = vand.u32 4294901760, %v10870_v3  ;;  %v16899_v12 = vand.u32 4294901760, %v16898_v31  ;;  %v1092_v44 = vadd.f32 %v16902_v47, %v16901_v55  ;;  %2996 = vmatpush.msra.mxu0 %v10729_v59  ;;  %v1223_v31 = vadd.f32 %v16904_v39, %v1172_v11 }
 0x299   :  { %2941 = vmatpush.msrb.mxu3 %v16900_v21  ;;  %v10910_v36 = vpop.f32.mrf.mxu0  ;;  %3107 = vmatpush.msra.mxu1 %v3106_v60  ;;  %v3123_v17 = vsub.f32 %v10855_v24, %v16903_v20  ;;  %v16906_v47 = vand.u32 4294901760, %v10793_v53  ;;  %v3118_v21 = vand.u32 4294901760, %v3117_v48  ;;  %v1698_v55 = vadd.f32 %v1697_v46, %v1656_v42  ;;  %v16910_v46 = vld [vmem:[#allocation59_spill] sm:$0xff] }
 0x29a   :  { %2890 = vmatpush.msrb.mxu2 %v16899_v12  ;;  %v16905_v12 = vld [vmem:[#allocation81_spill] sm:$0xff]  ;;  %v2594_v43 = vsub.f32 %v10870_v3, %v2593_v16  ;;  %v16907_v11 = vand.u32 4294901760, %v10497_v45  ;;  %2998 = vmatpush.msra.mxu0 %v10748_v9  ;;  %v1260_v42 = vadd.f32 %v16910_v46, %v1223_v31  ;;  %v16911_v24 = vand.u32 4294901760, %v10520_v57  ;;  %v16912_v45 = vld [vmem:[#allocation82_spill] sm:$0xff] }
 0x29b   :  { %2588 = vmatmul.f32.gmra.mxu2 %v2587_v41  ;;  %2943 = vmatpush.msrb.mxu3 %v16905_v12  ;;  %v16908_v41 = vld [vmem:[#allocation65_spill] sm:$0xff]  ;;  %v3124_v48 = vand.u32 4294901760, %v3123_v17  ;;  %v1660_v17 = vadd.f32 %v10601_v58, %v10623_v29 }
 0x29c   :  { %2705 = vmatmul.f32.vlgmr.msra.gmra.mxu3 %v10699_v14  ;;  %2831 = vmatmul.f32.gmra.mxu1 %v16906_v47  ;;  %v1702_v20 = vpop.f32.mrf.mxu2  ;;  %v1135_v39 = vadd.f32 %v16908_v41, %v1092_v44  ;;  %v1739_v12 = vpop.f32.mrf.mxu3  ;;  %v16909_v47 = vand.u32 4294901760, %v10885_v13  ;;  %v2595_v57 = vand.u32 4294901760, %v2594_v43  ;;  %v16916_v41 = vld [vmem:[#allocation83_spill] sm:$0xff]  ;;  %v10958_v58 = vand.u32 4294901760, %v1260_v42 }
 0x29d   :  { %2894 = vmatpush.msrb.mxu2 %v16907_v11  ;;  %2776 = vmatmul.f32.gmra.mxu0 %v10793_v53  ;;  %v1740_v60 = vadd.f32 %v1739_v12, %v1698_v55  ;;  %v16913_v11 = vld [vmem:[#allocation70_spill] sm:$0xff]  ;;  %v16914_v53 = vand.u32 4294901760, %v10898_v32  ;;  %v16915_v55 = vand.u32 4294901760, %v10550_v63  ;;  %v16921_v63 = vld [vmem:[#allocation64_spill] sm:$0xff] }
 0x29e   :  { %3113 = vmatpush.msra.mxu1 %v3112_v37  ;;  %v3129_v23 = vsub.f32 %v10885_v13, %v16909_v47  ;;  %2945 = vmatpush.msrb.mxu3 %v16912_v45  ;;  %v1178_v9 = vadd.f32 %v16913_v11, %v1135_v39  ;;  %v16917_v39 = vld [vmem:[#allocation55_spill] sm:$0xff]  ;;  %v16918_v12 = vld [vmem:[#allocation54_spill] sm:$0xff]  ;;  %v1703_v45 = vadd.f32 %v1702_v20, %v1660_v17  ;;  %v16924_v20 = vand.u32 4294901760, %v10605_v50  ;;  %v16930_v50 = vld [vmem:[#allocation57_spill] sm:$0xff] }
 0x29f   :  { %2898 = vmatpush.msrb.mxu2 %v16911_v24  ;;  %v10940_v44 = vpop.f32.mrf.mxu1  ;;  %3000 = vmatpush.msra.mxu0 %v10783_v38  ;;  %v3135_v37 = vsub.f32 %v10898_v32, %v16914_v53  ;;  %v1791_v31 = vadd.f32 %v10841_v19, %v1740_v60  ;;  %v2601_v24 = vand.u32 4294901760, %v10924_v33  ;;  %v16920_v19 = vld [vmem:[#allocation85_spill] sm:$0xff]  ;;  %v16926_v17 = vld [vmem:[#allocation63_spill] sm:$0xff] }
 0x2a0   :  { %3119 = vmatpush.msra.mxu1 %v3118_v21  ;;  %2947 = vmatpush.msrb.mxu3 %v16916_v41  ;;  %v1096_v21 = vadd.f32 %v16918_v12, %v16917_v39  ;;  %v3130_v46 = vand.u32 4294901760, %v3129_v23  ;;  %v1227_v43 = vadd.f32 %v16921_v63, %v1178_v9  ;;  %v10973_v9 = vsub.f32 %v1260_v42, %v10958_v58  ;;  %v16929_v12 = vld [vmem:[#allocation90_spill] sm:$0xff] }
 0x2a1   :  { %2902 = vmatpush.msrb.mxu2 %v16915_v55  ;;  %v10955_v47 = vpop.f32.mrf.mxu0  ;;  %3002 = vmatpush.msra.mxu0 %v10801_v18  ;;  %v10961_v29 = vadd.f32 %v10821_v52, %v1791_v31  ;;  %v3136_v60 = vand.u32 4294901760, %v3135_v37  ;;  %v2602_v53 = vsub.f32 %v10924_v33, %v2601_v24  ;;  %v16923_v52 = vld [vmem:[#allocation69_spill] sm:$0xff]  ;;  %v16925_v37 = vld [vmem:[#allocation88_spill] sm:$0xff] }
 0x2a2   :  { %3125 = vmatpush.msra.mxu1 %v3124_v48  ;;  %2949 = vmatpush.msrb.mxu3 %v16920_v19  ;;  %v16922_v48 = vand.u32 4294901760, %v10567_v2  ;;  %v1140_v23 = vadd.f32 %v16923_v52, %v1096_v21  ;;  %v1264_v2 = vadd.f32 %v16926_v17, %v1227_v43  ;;  %v16931_v21 = vld [vmem:[#allocation56_spill] sm:$0xff]  ;;  %v3011_v63 = vand.u32 4294901760, %v10973_v9 }
 0x2a3   :  { %16919 = vst [vmem:[#allocation58_spill] sm:$0xff] %v10961_v29  ;;  %2596 = vmatmul.f32.gmra.mxu2 %v2595_v57  ;;  %3004 = vmatpush.msra.mxu0 %v10819_v25  ;;  %v16927_v57 = vld [vmem:[#allocation74_spill] sm:$0xff]  ;;  %v2603_v39 = vand.u32 4294901760, %v2602_v53  ;;  %v16938_v52 = vand.u32 4294901760, %v10537_v56 }
 0x2a4   :  { %2709 = vmatmul.f32.gmra.mxu3 %v10757_v5  ;;  %2837 = vmatmul.f32.gmra.mxu1 %v2593_v16  ;;  %v1707_v11 = vpop.f32.mrf.mxu2  ;;  %v1745_v31 = vpop.f32.mrf.mxu3  ;;  %v1184_v55 = vadd.f32 %v16927_v57, %v1140_v23 }
 0x2a5   :  { %2906 = vmatpush.msrb.mxu2 %v16922_v48  ;;  %2781 = vmatmul.f32.gmra.mxu0 %v10870_v3  ;;  %v1746_v16 = vadd.f32 %v1745_v31, %v1703_v45  ;;  %v1664_v3 = vadd.f32 %v10683_v15, %v10701_v28  ;;  %v16934_v28 = vld [vmem:[#allocation92_spill] sm:$0xff]  ;;  %v16937_v48 = vld [vmem:[#allocation97_spill] sm:$0xff] }
 0x2a6   :  { %3131 = vmatpush.msra.mxu1 %v3130_v46  ;;  %2951 = vmatpush.msrb.mxu3 %v16925_v37  ;;  %v1100_v46 = vadd.f32 %v16931_v21, %v16930_v50 }
 0x2a7   :  { %2910 = vmatpush.msrb.mxu2 %v16924_v20  ;;  %v10980_v41 = vpop.f32.mrf.mxu1  ;;  %3006 = vmatpush.msra.mxu0 %v10857_v27  ;;  %v1795_v42 = vadd.f32 %v10910_v36, %v1746_v16  ;;  %v16935_v36 = vld [vmem:[#allocation68_spill] sm:$0xff]  ;;  %v1708_v45 = vadd.f32 %v1707_v11, %v1664_v3  ;;  %v16940_v11 = vld [vmem:[#allocation98_spill] sm:$0xff]  ;;  %v16941_v20 = vld [vmem:[#allocation67_spill] sm:$0xff] }
 0x2a8   :  { %16928 = vst [vmem:[#allocation77_spill] sm:$0xff] %v10980_v41  ;;  %3137 = vmatpush.msra.mxu1 %v3136_v60  ;;  %2953 = vmatpush.msrb.mxu3 %v16929_v12  ;;  %v1231_v43 = vadd.f32 %v16935_v36, %v1184_v55  ;;  %v11001_v60 = vand.u32 4294901760, %v1264_v2  ;;  %v16953_v36 = vld [vmem:[#allocation71_spill] sm:$0xff] }
 0x2a9   :  { %3157 = vmatpush.msra.mxu2 %v10537_v56  ;;  %v10990_v19 = vpop.f32.mrf.mxu0  ;;  %3008 = vmatpush.msra.mxu0 %v10867_v8  ;;  %v10996_v15 = vadd.f32 %v10891_v0, %v1795_v42  ;;  %v16939_v0 = vld [vmem:[#allocation73_spill] sm:$0xff]  ;;  %v16942_v56 = vld [vmem:[#allocation75_spill] sm:$0xff]  ;;  %v16945_v42 = vld [vmem:[#allocation96_spill] sm:$0xff] }
 0x2aa   :  { %16932 = vst [vmem:[#allocation50_spill] sm:$0xff] %v10990_v19  ;;  %3363 = vmatpush.msrb.mxu1 %v10505_v54  ;;  %2955 = vmatpush.msrb.mxu3 %v16934_v28  ;;  %v1145_v23 = vadd.f32 %v16939_v0, %v1100_v46  ;;  %v1268_v37 = vadd.f32 %v16941_v20, %v1231_v43 }
 0x2ab   :  { %16933 = vst [vmem:[#allocation62_spill] sm:$0xff] %v10996_v15  ;;  %2604 = vmatmul.f32.gmra.mxu2 %v2603_v39  ;;  %3284 = vmatpush.msrb.mxu0 %v16938_v52  ;;  %v11024_v55 = vsub.f32 %v1264_v2, %v11001_v60  ;;  %v16947_v39 = vand.u32 4294901760, %v16940_v11  ;;  %v16949_v2 = vld [vmem:[#allocation72_spill] sm:$0xff] }
 0x2ac   :  { %2713 = vmatmul.f32.gmra.mxu3 %v10839_v35  ;;  %2843 = vmatmul.f32.gmra.mxu1 %v2601_v24  ;;  %v11003_v53 = vpop.f32.mrf.mxu2  ;;  %v1751_v31 = vpop.f32.mrf.mxu3  ;;  %v3012_v24 = vsub.f32 %v10973_v9, %v3011_v63  ;;  %v1190_v17 = vadd.f32 %v16942_v56, %v1145_v23  ;;  %v11043_v46 = vand.u32 4294901760, %v1268_v37 }
 0x2ad   :  { %16936 = vst [vmem:[#allocation61_spill] sm:$0xff] %v11003_v53  ;;  %3160 = vmatpush.msra.mxu2 %v16937_v48  ;;  %2786 = vmatmul.f32.gmra.mxu0 %v10924_v33  ;;  %v1752_v16 = vadd.f32 %v1751_v31, %v1708_v45  ;;  %v16944_v33 = vand.u32 4294901760, %v16937_v48  ;;  %v16555_v21 = vand.u32 4294901760, %v11024_v55  ;;  %v16954_v48 = vand.u32 4294901760, %v10642_v34 }
 0x2ae   :  { %3365 = vmatpush.msrb.mxu1 %v10528_v1  ;;  %2957 = vmatpush.msrb.mxu3 %v10534_v51  ;;  %v3013_v50 = vand.u32 4294901760, %v3012_v24  ;;  %v16962_v24 = vand.u32 4294901760, %v10716_v49 }
 0x2af   :  { %3163 = vmatpush.msra.mxu2 %v16940_v11  ;;  %v11018_v57 = vpop.f32.mrf.mxu1  ;;  %3288 = vmatpush.msrb.mxu0 %v16944_v33  ;;  %v1799_v3 = vadd.f32 %v10955_v47, %v1752_v16  ;;  %v1235_v47 = vadd.f32 %v16949_v2, %v1190_v17  ;;  %v3020_v45 = vsub.f32 %v11024_v55, %v16555_v21  ;;  %v16963_v16 = vld [vmem:[#allocation102_spill] sm:$0xff]  ;;  %v2435_v21 = vld [vmem:[%s16425_s4 + $0x128] sm:$0xff] }
 0x2b0   :  { %16943 = vst [vmem:[#allocation84_spill] sm:$0xff] %v11018_v57  ;;  %3367 = vmatpush.msrb.mxu1 %v10572_v61  ;;  %2959 = vmatpush.msrb.mxu3 %v16945_v42  ;;  %v16968_v33 = vld [vmem:[#allocation110_spill] sm:$0xff] }
 0x2b1   :  { %3166 = vmatpush.msra.mxu2 %v10621_v62  ;;  %v11029_v51 = vpop.f32.mrf.mxu0  ;;  %3292 = vmatpush.msrb.mxu0 %v16947_v39  ;;  %v11035_v12 = vadd.f32 %v10940_v44, %v1799_v3  ;;  %v16951_v44 = vand.u32 4294901760, %v10621_v62  ;;  %v1272_v43 = vadd.f32 %v16953_v36, %v1235_v47  ;;  %v11063_v62 = vsub.f32 %v1268_v37, %v11043_v46  ;;  %v16965_v37 = vld [vmem:[#allocation108_spill] sm:$0xff]  ;;  %v16971_v42 = vld [vmem:[#allocation106_spill] sm:$0xff]  ;;  %v2445_v47 = vld [vmem:[%s16425_s4 + $0x178] sm:$0xff] }
 0x2b2   :  { %16946 = vst [vmem:[#allocation66_spill] sm:$0xff] %v11029_v51  ;;  %3369 = vmatpush.msrb.mxu1 %v10598_v4  ;;  %3225 = vmatpush.msra.mxu3 %v10505_v54 }
 0x2b3   :  { %16948 = vst [vmem:[#allocation86_spill] sm:$0xff] %v11035_v12  ;;  %2912 = vmatmul.f32.vlgmr.msrb.gmra.mxu2 %v10699_v14  ;;  %3296 = vmatpush.msrb.mxu0 %v16951_v44  ;;  %v16554_v23 = vand.u32 4294901760, %v11063_v62  ;;  %v11079_v31 = vand.u32 4294901760, %v1272_v43  ;;  %v17028_v12 = vld [vmem:[#allocation103_spill] sm:$0xff] }
 0x2b4   :  { %2717 = vmatmul.f32.gmra.mxu3 %v10900_v26  ;;  %3139 = vmatmul.f32.vlgmr.msra.gmra.mxu1 %v10958_v58  ;;  %v11045_v28 = vpop.f32.mrf.mxu2  ;;  %v11050_v54 = vpop.f32.mrf.mxu3 }
 0x2b5   :  { %16950 = vst [vmem:[#allocation78_spill] sm:$0xff] %v11045_v28  ;;  %3169 = vmatpush.msra.mxu2 %v10642_v34  ;;  %3014 = vmatmul.f32.vlgmr.msra.gmra.mxu0 %v3013_v50  ;;  %v3021_v34 = vand.u32 4294901760, %v3020_v45  ;;  %v11098_v11 = vsub.f32 %v1272_v43, %v11079_v31  ;;  %v16975_v50 = vld [vmem:[#allocation114_spill] sm:$0xff]  ;;  %v11147_v45 = vand.u32 4294901760, %v2445_v47 }
 0x2b6   :  { %16952 = vst [vmem:[#allocation93_spill] sm:$0xff] %v11050_v54  ;;  %3371 = vmatpush.msrb.mxu1 %v10608_v6  ;;  %3227 = vmatpush.msra.mxu3 %v10528_v1  ;;  %v16956_v1 = vand.u32 4294901760, %v10676_v7 }
 0x2b7   :  { %3172 = vmatpush.msra.mxu2 %v10676_v7  ;;  %3300 = vmatpush.msrb.mxu0 %v16954_v48  ;;  %v16552_v17 = vand.u32 4294901760, %v11098_v11 }
 0x2b8   :  { %3373 = vmatpush.msrb.mxu1 %v10644_v10  ;;  %v11065_v52 = vpop.f32.mrf.mxu1  ;;  %3229 = vmatpush.msra.mxu3 %v10572_v61  ;;  %v16958_v61 = vand.u32 4294901760, %v10695_v40 }
 0x2b9   :  { %16955 = vst [vmem:[#allocation91_spill] sm:$0xff] %v11065_v52  ;;  %3175 = vmatpush.msra.mxu2 %v10695_v40  ;;  %3304 = vmatpush.msrb.mxu0 %v16956_v1  ;;  %v3028_v40 = vsub.f32 %v11063_v62, %v16554_v23  ;;  %v3036_v2 = vsub.f32 %v11098_v11, %v16552_v17  ;;  %v2443_v1 = vld [vmem:[%s16425_s4 + $0x168] sm:$0xff]  ;;  %v11320_v23 = vand.u32 4294901760, %v2435_v21 }
 0x2ba   :  { %3375 = vmatpush.msrb.mxu1 %v10661_v22  ;;  %v11072_v0 = vpop.f32.mrf.mxu0  ;;  %3231 = vmatpush.msra.mxu3 %v10598_v4 }
 0x2bb   :  { %16957 = vst [vmem:[#allocation89_spill] sm:$0xff] %v11072_v0  ;;  %2916 = vmatmul.f32.gmra.mxu2 %v10757_v5  ;;  %3308 = vmatpush.msrb.mxu0 %v16958_v61  ;;  %v3029_v56 = vand.u32 4294901760, %v3028_v40  ;;  %v3037_v48 = vand.u32 4294901760, %v3036_v2  ;;  %v16980_v61 = vand.u32 4294901760, %v16975_v50  ;;  %v11172_v40 = vand.u32 4294901760, %v2443_v1 }
 0x2bc   :  { %2961 = vmatmul.f32.vlgmr.msrb.gmra.mxu3 %v10699_v14  ;;  %3143 = vmatmul.f32.gmra.mxu1 %v11001_v60  ;;  %v16961_v14 = vld [vmem:[#allocation105_spill] sm:$0xff]  ;;  %v16987_v2 = vand.u32 4294901760, %v10898_v32 }
 0x2bd   :  { %3178 = vmatpush.msra.mxu2 %v10716_v49  ;;  %3022 = vmatmul.f32.gmra.mxu0 %v3021_v34  ;;  %v11084_v7 = vpop.f32.mrf.mxu2  ;;  %v11087_v4 = vpop.f32.mrf.mxu3  ;;  %v16979_v34 = vld [vmem:[#allocation76_spill] sm:$0xff] }
 0x2be   :  { %16959 = vst [vmem:[#allocation79_spill] sm:$0xff] %v11084_v7  ;;  %3377 = vmatpush.msrb.mxu1 %v10678_v30  ;;  %3233 = vmatpush.msra.mxu3 %v10608_v6  ;;  %v16966_v6 = vand.u32 4294901760, %v16961_v14 }
 0x2bf   :  { %16960 = vst [vmem:[#allocation52_spill] sm:$0xff] %v11087_v4  ;;  %3181 = vmatpush.msra.mxu2 %v16961_v14  ;;  %3312 = vmatpush.msrb.mxu0 %v16962_v24 }
 0x2c0   :  { %3379 = vmatpush.msrb.mxu1 %v16963_v16  ;;  %v11100_v20 = vpop.f32.mrf.mxu1  ;;  %3235 = vmatpush.msra.mxu3 %v10644_v10  ;;  %v16969_v10 = vand.u32 4294901760, %v16965_v37 }
 0x2c1   :  { %16964 = vst [vmem:[#allocation51_spill] sm:$0xff] %v11100_v20  ;;  %3184 = vmatpush.msra.mxu2 %v16965_v37  ;;  %3316 = vmatpush.msrb.mxu0 %v16966_v6  ;;  %v16983_v37 = vand.u32 4294901760, %v16979_v34 }
 0x2c2   :  { %3381 = vmatpush.msrb.mxu1 %v10729_v59  ;;  %v11107_v49 = vpop.f32.mrf.mxu0  ;;  %3237 = vmatpush.msra.mxu3 %v10661_v22  ;;  %v16973_v22 = vld [vmem:[#allocation113_spill] sm:$0xff] }
 0x2c3   :  { %16967 = vst [vmem:[#allocation60_spill] sm:$0xff] %v11107_v49  ;;  %2920 = vmatmul.f32.gmra.mxu2 %v10839_v35  ;;  %3320 = vmatpush.msrb.mxu0 %v16969_v10  ;;  %v16976_v44 = vand.u32 4294901760, %v16973_v22  ;;  %v2441_v10 = vld [vmem:[%s16425_s4 + $0x158] sm:$0xff]  ;;  %v2460_v49 = vld [vmem:[%s16425_s4 + $0x1f0] sm:$0xff] }
 0x2c4   :  { %2965 = vmatmul.f32.gmra.mxu3 %v10757_v5  ;;  %3147 = vmatmul.f32.gmra.mxu1 %v11043_v46  ;;  %v16974_v5 = vand.u32 4294901760, %v16968_v33 }
 0x2c5   :  { %3187 = vmatpush.msra.mxu2 %v16968_v33  ;;  %3030 = vmatmul.f32.gmra.mxu0 %v3029_v56  ;;  %v11117_v3 = vpop.f32.mrf.mxu2  ;;  %v11120_v39 = vpop.f32.mrf.mxu3  ;;  %v16984_v33 = vand.u32 4294901760, %v10885_v13 }
 0x2c6   :  { %16970 = vst [vmem:[#allocation81_spill] sm:$0xff] %v11117_v3  ;;  %3383 = vmatpush.msrb.mxu1 %v16971_v42  ;;  %3239 = vmatpush.msra.mxu3 %v10678_v30  ;;  %v2444_v30 = vld [vmem:[%s16425_s4 + $0x170] sm:$0xff] }
 0x2c7   :  { %16972 = vst [vmem:[#allocation65_spill] sm:$0xff] %v11120_v39  ;;  %3190 = vmatpush.msra.mxu2 %v16973_v22  ;;  %3324 = vmatpush.msrb.mxu0 %v16974_v5  ;;  %v11157_v14 = vand.u32 4294901760, %v2444_v30  ;;  %v17009_v3 = vld [vmem:[#allocation100_spill] sm:$0xff] }
 0x2c8   :  { %3385 = vmatpush.msrb.mxu1 %v10783_v38  ;;  %3241 = vmatpush.msra.mxu3 %v16963_v16  ;;  %v11141_v36 = vpop.f32.mrf.mxu1  ;;  %v11170_v16 = vsub.f32 %v2445_v47, %v11147_v45 }
 0x2c9   :  { %3193 = vmatpush.msra.mxu2 %v16975_v50  ;;  %3328 = vmatpush.msrb.mxu0 %v16976_v44  ;;  %16977 = vst [vmem:[#allocation59_spill] sm:$0xff] %v11141_v36  ;;  %v11180_v6 = vsub.f32 %v2444_v30, %v11157_v14 }
 0x2ca   :  { %3387 = vmatpush.msrb.mxu1 %v10801_v18  ;;  %v11143_v43 = vpop.f32.mrf.mxu0  ;;  %3243 = vmatpush.msra.mxu3 %v10729_v59  ;;  %v16551_v22 = vand.u32 4294901760, %v11170_v16 }
 0x2cb   :  { %16978 = vst [vmem:[#allocation82_spill] sm:$0xff] %v11143_v43  ;;  %2924 = vmatmul.f32.gmra.mxu2 %v10900_v26  ;;  %3332 = vmatpush.msrb.mxu0 %v16980_v61 }
 0x2cc   :  { %2969 = vmatmul.f32.gmra.mxu3 %v10839_v35  ;;  %3151 = vmatmul.f32.gmra.mxu1 %v11079_v31  ;;  %v2442_v35 = vld [vmem:[%s16425_s4 + $0x160] sm:$0xff]  ;;  %v3479_v30 = vsub.f32 %v11170_v16, %v16551_v22 }
 0x2cd   :  { %3196 = vmatpush.msra.mxu2 %v16979_v34  ;;  %3038 = vmatmul.f32.gmra.mxu0 %v3037_v48  ;;  %v11159_v59 = vpop.f32.mrf.mxu2  ;;  %v11165_v24 = vpop.f32.mrf.mxu3  ;;  %v11182_v56 = vand.u32 4294901760, %v2442_v35 }
 0x2ce   :  { %16981 = vst [vmem:[#allocation70_spill] sm:$0xff] %v11159_v59  ;;  %3389 = vmatpush.msrb.mxu1 %v10819_v25  ;;  %3245 = vmatpush.msra.mxu3 %v16971_v42  ;;  %v11354_v59 = vsub.f32 %v2435_v21, %v11320_v23 }
 0x2cf   :  { %16982 = vst [vmem:[#allocation83_spill] sm:$0xff] %v11165_v24  ;;  %3199 = vmatpush.msra.mxu2 %v10885_v13  ;;  %3336 = vmatpush.msrb.mxu0 %v16983_v37  ;;  %v2440_v13 = vld [vmem:[%s16425_s4 + $0x150] sm:$0xff]  ;;  %v11211_v47 = vsub.f32 %v2442_v35, %v11182_v56  ;;  %v17008_v24 = vld [vmem:[#allocation87_spill] sm:$0xff] }
 0x2d0   :  { %3391 = vmatpush.msrb.mxu1 %v10857_v27  ;;  %3247 = vmatpush.msra.mxu3 %v10783_v38  ;;  %v11195_v38 = vsub.f32 %v2443_v1, %v11172_v40  ;;  %v11203_v5 = vpop.f32.mrf.mxu1  ;;  %v11228_v48 = vand.u32 4294901760, %v2440_v13  ;;  %v2438_v1 = vld [vmem:[%s16425_s4 + $0x140] sm:$0xff]  ;;  %v1505_v52 = vadd.f32 %v17009_v3, %v17008_v24  ;;  %v17016_v57 = vand.u32 4294901760, %v11354_v59 }
 0x2d1   :  { %3202 = vmatpush.msra.mxu2 %v10898_v32  ;;  %3340 = vmatpush.msrb.mxu0 %v16984_v33  ;;  %16986 = vst [vmem:[#allocation54_spill] sm:$0xff] %v11203_v5  ;;  %v2439_v32 = vld [vmem:[%s16425_s4 + $0x148] sm:$0xff]  ;;  %v16553_v35 = vand.u32 4294901760, %v11211_v47 }
 0x2d2   :  { %3393 = vmatpush.msrb.mxu1 %v10867_v8  ;;  %v11190_v42 = vpop.f32.mrf.mxu0  ;;  %3249 = vmatpush.msra.mxu3 %v10801_v18  ;;  %v11208_v18 = vand.u32 4294901760, %v2441_v10  ;;  %v11244_v61 = vand.u32 4294901760, %v2439_v32  ;;  %v11255_v33 = vsub.f32 %v2440_v13, %v11228_v48 }
 0x2d3   :  { %16985 = vst [vmem:[#allocation55_spill] sm:$0xff] %v11190_v42  ;;  %3205 = vmatmul.f32.vlgmr.msra.gmra.mxu2 %v10973_v9  ;;  %3344 = vmatpush.msrb.mxu0 %v16987_v2  ;;  %v2437_v2 = vld [vmem:[%s16425_s4 + $0x138] sm:$0xff]  ;;  %v3497_v13 = vsub.f32 %v11211_v47, %v16553_v35  ;;  %v2436_v9 = vld [vmem:[%s16425_s4 + $0x130] sm:$0xff] }
 0x2d4   :  { %2973 = vmatmul.f32.gmra.mxu3 %v10900_v26  ;;  %3395 = vmatmul.f32.vlgmr.msrb.gmra.mxu1 %v10958_v58  ;;  %v16549_v26 = vand.u32 4294901760, %v11180_v6  ;;  %v11242_v34 = vsub.f32 %v2441_v10, %v11208_v18  ;;  %v11257_v10 = vand.u32 4294901760, %v2438_v1  ;;  %v11280_v17 = vand.u32 4294901760, %v2437_v2 }
 0x2d5   :  { %3412 = vmatpush.msrb.mxu2 %v11147_v45  ;;  %3659 = vmatpush.msra.mxu1 %v11147_v45  ;;  %v11216_v50 = vpop.f32.mrf.mxu2  ;;  %v11221_v44 = vpop.f32.mrf.mxu3 }
 0x2d6   :  { %3346 = vmatmul.f32.vlgmr.msrb.gmra.mxu0 %v10958_v58  ;;  %16988 = vst [vmem:[#allocation85_spill] sm:$0xff] %v11216_v50  ;;  %3251 = vmatpush.msra.mxu3 %v10819_v25  ;;  %v16550_v58 = vand.u32 4294901760, %v11195_v38  ;;  %v3485_v25 = vsub.f32 %v11180_v6, %v16549_v26  ;;  %v11291_v35 = vsub.f32 %v2438_v1, %v11257_v10  ;;  %v11303_v1 = vand.u32 4294901760, %v2436_v9  ;;  %v17012_v50 = vld [vmem:[#allocation104_spill] sm:$0xff] }
 0x2d7   :  { %16989 = vst [vmem:[#allocation64_spill] sm:$0xff] %v11221_v44  ;;  %3414 = vmatpush.msrb.mxu2 %v11157_v14  ;;  %3591 = vmatpush.msra.mxu0 %v11170_v16  ;;  %v1542_v39 = vadd.f32 %v17012_v50, %v1505_v52  ;;  %v3539_v52 = vsub.f32 %v11354_v59, %v17016_v57 }
 0x2d8   :  { %3661 = vmatpush.msra.mxu1 %v11157_v14  ;;  %3253 = vmatpush.msra.mxu3 %v10857_v27  ;;  %v3480_v27 = vand.u32 4294901760, %v3479_v30  ;;  %v3491_v37 = vsub.f32 %v11195_v38, %v16550_v58  ;;  %v11273_v30 = vsub.f32 %v2439_v32, %v11244_v61  ;;  %v16556_v58 = vand.u32 4294901760, %v11242_v34 }
 0x2d9   :  { %3416 = vmatpush.msrb.mxu2 %v11172_v40  ;;  %3594 = vmatpush.msra.mxu0 %v11180_v6  ;;  %v17003_v44 = vand.u32 4294901760, %v11291_v35  ;;  %v11464_v28 = vand.u32 4294901760, %v1542_v39 }
 0x2da   :  { %3663 = vmatpush.msra.mxu1 %v11172_v40  ;;  %3255 = vmatpush.msra.mxu3 %v10867_v8  ;;  %v11262_v26 = vpop.f32.mrf.mxu0  ;;  %v3486_v8 = vand.u32 4294901760, %v3485_v25  ;;  %v3492_v25 = vand.u32 4294901760, %v3491_v37  ;;  %v3503_v37 = vsub.f32 %v11242_v34, %v16556_v58 }
 0x2db   :  { %3418 = vmatpush.msrb.mxu2 %v11182_v56  ;;  %16990 = vst [vmem:[#allocation69_spill] sm:$0xff] %v11262_v26  ;;  %3597 = vmatpush.msra.mxu0 %v11195_v38  ;;  %v16995_v26 = vld [vmem:[#allocation95_spill] sm:$0xff] }
 0x2dc   :  { %3665 = vmatpush.msra.mxu1 %v11182_v56  ;;  %3210 = vmatmul.f32.gmra.mxu2 %v11024_v55 }
 0x2dd   :  { %3259 = vmatmul.f32.vlgmr.msra.gmra.mxu3 %v3011_v63  ;;  %3399 = vmatmul.f32.gmra.mxu1 %v11001_v60  ;;  %v11278_v22 = vpop.f32.mrf.mxu2  ;;  %v11285_v63 = vpop.f32.mrf.mxu1 }
 0x2de   :  { %3420 = vmatpush.msrb.mxu2 %v11208_v18  ;;  %16991 = vst [vmem:[#allocation88_spill] sm:$0xff] %v11278_v22  ;;  %3481 = vmatpush.msrb.mxu3 %v3480_v27  ;;  %v11288_v32 = vpop.f32.mrf.mxu3  ;;  %v3498_v27 = vand.u32 4294901760, %v3497_v13  ;;  %v16996_v13 = vand.u32 4294901760, %v11255_v33 }
 0x2df   :  { %16992 = vst [vmem:[#allocation63_spill] sm:$0xff] %v11285_v63  ;;  %3600 = vmatpush.msra.mxu0 %v11211_v47  ;;  %3667 = vmatpush.msra.mxu1 %v11208_v18  ;;  %v16994_v63 = vld [vmem:[#allocation80_spill] sm:$0xff] }
 0x2e0   :  { %16993 = vst [vmem:[#allocation74_spill] sm:$0xff] %v11288_v32  ;;  %3350 = vmatmul.f32.gmra.mxu0 %v11001_v60  ;;  %3422 = vmatpush.msrb.mxu2 %v11228_v48  ;;  %v1501_v5 = vadd.f32 %v16995_v26, %v16994_v63  ;;  %v11311_v60 = vsub.f32 %v2437_v2, %v11280_v17  ;;  %v16997_v63 = vld [vmem:[#allocation101_spill] sm:$0xff]  ;;  %v2458_v32 = vld [vmem:[%s16425_s4 + $0x1e0] sm:$0xff] }
 0x2e1   :  { %3487 = vmatpush.msrb.mxu3 %v3486_v8  ;;  %3603 = vmatpush.msra.mxu0 %v11242_v34  ;;  %v2434_v8 = vld [vmem:[%s16425_s4 + $0x120] sm:$0xff]  ;;  %v3509_v58 = vsub.f32 %v11255_v33, %v16996_v13  ;;  %v2433_v2 = vld [vmem:[%s16425_s4 + $0x118] sm:$0xff]  ;;  %v16998_v13 = vand.u32 4294901760, %v11273_v30  ;;  %v11334_v26 = vsub.f32 %v2436_v9, %v11303_v1 }
 0x2e2   :  { %3669 = vmatpush.msra.mxu1 %v11228_v48  ;;  %3424 = vmatpush.msrb.mxu2 %v11244_v61  ;;  %v1538_v42 = vadd.f32 %v16997_v63, %v1501_v5  ;;  %v11336_v5 = vand.u32 4294901760, %v2434_v8  ;;  %v11338_v63 = vpop.f32.mrf.mxu0  ;;  %v11356_v20 = vand.u32 4294901760, %v2433_v2 }
 0x2e3   :  { %3493 = vmatpush.msrb.mxu3 %v3492_v25  ;;  %3606 = vmatpush.msra.mxu0 %v11255_v33  ;;  %v3504_v25 = vand.u32 4294901760, %v3503_v37  ;;  %v3515_v36 = vsub.f32 %v11273_v30, %v16998_v13  ;;  %16999 = vst [vmem:[#allocation90_spill] sm:$0xff] %v11338_v63  ;;  %v17001_v37 = vand.u32 4294901760, %v11024_v55  ;;  %v3510_v9 = vand.u32 4294901760, %v3509_v58  ;;  %v2432_v55 = vld [vmem:[%s16425_s4 + $0x110] sm:$0xff] }
 0x2e4   :  { %3671 = vmatpush.msra.mxu1 %v11244_v61  ;;  %3426 = vmatpush.msrb.mxu2 %v11257_v10  ;;  %v3521_v63 = vsub.f32 %v11291_v35, %v17003_v44  ;;  %17004 = vst [vmem:[#allocation92_spill] sm:$0xff] %v11356_v20  ;;  %v11366_v58 = vand.u32 4294901760, %v1538_v42  ;;  %v11392_v22 = vsub.f32 %v2433_v2, %v11356_v20 }
 0x2e5   :  { %3499 = vmatpush.msrb.mxu3 %v3498_v27  ;;  %3609 = vmatpush.msra.mxu0 %v11273_v30  ;;  %v11342_v43 = vpop.f32.mrf.mxu2  ;;  %v2461_v27 = vld [vmem:[%s16425_s4 + $0x1f8] sm:$0xff]  ;;  %v11368_v44 = vpop.f32.mrf.mxu1  ;;  %v3516_v21 = vand.u32 4294901760, %v3515_v36  ;;  %v2431_v36 = vld [vmem:[%s16425_s4 + $0x108] sm:$0xff] }
 0x2e6   :  { %3673 = vmatpush.msra.mxu1 %v11257_v10  ;;  %17000 = vst [vmem:[#allocation57_spill] sm:$0xff] %v11342_v43  ;;  %3215 = vmatmul.f32.gmra.mxu2 %v11063_v62  ;;  %v11348_v13 = vpop.f32.mrf.mxu3  ;;  %v3522_v43 = vand.u32 4294901760, %v3521_v63  ;;  %v2430_v63 = vld [vmem:[%s16425_s4 + $0x100] sm:$0xff]  ;;  %v11408_v2 = vsub.f32 %v1538_v42, %v11366_v58  ;;  %v11414_v24 = vand.u32 4294901760, %v2431_v36 }
 0x2e7   :  { %3265 = vmatmul.f32.gmra.mxu3 %v17001_v37  ;;  %17002 = vst [vmem:[#allocation56_spill] sm:$0xff] %v11348_v13  ;;  %3403 = vmatmul.f32.gmra.mxu1 %v11043_v46  ;;  %v11372_v37 = vsub.f32 %v2434_v8, %v11336_v5  ;;  %v17006_v13 = vand.u32 4294901760, %v11311_v60  ;;  %v11386_v8 = vand.u32 4294901760, %v2461_v27 }
 0x2e8   :  { %3428 = vmatpush.msrb.mxu2 %v11280_v17  ;;  %17005 = vst [vmem:[#allocation68_spill] sm:$0xff] %v11368_v44  ;;  %3505 = vmatpush.msrb.mxu3 %v3504_v25  ;;  %v11389_v44 = vand.u32 4294901760, %v2432_v55  ;;  %v11459_v4 = vsub.f32 %v2431_v36, %v11414_v24  ;;  %v3540_v36 = vand.u32 4294901760, %v3539_v52 }
 0x2e9   :  { %3612 = vmatpush.msra.mxu0 %v11291_v35  ;;  %3675 = vmatpush.msra.mxu1 %v11280_v17  ;;  %v3527_v25 = vsub.f32 %v11311_v60, %v17006_v13  ;;  %v2459_v13 = vld [vmem:[%s16425_s4 + $0x1e8] sm:$0xff]  ;;  %17011 = vst [vmem:[#allocation73_spill] sm:$0xff] %v11414_v24  ;;  %v11426_v7 = vsub.f32 %v2461_v27, %v11386_v8 }
 0x2ea   :  { %3354 = vmatmul.f32.gmra.mxu0 %v11043_v46  ;;  %3430 = vmatpush.msrb.mxu2 %v11303_v1  ;;  %17007 = vst [vmem:[#allocation97_spill] sm:$0xff] %v11389_v44  ;;  %v17010_v46 = vand.u32 4294901760, %v11334_v26  ;;  %v11437_v50 = vsub.f32 %v2432_v55, %v11389_v44  ;;  %v11442_v27 = vpop.f32.mrf.mxu0  ;;  %v17020_v55 = vand.u32 4294901760, %v11063_v62 }
 0x2eb   :  { %3511 = vmatpush.msrb.mxu3 %v3510_v9  ;;  %3615 = vmatpush.msra.mxu0 %v11311_v60  ;;  %v11405_v9 = vand.u32 4294901760, %v2460_v49  ;;  %v3528_v42 = vand.u32 4294901760, %v3527_v25  ;;  %17014 = vst [vmem:[#allocation67_spill] sm:$0xff] %v11426_v7  ;;  %v11439_v25 = vand.u32 4294901760, %v2430_v63  ;;  %v17029_v54 = vand.u32 4294901760, %v11426_v7 }
 0x2ec   :  { %3677 = vmatpush.msra.mxu1 %v11303_v1  ;;  %3432 = vmatpush.msrb.mxu2 %v11320_v23  ;;  %v3533_v3 = vsub.f32 %v11334_v26, %v17010_v46  ;;  %v11428_v46 = vand.u32 4294901760, %v2459_v13  ;;  %17018 = vst [vmem:[#allocation72_spill] sm:$0xff] %v11442_v27  ;;  %v17032_v15 = vand.u32 4294901760, %v11437_v50 }
 0x2ed   :  { %3517 = vmatpush.msrb.mxu3 %v3516_v21  ;;  %3618 = vmatpush.msra.mxu0 %v11334_v26  ;;  %v11423_v21 = vpop.f32.mrf.mxu2  ;;  %17017 = vst [vmem:[#allocation96_spill] sm:$0xff] %v11439_v25  ;;  %v11479_v41 = vsub.f32 %v2430_v63, %v11439_v25  ;;  %v17026_v63 = vand.u32 4294901760, %v11408_v2 }
 0x2ee   :  { %3679 = vmatpush.msra.mxu1 %v11320_v23  ;;  %17013 = vst [vmem:[#allocation98_spill] sm:$0xff] %v11423_v21  ;;  %3434 = vmatpush.msrb.mxu2 %v11336_v5  ;;  %v11431_v0 = vpop.f32.mrf.mxu3  ;;  %v3534_v51 = vand.u32 4294901760, %v3533_v3  ;;  %v17021_v21 = vand.u32 4294901760, %v11372_v37  ;;  %v11470_v3 = vsub.f32 %v2459_v13, %v11428_v46  ;;  %v2456_v13 = vld [vmem:[%s16425_s4 + $0x1d0] sm:$0xff]  ;;  %v3557_v29 = vsub.f32 %v11437_v50, %v17032_v15 }
 0x2ef   :  { %3523 = vmatpush.msrb.mxu3 %v3522_v43  ;;  %17015 = vst [vmem:[#allocation75_spill] sm:$0xff] %v11431_v0  ;;  %3621 = vmatpush.msra.mxu0 %v11354_v59  ;;  %v11447_v43 = vsub.f32 %v2460_v49, %v11405_v9  ;;  %v11449_v0 = vand.u32 4294901760, %v2458_v32  ;;  %v2457_v49 = vld [vmem:[%s16425_s4 + $0x1d8] sm:$0xff] }
 0x2f0   :  { %3681 = vmatpush.msra.mxu1 %v11336_v5  ;;  %3220 = vmatmul.f32.gmra.mxu2 %v11098_v11  ;;  %v3545_v27 = vsub.f32 %v11372_v37, %v17021_v21  ;;  %17022 = vst [vmem:[#allocation105_spill] sm:$0xff] %v11470_v3  ;;  %v17024_v21 = vand.u32 4294901760, %v11392_v22  ;;  %v11491_v62 = vand.u32 4294901760, %v2457_v49 }
 0x2f1   :  { %17019 = vst [vmem:[#allocation71_spill] sm:$0xff] %v11447_v43  ;;  %3271 = vmatmul.f32.gmra.mxu3 %v17020_v55  ;;  %3407 = vmatmul.f32.gmra.mxu1 %v11079_v31  ;;  %v11472_v55 = vpop.f32.mrf.mxu1  ;;  %v11489_v52 = vsub.f32 %v2458_v32, %v11449_v0 }
 0x2f2   :  { %3436 = vmatpush.msrb.mxu2 %v11356_v20  ;;  %17023 = vst [vmem:[#allocation102_spill] sm:$0xff] %v11472_v55  ;;  %3529 = vmatpush.msrb.mxu3 %v3528_v42  ;;  %v3551_v57 = vsub.f32 %v11392_v22, %v17024_v21  ;;  %v3446_v21 = vsub.f32 %v11408_v2, %v17026_v63  ;;  %v3546_v19 = vand.u32 4294901760, %v3545_v27  ;;  %v17027_v42 = vld [vmem:[#allocation94_spill] sm:$0xff]  ;;  %v11511_v27 = vand.u32 4294901760, %v2456_v13 }
 0x2f3   :  { %3624 = vmatpush.msra.mxu0 %v11372_v37  ;;  %3683 = vmatpush.msra.mxu1 %v11356_v20  ;;  %17025 = vst [vmem:[#allocation108_spill] sm:$0xff] %v11489_v52  ;;  %v1509_v32 = vadd.f32 %v17028_v12, %v17027_v42  ;;  %v3913_v63 = vsub.f32 %v11426_v7, %v17029_v54  ;;  %v17036_v7 = vand.u32 4294901760, %v11459_v4  ;;  %v11542_v20 = vpop.f32.mrf.mxu0 }
 0x2f4   :  { %3358 = vmatmul.f32.gmra.mxu0 %v11079_v31  ;;  %3438 = vmatpush.msrb.mxu2 %v11389_v44  ;;  %v2455_v31 = vld [vmem:[%s16425_s4 + $0x1c8] sm:$0xff]  ;;  %v11514_v55 = vsub.f32 %v1542_v39, %v11464_v28  ;;  %v3552_v12 = vand.u32 4294901760, %v3551_v57  ;;  %v17033_v39 = vand.u32 4294901760, %v11447_v43  ;;  %v3447_v54 = vand.u32 4294901760, %v3446_v21  ;;  %17037 = vst [vmem:[#allocation114_spill] sm:$0xff] %v11542_v20 }
 0x2f5   :  { %3535 = vmatpush.msrb.mxu3 %v3534_v51  ;;  %3627 = vmatpush.msra.mxu0 %v11392_v22  ;;  %v11508_v53 = vpop.f32.mrf.mxu2  ;;  %v2454_v51 = vld [vmem:[%s16425_s4 + $0x1c0] sm:$0xff]  ;;  %v11535_v15 = vand.u32 4294901760, %v2455_v31 }
 0x2f6   :  { %3685 = vmatpush.msra.mxu1 %v11389_v44  ;;  %17030 = vst [vmem:[#allocation110_spill] sm:$0xff] %v11508_v53  ;;  %3440 = vmatpush.msrb.mxu2 %v11414_v24  ;;  %v11517_v42 = vpop.f32.mrf.mxu3  ;;  %v3919_v57 = vsub.f32 %v11447_v43, %v17033_v39  ;;  %v11533_v53 = vsub.f32 %v2457_v49, %v11491_v62  ;;  %v3914_v49 = vand.u32 4294901760, %v3913_v63  ;;  %v17038_v39 = vand.u32 4294901760, %v11470_v3 }
 0x2f7   :  { %3541 = vmatpush.msrb.mxu3 %v3540_v36  ;;  %17031 = vst [vmem:[#allocation106_spill] sm:$0xff] %v11517_v42  ;;  %3630 = vmatpush.msra.mxu0 %v11437_v50  ;;  %v17035_v42 = vld [vmem:[#allocation112_spill] sm:$0xff]  ;;  %v17041_v36 = vand.u32 4294901760, %v11479_v41  ;;  %v3453_v63 = vand.u32 4294901760, %v11514_v55  ;;  %v17045_v43 = vand.u32 4294901760, %v11170_v16  ;;  %v17047_v16 = vand.u32 4294901760, %v11180_v6 }
 0x2f8   :  { %3687 = vmatpush.msra.mxu1 %v11414_v24  ;;  %17034 = vst [vmem:[#allocation113_spill] sm:$0xff] %v11533_v53  ;;  %v1546_v44 = vadd.f32 %v17035_v42, %v1509_v32  ;;  %3442 = vmatpush.msrb.mxu2 %v11439_v25  ;;  %v3563_v24 = vsub.f32 %v11459_v4, %v17036_v7  ;;  %v11552_v42 = vand.u32 4294901760, %v2454_v51  ;;  %v3558_v7 = vand.u32 4294901760, %v3557_v29 }
 0x2f9   :  { %3547 = vmatpush.msrb.mxu3 %v3546_v19  ;;  %3633 = vmatpush.msra.mxu0 %v11459_v4  ;;  %v3925_v21 = vsub.f32 %v11470_v3, %v17038_v39  ;;  %v11550_v32 = vsub.f32 %v2456_v13, %v11511_v27  ;;  %v17040_v19 = vand.u32 4294901760, %v11098_v11  ;;  %v3569_v20 = vsub.f32 %v11479_v41, %v17041_v36  ;;  %v2453_v39 = vld [vmem:[%s16425_s4 + $0x1b8] sm:$0xff]  ;;  %v11574_v3 = vpop.f32.mrf.mxu1 }
 0x2fa   :  { %3689 = vmatpush.msra.mxu1 %v11439_v25  ;;  %3448 = vmatmul.f32.vlgmr.msrb.gmra.mxu2 %v3447_v54  ;;  %v17042_v13 = vand.u32 4294901760, %v11408_v2  ;;  %v3920_v25 = vand.u32 4294901760, %v3919_v57  ;;  %v17043_v11 = vand.u32 4294901760, %v11489_v52  ;;  %v11572_v36 = vand.u32 4294901760, %v1546_v44  ;;  %17044 = vst [vmem:[#allocation80_spill] sm:$0xff] %v11574_v3  ;;  %v2452_v57 = vld [vmem:[%s16425_s4 + $0x1b0] sm:$0xff] }
 0x2fb   :  { %17039 = vst [vmem:[#allocation76_spill] sm:$0xff] %v11550_v32  ;;  %3277 = vmatmul.f32.gmra.mxu3 %v17040_v19  ;;  %v11570_v19 = vsub.f32 %v2455_v31, %v11535_v15  ;;  %3636 = vmatpush.msra.mxu0 %v11479_v41  ;;  %v11587_v29 = vsub.f32 %v2454_v51, %v11552_v42  ;;  %v11589_v3 = vand.u32 4294901760, %v2453_v39 }
 0x2fc   :  { %3693 = vmatmul.f32.vlgmr.msra.gmra.mxu1 %v17042_v13  ;;  %3553 = vmatpush.msrb.mxu3 %v3552_v12  ;;  %v3931_v54 = vsub.f32 %v11489_v52, %v17043_v11  ;;  %v3564_v12 = vand.u32 4294901760, %v3563_v24  ;;  %v3926_v13 = vand.u32 4294901760, %v3925_v21  ;;  %v3570_v24 = vand.u32 4294901760, %v3569_v20  ;;  %v17050_v20 = vld [vmem:[#allocation99_spill] sm:$0xff] }
 0x2fd   :  { %3718 = vmatpush.msra.mxu2 %v17045_v43  ;;  %3915 = vmatpush.msrb.mxu1 %v3914_v49  ;;  %v11583_v31 = vpop.f32.mrf.mxu2  ;;  %v3454_v43 = vsub.f32 %v11514_v55, %v3453_v63  ;;  %v17049_v21 = vand.u32 4294901760, %v11533_v53  ;;  %v17051_v11 = vld [vmem:[#allocation111_spill] sm:$0xff]  ;;  %v17052_v52 = vand.u32 4294901760, %v11195_v38  ;;  %v17054_v38 = vld [vmem:[#allocation53_spill] sm:$0xff] }
 0x2fe   :  { %3639 = vmatmul.f32.vlgmr.msra.gmra.mxu0 %v11408_v2  ;;  %17046 = vst [vmem:[#allocation95_spill] sm:$0xff] %v11583_v31  ;;  %3559 = vmatpush.msrb.mxu3 %v3558_v7  ;;  %v11594_v49 = vpop.f32.mrf.mxu3  ;;  %v2451_v2 = vld [vmem:[%s16425_s4 + $0x1a8] sm:$0xff]  ;;  %v3932_v51 = vand.u32 4294901760, %v3931_v54  ;;  %v1513_v31 = vadd.f32 %v17051_v11, %v17050_v20  ;;  %v17053_v54 = vand.u32 4294901760, %v11550_v32  ;;  %v17055_v20 = vand.u32 4294901760, %v11211_v47 }
 0x2ff   :  { %3722 = vmatpush.msra.mxu2 %v17047_v16  ;;  %17048 = vst [vmem:[#allocation101_spill] sm:$0xff] %v11594_v49  ;;  %3846 = vmatpush.msrb.mxu0 %v11386_v8  ;;  %v3937_v7 = vsub.f32 %v11533_v53, %v17049_v21  ;;  %v11604_v16 = vand.u32 4294901760, %v2452_v57  ;;  %v11609_v49 = vsub.f32 %v1546_v44, %v11572_v36  ;;  %v3455_v6 = vand.u32 4294901760, %v3454_v43  ;;  %v11629_v53 = vpop.f32.mrf.mxu0 }
 0x300   :  { %3921 = vmatpush.msrb.mxu1 %v3920_v25  ;;  %3565 = vmatpush.msrb.mxu3 %v3564_v12  ;;  %v2450_v25 = vld [vmem:[%s16425_s4 + $0x1a0] sm:$0xff]  ;;  %v3943_v21 = vsub.f32 %v11550_v32, %v17053_v54  ;;  %v11622_v44 = vsub.f32 %v2453_v39, %v11589_v3  ;;  %v11624_v12 = vand.u32 4294901760, %v2451_v2  ;;  %17056 = vst [vmem:[#allocation87_spill] sm:$0xff] %v11629_v53  ;;  %v17057_v54 = vand.u32 4294901760, %v11570_v19  ;;  %v17179_v53 = vld [vmem:[#allocation25_spill] sm:$0xff] }
 0x301   :  { %3726 = vmatpush.msra.mxu2 %v17052_v52  ;;  %3848 = vmatpush.msrb.mxu0 %v11405_v9  ;;  %v1550_v52 = vadd.f32 %v17054_v38, %v1513_v31  ;;  %v11636_v11 = vsub.f32 %v2452_v57, %v11604_v16  ;;  %v11638_v32 = vand.u32 4294901760, %v2450_v25  ;;  %v3461_v47 = vand.u32 4294901760, %v11609_v49  ;;  %v2449_v31 = vld [vmem:[%s16425_s4 + $0x198] sm:$0xff] }
 0x302   :  { %3927 = vmatpush.msrb.mxu1 %v3926_v13  ;;  %3571 = vmatpush.msrb.mxu3 %v3570_v24  ;;  %v3938_v13 = vand.u32 4294901760, %v3937_v7  ;;  %v3949_v39 = vsub.f32 %v11570_v19, %v17057_v54  ;;  %v17058_v24 = vand.u32 4294901760, %v11242_v34  ;;  %v3944_v43 = vand.u32 4294901760, %v3943_v21  ;;  %v11658_v54 = vpop.f32.mrf.mxu1 }
 0x303   :  { %3730 = vmatpush.msra.mxu2 %v17055_v20  ;;  %3850 = vmatpush.msrb.mxu0 %v11428_v46  ;;  %v11654_v38 = vsub.f32 %v2451_v2, %v11624_v12  ;;  %v11656_v20 = vand.u32 4294901760, %v1550_v52  ;;  %17061 = vst [vmem:[#allocation104_spill] sm:$0xff] %v11658_v54  ;;  %v3462_v7 = vsub.f32 %v11609_v49, %v3461_v47 }
 0x304   :  { %3933 = vmatpush.msrb.mxu1 %v3932_v51  ;;  %3456 = vmatmul.f32.gmra.mxu2 %v3455_v6  ;;  %v17059_v51 = vand.u32 4294901760, %v11587_v29  ;;  %v3950_v21 = vand.u32 4294901760, %v3949_v39 }
 0x305   :  { %3573 = vmatmul.f32.vlgmr.msrb.gmra.mxu3 %v11366_v58  ;;  %3699 = vmatmul.f32.gmra.mxu1 %v3453_v63  ;;  %v11651_v6 = vpop.f32.mrf.mxu2  ;;  %v2448_v63 = vld [vmem:[%s16425_s4 + $0x190] sm:$0xff] }
 0x306   :  { %3734 = vmatpush.msra.mxu2 %v17058_v24  ;;  %v3955_v57 = vsub.f32 %v11587_v29, %v17059_v51  ;;  %17060 = vst [vmem:[#allocation100_spill] sm:$0xff] %v11651_v6  ;;  %3797 = vmatpush.msra.mxu3 %v11147_v45  ;;  %v11662_v34 = vpop.f32.mrf.mxu3  ;;  %v11670_v24 = vsub.f32 %v2450_v25, %v11638_v32  ;;  %v11672_v51 = vand.u32 4294901760, %v2449_v31  ;;  %v17063_v45 = vand.u32 4294901760, %v11255_v33 }
 0x307   :  { %3852 = vmatpush.msrb.mxu0 %v11449_v0  ;;  %17062 = vst [vmem:[#allocation94_spill] sm:$0xff] %v11662_v34  ;;  %3939 = vmatpush.msrb.mxu1 %v3938_v13  ;;  %v2447_v13 = vld [vmem:[%s16425_s4 + $0x188] sm:$0xff]  ;;  %v17064_v25 = vand.u32 4294901760, %v11622_v44  ;;  %v11686_v33 = vand.u32 4294901760, %v2448_v63  ;;  %v11710_v54 = vpop.f32.mrf.mxu0 }
 0x308   :  { %3644 = vmatmul.f32.gmra.mxu0 %v11514_v55  ;;  %3738 = vmatpush.msra.mxu2 %v17063_v45  ;;  %v3956_v55 = vand.u32 4294901760, %v3955_v57  ;;  %v17065_v45 = vand.u32 4294901760, %v11273_v30  ;;  %v17066_v57 = vand.u32 4294901760, %v11636_v11  ;;  %v11705_v30 = vand.u32 4294901760, %v2447_v13  ;;  %17068 = vst [vmem:[#allocation103_spill] sm:$0xff] %v11710_v54  ;;  %v17177_v54 = vld [vmem:[#allocation32_spill] sm:$0xff] }
 0x309   :  { %3799 = vmatpush.msra.mxu3 %v11157_v14  ;;  %3854 = vmatpush.msrb.mxu0 %v11491_v62  ;;  %v3961_v39 = vsub.f32 %v11622_v44, %v17064_v25  ;;  %v11689_v14 = vsub.f32 %v1550_v52, %v11656_v20  ;;  %v11703_v52 = vsub.f32 %v2449_v31, %v11672_v51 }
 0x30a   :  { %3945 = vmatpush.msrb.mxu1 %v3944_v43  ;;  %3742 = vmatpush.msra.mxu2 %v17065_v45  ;;  %v2446_v43 = vld [vmem:[%s16425_s4 + $0x180] sm:$0xff]  ;;  %v3967_v25 = vsub.f32 %v11636_v11, %v17066_v57  ;;  %v3463_v45 = vand.u32 4294901760, %v3462_v7  ;;  %v17069_v57 = vand.u32 4294901760, %v11654_v38  ;;  %v11719_v6 = vsub.f32 %v2448_v63, %v11686_v33 }
 0x30b   :  { %3801 = vmatpush.msra.mxu3 %v11172_v40  ;;  %3856 = vmatpush.msrb.mxu0 %v11511_v27  ;;  %v17067_v40 = vand.u32 4294901760, %v11291_v35  ;;  %v11721_v35 = vand.u32 4294901760, %v2446_v43  ;;  %v3984_v63 = vand.u32 4294901760, %v11703_v52 }
 0x30c   :  { %3951 = vmatpush.msrb.mxu1 %v3950_v21  ;;  %v3962_v21 = vand.u32 4294901760, %v3961_v39  ;;  %v3973_v2 = vsub.f32 %v11654_v38, %v17069_v57  ;;  %3464 = vmatmul.f32.gmra.mxu2 %v3463_v45  ;;  %v3968_v39 = vand.u32 4294901760, %v3967_v25  ;;  %v11736_v45 = vpop.f32.mrf.mxu1 }
 0x30d   :  { %3746 = vmatpush.msra.mxu2 %v17067_v40  ;;  %3803 = vmatpush.msra.mxu3 %v11182_v56  ;;  %v11716_v31 = vpop.f32.mrf.mxu2  ;;  %v3469_v56 = vand.u32 4294901760, %v11689_v14  ;;  %v17073_v40 = vand.u32 4294901760, %v11670_v24  ;;  %17074 = vst [vmem:[#allocation111_spill] sm:$0xff] %v11736_v45  ;;  %v11743_v25 = vsub.f32 %v2446_v43, %v11721_v35  ;;  %v17076_v43 = vand.u32 4294901760, %v11354_v59 }
 0x30e   :  { %3858 = vmatpush.msrb.mxu0 %v11535_v15  ;;  %3957 = vmatpush.msrb.mxu1 %v3956_v55  ;;  %17070 = vst [vmem:[#allocation112_spill] sm:$0xff] %v11716_v31  ;;  %v11725_v7 = vpop.f32.mrf.mxu3  ;;  %v17072_v55 = vand.u32 4294901760, %v11311_v60  ;;  %v11734_v31 = vsub.f32 %v2447_v13, %v11705_v30  ;;  %v3974_v60 = vand.u32 4294901760, %v3973_v2 }
 0x30f   :  { %3577 = vmatmul.f32.gmra.mxu3 %v11464_v28  ;;  %17071 = vst [vmem:[#allocation99_spill] sm:$0xff] %v11725_v7  ;;  %3705 = vmatmul.f32.gmra.mxu1 %v3461_v47  ;;  %v3979_v57 = vsub.f32 %v11670_v24, %v17073_v40  ;;  %v3990_v47 = vand.u32 4294901760, %v11719_v6  ;;  %v3470_v13 = vsub.f32 %v11689_v14, %v3469_v56 }
 0x310   :  { %3750 = vmatpush.msra.mxu2 %v17072_v55  ;;  %3805 = vmatpush.msra.mxu3 %v11208_v18  ;;  %v17075_v55 = vand.u32 4294901760, %v11334_v26  ;;  %v3996_v2 = vand.u32 4294901760, %v11734_v31  ;;  %v4002_v26 = vand.u32 4294901760, %v11743_v25 }
 0x311   :  { %3860 = vmatpush.msrb.mxu0 %v11552_v42  ;;  %3963 = vmatpush.msrb.mxu1 %v3962_v21  ;;  %v3980_v18 = vand.u32 4294901760, %v3979_v57  ;;  %v3471_v59 = vand.u32 4294901760, %v3470_v13 }
 0x312   :  { %3649 = vmatmul.f32.gmra.mxu0 %v11609_v49  ;;  %3754 = vmatpush.msra.mxu2 %v17075_v55  ;;  %v3985_v49 = vsub.f32 %v11703_v52, %v3984_v63  ;;  %v4003_v55 = vsub.f32 %v11743_v25, %v4002_v26 }
 0x313   :  { %3807 = vmatpush.msra.mxu3 %v11228_v48  ;;  %3862 = vmatpush.msrb.mxu0 %v11589_v3  ;;  %v3991_v48 = vsub.f32 %v11719_v6, %v3990_v47 }
 0x314   :  { %3969 = vmatpush.msrb.mxu1 %v3968_v39  ;;  %3758 = vmatpush.msra.mxu2 %v17076_v43  ;;  %v17078_v39 = vand.u32 4294901760, %v11372_v37  ;;  %v3986_v57 = vand.u32 4294901760, %v3985_v49  ;;  %v17081_v37 = vand.u32 4294901760, %v11392_v22  ;;  %v11781_v13 = vpop.f32.mrf.mxu1  ;;  %v4004_v22 = vand.u32 4294901760, %v4003_v55 }
 0x315   :  { %3809 = vmatpush.msra.mxu3 %v11244_v61  ;;  %3864 = vmatpush.msrb.mxu0 %v11604_v16  ;;  %v11762_v21 = vpop.f32.mrf.mxu2  ;;  %v11769_v61 = vpop.f32.mrf.mxu0  ;;  %17082 = vst [vmem:[#allocation117_spill] sm:$0xff] %v11781_v13  ;;  %v17085_v43 = vand.u32 4294901760, %v11459_v4  ;;  %v17090_v4 = vld [vmem:[#allocation92_spill] sm:$0xff] }
 0x316   :  { %3975 = vmatpush.msrb.mxu1 %v3974_v60  ;;  %17077 = vst [vmem:[#allocation53_spill] sm:$0xff] %v11762_v21  ;;  %3762 = vmatpush.msra.mxu2 %v17078_v39  ;;  %v11767_v40 = vpop.f32.mrf.mxu3  ;;  %v3997_v60 = vsub.f32 %v11734_v31, %v3996_v2  ;;  %v17095_v39 = vld [vmem:[#allocation97_spill] sm:$0xff]  ;;  %v2486_v21 = vld [vmem:[%s16425_s4 + $0x2c0] sm:$0xff] }
 0x317   :  { %3811 = vmatpush.msra.mxu3 %v11257_v10  ;;  %17079 = vst [vmem:[#allocation115_spill] sm:$0xff] %v11767_v40  ;;  %3866 = vmatpush.msrb.mxu0 %v11624_v12  ;;  %v3992_v10 = vand.u32 4294901760, %v3991_v48  ;;  %v12294_v45 = vand.u32 4294901760, %v2486_v21 }
 0x318   :  { %17080 = vst [vmem:[#allocation116_spill] sm:$0xff] %v11769_v61  ;;  %3981 = vmatpush.msrb.mxu1 %v3980_v18  ;;  %3472 = vmatmul.f32.gmra.mxu2 %v3471_v59  ;;  %v3998_v18 = vand.u32 4294901760, %v3997_v60  ;;  %v17096_v59 = vld [vmem:[#allocation71_spill] sm:$0xff] }
 0x319   :  { %3581 = vmatmul.f32.gmra.mxu3 %v11572_v36  ;;  %3711 = vmatmul.f32.gmra.mxu1 %v3469_v56  ;;  %v17083_v56 = vand.u32 4294901760, %v11437_v50  ;;  %v17087_v50 = vand.u32 4294901760, %v11479_v41  ;;  %v17092_v41 = vld [vmem:[#allocation67_spill] sm:$0xff]  ;;  %v17101_v55 = vand.u32 4294901760, %v17096_v59 }
 0x31a   :  { %3766 = vmatpush.msra.mxu2 %v17081_v37  ;;  %3813 = vmatpush.msra.mxu3 %v11280_v17  ;;  %v17098_v60 = vand.u32 4294901760, %v17092_v41  ;;  %v17099_v37 = vld [vmem:[#allocation73_spill] sm:$0xff] }
 0x31b   :  { %3868 = vmatpush.msrb.mxu0 %v11638_v32  ;;  %3987 = vmatpush.msrb.mxu1 %v3986_v57 }
 0x31c   :  { %3654 = vmatmul.f32.gmra.mxu0 %v11689_v14  ;;  %3770 = vmatpush.msra.mxu2 %v17083_v56  ;;  %v11808_v14 = vpop.f32.mrf.mxu1  ;;  %v17103_v56 = vld [vmem:[#allocation108_spill] sm:$0xff] }
 0x31d   :  { %3815 = vmatpush.msra.mxu3 %v11303_v1  ;;  %3870 = vmatpush.msrb.mxu0 %v11672_v51  ;;  %v11801_v1 = vpop.f32.mrf.mxu0 }
 0x31e   :  { %3993 = vmatpush.msrb.mxu1 %v3992_v10  ;;  %v11790_v49 = vpop.f32.mrf.mxu2  ;;  %3774 = vmatpush.msra.mxu2 %v17085_v43  ;;  %17088 = vst [vmem:[#allocation120_spill] sm:$0xff] %v11801_v1  ;;  %v17100_v10 = vld [vmem:[#allocation105_spill] sm:$0xff] }
 0x31f   :  { %17084 = vst [vmem:[#allocation118_spill] sm:$0xff] %v11790_v49  ;;  %3817 = vmatpush.msra.mxu3 %v11320_v23  ;;  %v11795_v17 = vpop.f32.mrf.mxu3  ;;  %3872 = vmatpush.msrb.mxu0 %v11686_v33  ;;  %v17089_v23 = vld [vmem:[#allocation12_spill] sm:$0xff]  ;;  %v17105_v43 = vand.u32 4294901760, %v17100_v10 }
 0x320   :  { %17086 = vst [vmem:[#allocation119_spill] sm:$0xff] %v11795_v17  ;;  %3999 = vmatpush.msrb.mxu1 %v3998_v18  ;;  %3778 = vmatpush.msra.mxu2 %v17087_v50  ;;  %v17102_v18 = vld [vmem:[#allocation96_spill] sm:$0xff] }
 0x321   :  { %3819 = vmatpush.msra.mxu3 %v11336_v5  ;;  %3874 = vmatpush.msrb.mxu0 %v11705_v30  ;;  %17091 = vst [vmem:[#allocation12_spill] sm:$0xff] %v11808_v14  ;;  %v17093_v5 = vld [vmem:[#allocation33_spill] sm:$0xff]  ;;  %v17106_v50 = vld [vmem:[#allocation8_spill] sm:$0xff] }
 0x322   :  { %4005 = vmatpush.msrb.mxu1 %v4004_v22  ;;  %3585 = vmatmul.f32.gmra.mxu3 %v11656_v20  ;;  %v17162_v14 = vld [vmem:[#allocation5_spill] sm:$0xff] }
 0x323   :  { %3780 = vmatmul.f32.vlgmr.msra.gmra.mxu2 %v11366_v58  ;;  %4007 = vmatmul.f32.vlgmr.msrb.gmra.mxu1 %v17089_v23 }
 0x324   :  { %3821 = vmatpush.msra.mxu3 %v17090_v4  ;;  %3876 = vmatpush.msrb.mxu0 %v11721_v35  ;;  %v17107_v4 = vld [vmem:[#allocation113_spill] sm:$0xff] }
 0x325   :  { %4025 = vmatpush.msrb.mxu2 %v17092_v41  ;;  %4231 = vmatpush.msra.mxu1 %v11386_v8  ;;  %v11830_v22 = vpop.f32.mrf.mxu0 }
 0x326   :  { %3882 = vmatmul.f32.vlgmr.msrb.gmra.mxu0 %v17093_v5  ;;  %v11814_v48 = vpop.f32.mrf.mxu2  ;;  %3823 = vmatpush.msra.mxu3 %v17095_v39  ;;  %17104 = vst [vmem:[#allocation33_spill] sm:$0xff] %v11830_v22  ;;  %v11841_v5 = vpop.f32.mrf.mxu1  ;;  %v17110_v39 = vand.u32 4294901760, %v17103_v56 }
 0x327   :  { %17094 = vst [vmem:[#allocation92_spill] sm:$0xff] %v11814_v48  ;;  %4028 = vmatpush.msrb.mxu2 %v17096_v59  ;;  %v11818_v57 = vpop.f32.mrf.mxu3  ;;  %4152 = vmatpush.msra.mxu0 %v17098_v60  ;;  %v17112_v60 = vld [vmem:[#allocation31_spill] sm:$0xff] }
 0x328   :  { %17097 = vst [vmem:[#allocation67_spill] sm:$0xff] %v11818_v57  ;;  %4233 = vmatpush.msra.mxu1 %v11405_v9  ;;  %3825 = vmatpush.msra.mxu3 %v17099_v37  ;;  %v17114_v37 = vand.u32 4294901760, %v17107_v4  ;;  %v2489_v57 = vld [vmem:[%s16425_s4 + $0x2d8] sm:$0xff] }
 0x329   :  { %4031 = vmatpush.msrb.mxu2 %v17100_v10  ;;  %4156 = vmatpush.msra.mxu0 %v17101_v55  ;;  %17109 = vst [vmem:[#allocation71_spill] sm:$0xff] %v11841_v5 }
 0x32a   :  { %4235 = vmatpush.msra.mxu1 %v11428_v46  ;;  %3827 = vmatpush.msra.mxu3 %v17102_v18  ;;  %v17120_v18 = vld [vmem:[#allocation16_spill] sm:$0xff] }
 0x32b   :  { %4034 = vmatpush.msrb.mxu2 %v17103_v56  ;;  %4160 = vmatpush.msra.mxu0 %v17105_v43  ;;  %v17123_v56 = vld [vmem:[#allocation28_spill] sm:$0xff]  ;;  %v17129_v43 = vand.u32 4294901760, %v11654_v38 }
 0x32c   :  { %4237 = vmatpush.msra.mxu1 %v11449_v0  ;;  %3784 = vmatmul.f32.gmra.mxu2 %v11464_v28 }
 0x32d   :  { %3829 = vmatmul.f32.vlgmr.msra.gmra.mxu3 %v11366_v58  ;;  %4011 = vmatmul.f32.gmra.mxu1 %v17106_v50  ;;  %v17113_v58 = vld [vmem:[#allocation76_spill] sm:$0xff]  ;;  %v11862_v10 = vpop.f32.mrf.mxu0 }
 0x32e   :  { %4037 = vmatpush.msrb.mxu2 %v17107_v4  ;;  %v11839_v41 = vpop.f32.mrf.mxu2  ;;  %4093 = vmatpush.msrb.mxu3 %v11386_v8  ;;  %v17115_v8 = vand.u32 4294901760, %v17113_v58  ;;  %17116 = vst [vmem:[#allocation105_spill] sm:$0xff] %v11862_v10  ;;  %v17132_v4 = vand.u32 4294901760, %v11670_v24  ;;  %v2490_v10 = vld [vmem:[%s16425_s4 + $0x2e0] sm:$0xff] }
 0x32f   :  { %17108 = vst [vmem:[#allocation97_spill] sm:$0xff] %v11839_v41  ;;  %4164 = vmatpush.msra.mxu0 %v17110_v39  ;;  %v11846_v59 = vpop.f32.mrf.mxu3  ;;  %4239 = vmatpush.msra.mxu1 %v11491_v62 }
 0x330   :  { %17111 = vst [vmem:[#allocation73_spill] sm:$0xff] %v11846_v59  ;;  %3890 = vmatmul.f32.gmra.mxu0 %v17112_v60  ;;  %4040 = vmatpush.msrb.mxu2 %v17113_v58  ;;  %v2475_v60 = vld [vmem:[%s16425_s4 + $0x268] sm:$0xff] }
 0x331   :  { %4095 = vmatpush.msrb.mxu3 %v11405_v9  ;;  %4168 = vmatpush.msra.mxu0 %v17114_v37  ;;  %v17117_v9 = vand.u32 4294901760, %v11570_v19 }
 0x332   :  { %4241 = vmatpush.msra.mxu1 %v11511_v27  ;;  %4043 = vmatpush.msrb.mxu2 %v11570_v19  ;;  %v17122_v19 = vand.u32 4294901760, %v11587_v29 }
 0x333   :  { %4097 = vmatpush.msrb.mxu3 %v11428_v46  ;;  %4172 = vmatpush.msra.mxu0 %v17115_v8 }
 0x334   :  { %4243 = vmatpush.msra.mxu1 %v11535_v15  ;;  %4046 = vmatpush.msrb.mxu2 %v11587_v29 }
 0x335   :  { %4099 = vmatpush.msrb.mxu3 %v11449_v0  ;;  %4176 = vmatpush.msra.mxu0 %v17117_v9  ;;  %v11875_v0 = vpop.f32.mrf.mxu1 }
 0x336   :  { %4245 = vmatpush.msra.mxu1 %v11552_v42  ;;  %v11867_v55 = vpop.f32.mrf.mxu2  ;;  %3788 = vmatmul.f32.gmra.mxu2 %v11572_v36  ;;  %17121 = vst [vmem:[#allocation8_spill] sm:$0xff] %v11875_v0 }
 0x337   :  { %17118 = vst [vmem:[#allocation96_spill] sm:$0xff] %v11867_v55  ;;  %3833 = vmatmul.f32.gmra.mxu3 %v11464_v28  ;;  %v11871_v46 = vpop.f32.mrf.mxu3  ;;  %4015 = vmatmul.f32.gmra.mxu1 %v17120_v18  ;;  %v17124_v28 = vand.u32 4294901760, %v11622_v44 }
 0x338   :  { %17119 = vst [vmem:[#allocation108_spill] sm:$0xff] %v11871_v46  ;;  %4049 = vmatpush.msrb.mxu2 %v11622_v44  ;;  %4101 = vmatpush.msrb.mxu3 %v11491_v62  ;;  %v17125_v62 = vand.u32 4294901760, %v11636_v11  ;;  %v11898_v44 = vpop.f32.mrf.mxu0 }
 0x339   :  { %4180 = vmatpush.msra.mxu0 %v17122_v19  ;;  %4247 = vmatpush.msra.mxu1 %v11589_v3  ;;  %17128 = vst [vmem:[#allocation76_spill] sm:$0xff] %v11898_v44  ;;  %v17151_v44 = vld [vmem:[#allocation21_spill] sm:$0xff] }
 0x33a   :  { %3898 = vmatmul.f32.gmra.mxu0 %v17123_v56  ;;  %4052 = vmatpush.msrb.mxu2 %v11636_v11  ;;  %v17130_v11 = vld [vmem:[#allocation3_spill] sm:$0xff] }
 0x33b   :  { %4103 = vmatpush.msrb.mxu3 %v11511_v27  ;;  %4184 = vmatpush.msra.mxu0 %v17124_v28 }
 0x33c   :  { %4249 = vmatpush.msra.mxu1 %v11604_v16  ;;  %4055 = vmatpush.msrb.mxu2 %v11654_v38 }
 0x33d   :  { %4105 = vmatpush.msrb.mxu3 %v11535_v15  ;;  %4188 = vmatpush.msra.mxu0 %v17125_v62  ;;  %v2477_v15 = vld [vmem:[%s16425_s4 + $0x278] sm:$0xff]  ;;  %v11913_v38 = vpop.f32.mrf.mxu1 }
 0x33e   :  { %4251 = vmatpush.msra.mxu1 %v11624_v12  ;;  %v11892_v29 = vpop.f32.mrf.mxu2  ;;  %4058 = vmatpush.msrb.mxu2 %v11670_v24  ;;  %17131 = vst [vmem:[#allocation16_spill] sm:$0xff] %v11913_v38  ;;  %v11918_v39 = vand.u32 4294901760, %v2477_v15 }
 0x33f   :  { %17126 = vst [vmem:[#allocation113_spill] sm:$0xff] %v11892_v29  ;;  %4107 = vmatpush.msrb.mxu3 %v11552_v42  ;;  %v11896_v27 = vpop.f32.mrf.mxu3  ;;  %4192 = vmatpush.msra.mxu0 %v17129_v43  ;;  %v2476_v42 = vld [vmem:[%s16425_s4 + $0x270] sm:$0xff] }
 0x340   :  { %17127 = vst [vmem:[#allocation31_spill] sm:$0xff] %v11896_v27  ;;  %4253 = vmatpush.msra.mxu1 %v11638_v32  ;;  %3792 = vmatmul.f32.gmra.mxu2 %v11656_v20  ;;  %v11927_v58 = vand.u32 4294901760, %v2476_v42  ;;  %v11940_v37 = vsub.f32 %v2477_v15, %v11918_v39  ;;  %v2492_v29 = vld [vmem:[%s16425_s4 + $0x2f0] sm:$0xff] }
 0x341   :  { %3837 = vmatmul.f32.gmra.mxu3 %v11572_v36  ;;  %4019 = vmatmul.f32.gmra.mxu1 %v17130_v11  ;;  %v17133_v36 = vld [vmem:[#allocation17_spill] sm:$0xff] }
 0x342   :  { %4061 = vmatpush.msrb.mxu2 %v11703_v52  ;;  %4109 = vmatpush.msrb.mxu3 %v11589_v3  ;;  %v2474_v3 = vld [vmem:[%s16425_s4 + $0x260] sm:$0xff]  ;;  %v11952_v52 = vsub.f32 %v2476_v42, %v11927_v58  ;;  %v16578_v9 = vand.u32 4294901760, %v11940_v37 }
 0x343   :  { %4196 = vmatpush.msra.mxu0 %v17132_v4  ;;  %4255 = vmatpush.msra.mxu1 %v11672_v51 }
 0x344   :  { %3906 = vmatmul.f32.gmra.mxu0 %v17133_v36  ;;  %4064 = vmatpush.msrb.mxu2 %v11719_v6  ;;  %v2473_v6 = vld [vmem:[%s16425_s4 + $0x258] sm:$0xff]  ;;  %v16577_v56 = vand.u32 4294901760, %v11952_v52 }
 0x345   :  { %4111 = vmatpush.msrb.mxu3 %v11604_v16  ;;  %4200 = vmatpush.msra.mxu0 %v3984_v63  ;;  %v11942_v16 = vand.u32 4294901760, %v2475_v60  ;;  %v11956_v63 = vpop.f32.mrf.mxu0 }
 0x346   :  { %4257 = vmatpush.msra.mxu1 %v11686_v33  ;;  %v11935_v24 = vpop.f32.mrf.mxu2  ;;  %4067 = vmatpush.msrb.mxu2 %v11734_v31  ;;  %17136 = vst [vmem:[#allocation17_spill] sm:$0xff] %v11956_v63  ;;  %v2472_v31 = vld [vmem:[%s16425_s4 + $0x250] sm:$0xff] }
 0x347   :  { %17134 = vst [vmem:[#allocation28_spill] sm:$0xff] %v11935_v24  ;;  %4113 = vmatpush.msrb.mxu3 %v11624_v12  ;;  %v11944_v8 = vpop.f32.mrf.mxu3  ;;  %4204 = vmatpush.msra.mxu0 %v3990_v47  ;;  %v11954_v12 = vand.u32 4294901760, %v2474_v3  ;;  %v17137_v47 = vld [vmem:[#allocation20_spill] sm:$0xff] }
 0x348   :  { %17135 = vst [vmem:[#allocation3_spill] sm:$0xff] %v11944_v8  ;;  %4259 = vmatpush.msra.mxu1 %v11705_v30  ;;  %4070 = vmatpush.msrb.mxu2 %v11743_v25  ;;  %v4347_v25 = vsub.f32 %v11940_v37, %v16578_v9 }
 0x349   :  { %4115 = vmatpush.msrb.mxu3 %v11638_v32  ;;  %4208 = vmatpush.msra.mxu0 %v3996_v2  ;;  %v11967_v32 = vsub.f32 %v2475_v60, %v11942_v16  ;;  %v11975_v2 = vpop.f32.mrf.mxu1  ;;  %v11983_v19 = vsub.f32 %v2474_v3, %v11954_v12 }
 0x34a   :  { %4261 = vmatpush.msra.mxu1 %v11721_v35  ;;  %3841 = vmatmul.f32.gmra.mxu3 %v11656_v20  ;;  %17138 = vst [vmem:[#allocation20_spill] sm:$0xff] %v11975_v2  ;;  %v11980_v20 = vand.u32 4294901760, %v2473_v6 }
 0x34b   :  { %4073 = vmatmul.f32.vlgmr.msrb.gmra.mxu2 %v17137_v47  ;;  %4263 = vmatmul.f32.vlgmr.msra.gmra.mxu1 %v17089_v23  ;;  %v16576_v62 = vand.u32 4294901760, %v11967_v32  ;;  %v16579_v4 = vand.u32 4294901760, %v11983_v19 }
 0x34c   :  { %4117 = vmatpush.msrb.mxu3 %v11672_v51  ;;  %4212 = vmatpush.msra.mxu0 %v4002_v26  ;;  %v2471_v51 = vld [vmem:[%s16425_s4 + $0x248] sm:$0xff]  ;;  %v11998_v26 = vand.u32 4294901760, %v2472_v31  ;;  %v12014_v15 = vsub.f32 %v2473_v6, %v11980_v20  ;;  %v2469_v6 = vld [vmem:[%s16425_s4 + $0x238] sm:$0xff] }
 0x34d   :  { %4280 = vmatpush.msra.mxu2 %v11918_v39  ;;  %4527 = vmatpush.msrb.mxu1 %v11918_v39  ;;  %v12016_v42 = vand.u32 4294901760, %v2471_v51  ;;  %v4359_v36 = vsub.f32 %v11967_v32, %v16576_v62  ;;  %v12034_v47 = vpop.f32.mrf.mxu0 }
 0x34e   :  { %4214 = vmatmul.f32.vlgmr.msra.gmra.mxu0 %v17089_v23  ;;  %v11991_v28 = vpop.f32.mrf.mxu2  ;;  %4119 = vmatpush.msrb.mxu3 %v11686_v33  ;;  %v2470_v33 = vld [vmem:[%s16425_s4 + $0x240] sm:$0xff]  ;;  %v4353_v23 = vsub.f32 %v11952_v52, %v16577_v56  ;;  %v12027_v60 = vsub.f32 %v2472_v31, %v11998_v26  ;;  %17141 = vst [vmem:[#allocation123_spill] sm:$0xff] %v12034_v47 }
 0x34f   :  { %17139 = vst [vmem:[#allocation121_spill] sm:$0xff] %v11991_v28  ;;  %4282 = vmatpush.msra.mxu2 %v11927_v58  ;;  %v12001_v43 = vpop.f32.mrf.mxu3  ;;  %4459 = vmatpush.msrb.mxu0 %v11940_v37  ;;  %v12029_v3 = vand.u32 4294901760, %v2470_v33  ;;  %v4365_v31 = vsub.f32 %v11983_v19, %v16579_v4  ;;  %v12044_v56 = vsub.f32 %v2471_v51, %v12016_v42  ;;  %v12049_v28 = vand.u32 4294901760, %v2469_v6 }
 0x350   :  { %17140 = vst [vmem:[#allocation122_spill] sm:$0xff] %v12001_v43  ;;  %4529 = vmatpush.msrb.mxu1 %v11927_v58  ;;  %4121 = vmatpush.msrb.mxu3 %v11705_v30  ;;  %v4348_v30 = vand.u32 4294901760, %v4347_v25  ;;  %v17143_v25 = vld [vmem:[#allocation26_spill] sm:$0xff]  ;;  %v4354_v62 = vand.u32 4294901760, %v4353_v23  ;;  %v4360_v51 = vand.u32 4294901760, %v4359_v36  ;;  %v17147_v36 = vand.u32 4294901760, %v12014_v15 }
 0x351   :  { %4284 = vmatpush.msra.mxu2 %v11942_v16  ;;  %4462 = vmatpush.msrb.mxu0 %v11952_v52  ;;  %v12060_v4 = vsub.f32 %v2470_v33, %v12029_v3  ;;  %v17149_v43 = vand.u32 4294901760, %v12044_v56 }
 0x352   :  { %4531 = vmatpush.msrb.mxu1 %v11942_v16  ;;  %4123 = vmatpush.msrb.mxu3 %v11721_v35  ;;  %v17142_v35 = vld [vmem:[#allocation15_spill] sm:$0xff]  ;;  %v4371_v33 = vsub.f32 %v12014_v15, %v17147_v36 }
 0x353   :  { %4286 = vmatpush.msra.mxu2 %v11954_v12  ;;  %4465 = vmatpush.msrb.mxu0 %v11967_v32 }
 0x354   :  { %4533 = vmatpush.msrb.mxu1 %v11954_v12  ;;  %4078 = vmatmul.f32.gmra.mxu2 %v17142_v35  ;;  %v2468_v35 = vld [vmem:[%s16425_s4 + $0x230] sm:$0xff] }
 0x355   :  { %4127 = vmatmul.f32.vlgmr.msrb.gmra.mxu3 %v17143_v25  ;;  %4267 = vmatmul.f32.gmra.mxu1 %v17106_v50  ;;  %v12056_v25 = vpop.f32.mrf.mxu1  ;;  %v12106_v2 = vpop.f32.mrf.mxu0 }
 0x356   :  { %4288 = vmatpush.msra.mxu2 %v11980_v20  ;;  %v12054_v23 = vpop.f32.mrf.mxu2  ;;  %17145 = vst [vmem:[#allocation26_spill] sm:$0xff] %v12056_v25  ;;  %4349 = vmatpush.msra.mxu3 %v4348_v30  ;;  %v4366_v30 = vand.u32 4294901760, %v4365_v31  ;;  %v12074_v25 = vand.u32 4294901760, %v2468_v35  ;;  %v17148_v31 = vand.u32 4294901760, %v12027_v60 }
 0x357   :  { %17144 = vst [vmem:[#allocation15_spill] sm:$0xff] %v12054_v23  ;;  %4468 = vmatpush.msrb.mxu0 %v11983_v19  ;;  %v12063_v38 = vpop.f32.mrf.mxu3  ;;  %4535 = vmatpush.msrb.mxu1 %v11980_v20  ;;  %v2467_v23 = vld [vmem:[%s16425_s4 + $0x228] sm:$0xff] }
 0x358   :  { %17146 = vst [vmem:[#allocation124_spill] sm:$0xff] %v12063_v38  ;;  %4218 = vmatmul.f32.gmra.mxu0 %v17106_v50  ;;  %4290 = vmatpush.msra.mxu2 %v11998_v26  ;;  %v12080_v50 = vsub.f32 %v2469_v6, %v12049_v28  ;;  %v4377_v36 = vsub.f32 %v12027_v60, %v17148_v31  ;;  %v12089_v38 = vand.u32 4294901760, %v2467_v23  ;;  %v2465_v6 = vld [vmem:[%s16425_s4 + $0x218] sm:$0xff] }
 0x359   :  { %4355 = vmatpush.msra.mxu3 %v4354_v62  ;;  %4471 = vmatpush.msrb.mxu0 %v12014_v15  ;;  %v2466_v62 = vld [vmem:[%s16425_s4 + $0x220] sm:$0xff]  ;;  %v4383_v31 = vsub.f32 %v12044_v56, %v17149_v43  ;;  %v12102_v47 = vsub.f32 %v2468_v35, %v12074_v25  ;;  %17150 = vst [vmem:[#allocation125_spill] sm:$0xff] %v12106_v2  ;;  %v17153_v43 = vand.u32 4294901760, %v12060_v4  ;;  %v12119_v0 = vand.u32 4294901760, %v2465_v6  ;;  %v2493_v2 = vld [vmem:[%s16425_s4 + $0x2f8] sm:$0xff] }
 0x35a   :  { %4537 = vmatpush.msrb.mxu1 %v11998_v26  ;;  %4292 = vmatpush.msra.mxu2 %v12016_v42  ;;  %v12104_v9 = vand.u32 4294901760, %v2466_v62  ;;  %v12117_v8 = vsub.f32 %v2467_v23, %v12089_v38 }
 0x35b   :  { %4361 = vmatpush.msra.mxu3 %v4360_v51  ;;  %4474 = vmatpush.msrb.mxu0 %v12027_v60  ;;  %v4372_v51 = vand.u32 4294901760, %v4371_v33  ;;  %v4378_v33 = vand.u32 4294901760, %v4377_v36  ;;  %v4389_v35 = vsub.f32 %v12060_v4, %v17153_v43  ;;  %v4384_v43 = vand.u32 4294901760, %v4383_v31  ;;  %v2463_v31 = vld [vmem:[%s16425_s4 + $0x208] sm:$0xff] }
 0x35c   :  { %4539 = vmatpush.msrb.mxu1 %v12016_v42  ;;  %4294 = vmatpush.msra.mxu2 %v12029_v3  ;;  %v12137_v24 = vsub.f32 %v2466_v62, %v12104_v9  ;;  %v12151_v62 = vand.u32 4294901760, %v2493_v2  ;;  %v12174_v46 = vand.u32 4294901760, %v2463_v31 }
 0x35d   :  { %4367 = vmatpush.msra.mxu3 %v4366_v30  ;;  %4477 = vmatpush.msrb.mxu0 %v12044_v56  ;;  %v17152_v30 = vld [vmem:[#allocation24_spill] sm:$0xff]  ;;  %v12133_v23 = vpop.f32.mrf.mxu1  ;;  %v4390_v63 = vand.u32 4294901760, %v4389_v35  ;;  %v12168_v35 = vand.u32 4294901760, %v2492_v29 }
 0x35e   :  { %4541 = vmatpush.msrb.mxu1 %v12029_v3  ;;  %4083 = vmatmul.f32.gmra.mxu2 %v17151_v44  ;;  %v2464_v44 = vld [vmem:[%s16425_s4 + $0x210] sm:$0xff]  ;;  %17156 = vst [vmem:[#allocation126_spill] sm:$0xff] %v12133_v23  ;;  %v12183_v27 = vsub.f32 %v2493_v2, %v12151_v62  ;;  %v17164_v48 = vand.u32 4294901760, %v12137_v24 }
 0x35f   :  { %4133 = vmatmul.f32.gmra.mxu3 %v17152_v30  ;;  %4271 = vmatmul.f32.gmra.mxu1 %v17120_v18  ;;  %v12129_v36 = vpop.f32.mrf.mxu2  ;;  %v12154_v23 = vand.u32 4294901760, %v2464_v44  ;;  %v12202_v2 = vsub.f32 %v2492_v29, %v12168_v35 }
 0x360   :  { %4296 = vmatpush.msra.mxu2 %v12049_v28  ;;  %17154 = vst [vmem:[#allocation21_spill] sm:$0xff] %v12129_v36  ;;  %v12131_v30 = vpop.f32.mrf.mxu3  ;;  %4373 = vmatpush.msra.mxu3 %v4372_v51  ;;  %v17157_v36 = vand.u32 4294901760, %v12080_v50  ;;  %v4413_v22 = vsub.f32 %v12137_v24, %v17164_v48 }
 0x361   :  { %17155 = vst [vmem:[#allocation24_spill] sm:$0xff] %v12131_v30  ;;  %4480 = vmatpush.msrb.mxu0 %v12060_v4  ;;  %4543 = vmatpush.msrb.mxu1 %v12049_v28  ;;  %v12157_v30 = vsub.f32 %v2465_v6, %v12119_v0  ;;  %v17158_v6 = vand.u32 4294901760, %v12102_v47  ;;  %v12192_v55 = vsub.f32 %v2464_v44, %v12154_v23 }
 0x362   :  { %4222 = vmatmul.f32.gmra.mxu0 %v17120_v18  ;;  %v4395_v51 = vsub.f32 %v12080_v50, %v17157_v36  ;;  %4298 = vmatpush.msra.mxu2 %v12074_v25  ;;  %v2491_v36 = vld [vmem:[%s16425_s4 + $0x2e8] sm:$0xff] }
 0x363   :  { %4379 = vmatpush.msra.mxu3 %v4378_v33  ;;  %4483 = vmatpush.msrb.mxu0 %v12080_v50  ;;  %v2462_v33 = vld [vmem:[%s16425_s4 + $0x200] sm:$0xff]  ;;  %v4401_v18 = vsub.f32 %v12102_v47, %v17158_v6  ;;  %v17159_v6 = vand.u32 4294901760, %v12117_v8  ;;  %v17168_v1 = vand.u32 4294901760, %v12157_v30 }
 0x364   :  { %4545 = vmatpush.msrb.mxu1 %v12074_v25  ;;  %4300 = vmatpush.msra.mxu2 %v12089_v38  ;;  %v4396_v41 = vand.u32 4294901760, %v4395_v51  ;;  %v12194_v59 = vand.u32 4294901760, %v2462_v33  ;;  %v12197_v51 = vpop.f32.mrf.mxu0 }
 0x365   :  { %4385 = vmatpush.msra.mxu3 %v4384_v43  ;;  %4486 = vmatpush.msrb.mxu0 %v12102_v47  ;;  %v12185_v43 = vand.u32 4294901760, %v2491_v36  ;;  %v4407_v5 = vsub.f32 %v12117_v8, %v17159_v6  ;;  %17161 = vst [vmem:[#allocation128_spill] sm:$0xff] %v12197_v51  ;;  %v17163_v6 = vld [vmem:[#allocation23_spill] sm:$0xff]  ;;  %v4402_v44 = vand.u32 4294901760, %v4401_v18  ;;  %v12212_v51 = vsub.f32 %v2463_v31, %v12174_v46  ;;  %v12227_v48 = vpop.f32.mrf.mxu1 }
 0x366   :  { %4547 = vmatpush.msrb.mxu1 %v12089_v38  ;;  %4302 = vmatpush.msra.mxu2 %v12104_v9  ;;  %17160 = vst [vmem:[#allocation127_spill] sm:$0xff] %v12194_v59  ;;  %v4419_v49 = vsub.f32 %v12157_v30, %v17168_v1  ;;  %v12234_v17 = vsub.f32 %v2462_v33, %v12194_v59  ;;  %v4414_v1 = vand.u32 4294901760, %v4413_v22 }
 0x367   :  { %4391 = vmatpush.msra.mxu3 %v4390_v63  ;;  %4489 = vmatpush.msrb.mxu0 %v12117_v8  ;;  %v12204_v63 = vand.u32 4294901760, %v2490_v10  ;;  %v12221_v29 = vsub.f32 %v2491_v36, %v12185_v43  ;;  %17167 = vst [vmem:[#allocation129_spill] sm:$0xff] %v12227_v48  ;;  %v4408_v31 = vand.u32 4294901760, %v4407_v5  ;;  %v12246_v48 = vand.u32 4294901760, %v2489_v57  ;;  %v2487_v36 = vld [vmem:[%s16425_s4 + $0x2c8] sm:$0xff] }
 0x368   :  { %4549 = vmatpush.msrb.mxu1 %v12104_v9  ;;  %4088 = vmatmul.f32.gmra.mxu2 %v17162_v14  ;;  %v2488_v14 = vld [vmem:[%s16425_s4 + $0x2d0] sm:$0xff]  ;;  %v4420_v22 = vand.u32 4294901760, %v4419_v49 }
 0x369   :  { %4139 = vmatmul.f32.gmra.mxu3 %v17163_v6  ;;  %4275 = vmatmul.f32.gmra.mxu1 %v17130_v11  ;;  %v12223_v18 = vpop.f32.mrf.mxu2  ;;  %v12244_v5 = vsub.f32 %v2490_v10, %v12204_v63  ;;  %v17174_v49 = vand.u32 4294901760, %v12221_v29 }
 0x36a   :  { %4304 = vmatpush.msra.mxu2 %v12119_v0  ;;  %17165 = vst [vmem:[#allocation5_spill] sm:$0xff] %v12223_v18  ;;  %v12225_v6 = vpop.f32.mrf.mxu3  ;;  %4397 = vmatpush.msra.mxu3 %v4396_v41  ;;  %v12259_v18 = vand.u32 4294901760, %v2488_v14 }
 0x36b   :  { %17166 = vst [vmem:[#allocation23_spill] sm:$0xff] %v12225_v6  ;;  %4492 = vmatpush.msrb.mxu0 %v12137_v24  ;;  %4551 = vmatpush.msrb.mxu1 %v12119_v0  ;;  %v17172_v6 = vand.u32 4294901760, %v12212_v51 }
 0x36c   :  { %4226 = vmatmul.f32.gmra.mxu0 %v17130_v11  ;;  %4306 = vmatpush.msra.mxu2 %v12154_v23  ;;  %v17169_v11 = vand.u32 4294901760, %v12183_v27  ;;  %v12284_v61 = vpop.f32.mrf.mxu0  ;;  %v12292_v40 = vsub.f32 %v2488_v14, %v12259_v18 }
 0x36d   :  { %4403 = vmatpush.msra.mxu3 %v4402_v44  ;;  %4495 = vmatpush.msrb.mxu0 %v12157_v30  ;;  %v17170_v44 = vand.u32 4294901760, %v12192_v55  ;;  %v4431_v13 = vsub.f32 %v12212_v51, %v17172_v6  ;;  %17173 = vst [vmem:[#allocation130_spill] sm:$0xff] %v12284_v61  ;;  %v17178_v61 = vand.u32 4294901760, %v12234_v17 }
 0x36e   :  { %4553 = vmatpush.msrb.mxu1 %v12154_v23  ;;  %v4781_v10 = vsub.f32 %v12183_v27, %v17169_v11  ;;  %4308 = vmatpush.msra.mxu2 %v12174_v46  ;;  %v17171_v11 = vand.u32 4294901760, %v12202_v2  ;;  %17175 = vst [vmem:[#allocation131_spill] sm:$0xff] %v12292_v40 }
 0x36f   :  { %4409 = vmatpush.msra.mxu3 %v4408_v31  ;;  %v4425_v33 = vsub.f32 %v12192_v55, %v17170_v44  ;;  %4498 = vmatpush.msrb.mxu0 %v12192_v55  ;;  %v12276_v31 = vsub.f32 %v2489_v57, %v12246_v48  ;;  %v12278_v44 = vand.u32 4294901760, %v2487_v36  ;;  %v4793_v57 = vsub.f32 %v12221_v29, %v17174_v49 }
 0x370   :  { %4555 = vmatpush.msrb.mxu1 %v12174_v46  ;;  %v4787_v41 = vsub.f32 %v12202_v2, %v17171_v11  ;;  %4310 = vmatpush.msra.mxu2 %v12194_v59  ;;  %v4782_v11 = vand.u32 4294901760, %v4781_v10  ;;  %v4437_v7 = vsub.f32 %v12234_v17, %v17178_v61  ;;  %v2485_v10 = vld [vmem:[%s16425_s4 + $0x2b8] sm:$0xff]  ;;  %v17180_v49 = vand.u32 4294901760, %v12244_v5 }
 0x371   :  { %4415 = vmatpush.msra.mxu3 %v4414_v1  ;;  %4501 = vmatpush.msrb.mxu0 %v12212_v51  ;;  %v17176_v1 = vld [vmem:[#allocation9_spill] sm:$0xff]  ;;  %v4426_v6 = vand.u32 4294901760, %v4425_v33 }
 0x372   :  { %4557 = vmatpush.msrb.mxu1 %v12194_v59  ;;  %4145 = vmatmul.f32.gmra.mxu3 %v17176_v1  ;;  %v4788_v14 = vand.u32 4294901760, %v4787_v41  ;;  %v4799_v34 = vsub.f32 %v12244_v5, %v17180_v49  ;;  %v12316_v59 = vpop.f32.mrf.mxu1  ;;  %v4432_v41 = vand.u32 4294901760, %v4431_v13  ;;  %v17186_v49 = vld [vmem:[#allocation18_spill] sm:$0xff]  ;;  %v4438_v13 = vand.u32 4294901760, %v4437_v7 }
 0x373   :  { %4316 = vmatmul.f32.vlgmr.msra.gmra.mxu2 %v17177_v54  ;;  %4561 = vmatmul.f32.vlgmr.msrb.gmra.mxu1 %v17179_v53  ;;  %v12310_v54 = vsub.f32 %v2487_v36, %v12278_v44  ;;  %v12312_v33 = vpop.f32.mrf.mxu2  ;;  %17184 = vst [vmem:[#allocation132_spill] sm:$0xff] %v12316_v59  ;;  %v17185_v53 = vand.u32 4294901760, %v11940_v37  ;;  %v4794_v36 = vand.u32 4294901760, %v4793_v57  ;;  %v17187_v37 = vand.u32 4294901760, %v11952_v52  ;;  %v2482_v7 = vld [vmem:[%s16425_s4 + $0x2a0] sm:$0xff] }
 0x374   :  { %4421 = vmatpush.msra.mxu3 %v4420_v22  ;;  %17182 = vst [vmem:[#allocation32_spill] sm:$0xff] %v12312_v33  ;;  %v12314_v61 = vpop.f32.mrf.mxu3  ;;  %4504 = vmatpush.msrb.mxu0 %v12234_v17  ;;  %v2484_v22 = vld [vmem:[%s16425_s4 + $0x2b0] sm:$0xff]  ;;  %v12327_v33 = vsub.f32 %v2486_v21, %v12294_v45  ;;  %v17188_v57 = vand.u32 4294901760, %v12276_v31  ;;  %v17189_v52 = vand.u32 4294901760, %v11967_v32  ;;  %v17191_v32 = vand.u32 4294901760, %v11983_v19  ;;  %v2481_v19 = vld [vmem:[%s16425_s4 + $0x298] sm:$0xff] }
 0x375   :  { %17181 = vst [vmem:[#allocation9_spill] sm:$0xff] %v12310_v54  ;;  %4586 = vmatpush.msrb.mxu2 %v17185_v53  ;;  %4783 = vmatpush.msra.mxu1 %v4782_v11  ;;  %v2483_v53 = vld [vmem:[%s16425_s4 + $0x2a8] sm:$0xff]  ;;  %v4800_v11 = vand.u32 4294901760, %v4799_v34  ;;  %v12341_v1 = vand.u32 4294901760, %v2484_v22  ;;  %v17190_v34 = vand.u32 4294901760, %v12292_v40 }
 0x376   :  { %17183 = vst [vmem:[#allocation25_spill] sm:$0xff] %v12314_v61  ;;  %4507 = vmatmul.f32.vlgmr.msrb.gmra.mxu0 %v17186_v49  ;;  %v12329_v61 = vand.u32 4294901760, %v2485_v10  ;;  %4427 = vmatpush.msra.mxu3 %v4426_v6  ;;  %v4805_v21 = vsub.f32 %v12276_v31, %v17188_v57  ;;  %v16581_v49 = vand.u32 4294901760, %v12310_v54  ;;  %v12360_v57 = vpop.f32.mrf.mxu0 }
 0x377   :  { %4590 = vmatpush.msrb.mxu2 %v17187_v37  ;;  %4714 = vmatpush.msra.mxu0 %v12151_v62  ;;  %v4811_v6 = vsub.f32 %v12292_v40, %v17190_v34  ;;  %17192 = vst [vmem:[#allocation18_spill] sm:$0xff] %v12360_v57  ;;  %v12367_v34 = vsub.f32 %v2484_v22, %v12341_v1  ;;  %v17202_v57 = vand.u32 4294901760, %v12027_v60  ;;  %v17204_v60 = vand.u32 4294901760, %v12044_v56 }
 0x378   :  { %4789 = vmatpush.msra.mxu1 %v4788_v14  ;;  %4433 = vmatpush.msra.mxu3 %v4432_v41  ;;  %v12354_v37 = vsub.f32 %v2485_v10, %v12329_v61  ;;  %v12356_v41 = vand.u32 4294901760, %v2483_v53  ;;  %v12369_v10 = vand.u32 4294901760, %v2482_v7  ;;  %v17193_v14 = vld [vmem:[#allocation30_spill] sm:$0xff] }
 0x379   :  { %4594 = vmatpush.msrb.mxu2 %v17189_v52  ;;  %4716 = vmatpush.msra.mxu0 %v12168_v35  ;;  %v4817_v52 = vsub.f32 %v12310_v54, %v16581_v49  ;;  %v17197_v49 = vand.u32 4294901760, %v12327_v33 }
 0x37a   :  { %4795 = vmatpush.msra.mxu1 %v4794_v36  ;;  %4439 = vmatpush.msra.mxu3 %v4438_v13  ;;  %v4806_v36 = vand.u32 4294901760, %v4805_v21  ;;  %v17194_v13 = vld [vmem:[#allocation10_spill] sm:$0xff]  ;;  %v4812_v21 = vand.u32 4294901760, %v4811_v6  ;;  %v12390_v40 = vpop.f32.mrf.mxu1 }
 0x37b   :  { %4598 = vmatpush.msrb.mxu2 %v17191_v32  ;;  %4718 = vmatpush.msra.mxu0 %v12185_v43  ;;  %v17195_v32 = vld [vmem:[#allocation22_spill] sm:$0xff]  ;;  %v4823_v22 = vsub.f32 %v12327_v33, %v17197_v49  ;;  %v17201_v49 = vld [vmem:[#allocation13_spill] sm:$0xff]  ;;  %v4818_v6 = vand.u32 4294901760, %v4817_v52  ;;  %v17203_v52 = vand.u32 4294901760, %v12354_v37 }
 0x37c   :  { %4801 = vmatpush.msra.mxu1 %v4800_v11  ;;  %4324 = vmatmul.f32.gmra.mxu2 %v17193_v14  ;;  %v17196_v11 = vand.u32 4294901760, %v12014_v15  ;;  %v12384_v14 = vsub.f32 %v2483_v53, %v12356_v41  ;;  %17200 = vst [vmem:[#allocation22_spill] sm:$0xff] %v12390_v40  ;;  %v2480_v15 = vld [vmem:[%s16425_s4 + $0x290] sm:$0xff] }
 0x37d   :  { %4441 = vmatmul.f32.vlgmr.msra.gmra.mxu3 %v17194_v13  ;;  %4567 = vmatmul.f32.gmra.mxu1 %v17195_v32  ;;  %v12388_v54 = vpop.f32.mrf.mxu2  ;;  %v12400_v32 = vsub.f32 %v2482_v7, %v12369_v10  ;;  %v4829_v7 = vsub.f32 %v12354_v37, %v17203_v52  ;;  %v12415_v53 = vand.u32 4294901760, %v2480_v15 }
 0x37e   :  { %4602 = vmatpush.msrb.mxu2 %v17196_v11  ;;  %v12386_v59 = vpop.f32.mrf.mxu3  ;;  %17199 = vst [vmem:[#allocation10_spill] sm:$0xff] %v12388_v54  ;;  %4665 = vmatpush.msrb.mxu3 %v11918_v39  ;;  %v12402_v11 = vand.u32 4294901760, %v2481_v19  ;;  %v2479_v39 = vld [vmem:[%s16425_s4 + $0x288] sm:$0xff] }
 0x37f   :  { %17198 = vst [vmem:[#allocation30_spill] sm:$0xff] %v12386_v59  ;;  %4720 = vmatpush.msra.mxu0 %v12204_v63  ;;  %4807 = vmatpush.msra.mxu1 %v4806_v36  ;;  %v4824_v36 = vand.u32 4294901760, %v4823_v22  ;;  %v12431_v56 = vand.u32 4294901760, %v2479_v39  ;;  %v17208_v59 = vld [vmem:[#allocation29_spill] sm:$0xff] }
 0x380   :  { %4512 = vmatmul.f32.gmra.mxu0 %v17201_v49  ;;  %4606 = vmatpush.msrb.mxu2 %v17202_v57  ;;  %v16586_v49 = vand.u32 4294901760, %v12384_v14  ;;  %v17205_v57 = vand.u32 4294901760, %v12367_v34  ;;  %v12429_v52 = vsub.f32 %v2481_v19, %v12402_v11  ;;  %v12443_v19 = vsub.f32 %v2480_v15, %v12415_v53 }
 0x381   :  { %4667 = vmatpush.msrb.mxu3 %v11927_v58  ;;  %4722 = vmatpush.msra.mxu0 %v12246_v48  ;;  %v2478_v58 = vld [vmem:[%s16425_s4 + $0x280] sm:$0xff]  ;;  %v12457_v15 = vsub.f32 %v2479_v39, %v12431_v56  ;;  %v17217_v39 = vand.u32 4294901760, %v12102_v47  ;;  %v17219_v47 = vand.u32 4294901760, %v12137_v24  ;;  %v17224_v24 = vand.u32 4294901760, %v12157_v30 }
 0x382   :  { %4813 = vmatpush.msra.mxu1 %v4812_v21  ;;  %4610 = vmatpush.msrb.mxu2 %v17204_v60  ;;  %v4835_v21 = vsub.f32 %v12367_v34, %v17205_v57  ;;  %v12436_v60 = vpop.f32.mrf.mxu0  ;;  %v4841_v57 = vsub.f32 %v12384_v14, %v16586_v49  ;;  %v12445_v22 = vand.u32 4294901760, %v2478_v58  ;;  %v4852_v49 = vand.u32 4294901760, %v12429_v52  ;;  %v12463_v54 = vpop.f32.mrf.mxu1 }
 0x383   :  { %4669 = vmatpush.msrb.mxu3 %v11942_v16  ;;  %4724 = vmatpush.msra.mxu0 %v12259_v18  ;;  %v17206_v16 = vand.u32 4294901760, %v12060_v4  ;;  %17207 = vst [vmem:[#allocation13_spill] sm:$0xff] %v12436_v60  ;;  %v17209_v4 = vld [vmem:[#allocation6_spill] sm:$0xff] }
 0x384   :  { %4819 = vmatpush.msra.mxu1 %v4818_v6  ;;  %v4830_v6 = vand.u32 4294901760, %v4829_v7  ;;  %4332 = vmatmul.f32.gmra.mxu2 %v17208_v59  ;;  %v17212_v7 = vand.u32 4294901760, %v12400_v32 }
 0x385   :  { %4614 = vmatpush.msrb.mxu2 %v17206_v16  ;;  %4671 = vmatpush.msrb.mxu3 %v11954_v12  ;;  %v17210_v12 = vld [vmem:[#allocation19_spill] sm:$0xff]  ;;  %v17211_v16 = vand.u32 4294901760, %v12080_v50 }
 0x386   :  { %4726 = vmatpush.msra.mxu0 %v12278_v44  ;;  %4825 = vmatpush.msra.mxu1 %v4824_v36  ;;  %v4836_v36 = vand.u32 4294901760, %v4835_v21  ;;  %v4847_v40 = vsub.f32 %v12400_v32, %v17212_v7  ;;  %17215 = vst [vmem:[#allocation19_spill] sm:$0xff] %v12463_v54  ;;  %v17216_v50 = vld [vmem:[#allocation11_spill] sm:$0xff]  ;;  %v4842_v21 = vand.u32 4294901760, %v4841_v57  ;;  %v4864_v57 = vand.u32 4294901760, %v12457_v15 }
 0x387   :  { %4445 = vmatmul.f32.gmra.mxu3 %v17209_v4  ;;  %4573 = vmatmul.f32.gmra.mxu1 %v17210_v12  ;;  %v12459_v60 = vpop.f32.mrf.mxu2  ;;  %v4858_v12 = vand.u32 4294901760, %v12443_v19  ;;  %v17218_v7 = vand.u32 4294901760, %v12117_v8 }
 0x388   :  { %4618 = vmatpush.msrb.mxu2 %v17211_v16  ;;  %17213 = vst [vmem:[#allocation29_spill] sm:$0xff] %v12459_v60  ;;  %v12461_v59 = vpop.f32.mrf.mxu3  ;;  %4673 = vmatpush.msrb.mxu3 %v11980_v20  ;;  %v12470_v16 = vsub.f32 %v2478_v58, %v12445_v22  ;;  %v4848_v20 = vand.u32 4294901760, %v4847_v40 }
 0x389   :  { %17214 = vst [vmem:[#allocation6_spill] sm:$0xff] %v12461_v59  ;;  %4728 = vmatpush.msra.mxu0 %v12294_v45  ;;  %4831 = vmatpush.msra.mxu1 %v4830_v6  ;;  %v4853_v6 = vsub.f32 %v12429_v52, %v4852_v49 }
 0x38a   :  { %4517 = vmatmul.f32.gmra.mxu0 %v17216_v50  ;;  %4622 = vmatpush.msrb.mxu2 %v17217_v39  ;;  %v4870_v40 = vand.u32 4294901760, %v12470_v16  ;;  %v12491_v58 = vpop.f32.mrf.mxu0  ;;  %v17222_v50 = vld [vmem:[#allocation4_spill] sm:$0xff] }
 0x38b   :  { %4675 = vmatpush.msrb.mxu3 %v11998_v26  ;;  %4730 = vmatpush.msra.mxu0 %v12329_v61  ;;  %v4859_v26 = vsub.f32 %v12443_v19, %v4858_v12  ;;  %17220 = vst [vmem:[#allocation11_spill] sm:$0xff] %v12491_v58  ;;  %v4854_v8 = vand.u32 4294901760, %v4853_v6 }
 0x38c   :  { %4837 = vmatpush.msra.mxu1 %v4836_v36  ;;  %4626 = vmatpush.msrb.mxu2 %v17218_v7  ;;  %v17221_v36 = vld [vmem:[#allocation27_spill] sm:$0xff]  ;;  %v4871_v39 = vsub.f32 %v12470_v16, %v4870_v40  ;;  %v12509_v7 = vpop.f32.mrf.mxu1 }
 0x38d   :  { %4677 = vmatpush.msrb.mxu3 %v12016_v42  ;;  %4732 = vmatpush.msra.mxu0 %v12341_v1  ;;  %v4865_v42 = vsub.f32 %v12457_v15, %v4864_v57 }
 0x38e   :  { %4843 = vmatpush.msra.mxu1 %v4842_v21  ;;  %4630 = vmatpush.msrb.mxu2 %v17219_v47  ;;  %v17223_v21 = vld [vmem:[#allocation14_spill] sm:$0xff]  ;;  %v17228_v47 = vld [vmem:[#allocation7_spill] sm:$0xff] }
 0x38f   :  { %4679 = vmatpush.msrb.mxu3 %v12029_v3  ;;  %4734 = vmatpush.msra.mxu0 %v12356_v41  ;;  %v4860_v3 = vand.u32 4294901760, %v4859_v26  ;;  %17227 = vst [vmem:[#allocation14_spill] sm:$0xff] %v12509_v7  ;;  %v4866_v30 = vand.u32 4294901760, %v4865_v42  ;;  %v17229_v26 = vand.u32 4294901760, %v12192_v55  ;;  %v17240_v42 = vand.u32 4294901760, %v12202_v2 }
 0x390   :  { %4849 = vmatpush.msra.mxu1 %v4848_v20  ;;  %4340 = vmatmul.f32.gmra.mxu2 %v17221_v36  ;;  %v12505_v20 = vpop.f32.mrf.mxu2  ;;  %v4872_v36 = vand.u32 4294901760, %v4871_v39 }
 0x391   :  { %4449 = vmatmul.f32.gmra.mxu3 %v17222_v50  ;;  %4579 = vmatmul.f32.gmra.mxu1 %v17223_v21  ;;  %17225 = vst [vmem:[#allocation27_spill] sm:$0xff] %v12505_v20  ;;  %v17230_v21 = vand.u32 4294901760, %v12212_v51  ;;  %v17234_v51 = vld [vmem:[#allocation39_spill] sm:$0xff] }
 0x392   :  { %4634 = vmatpush.msrb.mxu2 %v17224_v24  ;;  %v12507_v6 = vpop.f32.mrf.mxu3  ;;  %4681 = vmatpush.msrb.mxu3 %v12049_v28  ;;  %v17231_v28 = vand.u32 4294901760, %v12234_v17  ;;  %v12525_v55 = vpop.f32.mrf.mxu0  ;;  %v17241_v24 = vld [vmem:[#allocation127_spill] sm:$0xff] }
 0x393   :  { %17226 = vst [vmem:[#allocation4_spill] sm:$0xff] %v12507_v6  ;;  %4736 = vmatpush.msra.mxu0 %v12369_v10  ;;  %4855 = vmatpush.msra.mxu1 %v4854_v8 }
 0x394   :  { %4522 = vmatmul.f32.gmra.mxu0 %v17228_v47  ;;  %4638 = vmatpush.msrb.mxu2 %v17229_v26  ;;  %17232 = vst [vmem:[#allocation7_spill] sm:$0xff] %v12525_v55  ;;  %v12536_v17 = vpop.f32.mrf.mxu1  ;;  %v17249_v47 = vld [vmem:[#allocation48_spill] sm:$0xff]  ;;  %v17252_v26 = vld [vmem:[#allocation9_spill] sm:$0xff] }
 0x395   :  { %4683 = vmatpush.msrb.mxu3 %v12074_v25  ;;  %4738 = vmatpush.msra.mxu0 %v12402_v11  ;;  %v17233_v25 = vld [vmem:[#allocation2_spill] sm:$0xff]  ;;  %17237 = vst [vmem:[#allocation133_spill] sm:$0xff] %v12536_v17  ;;  %v17320_v55 = vld [vmem:[#allocation61_spill] sm:$0xff] }
 0x396   :  { %4861 = vmatpush.msra.mxu1 %v4860_v3  ;;  %4642 = vmatpush.msrb.mxu2 %v17230_v21  ;;  %v17260_v21 = vand.u32 4294901760, %v12327_v33 }
 0x397   :  { %4685 = vmatpush.msrb.mxu3 %v12089_v38  ;;  %4740 = vmatpush.msra.mxu0 %v12415_v53 }
 0x398   :  { %4867 = vmatpush.msra.mxu1 %v4866_v30  ;;  %4646 = vmatpush.msrb.mxu2 %v17231_v28  ;;  %v17251_v30 = vand.u32 4294901760, %v12276_v31  ;;  %v17261_v28 = vld [vmem:[#allocation47_spill] sm:$0xff] }
 0x399   :  { %4687 = vmatpush.msrb.mxu3 %v12104_v9  ;;  %4742 = vmatpush.msra.mxu0 %v12431_v56  ;;  %v17238_v9 = vld [vmem:[#allocation49_spill] sm:$0xff] }
 0x39a   :  { %4873 = vmatpush.msra.mxu1 %v4872_v36  ;;  %4453 = vmatmul.f32.gmra.mxu3 %v17233_v25 }
 0x39b   :  { %4648 = vmatmul.f32.vlgmr.msrb.gmra.mxu2 %v17194_v13  ;;  %4875 = vmatmul.f32.vlgmr.msra.gmra.mxu1 %v17234_v51  ;;  %v12532_v38 = vpop.f32.mrf.mxu2 }
 0x39c   :  { %4689 = vmatpush.msrb.mxu3 %v12119_v0  ;;  %17235 = vst [vmem:[#allocation2_spill] sm:$0xff] %v12532_v38  ;;  %v12534_v8 = vpop.f32.mrf.mxu3  ;;  %4744 = vmatpush.msra.mxu0 %v12445_v22  ;;  %v17239_v0 = vand.u32 4294901760, %v12183_v27  ;;  %v12567_v39 = vpop.f32.mrf.mxu1 }
 0x39d   :  { %17236 = vst [vmem:[#allocation39_spill] sm:$0xff] %v12534_v8  ;;  %4893 = vmatpush.msra.mxu2 %v12183_v27  ;;  %5099 = vmatpush.msrb.mxu1 %v12151_v62  ;;  %v17243_v27 = vand.u32 4294901760, %v12221_v29  ;;  %v17306_v8 = vld [vmem:[#allocation62_spill] sm:$0xff] }
 0x39e   :  { %4750 = vmatmul.f32.vlgmr.msra.gmra.mxu0 %v17238_v9  ;;  %4691 = vmatpush.msrb.mxu3 %v12154_v23  ;;  %v12554_v23 = vpop.f32.mrf.mxu0  ;;  %17247 = vst [vmem:[#allocation134_spill] sm:$0xff] %v12567_v39 }
 0x39f   :  { %4896 = vmatpush.msra.mxu2 %v12202_v2  ;;  %5020 = vmatpush.msrb.mxu0 %v17239_v0  ;;  %17242 = vst [vmem:[#allocation49_spill] sm:$0xff] %v12554_v23  ;;  %v17270_v0 = vand.u32 4294901760, %v12400_v32  ;;  %v12946_v23 = vand.u32 4294901760, %v17306_v8 }
 0x3a0   :  { %5101 = vmatpush.msrb.mxu1 %v12168_v35  ;;  %4693 = vmatpush.msrb.mxu3 %v12174_v46  ;;  %v17244_v46 = vld [vmem:[#allocation37_spill] sm:$0xff] }
 0x3a1   :  { %4899 = vmatpush.msra.mxu2 %v12221_v29  ;;  %5024 = vmatpush.msrb.mxu0 %v17240_v42  ;;  %v17248_v29 = vand.u32 4294901760, %v12244_v5  ;;  %v17271_v42 = vld [vmem:[#allocation46_spill] sm:$0xff] }
 0x3a2   :  { %5103 = vmatpush.msrb.mxu1 %v12185_v43  ;;  %4695 = vmatpush.msrb.mxu3 %v17241_v24  ;;  %v2507_v24 = vld [vmem:[%s16425_s4 + $0x368] sm:$0xff] }
 0x3a3   :  { %4902 = vmatpush.msra.mxu2 %v12244_v5  ;;  %5028 = vmatpush.msrb.mxu0 %v17243_v27 }
 0x3a4   :  { %5105 = vmatpush.msrb.mxu1 %v12204_v63  ;;  %4652 = vmatmul.f32.gmra.mxu2 %v17209_v4 }
 0x3a5   :  { %4697 = vmatmul.f32.vlgmr.msrb.gmra.mxu3 %v17194_v13  ;;  %4879 = vmatmul.f32.gmra.mxu1 %v17244_v46  ;;  %v12563_v2 = vpop.f32.mrf.mxu3  ;;  %v17250_v13 = vld [vmem:[#allocation131_spill] sm:$0xff] }
 0x3a6   :  { %4905 = vmatpush.msra.mxu2 %v12276_v31  ;;  %17245 = vst [vmem:[#allocation127_spill] sm:$0xff] %v12563_v2  ;;  %v12565_v3 = vpop.f32.mrf.mxu2  ;;  %4961 = vmatpush.msra.mxu3 %v12151_v62  ;;  %v17253_v62 = vand.u32 4294901760, %v17250_v13  ;;  %v12586_v5 = vpop.f32.mrf.mxu0 }
 0x3a7   :  { %17246 = vst [vmem:[#allocation37_spill] sm:$0xff] %v12565_v3  ;;  %5032 = vmatpush.msrb.mxu0 %v17248_v29  ;;  %5107 = vmatpush.msrb.mxu1 %v12246_v48  ;;  %v12664_v29 = vand.u32 4294901760, %v2507_v24 }
 0x3a8   :  { %4758 = vmatmul.f32.gmra.mxu0 %v17249_v47  ;;  %4908 = vmatpush.msra.mxu2 %v17250_v13  ;;  %17254 = vst [vmem:[#allocation48_spill] sm:$0xff] %v12586_v5 }
 0x3a9   :  { %4963 = vmatpush.msra.mxu3 %v12168_v35  ;;  %5036 = vmatpush.msrb.mxu0 %v17251_v30  ;;  %v17255_v35 = vand.u32 4294901760, %v17252_v26 }
 0x3aa   :  { %5109 = vmatpush.msrb.mxu1 %v12259_v18  ;;  %4911 = vmatpush.msra.mxu2 %v17252_v26  ;;  %v2503_v26 = vld [vmem:[%s16425_s4 + $0x348] sm:$0xff] }
 0x3ab   :  { %4965 = vmatpush.msra.mxu3 %v12185_v43  ;;  %5040 = vmatpush.msrb.mxu0 %v17253_v62  ;;  %v17256_v43 = vld [vmem:[#allocation35_spill] sm:$0xff] }
 0x3ac   :  { %5111 = vmatpush.msrb.mxu1 %v12278_v44  ;;  %4914 = vmatpush.msra.mxu2 %v12327_v33 }
 0x3ad   :  { %4967 = vmatpush.msra.mxu3 %v12204_v63  ;;  %5044 = vmatpush.msrb.mxu0 %v17255_v35  ;;  %v12599_v63 = vpop.f32.mrf.mxu1 }
 0x3ae   :  { %5113 = vmatpush.msrb.mxu1 %v12294_v45  ;;  %4656 = vmatmul.f32.gmra.mxu2 %v17222_v50  ;;  %17259 = vst [vmem:[#allocation35_spill] sm:$0xff] %v12599_v63  ;;  %v12618_v33 = vpop.f32.mrf.mxu0 }
 0x3af   :  { %4701 = vmatmul.f32.gmra.mxu3 %v17209_v4  ;;  %4883 = vmatmul.f32.gmra.mxu1 %v17256_v43  ;;  %v12595_v31 = vpop.f32.mrf.mxu2  ;;  %v17262_v4 = vand.u32 4294901760, %v12354_v37  ;;  %17264 = vst [vmem:[#allocation47_spill] sm:$0xff] %v12618_v33 }
 0x3b0   :  { %4917 = vmatpush.msra.mxu2 %v12354_v37  ;;  %17257 = vst [vmem:[#allocation131_spill] sm:$0xff] %v12595_v31  ;;  %v12597_v36 = vpop.f32.mrf.mxu3  ;;  %4969 = vmatpush.msra.mxu3 %v12246_v48  ;;  %v17263_v48 = vand.u32 4294901760, %v12367_v34  ;;  %v17266_v37 = vld [vmem:[#allocation34_spill] sm:$0xff] }
 0x3b1   :  { %17258 = vst [vmem:[#allocation9_spill] sm:$0xff] %v12597_v36  ;;  %5048 = vmatpush.msrb.mxu0 %v17260_v21  ;;  %5115 = vmatpush.msrb.mxu1 %v12329_v61  ;;  %v12736_v21 = vand.u32 4294901760, %v2503_v26  ;;  %v2522_v31 = vld [vmem:[%s16425_s4 + $0x3e0] sm:$0xff]  ;;  %v17303_v36 = vld [vmem:[#allocation36_spill] sm:$0xff] }
 0x3b2   :  { %4766 = vmatmul.f32.gmra.mxu0 %v17261_v28  ;;  %4920 = vmatpush.msra.mxu2 %v12367_v34 }
 0x3b3   :  { %4971 = vmatpush.msra.mxu3 %v12259_v18  ;;  %5052 = vmatpush.msrb.mxu0 %v17262_v4  ;;  %v17265_v18 = vand.u32 4294901760, %v12384_v14 }
 0x3b4   :  { %5117 = vmatpush.msrb.mxu1 %v12341_v1  ;;  %4923 = vmatpush.msra.mxu2 %v12384_v14 }
 0x3b5   :  { %4973 = vmatpush.msra.mxu3 %v12278_v44  ;;  %5056 = vmatpush.msrb.mxu0 %v17263_v48  ;;  %v2509_v44 = vld [vmem:[%s16425_s4 + $0x378] sm:$0xff]  ;;  %v12637_v9 = vpop.f32.mrf.mxu1 }
 0x3b6   :  { %5119 = vmatpush.msrb.mxu1 %v12356_v41  ;;  %4926 = vmatpush.msra.mxu2 %v12400_v32  ;;  %17269 = vst [vmem:[#allocation136_spill] sm:$0xff] %v12637_v9  ;;  %v17286_v9 = vld [vmem:[#allocation38_spill] sm:$0xff] }
 0x3b7   :  { %4975 = vmatpush.msra.mxu3 %v12294_v45  ;;  %5060 = vmatpush.msrb.mxu0 %v17265_v18  ;;  %v2508_v45 = vld [vmem:[%s16425_s4 + $0x370] sm:$0xff] }
 0x3b8   :  { %5121 = vmatpush.msrb.mxu1 %v12369_v10  ;;  %4660 = vmatmul.f32.gmra.mxu2 %v17233_v25  ;;  %v12651_v27 = vand.u32 4294901760, %v2508_v45 }
 0x3b9   :  { %4705 = vmatmul.f32.gmra.mxu3 %v17222_v50  ;;  %4887 = vmatmul.f32.gmra.mxu1 %v17266_v37  ;;  %v12633_v34 = vpop.f32.mrf.mxu2  ;;  %v12642_v50 = vand.u32 4294901760, %v2509_v44 }
 0x3ba   :  { %4929 = vmatpush.msra.mxu2 %v12429_v52  ;;  %17267 = vst [vmem:[#allocation34_spill] sm:$0xff] %v12633_v34  ;;  %v12635_v14 = vpop.f32.mrf.mxu3  ;;  %4977 = vmatpush.msra.mxu3 %v12329_v61  ;;  %v2506_v61 = vld [vmem:[%s16425_s4 + $0x360] sm:$0xff]  ;;  %v2505_v52 = vld [vmem:[%s16425_s4 + $0x358] sm:$0xff] }
 0x3bb   :  { %17268 = vst [vmem:[#allocation135_spill] sm:$0xff] %v12635_v14  ;;  %5064 = vmatpush.msrb.mxu0 %v17270_v0  ;;  %5123 = vmatpush.msrb.mxu1 %v12402_v11  ;;  %v12662_v32 = vsub.f32 %v2509_v44, %v12642_v50  ;;  %v12704_v13 = vand.u32 4294901760, %v2505_v52  ;;  %v2501_v44 = vld [vmem:[%s16425_s4 + $0x338] sm:$0xff] }
 0x3bc   :  { %4774 = vmatmul.f32.gmra.mxu0 %v17271_v42  ;;  %4932 = vmatpush.msra.mxu2 %v12443_v19  ;;  %v17273_v19 = vld [vmem:[#allocation42_spill] sm:$0xff]  ;;  %v17279_v0 = vld [vmem:[#allocation45_spill] sm:$0xff] }
 0x3bd   :  { %4979 = vmatpush.msra.mxu3 %v12341_v1  ;;  %5068 = vmatpush.msrb.mxu0 %v4852_v49  ;;  %v12672_v1 = vsub.f32 %v2508_v45, %v12651_v27  ;;  %v12674_v49 = vand.u32 4294901760, %v2506_v61  ;;  %v12734_v35 = vsub.f32 %v2505_v52, %v12704_v13 }
 0x3be   :  { %5125 = vmatpush.msrb.mxu1 %v12415_v53  ;;  %4935 = vmatpush.msra.mxu2 %v12457_v15  ;;  %v2504_v15 = vld [vmem:[%s16425_s4 + $0x350] sm:$0xff] }
 0x3bf   :  { %4981 = vmatpush.msra.mxu3 %v12356_v41  ;;  %5072 = vmatpush.msrb.mxu0 %v4858_v12  ;;  %v12676_v41 = vpop.f32.mrf.mxu0  ;;  %v16591_v12 = vand.u32 4294901760, %v12662_v32  ;;  %v12707_v30 = vsub.f32 %v2506_v61, %v12674_v49  ;;  %v12764_v61 = vsub.f32 %v2503_v26, %v12736_v21  ;;  %v16590_v52 = vand.u32 4294901760, %v12734_v35 }
 0x3c0   :  { %5127 = vmatpush.msrb.mxu1 %v12431_v56  ;;  %4938 = vmatpush.msra.mxu2 %v12470_v16  ;;  %17272 = vst [vmem:[#allocation46_spill] sm:$0xff] %v12676_v41 }
 0x3c1   :  { %4983 = vmatpush.msra.mxu3 %v12369_v10  ;;  %5076 = vmatpush.msrb.mxu0 %v4864_v57  ;;  %v12687_v10 = vsub.f32 %v2507_v24, %v12664_v29  ;;  %v5215_v16 = vsub.f32 %v12662_v32, %v16591_v12  ;;  %v16587_v28 = vand.u32 4294901760, %v12707_v30 }
 0x3c2   :  { %5129 = vmatpush.msrb.mxu1 %v12445_v22  ;;  %4709 = vmatmul.f32.gmra.mxu3 %v17233_v25  ;;  %v12699_v25 = vpop.f32.mrf.mxu1 }
 0x3c3   :  { %4941 = vmatmul.f32.vlgmr.msra.gmra.mxu2 %v17273_v19  ;;  %5131 = vmatmul.f32.vlgmr.msrb.gmra.mxu1 %v17234_v51  ;;  %v12695_v57 = vpop.f32.mrf.mxu2  ;;  %17276 = vst [vmem:[#allocation138_spill] sm:$0xff] %v12699_v25  ;;  %v16588_v62 = vand.u32 4294901760, %v12687_v10  ;;  %v5233_v24 = vsub.f32 %v12707_v30, %v16587_v28  ;;  %v12769_v19 = vand.u32 4294901760, %v2501_v44 }
 0x3c4   :  { %4985 = vmatpush.msra.mxu3 %v12402_v11  ;;  %17274 = vst [vmem:[#allocation42_spill] sm:$0xff] %v12695_v57  ;;  %v12697_v47 = vpop.f32.mrf.mxu3  ;;  %5080 = vmatpush.msrb.mxu0 %v4870_v40  ;;  %v16589_v11 = vand.u32 4294901760, %v12672_v1  ;;  %v12720_v40 = vand.u32 4294901760, %v2504_v15 }
 0x3c5   :  { %17275 = vst [vmem:[#allocation137_spill] sm:$0xff] %v12697_v47  ;;  %5148 = vmatpush.msrb.mxu2 %v12642_v50  ;;  %5395 = vmatpush.msra.mxu1 %v12642_v50  ;;  %v5227_v4 = vsub.f32 %v12687_v10, %v16588_v62  ;;  %v2499_v62 = vld [vmem:[%s16425_s4 + $0x328] sm:$0xff] }
 0x3c6   :  { %5082 = vmatmul.f32.vlgmr.msrb.gmra.mxu0 %v17234_v51  ;;  %4987 = vmatpush.msra.mxu3 %v12415_v53  ;;  %v2502_v51 = vld [vmem:[%s16425_s4 + $0x340] sm:$0xff]  ;;  %v5221_v53 = vsub.f32 %v12672_v1, %v16589_v11  ;;  %v12747_v48 = vsub.f32 %v2504_v15, %v12720_v40  ;;  %v2500_v15 = vld [vmem:[%s16425_s4 + $0x330] sm:$0xff]  ;;  %v16593_v11 = vand.u32 4294901760, %v12764_v61 }
 0x3c7   :  { %5150 = vmatpush.msrb.mxu2 %v12651_v27  ;;  %5327 = vmatpush.msra.mxu0 %v12662_v32  ;;  %v12749_v18 = vand.u32 4294901760, %v2502_v51  ;;  %v12754_v45 = vpop.f32.mrf.mxu0  ;;  %v5228_v26 = vand.u32 4294901760, %v5227_v4  ;;  %v5239_v4 = vsub.f32 %v12734_v35, %v16590_v52  ;;  %v12809_v52 = vand.u32 4294901760, %v2499_v62 }
 0x3c8   :  { %5397 = vmatpush.msra.mxu1 %v12651_v27  ;;  %4989 = vmatpush.msra.mxu3 %v12431_v56  ;;  %v5216_v56 = vand.u32 4294901760, %v5215_v16  ;;  %17277 = vst [vmem:[#allocation139_spill] sm:$0xff] %v12754_v45  ;;  %v5222_v42 = vand.u32 4294901760, %v5221_v53  ;;  %v16592_v28 = vand.u32 4294901760, %v12747_v48 }
 0x3c9   :  { %5152 = vmatpush.msrb.mxu2 %v12664_v29  ;;  %5330 = vmatpush.msra.mxu0 %v12672_v1  ;;  %17283 = vst [vmem:[#allocation141_spill] sm:$0xff] %v12809_v52 }
 0x3ca   :  { %5399 = vmatpush.msra.mxu1 %v12664_v29  ;;  %4991 = vmatpush.msra.mxu3 %v12445_v22  ;;  %v17278_v22 = vld [vmem:[#allocation41_spill] sm:$0xff] }
 0x3cb   :  { %5154 = vmatpush.msrb.mxu2 %v12674_v49  ;;  %5333 = vmatpush.msra.mxu0 %v12687_v10 }
 0x3cc   :  { %5401 = vmatpush.msra.mxu1 %v12674_v49  ;;  %4946 = vmatmul.f32.gmra.mxu2 %v17278_v22  ;;  %v12778_v22 = vpop.f32.mrf.mxu1 }
 0x3cd   :  { %4995 = vmatmul.f32.vlgmr.msra.gmra.mxu3 %v17279_v0  ;;  %5135 = vmatmul.f32.gmra.mxu1 %v17244_v46  ;;  %v12774_v16 = vpop.f32.mrf.mxu3  ;;  %17282 = vst [vmem:[#allocation140_spill] sm:$0xff] %v12778_v22  ;;  %v12782_v0 = vsub.f32 %v2502_v51, %v12749_v18  ;;  %v12794_v51 = vand.u32 4294901760, %v2500_v15 }
 0x3ce   :  { %5156 = vmatpush.msrb.mxu2 %v12704_v13  ;;  %17280 = vst [vmem:[#allocation41_spill] sm:$0xff] %v12774_v16  ;;  %v12776_v53 = vpop.f32.mrf.mxu2  ;;  %5217 = vmatpush.msrb.mxu3 %v5216_v56  ;;  %v5234_v56 = vand.u32 4294901760, %v5233_v24  ;;  %v5245_v24 = vsub.f32 %v12747_v48, %v16592_v28  ;;  %v5251_v28 = vsub.f32 %v12764_v61, %v16593_v11 }
 0x3cf   :  { %17281 = vst [vmem:[#allocation45_spill] sm:$0xff] %v12776_v53  ;;  %5336 = vmatpush.msra.mxu0 %v12707_v30  ;;  %5403 = vmatpush.msra.mxu1 %v12704_v13  ;;  %v12822_v16 = vsub.f32 %v2500_v15, %v12794_v51  ;;  %v12826_v22 = vpop.f32.mrf.mxu0  ;;  %v17288_v11 = vand.u32 4294901760, %v12782_v0  ;;  %v12837_v53 = vsub.f32 %v2499_v62, %v12809_v52  ;;  %v17292_v62 = vld [vmem:[#allocation58_spill] sm:$0xff] }
 0x3d0   :  { %5086 = vmatmul.f32.gmra.mxu0 %v17244_v46  ;;  %5158 = vmatpush.msrb.mxu2 %v12720_v40  ;;  %v12800_v46 = vsub.f32 %v2501_v44, %v12769_v19  ;;  %v2497_v44 = vld [vmem:[%s16425_s4 + $0x318] sm:$0xff]  ;;  %17285 = vst [vmem:[#allocation143_spill] sm:$0xff] %v12826_v22  ;;  %v5252_v45 = vand.u32 4294901760, %v5251_v28  ;;  %v2495_v28 = vld [vmem:[%s16425_s4 + $0x308] sm:$0xff] }
 0x3d1   :  { %5223 = vmatpush.msrb.mxu3 %v5222_v42  ;;  %5339 = vmatpush.msra.mxu0 %v12734_v35  ;;  %v2498_v42 = vld [vmem:[%s16425_s4 + $0x320] sm:$0xff]  ;;  %v5257_v15 = vsub.f32 %v12782_v0, %v17288_v11  ;;  %v12839_v47 = vand.u32 4294901760, %v2497_v44  ;;  %v2525_v22 = vld [vmem:[%s16425_s4 + $0x3f8] sm:$0xff]  ;;  %v12901_v63 = vand.u32 4294901760, %v2495_v28 }
 0x3d2   :  { %5405 = vmatpush.msra.mxu1 %v12720_v40  ;;  %5160 = vmatpush.msrb.mxu2 %v12736_v21  ;;  %v12824_v12 = vand.u32 4294901760, %v2498_v42 }
 0x3d3   :  { %5229 = vmatpush.msrb.mxu3 %v5228_v26  ;;  %5342 = vmatpush.msra.mxu0 %v12747_v48  ;;  %v5240_v26 = vand.u32 4294901760, %v5239_v4  ;;  %v5246_v4 = vand.u32 4294901760, %v5245_v24  ;;  %17289 = vst [vmem:[#allocation38_spill] sm:$0xff] %v12839_v47  ;;  %v5258_v34 = vand.u32 4294901760, %v5257_v15  ;;  %v12880_v33 = vsub.f32 %v2497_v44, %v12839_v47 }
 0x3d4   :  { %5407 = vmatpush.msra.mxu1 %v12736_v21  ;;  %5162 = vmatpush.msrb.mxu2 %v12749_v18  ;;  %17284 = vst [vmem:[#allocation142_spill] sm:$0xff] %v12824_v12  ;;  %v12856_v57 = vpop.f32.mrf.mxu1  ;;  %v12860_v25 = vsub.f32 %v2498_v42, %v12824_v12  ;;  %v12874_v42 = vand.u32 4294901760, %v2525_v22  ;;  %v12940_v3 = vsub.f32 %v2495_v28, %v12901_v63 }
 0x3d5   :  { %5235 = vmatpush.msrb.mxu3 %v5234_v56  ;;  %5345 = vmatpush.msra.mxu0 %v12764_v61  ;;  %v17287_v56 = vld [vmem:[#allocation44_spill] sm:$0xff]  ;;  %17293 = vst [vmem:[#allocation58_spill] sm:$0xff] %v12856_v57  ;;  %v17311_v17 = vand.u32 4294901760, %v12880_v33 }
 0x3d6   :  { %5409 = vmatpush.msra.mxu1 %v12749_v18  ;;  %4951 = vmatmul.f32.gmra.mxu2 %v17286_v9  ;;  %v2496_v9 = vld [vmem:[%s16425_s4 + $0x310] sm:$0xff]  ;;  %17297 = vst [vmem:[#allocation146_spill] sm:$0xff] %v12901_v63  ;;  %v12910_v2 = vsub.f32 %v2525_v22, %v12874_v42  ;;  %v17305_v38 = vand.u32 4294901760, %v12860_v25 }
 0x3d7   :  { %5001 = vmatmul.f32.gmra.mxu3 %v17287_v56  ;;  %5139 = vmatmul.f32.gmra.mxu1 %v17256_v43  ;;  %v12849_v24 = vpop.f32.mrf.mxu2  ;;  %v12854_v56 = vand.u32 4294901760, %v17292_v62  ;;  %v12877_v57 = vand.u32 4294901760, %v2496_v9  ;;  %v5287_v20 = vsub.f32 %v12880_v33, %v17311_v17  ;;  %v17313_v17 = vld [vmem:[#allocation109_spill] sm:$0xff] }
 0x3d8   :  { %5164 = vmatpush.msrb.mxu2 %v12769_v19  ;;  %17290 = vst [vmem:[#allocation44_spill] sm:$0xff] %v12849_v24  ;;  %v12851_v11 = vpop.f32.mrf.mxu3  ;;  %5241 = vmatpush.msrb.mxu3 %v5240_v26  ;;  %v2524_v24 = vld [vmem:[%s16425_s4 + $0x3f0] sm:$0xff] }
 0x3d9   :  { %17291 = vst [vmem:[#allocation144_spill] sm:$0xff] %v12851_v11  ;;  %5348 = vmatpush.msra.mxu0 %v12782_v0  ;;  %5411 = vmatpush.msra.mxu1 %v12769_v19  ;;  %v17294_v11 = vand.u32 4294901760, %v12800_v46  ;;  %v12891_v15 = vand.u32 4294901760, %v2524_v24  ;;  %v12895_v44 = vsub.f32 %v17292_v62, %v12854_v56  ;;  %v12919_v39 = vsub.f32 %v2496_v9, %v12877_v57  ;;  %v17304_v9 = vld [vmem:[#allocation43_spill] sm:$0xff] }
 0x3da   :  { %5090 = vmatmul.f32.gmra.mxu0 %v17256_v43  ;;  %5166 = vmatpush.msrb.mxu2 %v12794_v51  ;;  %17295 = vst [vmem:[#allocation145_spill] sm:$0xff] %v12877_v57  ;;  %v17296_v43 = vand.u32 4294901760, %v12822_v16 }
 0x3db   :  { %v5263_v26 = vsub.f32 %v12800_v46, %v17294_v11  ;;  %5247 = vmatpush.msrb.mxu3 %v5246_v4  ;;  %v2523_v11 = vld [vmem:[%s16425_s4 + $0x3e8] sm:$0xff]  ;;  %5351 = vmatpush.msra.mxu0 %v12800_v46  ;;  %v2494_v4 = vld [vmem:[%s16425_s4 + $0x300] sm:$0xff]  ;;  %17298 = vst [vmem:[#allocation147_spill] sm:$0xff] %v12910_v2  ;;  %v12929_v22 = vsub.f32 %v2524_v24, %v12891_v15  ;;  %v2521_v24 = vld [vmem:[%s16425_s4 + $0x3d8] sm:$0xff] }
 0x3dc   :  { %5413 = vmatpush.msra.mxu1 %v12794_v51  ;;  %5168 = vmatpush.msrb.mxu2 %v12809_v52  ;;  %v5269_v14 = vsub.f32 %v12822_v16, %v17296_v43  ;;  %v17299_v43 = vand.u32 4294901760, %v12837_v53  ;;  %v12921_v5 = vand.u32 4294901760, %v2494_v4 }
 0x3dd   :  { %5253 = vmatpush.msrb.mxu3 %v5252_v45  ;;  %5354 = vmatpush.msra.mxu0 %v12822_v16  ;;  %v5264_v62 = vand.u32 4294901760, %v5263_v26  ;;  %v12912_v45 = vand.u32 4294901760, %v2523_v11  ;;  %v12924_v26 = vpop.f32.mrf.mxu0  ;;  %17302 = vst [vmem:[#allocation150_spill] sm:$0xff] %v12929_v22 }
 0x3de   :  { %5415 = vmatpush.msra.mxu1 %v12809_v52  ;;  %5170 = vmatpush.msrb.mxu2 %v12824_v12  ;;  %v5275_v41 = vsub.f32 %v12837_v53, %v17299_v43  ;;  %17300 = vst [vmem:[#allocation148_spill] sm:$0xff] %v12921_v5  ;;  %v5270_v7 = vand.u32 4294901760, %v5269_v14  ;;  %v12965_v58 = vsub.f32 %v2494_v4, %v12921_v5  ;;  %v17314_v4 = vld [vmem:[#allocation107_spill] sm:$0xff] }
 0x3df   :  { %5259 = vmatpush.msrb.mxu3 %v5258_v34  ;;  %17301 = vst [vmem:[#allocation149_spill] sm:$0xff] %v12924_v26  ;;  %5357 = vmatpush.msra.mxu0 %v12837_v53  ;;  %v12931_v34 = vand.u32 4294901760, %v2522_v31  ;;  %v5281_v26 = vsub.f32 %v12860_v25, %v17305_v38  ;;  %v12952_v14 = vsub.f32 %v2523_v11, %v12912_v45  ;;  %v17315_v11 = vand.u32 4294901760, %v12895_v44 }
 0x3e0   :  { %5417 = vmatpush.msra.mxu1 %v12824_v12  ;;  %4956 = vmatmul.f32.gmra.mxu2 %v17303_v36  ;;  %v5276_v43 = vand.u32 4294901760, %v5275_v41  ;;  %v2520_v36 = vld [vmem:[%s16425_s4 + $0x3d0] sm:$0xff] }
 0x3e1   :  { %5007 = vmatmul.f32.gmra.mxu3 %v17304_v9  ;;  %5143 = vmatmul.f32.gmra.mxu1 %v17266_v37  ;;  %17307 = vst [vmem:[#allocation36_spill] sm:$0xff] %v12952_v14  ;;  %v12954_v38 = vpop.f32.mrf.mxu2  ;;  %v12958_v9 = vpop.f32.mrf.mxu1  ;;  %v12975_v41 = vsub.f32 %v2522_v31, %v12931_v34  ;;  %v5282_v6 = vand.u32 4294901760, %v5281_v26  ;;  %v2519_v31 = vld [vmem:[%s16425_s4 + $0x3c8] sm:$0xff]  ;;  %v5288_v26 = vand.u32 4294901760, %v5287_v20 }
 0x3e2   :  { %5172 = vmatpush.msrb.mxu2 %v12839_v47  ;;  %17308 = vst [vmem:[#allocation43_spill] sm:$0xff] %v12954_v38  ;;  %v12956_v28 = vpop.f32.mrf.mxu3  ;;  %5265 = vmatpush.msrb.mxu3 %v5264_v62  ;;  %v1668_v38 = vadd.f32 %v17314_v4, %v17313_v17  ;;  %v17316_v17 = vand.u32 4294901760, %v12910_v2  ;;  %v12995_v62 = vand.u32 4294901760, %v2520_v36 }
 0x3e3   :  { %17309 = vst [vmem:[#allocation62_spill] sm:$0xff] %v12956_v28  ;;  %5360 = vmatpush.msra.mxu0 %v12860_v25  ;;  %5419 = vmatpush.msra.mxu1 %v12839_v47  ;;  %v5182_v28 = vsub.f32 %v12895_v44, %v17315_v11  ;;  %v17331_v47 = vld [vmem:[#allocation86_spill] sm:$0xff] }
 0x3e4   :  { %17310 = vst [vmem:[#allocation151_spill] sm:$0xff] %v12958_v9  ;;  %5094 = vmatmul.f32.gmra.mxu0 %v17266_v37  ;;  %v12977_v9 = vand.u32 4294901760, %v2521_v24  ;;  %5174 = vmatpush.msrb.mxu2 %v12877_v57  ;;  %v5649_v4 = vsub.f32 %v12910_v2, %v17316_v17  ;;  %v17317_v37 = vand.u32 4294901760, %v12919_v39  ;;  %v2518_v17 = vld [vmem:[%s16425_s4 + $0x3c0] sm:$0xff]  ;;  %v1713_v60 = vadd.f32 %v17320_v55, %v1668_v38  ;;  %v17324_v38 = vld [vmem:[#allocation93_spill] sm:$0xff] }
 0x3e5   :  { %17312 = vst [vmem:[#allocation152_spill] sm:$0xff] %v12975_v41  ;;  %5271 = vmatpush.msrb.mxu3 %v5270_v7  ;;  %5363 = vmatpush.msra.mxu0 %v12880_v33  ;;  %v12999_v7 = vsub.f32 %v17306_v8, %v12946_v23  ;;  %v17318_v8 = vand.u32 4294901760, %v12929_v22  ;;  %v5183_v59 = vand.u32 4294901760, %v5182_v28  ;;  %v13025_v2 = vpop.f32.mrf.mxu0  ;;  %v13033_v55 = vsub.f32 %v2520_v36, %v12995_v62 }
 0x3e6   :  { %5421 = vmatpush.msra.mxu1 %v12877_v57  ;;  %5176 = vmatpush.msrb.mxu2 %v12901_v63  ;;  %v5293_v54 = vsub.f32 %v12919_v39, %v17317_v37  ;;  %v13018_v37 = vand.u32 4294901760, %v2519_v31  ;;  %v17321_v57 = vand.u32 4294901760, %v12940_v3  ;;  %17322 = vst [vmem:[#allocation107_spill] sm:$0xff] %v13025_v2  ;;  %v1758_v28 = vadd.f32 %v17324_v38, %v1713_v60 }
 0x3e7   :  { %5277 = vmatpush.msrb.mxu3 %v5276_v43  ;;  %5366 = vmatpush.msra.mxu0 %v12919_v39  ;;  %v5655_v11 = vsub.f32 %v12929_v22, %v17318_v8  ;;  %v13016_v43 = vsub.f32 %v2521_v24, %v12977_v9  ;;  %v5650_v24 = vand.u32 4294901760, %v5649_v4  ;;  %v17323_v8 = vand.u32 4294901760, %v12952_v14  ;;  %v17325_v22 = vld [vmem:[#allocation40_spill] sm:$0xff] }
 0x3e8   :  { %5423 = vmatpush.msra.mxu1 %v12901_v63  ;;  %5178 = vmatpush.msrb.mxu2 %v12921_v5  ;;  %v5299_v63 = vsub.f32 %v12940_v3, %v17321_v57  ;;  %v5294_v57 = vand.u32 4294901760, %v5293_v54  ;;  %v17326_v2 = vand.u32 4294901760, %v12965_v58  ;;  %v5189_v4 = vand.u32 4294901760, %v12999_v7 }
 0x3e9   :  { %17319 = vst [vmem:[#allocation109_spill] sm:$0xff] %v13016_v43  ;;  %5283 = vmatpush.msrb.mxu3 %v5282_v6  ;;  %5369 = vmatpush.msra.mxu0 %v12940_v3  ;;  %v5661_v20 = vsub.f32 %v12952_v14, %v17323_v8  ;;  %v13035_v6 = vand.u32 4294901760, %v2518_v17  ;;  %v2517_v8 = vld [vmem:[%s16425_s4 + $0x3b8] sm:$0xff]  ;;  %v17327_v36 = vand.u32 4294901760, %v12895_v44  ;;  %v5656_v14 = vand.u32 4294901760, %v5655_v11  ;;  %v13062_v52 = vpop.f32.mrf.mxu1 }
 0x3ea   :  { %5425 = vmatpush.msra.mxu1 %v12921_v5  ;;  %5013 = vmatmul.f32.gmra.mxu3 %v17325_v22  ;;  %v5305_v5 = vsub.f32 %v12965_v58, %v17326_v2  ;;  %v17328_v60 = vand.u32 4294901760, %v12975_v41  ;;  %v13053_v22 = vsub.f32 %v2519_v31, %v13018_v37  ;;  %v13060_v12 = vand.u32 4294901760, %v17331_v47  ;;  %17332 = vst [vmem:[#allocation40_spill] sm:$0xff] %v13062_v52  ;;  %v2516_v31 = vld [vmem:[%s16425_s4 + $0x3b0] sm:$0xff] }
 0x3eb   :  { %5184 = vmatmul.f32.vlgmr.msrb.gmra.mxu2 %v5183_v59  ;;  %5429 = vmatmul.f32.vlgmr.msra.gmra.mxu1 %v17327_v36  ;;  %v13055_v2 = vpop.f32.mrf.mxu2  ;;  %v17333_v11 = vand.u32 4294901760, %v12662_v32  ;;  %v5662_v36 = vand.u32 4294901760, %v5661_v20  ;;  %v13073_v54 = vsub.f32 %v2518_v17, %v13035_v6  ;;  %v17336_v20 = vand.u32 4294901760, %v13016_v43 }
 0x3ec   :  { %5289 = vmatpush.msrb.mxu3 %v5288_v26  ;;  %v5667_v59 = vsub.f32 %v12975_v41, %v17328_v60  ;;  %17329 = vst [vmem:[#allocation61_spill] sm:$0xff] %v13055_v2  ;;  %v13057_v38 = vpop.f32.mrf.mxu3  ;;  %5372 = vmatpush.msra.mxu0 %v12965_v58  ;;  %v5300_v26 = vand.u32 4294901760, %v5299_v63  ;;  %v16610_v60 = vand.u32 4294901760, %v13033_v55  ;;  %v13075_v2 = vand.u32 4294901760, %v2517_v8 }
 0x3ed   :  { %17330 = vst [vmem:[#allocation93_spill] sm:$0xff] %v13057_v38  ;;  %5454 = vmatpush.msra.mxu2 %v17333_v11  ;;  %5651 = vmatpush.msrb.mxu1 %v5650_v24  ;;  %v17334_v38 = vld [vmem:[#allocation50_spill] sm:$0xff]  ;;  %v17335_v63 = vand.u32 4294901760, %v12672_v1  ;;  %v5306_v32 = vand.u32 4294901760, %v5305_v5  ;;  %v5190_v11 = vsub.f32 %v12999_v7, %v5189_v4  ;;  %v5673_v24 = vsub.f32 %v13016_v43, %v17336_v20  ;;  %v13115_v41 = vpop.f32.mrf.mxu0 }
 0x3ee   :  { %5375 = vmatmul.f32.vlgmr.msra.gmra.mxu0 %v12895_v44  ;;  %v1803_v52 = vadd.f32 %v17334_v38, %v1758_v28  ;;  %5295 = vmatpush.msrb.mxu3 %v5294_v57  ;;  %v2515_v44 = vld [vmem:[%s16425_s4 + $0x3a8] sm:$0xff]  ;;  %v5668_v17 = vand.u32 4294901760, %v5667_v59  ;;  %v13089_v57 = vand.u32 4294901760, %v2516_v31  ;;  %v13093_v5 = vsub.f32 %v17331_v47, %v13060_v12  ;;  %v17340_v20 = vld [vmem:[#allocation78_spill] sm:$0xff]  ;;  %17343 = vst [vmem:[#allocation50_spill] sm:$0xff] %v13115_v41 }
 0x3ef   :  { %5458 = vmatpush.msra.mxu2 %v17335_v63  ;;  %5582 = vmatpush.msrb.mxu0 %v12874_v42  ;;  %v17337_v1 = vand.u32 4294901760, %v12687_v10  ;;  %v5679_v59 = vsub.f32 %v13033_v55, %v16610_v60  ;;  %v13106_v47 = vsub.f32 %v2517_v8, %v13075_v2  ;;  %v17339_v10 = vld [vmem:[#allocation77_spill] sm:$0xff]  ;;  %v17342_v43 = vand.u32 4294901760, %v12707_v30 }
 0x3f0   :  { %5657 = vmatpush.msrb.mxu1 %v5656_v14  ;;  %5301 = vmatpush.msrb.mxu3 %v5300_v26  ;;  %v2514_v14 = vld [vmem:[%s16425_s4 + $0x3a0] sm:$0xff]  ;;  %v13108_v26 = vand.u32 4294901760, %v2515_v44  ;;  %v1840_v63 = vadd.f32 %v17339_v10, %v1803_v52  ;;  %v5674_v60 = vand.u32 4294901760, %v5673_v24  ;;  %v17344_v8 = vand.u32 4294901760, %v13053_v22 }
 0x3f1   :  { %5462 = vmatpush.msra.mxu2 %v17337_v1  ;;  %5584 = vmatpush.msrb.mxu0 %v12891_v15  ;;  %17338 = vst [vmem:[#allocation86_spill] sm:$0xff] %v13106_v47  ;;  %v17341_v1 = vld [vmem:[#allocation52_spill] sm:$0xff]  ;;  %v13122_v52 = vsub.f32 %v2516_v31, %v13089_v57  ;;  %v13124_v10 = vand.u32 4294901760, %v2514_v14  ;;  %v5197_v30 = vand.u32 4294901760, %v13093_v5  ;;  %v16611_v24 = vand.u32 4294901760, %v13106_v47 }
 0x3f2   :  { %5663 = vmatpush.msrb.mxu1 %v5662_v36  ;;  %v1934_v28 = vadd.f32 %v17341_v1, %v17340_v20  ;;  %5307 = vmatpush.msrb.mxu3 %v5306_v32  ;;  %v5191_v36 = vand.u32 4294901760, %v5190_v11  ;;  %v5685_v38 = vsub.f32 %v13053_v22, %v17344_v8  ;;  %v17345_v32 = vand.u32 4294901760, %v12734_v35  ;;  %v13147_v35 = vpop.f32.mrf.mxu1 }
 0x3f3   :  { %5466 = vmatpush.msra.mxu2 %v17342_v43  ;;  %5586 = vmatpush.msrb.mxu0 %v12912_v45  ;;  %v2513_v43 = vld [vmem:[%s16425_s4 + $0x398] sm:$0xff]  ;;  %v5680_v11 = vand.u32 4294901760, %v5679_v59  ;;  %v13138_v20 = vsub.f32 %v2515_v44, %v13108_v26  ;;  %v13144_v8 = vand.u32 4294901760, %v1840_v63  ;;  %17350 = vst [vmem:[#allocation52_spill] sm:$0xff] %v13147_v35  ;;  %v2512_v59 = vld [vmem:[%s16425_s4 + $0x390] sm:$0xff] }
 0x3f4   :  { %5669 = vmatpush.msrb.mxu1 %v5668_v17  ;;  %5192 = vmatmul.f32.gmra.mxu2 %v5191_v36  ;;  %v17346_v17 = vand.u32 4294901760, %v13073_v54  ;;  %v5686_v44 = vand.u32 4294901760, %v5685_v38  ;;  %v17357_v38 = vld [vmem:[#allocation85_spill] sm:$0xff] }
 0x3f5   :  { %5309 = vmatmul.f32.vlgmr.msrb.gmra.mxu3 %v12854_v56  ;;  %5435 = vmatmul.f32.gmra.mxu1 %v5189_v4  ;;  %v13140_v1 = vpop.f32.mrf.mxu3  ;;  %v17349_v4 = vld [vmem:[#allocation66_spill] sm:$0xff] }
 0x3f6   :  { %5470 = vmatpush.msra.mxu2 %v17345_v32  ;;  %v5691_v31 = vsub.f32 %v13073_v54, %v17346_v17  ;;  %17347 = vst [vmem:[#allocation77_spill] sm:$0xff] %v13140_v1  ;;  %v13142_v36 = vpop.f32.mrf.mxu2  ;;  %v1976_v41 = vadd.f32 %v17349_v4, %v1934_v28  ;;  %5533 = vmatpush.msra.mxu3 %v12642_v50  ;;  %v13159_v28 = vand.u32 4294901760, %v2513_v43  ;;  %v17351_v4 = vand.u32 4294901760, %v12747_v48 }
 0x3f7   :  { %17348 = vst [vmem:[#allocation78_spill] sm:$0xff] %v13142_v36  ;;  %5588 = vmatpush.msrb.mxu0 %v12931_v34  ;;  %5675 = vmatpush.msrb.mxu1 %v5674_v60  ;;  %v13157_v17 = vsub.f32 %v2514_v14, %v13124_v10  ;;  %v5198_v50 = vsub.f32 %v13093_v5, %v5197_v30  ;;  %v2511_v60 = vld [vmem:[%s16425_s4 + $0x388] sm:$0xff]  ;;  %v13173_v48 = vand.u32 4294901760, %v2512_v59  ;;  %v17353_v1 = vand.u32 4294901760, %v12764_v61 }
 0x3f8   :  { %5380 = vmatmul.f32.gmra.mxu0 %v12999_v7  ;;  %5474 = vmatpush.msra.mxu2 %v17351_v4  ;;  %v5692_v7 = vand.u32 4294901760, %v5691_v31  ;;  %v5697_v14 = vsub.f32 %v13106_v47, %v16611_v24  ;;  %v17352_v4 = vld [vmem:[#allocation84_spill] sm:$0xff]  ;;  %v17354_v31 = vand.u32 4294901760, %v13122_v52  ;;  %v13193_v61 = vand.u32 4294901760, %v2511_v60  ;;  %v13201_v47 = vpop.f32.mrf.mxu0 }
 0x3f9   :  { %5535 = vmatpush.msra.mxu3 %v12651_v27  ;;  %5590 = vmatpush.msrb.mxu0 %v12977_v9  ;;  %v13176_v27 = vsub.f32 %v1840_v63, %v13144_v8  ;;  %v2018_v32 = vadd.f32 %v17352_v4, %v1976_v41  ;;  %v13191_v41 = vsub.f32 %v2513_v43, %v13159_v28  ;;  %v17358_v36 = vand.u32 4294901760, %v12782_v0  ;;  %v17360_v0 = vld [vmem:[#allocation74_spill] sm:$0xff] }
 0x3fa   :  { %5681 = vmatpush.msrb.mxu1 %v5680_v11  ;;  %5478 = vmatpush.msra.mxu2 %v17353_v1  ;;  %v2510_v11 = vld [vmem:[%s16425_s4 + $0x380] sm:$0xff]  ;;  %v5703_v24 = vsub.f32 %v13122_v52, %v17354_v31  ;;  %v17355_v1 = vld [vmem:[#allocation79_spill] sm:$0xff]  ;;  %v5698_v43 = vand.u32 4294901760, %v5697_v14  ;;  %v17359_v31 = vand.u32 4294901760, %v13138_v20  ;;  %v17362_v14 = vand.u32 4294901760, %v13157_v17 }
 0x3fb   :  { %5537 = vmatpush.msra.mxu3 %v12664_v29  ;;  %5592 = vmatpush.msrb.mxu0 %v12995_v62  ;;  %v17356_v29 = vld [vmem:[#allocation65_spill] sm:$0xff]  ;;  %v2069_v35 = vadd.f32 %v17357_v38, %v2018_v32  ;;  %v13210_v32 = vand.u32 4294901760, %v2510_v11 }
 0x3fc   :  { %5687 = vmatpush.msrb.mxu1 %v5686_v44  ;;  %v1938_v4 = vadd.f32 %v17356_v29, %v17355_v1  ;;  %5482 = vmatpush.msra.mxu2 %v17358_v36  ;;  %v5199_v44 = vand.u32 4294901760, %v5198_v50  ;;  %v5709_v63 = vsub.f32 %v13138_v20, %v17359_v31  ;;  %v13208_v1 = vsub.f32 %v2512_v59, %v13173_v48  ;;  %v13228_v31 = vpop.f32.mrf.mxu1 }
 0x3fd   :  { %5539 = vmatpush.msra.mxu3 %v12674_v49  ;;  %5594 = vmatpush.msrb.mxu0 %v13018_v37  ;;  %v2106_v36 = vadd.f32 %v17360_v0, %v2069_v35  ;;  %v5205_v49 = vand.u32 4294901760, %v13176_v27  ;;  %v17361_v50 = vand.u32 4294901760, %v12800_v46  ;;  %v5715_v38 = vsub.f32 %v13157_v17, %v17362_v14  ;;  %v17363_v46 = vld [vmem:[#allocation89_spill] sm:$0xff] }
 0x3fe   :  { %5693 = vmatpush.msrb.mxu1 %v5692_v7  ;;  %5200 = vmatmul.f32.gmra.mxu2 %v5199_v44  ;;  %v5704_v7 = vand.u32 4294901760, %v5703_v24  ;;  %v16614_v59 = vand.u32 4294901760, %v13191_v41  ;;  %v13222_v29 = vsub.f32 %v2511_v60, %v13193_v61  ;;  %v5710_v24 = vand.u32 4294901760, %v5709_v63 }
 0x3ff   :  { %5313 = vmatmul.f32.gmra.mxu3 %v12946_v23  ;;  %5441 = vmatmul.f32.gmra.mxu1 %v5197_v30  ;;  %v13224_v35 = vpop.f32.mrf.mxu2  ;;  %v1981_v30 = vadd.f32 %v17363_v46, %v1938_v4  ;;  %v5726_v0 = vand.u32 4294901760, %v13208_v1  ;;  %v13236_v60 = vsub.f32 %v2510_v11, %v13210_v32  ;;  %v13242_v14 = vand.u32 4294901760, %v2106_v36  ;;  %v17368_v46 = vld [vmem:[#allocation83_spill] sm:$0xff] }
 0x400   :  { %5486 = vmatpush.msra.mxu2 %v17361_v50  ;;  %v13226_v44 = vpop.f32.mrf.mxu3  ;;  %5541 = vmatpush.msra.mxu3 %v12704_v13  ;;  %v17364_v50 = vand.u32 4294901760, %v12822_v16  ;;  %v5206_v13 = vsub.f32 %v13176_v27, %v5205_v49  ;;  %v5716_v4 = vand.u32 4294901760, %v5715_v38  ;;  %v5732_v11 = vand.u32 4294901760, %v13222_v29  ;;  %v17367_v38 = vld [vmem:[#allocation81_spill] sm:$0xff] }
 0x401   :  { %5596 = vmatpush.msrb.mxu0 %v13035_v6  ;;  %5699 = vmatpush.msrb.mxu1 %v5698_v43  ;;  %v17365_v63 = vand.u32 4294901760, %v12837_v53  ;;  %v5727_v43 = vsub.f32 %v13208_v1, %v5726_v0  ;;  %v17370_v53 = vld [vmem:[#allocation88_spill] sm:$0xff] }
 0x402   :  { %5385 = vmatmul.f32.gmra.mxu0 %v13093_v5  ;;  %5490 = vmatpush.msra.mxu2 %v17364_v50  ;;  %v5721_v5 = vsub.f32 %v13191_v41, %v16614_v59  ;;  %v1942_v50 = vadd.f32 %v17368_v46, %v17367_v38  ;;  %v17369_v59 = vand.u32 4294901760, %v12860_v25  ;;  %v5733_v38 = vsub.f32 %v13222_v29, %v5732_v11  ;;  %v17371_v25 = vld [vmem:[#allocation56_spill] sm:$0xff] }
 0x403   :  { %5543 = vmatpush.msra.mxu3 %v12720_v40  ;;  %5598 = vmatpush.msrb.mxu0 %v13075_v2  ;;  %v17366_v40 = vld [vmem:[#allocation91_spill] sm:$0xff]  ;;  %v17374_v46 = vld [vmem:[#allocation60_spill] sm:$0xff] }
 0x404   :  { %5705 = vmatpush.msrb.mxu1 %v5704_v7  ;;  %5494 = vmatpush.msra.mxu2 %v17365_v63  ;;  %v2024_v16 = vadd.f32 %v17366_v40, %v1981_v30  ;;  %v16616_v7 = vand.u32 4294901760, %v13236_v60  ;;  %v13265_v63 = vsub.f32 %v2106_v36, %v13242_v14  ;;  %v5722_v40 = vand.u32 4294901760, %v5721_v5 }
 0x405   :  { %5545 = vmatpush.msra.mxu3 %v12736_v21  ;;  %5600 = vmatpush.msrb.mxu0 %v13089_v57  ;;  %v5207_v21 = vand.u32 4294901760, %v5206_v13  ;;  %v5728_v36 = vand.u32 4294901760, %v5727_v43  ;;  %v5734_v43 = vand.u32 4294901760, %v5733_v38  ;;  %v17380_v38 = vld [vmem:[#allocation142_spill] sm:$0xff] }
 0x406   :  { %5711 = vmatpush.msrb.mxu1 %v5710_v24  ;;  %5498 = vmatpush.msra.mxu2 %v17369_v59  ;;  %v2073_v30 = vadd.f32 %v17370_v53, %v2024_v16  ;;  %v13267_v24 = vpop.f32.mrf.mxu0  ;;  %v17372_v59 = vand.u32 4294901760, %v12880_v33  ;;  %v5739_v13 = vsub.f32 %v13236_v60, %v16616_v7  ;;  %v13284_v16 = vpop.f32.mrf.mxu1  ;;  %v16615_v33 = vand.u32 4294901760, %v13265_v63 }
 0x407   :  { %5547 = vmatpush.msra.mxu3 %v12749_v18  ;;  %5602 = vmatpush.msrb.mxu0 %v13108_v26  ;;  %17373 = vst [vmem:[#allocation66_spill] sm:$0xff] %v13284_v16 }
 0x408   :  { %5717 = vmatpush.msrb.mxu1 %v5716_v4  ;;  %5208 = vmatmul.f32.gmra.mxu2 %v5207_v21  ;;  %v2110_v18 = vadd.f32 %v17371_v25, %v2073_v30  ;;  %v13280_v4 = vpop.f32.mrf.mxu2  ;;  %v17375_v21 = vand.u32 4294901760, %v12919_v39  ;;  %v17376_v30 = vand.u32 4294901760, %v12940_v3  ;;  %v17381_v25 = vld [vmem:[#allocation70_spill] sm:$0xff] }
 0x409   :  { %5317 = vmatmul.f32.gmra.mxu3 %v13060_v12  ;;  %5447 = vmatmul.f32.gmra.mxu1 %v5205_v49  ;;  %v1986_v49 = vadd.f32 %v17374_v46, %v1942_v50  ;;  %v17377_v50 = vld [vmem:[#allocation141_spill] sm:$0xff] }
 0x40a   :  { %5502 = vmatpush.msra.mxu2 %v17372_v59  ;;  %v13282_v5 = vpop.f32.mrf.mxu3  ;;  %5549 = vmatpush.msra.mxu3 %v12769_v19  ;;  %v13294_v53 = vand.u32 4294901760, %v2110_v18  ;;  %v5740_v19 = vand.u32 4294901760, %v5739_v13  ;;  %v17382_v59 = vld [vmem:[#allocation64_spill] sm:$0xff] }
 0x40b   :  { %5604 = vmatpush.msrb.mxu0 %v13124_v10  ;;  %5723 = vmatpush.msrb.mxu1 %v5722_v40  ;;  %v17378_v40 = vld [vmem:[#allocation51_spill] sm:$0xff]  ;;  %v1946_v3 = vadd.f32 %v17382_v59, %v17381_v25  ;;  %v17391_v25 = vld [vmem:[#allocation150_spill] sm:$0xff] }
 0x40c   :  { %5390 = vmatmul.f32.gmra.mxu0 %v13176_v27  ;;  %5506 = vmatpush.msra.mxu2 %v17375_v21  ;;  %v5616_v27 = vsub.f32 %v13265_v63, %v16615_v33  ;;  %v2030_v39 = vadd.f32 %v17378_v40, %v1986_v49  ;;  %v13312_v46 = vsub.f32 %v2110_v18, %v13294_v53  ;;  %v17384_v49 = vld [vmem:[#allocation75_spill] sm:$0xff] }
 0x40d   :  { %5551 = vmatpush.msra.mxu3 %v12794_v51  ;;  %5606 = vmatpush.msrb.mxu0 %v13159_v28  ;;  %v17379_v51 = vand.u32 4294901760, %v12965_v58 }
 0x40e   :  { %5729 = vmatpush.msrb.mxu1 %v5728_v36  ;;  %5510 = vmatpush.msra.mxu2 %v17376_v30  ;;  %v17383_v36 = vld [vmem:[#allocation57_spill] sm:$0xff]  ;;  %v13314_v21 = vpop.f32.mrf.mxu0  ;;  %v5617_v58 = vand.u32 4294901760, %v5616_v27  ;;  %v17385_v30 = vld [vmem:[#allocation38_spill] sm:$0xff]  ;;  %v13326_v40 = vpop.f32.mrf.mxu1  ;;  %v16622_v27 = vand.u32 4294901760, %v13312_v46 }
 0x40f   :  { %5553 = vmatpush.msra.mxu3 %v17377_v50  ;;  %5608 = vmatpush.msrb.mxu0 %v13173_v48  ;;  %v2077_v13 = vadd.f32 %v17383_v36, %v2030_v39  ;;  %v17389_v39 = vld [vmem:[#allocation82_spill] sm:$0xff] }
 0x410   :  { %5735 = vmatpush.msrb.mxu1 %v5734_v43  ;;  %5514 = vmatpush.msra.mxu2 %v17379_v51  ;;  %v1991_v51 = vadd.f32 %v17389_v39, %v1946_v3  ;;  %v17395_v3 = vld [vmem:[#allocation59_spill] sm:$0xff]  ;;  %v5624_v39 = vsub.f32 %v13312_v46, %v16622_v27  ;;  %v2532_v27 = vld [vmem:[%s16425_s4 + $0x430] sm:$0xff] }
 0x411   :  { %5555 = vmatpush.msra.mxu3 %v17380_v38  ;;  %5610 = vmatpush.msrb.mxu0 %v13193_v61  ;;  %v2114_v43 = vadd.f32 %v17384_v49, %v2077_v13  ;;  %v17390_v38 = vld [vmem:[#allocation145_spill] sm:$0xff]  ;;  %v17393_v13 = vld [vmem:[#allocation146_spill] sm:$0xff]  ;;  %v17394_v49 = vld [vmem:[#allocation36_spill] sm:$0xff] }
 0x412   :  { %5741 = vmatpush.msrb.mxu1 %v5740_v19  ;;  %5321 = vmatmul.f32.gmra.mxu3 %v13144_v8  ;;  %v17388_v19 = vld [vmem:[#allocation147_spill] sm:$0xff] }
 0x413   :  { %5516 = vmatmul.f32.vlgmr.msra.gmra.mxu2 %v12854_v56  ;;  %5743 = vmatmul.f32.vlgmr.msrb.gmra.mxu1 %v13242_v14  ;;  %v13322_v50 = vpop.f32.mrf.mxu2  ;;  %v13335_v59 = vand.u32 4294901760, %v2114_v43  ;;  %v17392_v36 = vand.u32 4294901760, %v17388_v19 }
 0x414   :  { %5557 = vmatpush.msra.mxu3 %v17385_v30  ;;  %17386 = vst [vmem:[#allocation84_spill] sm:$0xff] %v13322_v50  ;;  %v13324_v18 = vpop.f32.mrf.mxu3  ;;  %5612 = vmatpush.msrb.mxu0 %v13210_v32  ;;  %v2036_v30 = vadd.f32 %v17395_v3, %v1991_v51  ;;  %v17401_v51 = vand.u32 4294901760, %v17394_v49 }
 0x415   :  { %17387 = vst [vmem:[#allocation79_spill] sm:$0xff] %v13324_v18  ;;  %5761 = vmatpush.msrb.mxu2 %v17388_v19  ;;  %5967 = vmatpush.msra.mxu1 %v12874_v42  ;;  %v17398_v19 = vld [vmem:[#allocation152_spill] sm:$0xff]  ;;  %v17475_v18 = vld [vmem:[#allocation111_spill] sm:$0xff] }
 0x416   :  { %5618 = vmatmul.f32.vlgmr.msrb.gmra.mxu0 %v5617_v58  ;;  %5559 = vmatpush.msra.mxu3 %v17390_v38  ;;  %v17396_v58 = vand.u32 4294901760, %v17391_v25  ;;  %v17397_v38 = vld [vmem:[#allocation148_spill] sm:$0xff]  ;;  %v13355_v7 = vpop.f32.mrf.mxu0 }
 0x417   :  { %5764 = vmatpush.msrb.mxu2 %v17391_v25  ;;  %5888 = vmatpush.msra.mxu0 %v17392_v36  ;;  %v17399_v36 = vld [vmem:[#allocation98_spill] sm:$0xff]  ;;  %17400 = vst [vmem:[#allocation65_spill] sm:$0xff] %v13355_v7 }
 0x418   :  { %5969 = vmatpush.msra.mxu1 %v12891_v15  ;;  %5561 = vmatpush.msra.mxu3 %v17393_v13  ;;  %v2081_v33 = vadd.f32 %v17399_v36, %v2036_v30  ;;  %v13353_v13 = vsub.f32 %v2114_v43, %v13335_v59  ;;  %v17402_v25 = vld [vmem:[#allocation106_spill] sm:$0xff]  ;;  %v5625_v30 = vand.u32 4294901760, %v5624_v39  ;;  %v13369_v36 = vpop.f32.mrf.mxu1 }
 0x419   :  { %5767 = vmatpush.msrb.mxu2 %v17394_v49  ;;  %5892 = vmatpush.msra.mxu0 %v17396_v58  ;;  %v17403_v58 = vld [vmem:[#allocation109_spill] sm:$0xff]  ;;  %17406 = vst [vmem:[#allocation89_spill] sm:$0xff] %v13369_v36  ;;  %v17407_v49 = vand.u32 4294901760, %v17398_v19  ;;  %v17465_v36 = vld [vmem:[#allocation102_spill] sm:$0xff] }
 0x41a   :  { %5971 = vmatpush.msra.mxu1 %v12912_v45  ;;  %5563 = vmatpush.msra.mxu3 %v17397_v38  ;;  %v2118_v3 = vadd.f32 %v17402_v25, %v2081_v33  ;;  %v17408_v39 = vand.u32 4294901760, %v17403_v58 }
 0x41b   :  { %5770 = vmatpush.msrb.mxu2 %v17398_v19  ;;  %5896 = vmatpush.msra.mxu0 %v17401_v51 }
 0x41c   :  { %5973 = vmatpush.msra.mxu1 %v12931_v34  ;;  %5520 = vmatmul.f32.gmra.mxu2 %v12946_v23  ;;  %v13378_v33 = vand.u32 4294901760, %v2118_v3 }
 0x41d   :  { %5565 = vmatmul.f32.vlgmr.msra.gmra.mxu3 %v12854_v56  ;;  %5747 = vmatmul.f32.gmra.mxu1 %v13294_v53  ;;  %v13365_v43 = vpop.f32.mrf.mxu3  ;;  %v16620_v56 = vand.u32 4294901760, %v13353_v13 }
 0x41e   :  { %5773 = vmatpush.msrb.mxu2 %v17403_v58  ;;  %17404 = vst [vmem:[#allocation85_spill] sm:$0xff] %v13365_v43  ;;  %v13367_v38 = vpop.f32.mrf.mxu2  ;;  %5829 = vmatpush.msrb.mxu3 %v12874_v42  ;;  %v17409_v42 = vand.u32 4294901760, %v13033_v55  ;;  %v13394_v19 = vsub.f32 %v2118_v3, %v13378_v33  ;;  %v13396_v51 = vpop.f32.mrf.mxu0 }
 0x41f   :  { %17405 = vst [vmem:[#allocation74_spill] sm:$0xff] %v13367_v38  ;;  %5900 = vmatpush.msra.mxu0 %v17407_v49  ;;  %5975 = vmatpush.msra.mxu1 %v12977_v9  ;;  %v17420_v49 = vand.u32 4294901760, %v13138_v20 }
 0x420   :  { %5626 = vmatmul.f32.gmra.mxu0 %v5625_v30  ;;  %5776 = vmatpush.msrb.mxu2 %v13033_v55  ;;  %17410 = vst [vmem:[#allocation91_spill] sm:$0xff] %v13396_v51  ;;  %v17412_v55 = vld [vmem:[#allocation86_spill] sm:$0xff]  ;;  %v13409_v58 = vpop.f32.mrf.mxu1  ;;  %v17462_v51 = vld [vmem:[#allocation104_spill] sm:$0xff]  ;;  %v17481_v7 = vand.u32 4294901760, %v13394_v19 }
 0x421   :  { %5831 = vmatpush.msrb.mxu3 %v12891_v15  ;;  %5904 = vmatpush.msra.mxu0 %v17408_v39  ;;  %v5632_v15 = vsub.f32 %v13353_v13, %v16620_v56  ;;  %17415 = vst [vmem:[#allocation88_spill] sm:$0xff] %v13409_v58  ;;  %v17417_v30 = vand.u32 4294901760, %v17412_v55  ;;  %v17434_v56 = vld [vmem:[#allocation101_spill] sm:$0xff] }
 0x422   :  { %5977 = vmatpush.msra.mxu1 %v12995_v62  ;;  %5779 = vmatpush.msrb.mxu2 %v13053_v22 }
 0x423   :  { %5833 = vmatpush.msrb.mxu3 %v12912_v45  ;;  %5908 = vmatpush.msra.mxu0 %v17409_v42  ;;  %v17411_v45 = vand.u32 4294901760, %v13053_v22  ;;  %v5633_v25 = vand.u32 4294901760, %v5632_v15  ;;  %v17416_v22 = vand.u32 4294901760, %v13073_v54  ;;  %v17424_v15 = vand.u32 4294901760, %v13157_v17 }
 0x424   :  { %5979 = vmatpush.msra.mxu1 %v13018_v37  ;;  %5782 = vmatpush.msrb.mxu2 %v13073_v54 }
 0x425   :  { %5835 = vmatpush.msrb.mxu3 %v12931_v34  ;;  %5912 = vmatpush.msra.mxu0 %v17411_v45  ;;  %v2539_v45 = vld [vmem:[%s16425_s4 + $0x468] sm:$0xff] }
 0x426   :  { %5981 = vmatpush.msra.mxu1 %v13035_v6  ;;  %5524 = vmatmul.f32.gmra.mxu2 %v13060_v12 }
 0x427   :  { %5569 = vmatmul.f32.gmra.mxu3 %v12946_v23  ;;  %5751 = vmatmul.f32.gmra.mxu1 %v13335_v59  ;;  %v13405_v34 = vpop.f32.mrf.mxu2  ;;  %v16619_v23 = vand.u32 4294901760, %v13394_v19 }
 0x428   :  { %5785 = vmatpush.msrb.mxu2 %v17412_v55  ;;  %17413 = vst [vmem:[#allocation81_spill] sm:$0xff] %v13405_v34  ;;  %v13407_v3 = vpop.f32.mrf.mxu3  ;;  %5837 = vmatpush.msrb.mxu3 %v12977_v9  ;;  %v17418_v9 = vand.u32 4294901760, %v13122_v52  ;;  %v13450_v42 = vpop.f32.mrf.mxu1  ;;  %v2527_v34 = vld [vmem:[%s16425_s4 + $0x408] sm:$0xff] }
 0x429   :  { %17414 = vst [vmem:[#allocation83_spill] sm:$0xff] %v13407_v3  ;;  %5916 = vmatpush.msra.mxu0 %v17416_v22  ;;  %5983 = vmatpush.msra.mxu1 %v13075_v2  ;;  %v5640_v54 = vsub.f32 %v13394_v19, %v16619_v23  ;;  %v13476_v22 = vand.u32 4294901760, %v2539_v45 }
 0x42a   :  { %5634 = vmatmul.f32.gmra.mxu0 %v5633_v25  ;;  %5788 = vmatpush.msrb.mxu2 %v13122_v52  ;;  %v2540_v52 = vld [vmem:[%s16425_s4 + $0x470] sm:$0xff]  ;;  %17423 = vst [vmem:[#allocation51_spill] sm:$0xff] %v13450_v42  ;;  %v17440_v42 = vld [vmem:[#allocation69_spill] sm:$0xff] }
 0x42b   :  { %5839 = vmatpush.msrb.mxu3 %v12995_v62  ;;  %5920 = vmatpush.msra.mxu0 %v17417_v30  ;;  %v13431_v62 = vpop.f32.mrf.mxu0  ;;  %v13463_v55 = vand.u32 4294901760, %v2540_v52 }
 0x42c   :  { %5985 = vmatpush.msra.mxu1 %v13089_v57  ;;  %5791 = vmatpush.msrb.mxu2 %v13138_v20  ;;  %17419 = vst [vmem:[#allocation56_spill] sm:$0xff] %v13431_v62 }
 0x42d   :  { %5841 = vmatpush.msrb.mxu3 %v13018_v37  ;;  %5924 = vmatpush.msra.mxu0 %v17418_v9  ;;  %v2541_v37 = vld [vmem:[%s16425_s4 + $0x478] sm:$0xff]  ;;  %v17430_v9 = vand.u32 4294901760, %v13236_v60 }
 0x42e   :  { %5987 = vmatpush.msra.mxu1 %v13108_v26  ;;  %5794 = vmatpush.msrb.mxu2 %v13157_v17  ;;  %v2538_v17 = vld [vmem:[%s16425_s4 + $0x460] sm:$0xff] }
 0x42f   :  { %5843 = vmatpush.msrb.mxu3 %v13035_v6  ;;  %5928 = vmatpush.msra.mxu0 %v17420_v49  ;;  %v5641_v6 = vand.u32 4294901760, %v5640_v54 }
 0x430   :  { %5989 = vmatpush.msra.mxu1 %v13124_v10  ;;  %5528 = vmatmul.f32.gmra.mxu2 %v13144_v8 }
 0x431   :  { %5573 = vmatmul.f32.gmra.mxu3 %v13060_v12  ;;  %5755 = vmatmul.f32.gmra.mxu1 %v13378_v33  ;;  %v13446_v20 = vpop.f32.mrf.mxu2  ;;  %v13455_v12 = vand.u32 4294901760, %v2541_v37 }
 0x432   :  { %5797 = vmatpush.msrb.mxu2 %v13191_v41  ;;  %17421 = vst [vmem:[#allocation60_spill] sm:$0xff] %v13446_v20  ;;  %v13448_v39 = vpop.f32.mrf.mxu3  ;;  %5845 = vmatpush.msrb.mxu3 %v13075_v2  ;;  %v17425_v2 = vand.u32 4294901760, %v13191_v41  ;;  %v13486_v41 = vand.u32 4294901760, %v2538_v17 }
 0x433   :  { %17422 = vst [vmem:[#allocation141_spill] sm:$0xff] %v13448_v39  ;;  %5932 = vmatpush.msra.mxu0 %v17424_v15  ;;  %5991 = vmatpush.msra.mxu1 %v13159_v28  ;;  %v13474_v25 = vsub.f32 %v2541_v37, %v13455_v12  ;;  %v17431_v37 = vld [vmem:[#allocation55_spill] sm:$0xff]  ;;  %v17450_v39 = vld [vmem:[#allocation94_spill] sm:$0xff] }
 0x434   :  { %5642 = vmatmul.f32.gmra.mxu0 %v5641_v6  ;;  %5800 = vmatpush.msrb.mxu2 %v13208_v1  ;;  %v2537_v1 = vld [vmem:[%s16425_s4 + $0x458] sm:$0xff]  ;;  %v13519_v49 = vsub.f32 %v2538_v17, %v13486_v41  ;;  %v17432_v6 = vld [vmem:[#allocation54_spill] sm:$0xff] }
 0x435   :  { %5847 = vmatpush.msrb.mxu3 %v13089_v57  ;;  %5936 = vmatpush.msra.mxu0 %v17425_v2  ;;  %v13484_v57 = vsub.f32 %v2540_v52, %v13463_v55  ;;  %v13516_v54 = vand.u32 4294901760, %v2537_v1  ;;  %v2212_v52 = vadd.f32 %v17432_v6, %v17431_v37  ;;  %v17433_v6 = vld [vmem:[#allocation110_spill] sm:$0xff] }
 0x436   :  { %5993 = vmatpush.msra.mxu1 %v13173_v48  ;;  %5803 = vmatpush.msrb.mxu2 %v13222_v29  ;;  %v2536_v29 = vld [vmem:[%s16425_s4 + $0x450] sm:$0xff]  ;;  %v16623_v37 = vand.u32 4294901760, %v13519_v49 }
 0x437   :  { %5849 = vmatpush.msrb.mxu3 %v13108_v26  ;;  %5940 = vmatpush.msra.mxu0 %v5726_v0  ;;  %v13488_v26 = vpop.f32.mrf.mxu0  ;;  %v16617_v0 = vand.u32 4294901760, %v13474_v25  ;;  %v13548_v17 = vsub.f32 %v2537_v1, %v13516_v54 }
 0x438   :  { %5995 = vmatpush.msra.mxu1 %v13193_v61  ;;  %5806 = vmatpush.msrb.mxu2 %v13236_v60  ;;  %17426 = vst [vmem:[#allocation142_spill] sm:$0xff] %v13488_v26  ;;  %v2535_v60 = vld [vmem:[%s16425_s4 + $0x448] sm:$0xff] }
 0x439   :  { %5851 = vmatpush.msrb.mxu3 %v13124_v10  ;;  %5944 = vmatpush.msra.mxu0 %v5732_v11  ;;  %v13499_v10 = vsub.f32 %v2539_v45, %v13476_v22  ;;  %v6083_v15 = vsub.f32 %v13474_v25, %v16617_v0  ;;  %v13534_v45 = vand.u32 4294901760, %v2536_v29  ;;  %v2254_v0 = vadd.f32 %v17433_v6, %v2212_v52 }
 0x43a   :  { %5997 = vmatpush.msra.mxu1 %v13210_v32  ;;  %5577 = vmatmul.f32.gmra.mxu3 %v13144_v8  ;;  %v13511_v8 = vpop.f32.mrf.mxu1 }
 0x43b   :  { %5809 = vmatmul.f32.vlgmr.msrb.gmra.mxu2 %v13265_v63  ;;  %5999 = vmatmul.f32.vlgmr.msra.gmra.mxu1 %v13242_v14  ;;  %v13507_v11 = vpop.f32.mrf.mxu2  ;;  %17429 = vst [vmem:[#allocation57_spill] sm:$0xff] %v13511_v8  ;;  %v16621_v2 = vand.u32 4294901760, %v13499_v10  ;;  %v2296_v52 = vadd.f32 %v17434_v56, %v2254_v0  ;;  %v6101_v56 = vsub.f32 %v13519_v49, %v16623_v37  ;;  %v17442_v8 = vld [vmem:[#allocation114_spill] sm:$0xff] }
 0x43c   :  { %5853 = vmatpush.msrb.mxu3 %v13159_v28  ;;  %17427 = vst [vmem:[#allocation70_spill] sm:$0xff] %v13507_v11  ;;  %v13509_v30 = vpop.f32.mrf.mxu3  ;;  %5948 = vmatpush.msra.mxu0 %v17430_v9  ;;  %v16618_v28 = vand.u32 4294901760, %v13484_v57  ;;  %v13550_v9 = vand.u32 4294901760, %v2535_v60 }
 0x43d   :  { %17428 = vst [vmem:[#allocation64_spill] sm:$0xff] %v13509_v30  ;;  %6016 = vmatpush.msra.mxu2 %v13455_v12  ;;  %6263 = vmatpush.msrb.mxu1 %v13455_v12  ;;  %v6095_v1 = vsub.f32 %v13499_v10, %v16621_v2  ;;  %v17441_v30 = vld [vmem:[#allocation63_spill] sm:$0xff] }
 0x43e   :  { %5950 = vmatmul.f32.vlgmr.msra.gmra.mxu0 %v13242_v14  ;;  %5855 = vmatpush.msrb.mxu3 %v13173_v48  ;;  %v2534_v14 = vld [vmem:[%s16425_s4 + $0x440] sm:$0xff]  ;;  %v6089_v48 = vsub.f32 %v13484_v57, %v16618_v28  ;;  %v13562_v28 = vsub.f32 %v2536_v29, %v13534_v45  ;;  %v13581_v0 = vsub.f32 %v2535_v60, %v13550_v9 }
 0x43f   :  { %6018 = vmatpush.msra.mxu2 %v13463_v55  ;;  %6195 = vmatpush.msrb.mxu0 %v13474_v25  ;;  %v13564_v23 = vand.u32 4294901760, %v2534_v14  ;;  %v13567_v6 = vpop.f32.mrf.mxu0  ;;  %v6096_v60 = vand.u32 4294901760, %v6095_v1  ;;  %v17443_v1 = vand.u32 4294901760, %v13548_v17 }
 0x440   :  { %6265 = vmatpush.msrb.mxu1 %v13463_v55  ;;  %5857 = vmatpush.msrb.mxu3 %v13193_v61  ;;  %v6084_v61 = vand.u32 4294901760, %v6083_v15  ;;  %17435 = vst [vmem:[#allocation75_spill] sm:$0xff] %v13567_v6  ;;  %v17436_v15 = vand.u32 4294901760, %v13265_v63  ;;  %v6090_v29 = vand.u32 4294901760, %v6089_v48  ;;  %v2216_v6 = vadd.f32 %v17441_v30, %v17440_v42 }
 0x441   :  { %6020 = vmatpush.msra.mxu2 %v13476_v22  ;;  %6198 = vmatpush.msrb.mxu0 %v13484_v57  ;;  %v13599_v2 = vsub.f32 %v2534_v14, %v13564_v23  ;;  %v6102_v14 = vand.u32 4294901760, %v6101_v56  ;;  %v6107_v11 = vsub.f32 %v13548_v17, %v17443_v1  ;;  %v17444_v30 = vand.u32 4294901760, %v13562_v28  ;;  %v17445_v1 = vld [vmem:[#allocation95_spill] sm:$0xff] }
 0x442   :  { %6267 = vmatpush.msrb.mxu1 %v13476_v22  ;;  %5859 = vmatpush.msrb.mxu3 %v13210_v32  ;;  %v2533_v32 = vld [vmem:[%s16425_s4 + $0x438] sm:$0xff]  ;;  %v2259_v42 = vadd.f32 %v17445_v1, %v2216_v6 }
 0x443   :  { %6022 = vmatpush.msra.mxu2 %v13486_v41  ;;  %6201 = vmatpush.msrb.mxu0 %v13499_v10  ;;  %v13596_v37 = vand.u32 4294901760, %v2533_v32  ;;  %v2529_v6 = vld [vmem:[%s16425_s4 + $0x418] sm:$0xff] }
 0x444   :  { %6269 = vmatpush.msrb.mxu1 %v13486_v41  ;;  %5814 = vmatmul.f32.gmra.mxu2 %v13312_v46  ;;  %v2302_v58 = vadd.f32 %v17450_v39, %v2259_v42  ;;  %v2528_v42 = vld [vmem:[%s16425_s4 + $0x410] sm:$0xff] }
 0x445   :  { %5863 = vmatmul.f32.vlgmr.msrb.gmra.mxu3 %v17436_v15  ;;  %6003 = vmatmul.f32.gmra.mxu1 %v13294_v53  ;;  %v13589_v63 = vpop.f32.mrf.mxu3  ;;  %v13593_v15 = vpop.f32.mrf.mxu1 }
 0x446   :  { %6024 = vmatpush.msra.mxu2 %v13516_v54  ;;  %17437 = vst [vmem:[#allocation38_spill] sm:$0xff] %v13589_v63  ;;  %v13591_v48 = vpop.f32.mrf.mxu2  ;;  %6085 = vmatpush.msra.mxu3 %v6084_v61  ;;  %v2347_v63 = vadd.f32 %v17442_v8, %v2296_v52  ;;  %v2531_v61 = vld [vmem:[%s16425_s4 + $0x428] sm:$0xff]  ;;  %v6113_v8 = vsub.f32 %v13562_v28, %v17444_v30  ;;  %v17447_v30 = vand.u32 4294901760, %v13581_v0 }
 0x447   :  { %17438 = vst [vmem:[#allocation147_spill] sm:$0xff] %v13591_v48  ;;  %6204 = vmatpush.msrb.mxu0 %v13519_v49  ;;  %6271 = vmatpush.msrb.mxu1 %v13516_v54  ;;  %v13627_v52 = vsub.f32 %v2533_v32, %v13596_v37  ;;  %v17446_v48 = vld [vmem:[#allocation80_spill] sm:$0xff] }
 0x448   :  { %17439 = vst [vmem:[#allocation82_spill] sm:$0xff] %v13593_v15  ;;  %5954 = vmatmul.f32.gmra.mxu0 %v13294_v53  ;;  %6026 = vmatpush.msra.mxu2 %v13534_v45  ;;  %v13614_v15 = vand.u32 4294901760, %v2532_v27  ;;  %v2530_v53 = vld [vmem:[%s16425_s4 + $0x420] sm:$0xff]  ;;  %v2384_v20 = vadd.f32 %v17446_v48, %v2347_v63  ;;  %v6119_v32 = vsub.f32 %v13581_v0, %v17447_v30  ;;  %v17449_v48 = vld [vmem:[#allocation68_spill] sm:$0xff]  ;;  %v17453_v30 = vand.u32 4294901760, %v13599_v2 }
 0x449   :  { %6091 = vmatpush.msra.mxu3 %v6090_v29  ;;  %6207 = vmatpush.msrb.mxu0 %v13548_v17  ;;  %v13629_v29 = vand.u32 4294901760, %v2531_v61  ;;  %v13643_v56 = vand.u32 4294901760, %v2530_v53  ;;  %v17448_v63 = vld [vmem:[#allocation90_spill] sm:$0xff] }
 0x44a   :  { %6273 = vmatpush.msrb.mxu1 %v13534_v45  ;;  %6028 = vmatpush.msra.mxu2 %v13550_v9  ;;  %v13641_v62 = vsub.f32 %v2532_v27, %v13614_v15  ;;  %v2220_v1 = vadd.f32 %v17449_v48, %v17448_v63  ;;  %v17452_v27 = vand.u32 4294901760, %v13312_v46  ;;  %v6125_v26 = vsub.f32 %v13599_v2, %v17453_v30 }
 0x44b   :  { %6097 = vmatpush.msra.mxu3 %v6096_v60  ;;  %6210 = vmatpush.msrb.mxu0 %v13562_v28  ;;  %v6108_v60 = vand.u32 4294901760, %v6107_v11  ;;  %v6114_v11 = vand.u32 4294901760, %v6113_v8  ;;  %v13662_v63 = vsub.f32 %v2531_v61, %v13629_v29  ;;  %v13670_v46 = vand.u32 4294901760, %v2529_v6 }
 0x44c   :  { %6275 = vmatpush.msrb.mxu1 %v13550_v9  ;;  %6030 = vmatpush.msra.mxu2 %v13564_v23  ;;  %v6120_v30 = vand.u32 4294901760, %v6119_v32  ;;  %v13682_v39 = vsub.f32 %v2530_v53, %v13643_v56  ;;  %v6126_v53 = vand.u32 4294901760, %v6125_v26  ;;  %v17459_v32 = vand.u32 4294901760, %v13627_v52 }
 0x44d   :  { %6103 = vmatpush.msra.mxu3 %v6102_v14  ;;  %v13651_v14 = vpop.f32.mrf.mxu0  ;;  %6213 = vmatpush.msrb.mxu0 %v13581_v0  ;;  %v13678_v61 = vpop.f32.mrf.mxu1 }
 0x44e   :  { %17451 = vst [vmem:[#allocation145_spill] sm:$0xff] %v13651_v14  ;;  %6277 = vmatpush.msrb.mxu1 %v13564_v23  ;;  %5819 = vmatmul.f32.gmra.mxu2 %v13353_v13  ;;  %v6131_v14 = vsub.f32 %v13627_v52, %v17459_v32 }
 0x44f   :  { %5869 = vmatmul.f32.gmra.mxu3 %v17452_v27  ;;  %6007 = vmatmul.f32.gmra.mxu1 %v13335_v59  ;;  %v13672_v8 = vpop.f32.mrf.mxu2  ;;  %v13676_v27 = vand.u32 4294901760, %v2384_v20  ;;  %17456 = vst [vmem:[#allocation36_spill] sm:$0xff] %v13678_v61  ;;  %v13691_v61 = vand.u32 4294901760, %v2528_v42 }
 0x450   :  { %6032 = vmatpush.msra.mxu2 %v13596_v37  ;;  %17454 = vst [vmem:[#allocation150_spill] sm:$0xff] %v13672_v8  ;;  %v13674_v48 = vpop.f32.mrf.mxu3  ;;  %6109 = vmatpush.msra.mxu3 %v6108_v60  ;;  %v17457_v8 = vld [vmem:[#allocation87_spill] sm:$0xff]  ;;  %v17458_v60 = vld [vmem:[#allocation100_spill] sm:$0xff] }
 0x451   :  { %17455 = vst [vmem:[#allocation146_spill] sm:$0xff] %v13674_v48  ;;  %6216 = vmatpush.msrb.mxu0 %v13599_v2  ;;  %v2351_v43 = vadd.f32 %v17457_v8, %v2302_v58  ;;  %6279 = vmatpush.msrb.mxu1 %v13596_v37  ;;  %v2264_v48 = vadd.f32 %v17458_v60, %v2220_v1  ;;  %v2526_v58 = vld [vmem:[%s16425_s4 + $0x400] sm:$0xff]  ;;  %v13707_v1 = vand.u32 4294901760, %v2527_v34  ;;  %v17461_v60 = vand.u32 4294901760, %v13641_v62 }
 0x452   :  { %5958 = vmatmul.f32.gmra.mxu0 %v13335_v59  ;;  %6034 = vmatpush.msra.mxu2 %v13614_v15  ;;  %v13705_v59 = vsub.f32 %v2529_v6, %v13670_v46  ;;  %v13710_v26 = vsub.f32 %v2384_v20, %v13676_v27  ;;  %v13722_v20 = vsub.f32 %v2528_v42, %v13691_v61  ;;  %v13724_v6 = vand.u32 4294901760, %v2526_v58 }
 0x453   :  { %6115 = vmatpush.msra.mxu3 %v6114_v11  ;;  %6219 = vmatpush.msrb.mxu0 %v13627_v52  ;;  %v17460_v11 = vld [vmem:[#allocation99_spill] sm:$0xff]  ;;  %v6137_v32 = vsub.f32 %v13641_v62, %v17461_v60  ;;  %v2388_v50 = vadd.f32 %v17462_v51, %v2351_v43  ;;  %v17464_v60 = vld [vmem:[#allocation72_spill] sm:$0xff]  ;;  %v13737_v42 = vsub.f32 %v2527_v34, %v13707_v1 }
 0x454   :  { %6281 = vmatpush.msrb.mxu1 %v13614_v15  ;;  %v2308_v8 = vadd.f32 %v17460_v11, %v2264_v48  ;;  %6036 = vmatpush.msra.mxu2 %v13629_v29  ;;  %v6132_v48 = vand.u32 4294901760, %v6131_v14  ;;  %v2224_v43 = vadd.f32 %v17465_v36, %v17464_v60  ;;  %v6049_v14 = vand.u32 4294901760, %v13710_v26 }
 0x455   :  { %6121 = vmatpush.msra.mxu3 %v6120_v30  ;;  %6222 = vmatpush.msrb.mxu0 %v13641_v62  ;;  %v17463_v30 = vand.u32 4294901760, %v13662_v63  ;;  %v13732_v51 = vpop.f32.mrf.mxu0  ;;  %v6138_v36 = vand.u32 4294901760, %v6137_v32  ;;  %v17469_v60 = vand.u32 4294901760, %v13682_v39  ;;  %v13748_v38 = vand.u32 4294901760, %v2388_v50  ;;  %v13760_v32 = vpop.f32.mrf.mxu1 }
 0x456   :  { %6283 = vmatpush.msrb.mxu1 %v13629_v29  ;;  %6038 = vmatpush.msra.mxu2 %v13643_v56  ;;  %17466 = vst [vmem:[#allocation59_spill] sm:$0xff] %v13732_v51  ;;  %v13753_v34 = vsub.f32 %v2526_v58, %v13724_v6  ;;  %v17474_v58 = vand.u32 4294901760, %v13705_v59 }
 0x457   :  { %6127 = vmatpush.msra.mxu3 %v6126_v53  ;;  %v6143_v11 = vsub.f32 %v13662_v63, %v17463_v30  ;;  %6225 = vmatpush.msrb.mxu0 %v13662_v63  ;;  %v17467_v53 = vld [vmem:[#allocation103_spill] sm:$0xff]  ;;  %v17468_v30 = vand.u32 4294901760, %v13353_v13  ;;  %v6149_v51 = vsub.f32 %v13682_v39, %v17469_v60  ;;  %17472 = vst [vmem:[#allocation98_spill] sm:$0xff] %v13760_v32  ;;  %v17473_v60 = vld [vmem:[#allocation112_spill] sm:$0xff] }
 0x458   :  { %6285 = vmatpush.msrb.mxu1 %v13643_v56  ;;  %v2355_v16 = vadd.f32 %v17467_v53, %v2308_v8  ;;  %5824 = vmatmul.f32.gmra.mxu2 %v13394_v19  ;;  %v2269_v3 = vadd.f32 %v17473_v60, %v2224_v43  ;;  %v6155_v8 = vsub.f32 %v13705_v59, %v17474_v58  ;;  %v17476_v43 = vld [vmem:[#allocation115_spill] sm:$0xff] }
 0x459   :  { %5875 = vmatmul.f32.gmra.mxu3 %v17468_v30  ;;  %6011 = vmatmul.f32.gmra.mxu1 %v13378_v33  ;;  %v13756_v53 = vpop.f32.mrf.mxu2  ;;  %v6144_v30 = vand.u32 4294901760, %v6143_v11  ;;  %v6056_v11 = vsub.f32 %v2388_v50, %v13748_v38  ;;  %v17478_v50 = vand.u32 4294901760, %v13737_v42 }
 0x45a   :  { %6040 = vmatpush.msra.mxu2 %v13670_v46  ;;  %17470 = vst [vmem:[#allocation148_spill] sm:$0xff] %v13756_v53  ;;  %v13758_v13 = vpop.f32.mrf.mxu3  ;;  %6133 = vmatpush.msra.mxu3 %v6132_v48  ;;  %v2392_v32 = vadd.f32 %v17475_v18, %v2355_v16  ;;  %v6150_v48 = vand.u32 4294901760, %v6149_v51  ;;  %v2314_v60 = vadd.f32 %v17476_v43, %v2269_v3  ;;  %v16624_v53 = vand.u32 4294901760, %v13753_v34 }
 0x45b   :  { %17471 = vst [vmem:[#allocation152_spill] sm:$0xff] %v13758_v13  ;;  %6228 = vmatpush.msrb.mxu0 %v13682_v39  ;;  %6287 = vmatpush.msrb.mxu1 %v13670_v46  ;;  %v6050_v13 = vsub.f32 %v13710_v26, %v6049_v14  ;;  %v6156_v16 = vand.u32 4294901760, %v6155_v8  ;;  %v6167_v18 = vsub.f32 %v13737_v42, %v17478_v50  ;;  %v6057_v50 = vand.u32 4294901760, %v6056_v11 }
 0x45c   :  { %5962 = vmatmul.f32.gmra.mxu0 %v13378_v33  ;;  %6042 = vmatpush.msra.mxu2 %v13691_v61  ;;  %v17477_v33 = vand.u32 4294901760, %v13722_v20  ;;  %v13787_v3 = vand.u32 4294901760, %v2392_v32  ;;  %v6173_v8 = vsub.f32 %v13753_v34, %v16624_v53 }
 0x45d   :  { %6139 = vmatpush.msra.mxu3 %v6138_v36  ;;  %6231 = vmatpush.msrb.mxu0 %v13705_v59  ;;  %v6051_v51 = vand.u32 4294901760, %v6050_v13  ;;  %v17479_v36 = vld [vmem:[#allocation116_spill] sm:$0xff]  ;;  %v6168_v13 = vand.u32 4294901760, %v6167_v18  ;;  %v17485_v18 = vand.u32 4294901760, %v13499_v10  ;;  %v17487_v10 = vand.u32 4294901760, %v13548_v17 }
 0x45e   :  { %6289 = vmatpush.msrb.mxu1 %v13691_v61  ;;  %v6161_v58 = vsub.f32 %v13722_v20, %v17477_v33  ;;  %6044 = vmatpush.msra.mxu2 %v13707_v1  ;;  %v2359_v43 = vadd.f32 %v17479_v36, %v2314_v60  ;;  %v13791_v33 = vpop.f32.mrf.mxu0  ;;  %v13804_v36 = vpop.f32.mrf.mxu1  ;;  %v6064_v53 = vsub.f32 %v2392_v32, %v13787_v3  ;;  %v17486_v32 = vand.u32 4294901760, %v13519_v49 }
 0x45f   :  { %6145 = vmatpush.msra.mxu3 %v6144_v30  ;;  %6234 = vmatpush.msrb.mxu0 %v13722_v20  ;;  %17480 = vst [vmem:[#allocation106_spill] sm:$0xff] %v13791_v33  ;;  %v17483_v33 = vld [vmem:[#allocation117_spill] sm:$0xff] }
 0x460   :  { %6291 = vmatpush.msrb.mxu1 %v13707_v1  ;;  %6046 = vmatpush.msra.mxu2 %v13724_v6  ;;  %v6162_v30 = vand.u32 4294901760, %v6161_v58  ;;  %v17482_v58 = vand.u32 4294901760, %v13474_v25  ;;  %v2396_v19 = vadd.f32 %v17483_v33, %v2359_v43 }
 0x461   :  { %6151 = vmatpush.msra.mxu3 %v6150_v48  ;;  %6237 = vmatpush.msrb.mxu0 %v13737_v42 }
 0x462   :  { %6293 = vmatpush.msrb.mxu1 %v13724_v6  ;;  %5881 = vmatmul.f32.gmra.mxu3 %v17481_v7  ;;  %v6174_v7 = vand.u32 4294901760, %v6173_v8 }
 0x463   :  { %6052 = vmatmul.f32.vlgmr.msra.gmra.mxu2 %v6051_v51  ;;  %6297 = vmatmul.f32.vlgmr.msrb.gmra.mxu1 %v6049_v14  ;;  %v13800_v48 = vpop.f32.mrf.mxu2  ;;  %v6058_v14 = vsub.f32 %v6056_v11, %v6057_v50  ;;  %v13816_v51 = vand.u32 4294901760, %v2396_v19 }
 0x464   :  { %6157 = vmatpush.msra.mxu3 %v6156_v16  ;;  %v13802_v60 = vpop.f32.mrf.mxu3  ;;  %6240 = vmatpush.msrb.mxu0 %v13753_v34  ;;  %v17484_v16 = vand.u32 4294901760, %v13484_v57  ;;  %v9213_v57 = vld [vmem:[%s16423_s1 + $0x5] ss:$0 sm:$0xff] }
 0x465   :  { %6322 = vmatpush.msrb.mxu2 %v17482_v58  ;;  %6243 = vmatmul.f32.vlgmr.msrb.gmra.mxu0 %v13710_v26  ;;  %v6059_v25 = vand.u32 4294901760, %v6058_v14  ;;  %v6065_v58 = vand.u32 4294901760, %v6064_v53  ;;  %v6072_v43 = vsub.f32 %v2396_v19, %v13816_v51  ;;  %v17491_v19 = vld [vmem:[#allocation119_spill] sm:$0xff] }
 0x466   :  { %6163 = vmatpush.msra.mxu3 %v6162_v30  ;;  %v13821_v26 = vpop.f32.mrf.mxu0  ;;  %v13834_v8 = vpop.f32.mrf.mxu1 }
 0x467   :  { %6326 = vmatpush.msrb.mxu2 %v17484_v16  ;;  %v6066_v49 = vsub.f32 %v6064_v53, %v6065_v58  ;;  %v17492_v16 = vand.u32 4294901760, %v13599_v2 }
 0x468   :  { %6169 = vmatpush.msra.mxu3 %v6168_v13  ;;  %v17489_v13 = vld [vmem:[#allocation53_spill] sm:$0xff] }
 0x469   :  { %6330 = vmatpush.msrb.mxu2 %v17485_v18  ;;  %v2582_v17 = vadd.f32 %v9213_v57, %v17489_v13 }
 0x46a   :  { %6175 = vmatpush.msra.mxu3 %v6174_v7  ;;  %v17490_v7 = vand.u32 4294901760, %v13581_v0  ;;  %v17494_v0 = vld [vmem:[#allocation118_spill] sm:$0xff] }
 0x46b   :  { %6334 = vmatpush.msrb.mxu2 %v17486_v32  ;;  %6177 = vmatmul.f32.vlgmr.msra.gmra.mxu3 %v13676_v27  ;;  %v2707_v14 = vadd.f32 %v17491_v19, %v2582_v17  ;;  %v2590_v18 = vadd.f32 %v9213_v57, %v17494_v0  ;;  %v17496_v32 = vand.u32 4294901760, %v13641_v62  ;;  %v17500_v62 = vld [vmem:[#allocation12_spill] sm:$0xff]  ;;  %v17503_v19 = vld [vmem:[#allocation73_spill] sm:$0xff] }
 0x46c   :  { %6060 = vmatmul.f32.gmra.mxu2 %v6059_v25  ;;  %6303 = vmatmul.f32.gmra.mxu1 %v6057_v50  ;;  %v17488_v50 = vand.u32 4294901760, %v13562_v28  ;;  %v17495_v25 = vld [vmem:[#allocation120_spill] sm:$0xff]  ;;  %v17508_v0 = vld [vmem:[#allocation97_spill] sm:$0xff] }
 0x46d   :  { %6338 = vmatpush.msrb.mxu2 %v17487_v10  ;;  %6401 = vmatpush.msrb.mxu3 %v13455_v12  ;;  %v13830_v33 = vpop.f32.mrf.mxu3  ;;  %v6067_v12 = vand.u32 4294901760, %v6066_v49  ;;  %v2773_v2 = vadd.f32 %v17495_v25, %v2707_v14  ;;  %v17509_v25 = vld [vmem:[#allocation105_spill] sm:$0xff] }
 0x46e   :  { %6248 = vmatmul.f32.gmra.mxu0 %v6056_v11  ;;  %v13832_v30 = vpop.f32.mrf.mxu2  ;;  %v6073_v11 = vand.u32 4294901760, %v6072_v43  ;;  %v13850_v28 = vpop.f32.mrf.mxu0 }
 0x46f   :  { %6342 = vmatpush.msrb.mxu2 %v17488_v50  ;;  %6403 = vmatpush.msrb.mxu3 %v13463_v55  ;;  %v17493_v55 = vand.u32 4294901760, %v13627_v52  ;;  %v17497_v52 = vld [vmem:[#allocation67_spill] sm:$0xff]  ;;  %v13863_v49 = vpop.f32.mrf.mxu1  ;;  %v17499_v50 = vld [vmem:[#allocation92_spill] sm:$0xff]  ;;  %v2827_v17 = vadd.f32 %v17500_v62, %v2773_v2 }
 0x470   :  { %v2711_v10 = vadd.f32 %v17497_v52, %v2590_v18  ;;  %v2598_v13 = vadd.f32 %v9213_v57, %v17499_v50  ;;  %v2606_v18 = vadd.f32 %v9213_v57, %v17508_v0  ;;  %v17512_v52 = vld [vmem:[#allocation108_spill] sm:$0xff]  ;;  %v17515_v50 = vand.u32 4294901760, %v13753_v34  ;;  %v17521_v34 = vld [vmem:[#allocation123_spill] sm:$0xff] }
 0x471   :  { %6346 = vmatpush.msrb.mxu2 %v17490_v7  ;;  %6405 = vmatpush.msrb.mxu3 %v13476_v22  ;;  %v6074_v22 = vsub.f32 %v6072_v43, %v6073_v11  ;;  %v17502_v7 = vld [vmem:[#allocation33_spill] sm:$0xff]  ;;  %v17525_v0 = vld [vmem:[#allocation24_spill] sm:$0xff] }
 0x472   :  { %v2715_v14 = vadd.f32 %v17503_v19, %v2598_v13  ;;  %v17520_v19 = vld [vmem:[#allocation20_spill] sm:$0xff] }
 0x473   :  { %6350 = vmatpush.msrb.mxu2 %v17492_v16  ;;  %6407 = vmatpush.msrb.mxu3 %v13486_v41  ;;  %v17504_v16 = vld [vmem:[#allocation96_spill] sm:$0xff] }
 0x474   :  { %6068 = vmatmul.f32.gmra.mxu2 %v6067_v12  ;;  %6181 = vmatmul.f32.gmra.mxu3 %v13748_v38  ;;  %v2778_v12 = vadd.f32 %v17502_v7, %v2711_v10  ;;  %v2783_v2 = vadd.f32 %v17509_v25, %v2715_v14  ;;  %v17513_v10 = vld [vmem:[#allocation113_spill] sm:$0xff]  ;;  %v17519_v7 = vld [vmem:[#allocation28_spill] sm:$0xff] }
 0x475   :  { %6309 = vmatmul.f32.gmra.mxu1 %v6065_v58  ;;  %6354 = vmatpush.msrb.mxu2 %v17493_v55  ;;  %v17506_v55 = vld [vmem:[#allocation31_spill] sm:$0xff] }
 0x476   :  { %6409 = vmatpush.msrb.mxu3 %v13516_v54  ;;  %6253 = vmatmul.f32.gmra.mxu0 %v6064_v53  ;;  %v17498_v54 = vand.u32 4294901760, %v13662_v63  ;;  %v6075_v53 = vand.u32 4294901760, %v6074_v22  ;;  %v2914_v63 = vadd.f32 %v17504_v16, %v2827_v17  ;;  %v13881_v22 = vpop.f32.mrf.mxu0  ;;  %v17518_v17 = vld [vmem:[#allocation76_spill] sm:$0xff]  ;;  %v17522_v16 = vld [vmem:[#allocation122_spill] sm:$0xff] }
 0x477   :  { %6358 = vmatpush.msrb.mxu2 %v17496_v32  ;;  %v13858_v41 = vpop.f32.mrf.mxu2  ;;  %v13899_v57 = vpop.f32.mrf.mxu1 }
 0x478   :  { %6411 = vmatpush.msrb.mxu3 %v13534_v45  ;;  %v13860_v58 = vpop.f32.mrf.mxu3  ;;  %v17501_v45 = vand.u32 4294901760, %v13682_v39  ;;  %v2963_v39 = vadd.f32 %v17506_v55, %v2914_v63 }
 0x479   :  { %6362 = vmatpush.msrb.mxu2 %v17498_v54 }
 0x47a   :  { %6413 = vmatpush.msrb.mxu3 %v13550_v9  ;;  %v17505_v9 = vand.u32 4294901760, %v13705_v59  ;;  %v17511_v59 = vand.u32 4294901760, %v13737_v42  ;;  %v17516_v42 = vld [vmem:[#allocation8_spill] sm:$0xff] }
 0x47b   :  { %6366 = vmatpush.msrb.mxu2 %v17501_v45  ;;  %v2839_v13 = vadd.f32 %v17516_v42, %v2783_v2  ;;  %v17532_v42 = vld [vmem:[#allocation126_spill] sm:$0xff] }
 0x47c   :  { %6415 = vmatpush.msrb.mxu3 %v13564_v23  ;;  %6076 = vmatmul.f32.gmra.mxu2 %v6075_v53  ;;  %v17507_v23 = vand.u32 4294901760, %v13722_v20  ;;  %v2719_v20 = vadd.f32 %v17512_v52, %v2606_v18  ;;  %v17528_v52 = vld [vmem:[#allocation26_spill] sm:$0xff] }
 0x47d   :  { %6185 = vmatmul.f32.gmra.mxu3 %v13787_v3  ;;  %6315 = vmatmul.f32.gmra.mxu1 %v6073_v11  ;;  %v17510_v11 = vld [vmem:[#allocation71_spill] sm:$0xff] }
 0x47e   :  { %6370 = vmatpush.msrb.mxu2 %v17505_v9  ;;  %6417 = vmatpush.msrb.mxu3 %v13596_v37  ;;  %v2833_v32 = vadd.f32 %v17510_v11, %v2778_v12  ;;  %v2788_v45 = vadd.f32 %v17518_v17, %v2719_v20  ;;  %v2922_v12 = vadd.f32 %v17519_v7, %v2839_v13  ;;  %v17523_v9 = vld [vmem:[#allocation15_spill] sm:$0xff]  ;;  %v17534_v17 = vld [vmem:[#allocation128_spill] sm:$0xff]  ;;  %v17535_v7 = vld [vmem:[#allocation5_spill] sm:$0xff] }
 0x47f   :  { %6258 = vmatmul.f32.gmra.mxu0 %v6072_v43 }
 0x480   :  { %6374 = vmatpush.msrb.mxu2 %v17507_v23  ;;  %6419 = vmatpush.msrb.mxu3 %v13614_v15  ;;  %v2918_v54 = vadd.f32 %v17513_v10, %v2833_v32  ;;  %v17514_v15 = vld [vmem:[#allocation17_spill] sm:$0xff]  ;;  %v2971_v63 = vadd.f32 %v17522_v16, %v2922_v12  ;;  %v17524_v23 = vld [vmem:[#allocation16_spill] sm:$0xff]  ;;  %v13929_v10 = vpop.f32.mrf.mxu1 }
 0x481   :  { %v13892_v37 = vpop.f32.mrf.mxu2  ;;  %v3016_v53 = vadd.f32 %v17514_v15, %v2963_v39  ;;  %v13916_v39 = vpop.f32.mrf.mxu0  ;;  %v17527_v32 = vld [vmem:[#allocation125_spill] sm:$0xff] }
 0x482   :  { %6378 = vmatpush.msrb.mxu2 %v17511_v59  ;;  %6421 = vmatpush.msrb.mxu3 %v13629_v29  ;;  %v13894_v43 = vpop.f32.mrf.mxu3  ;;  %v17517_v29 = vld [vmem:[#allocation3_spill] sm:$0xff]  ;;  %v3032_v59 = vadd.f32 %v17527_v32, %v2971_v63  ;;  %v17530_v15 = vld [vmem:[#allocation21_spill] sm:$0xff] }
 0x483   :  { %v2967_v62 = vadd.f32 %v17517_v29, %v2918_v54  ;;  %v3141_v14 = vadd.f32 %v17520_v19, %v3016_v53  ;;  %v17531_v53 = vld [vmem:[#allocation130_spill] sm:$0xff]  ;;  %v17533_v29 = vld [vmem:[#allocation23_spill] sm:$0xff]  ;;  %v17536_v19 = vld [vmem:[#allocation132_spill] sm:$0xff] }
 0x484   :  { %6382 = vmatpush.msrb.mxu2 %v17515_v50  ;;  %6423 = vmatpush.msrb.mxu3 %v13643_v56  ;;  %v3149_v13 = vadd.f32 %v17532_v42, %v3032_v59  ;;  %v17538_v16 = vld [vmem:[#allocation25_spill] sm:$0xff]  ;;  %v17542_v59 = vld [vmem:[#allocation32_spill] sm:$0xff]  ;;  %v17547_v42 = vld [vmem:[#allocation7_spill] sm:$0xff] }
 0x485   :  { %6189 = vmatmul.f32.gmra.mxu3 %v13816_v51  ;;  %6384 = vmatmul.f32.vlgmr.msrb.gmra.mxu2 %v13676_v27  ;;  %v3024_v56 = vadd.f32 %v17521_v34, %v2967_v62  ;;  %v3207_v55 = vadd.f32 %v17523_v9, %v3141_v14  ;;  %v17539_v9 = vld [vmem:[#allocation10_spill] sm:$0xff] }
 0x486   :  { %6425 = vmatpush.msrb.mxu3 %v13670_v46  ;;  %v2845_v46 = vadd.f32 %v17524_v23, %v2788_v45  ;;  %v3217_v12 = vadd.f32 %v17535_v7, %v3149_v13 }
 0x487   :  { %v3261_v18 = vadd.f32 %v17525_v0, %v3207_v55  ;;  %v3145_v20 = vadd.f32 %v17528_v52, %v3024_v56  ;;  %v17537_v56 = vld [vmem:[#allocation18_spill] sm:$0xff]  ;;  %v17540_v0 = vld [vmem:[#allocation129_spill] sm:$0xff] }
 0x488   :  { %6427 = vmatpush.msrb.mxu3 %v13691_v61  ;;  %v17526_v61 = vld [vmem:[#allocation121_spill] sm:$0xff]  ;;  %v3273_v63 = vadd.f32 %v17538_v16, %v3217_v12  ;;  %v13954_v32 = vpop.f32.mrf.mxu1  ;;  %v17550_v12 = vld [vmem:[#allocation11_spill] sm:$0xff] }
 0x489   :  { %v2926_v11 = vadd.f32 %v17526_v61, %v2845_v46  ;;  %v3348_v50 = vadd.f32 %v17531_v53, %v3261_v18  ;;  %v13941_v34 = vpop.f32.mrf.mxu0  ;;  %v17541_v61 = vld [vmem:[#allocation6_spill] sm:$0xff] }
 0x48a   :  { %6429 = vmatpush.msrb.mxu3 %v13707_v1  ;;  %v17529_v1 = vld [vmem:[#allocation124_spill] sm:$0xff] }
 0x48b   :  { %v13922_v25 = vpop.f32.mrf.mxu2  ;;  %v2975_v54 = vadd.f32 %v17529_v1, %v2926_v11  ;;  %v3397_v14 = vadd.f32 %v17536_v19, %v3348_v50  ;;  %v17546_v50 = vld [vmem:[#allocation29_spill] sm:$0xff] }
 0x48c   :  { %6431 = vmatpush.msrb.mxu3 %v13724_v6  ;;  %v13924_v2 = vpop.f32.mrf.mxu3  ;;  %v3212_v6 = vadd.f32 %v17530_v15, %v3145_v20  ;;  %v17543_v20 = vld [vmem:[#allocation13_spill] sm:$0xff] }
 0x48d   :  { %6388 = vmatmul.f32.gmra.mxu2 %v13748_v38  ;;  %6433 = vmatmul.f32.vlgmr.msrb.gmra.mxu3 %v13676_v27  ;;  %v3040_v45 = vadd.f32 %v17534_v17, %v2975_v54  ;;  %v3450_v55 = vadd.f32 %v17539_v9, %v3397_v14  ;;  %v3356_v1 = vadd.f32 %v17543_v20, %v3273_v63  ;;  %v17544_v54 = vld [vmem:[#allocation22_spill] sm:$0xff]  ;;  %v17549_v17 = vld [vmem:[#allocation4_spill] sm:$0xff]  ;;  %v17551_v14 = vld [vmem:[#allocation27_spill] sm:$0xff] }
 0x48e   :  { %v3267_v62 = vadd.f32 %v17533_v29, %v3212_v6  ;;  %v17545_v6 = vld [vmem:[#allocation30_spill] sm:$0xff]  ;;  %v17548_v29 = vld [vmem:[#allocation19_spill] sm:$0xff] }
 0x48f   :  { %v3153_v18 = vadd.f32 %v17540_v0, %v3040_v45  ;;  %v3575_v11 = vadd.f32 %v17541_v61, %v3450_v55  ;;  %v17553_v55 = vld [vmem:[#allocation49_spill] sm:$0xff] }
 0x490   :  { %v3352_v27 = vadd.f32 %v17537_v56, %v3267_v62  ;;  %v3405_v62 = vadd.f32 %v17548_v29, %v3356_v1  ;;  %v17557_v1 = vld [vmem:[#allocation9_spill] sm:$0xff] }
 0x491   :  { %v3222_v52 = vadd.f32 %v17542_v59, %v3153_v18  ;;  %v3641_v13 = vadd.f32 %v17547_v42, %v3575_v11  ;;  %v13966_v7 = vpop.f32.mrf.mxu0  ;;  %v17554_v18 = vld [vmem:[#allocation39_spill] sm:$0xff]  ;;  %v17555_v11 = vld [vmem:[#allocation37_spill] sm:$0xff] }
 0x492   :  { %v3401_v15 = vadd.f32 %v17544_v54, %v3352_v27  ;;  %v3466_v56 = vadd.f32 %v17551_v14, %v3405_v62  ;;  %v17552_v27 = vld [vmem:[#allocation133_spill] sm:$0xff]  ;;  %v17562_v62 = vld [vmem:[#allocation131_spill] sm:$0xff] }
 0x493   :  { %v3279_v53 = vadd.f32 %v17545_v6, %v3222_v52  ;;  %v3695_v16 = vadd.f32 %v17552_v27, %v3641_v13  ;;  %v13978_v52 = vpop.f32.mrf.mxu1  ;;  %v17561_v13 = vld [vmem:[#allocation127_spill] sm:$0xff] }
 0x494   :  { %v3583_v61 = vadd.f32 %v17554_v18, %v3466_v56  ;;  %v17564_v56 = vld [vmem:[#allocation35_spill] sm:$0xff] }
 0x495   :  { %6392 = vmatmul.f32.gmra.mxu2 %v13787_v3  ;;  %6437 = vmatmul.f32.gmra.mxu3 %v13748_v38  ;;  %v13948_v23 = vpop.f32.mrf.mxu3  ;;  %v3458_v38 = vadd.f32 %v17546_v50, %v3401_v15  ;;  %v3360_v19 = vadd.f32 %v17550_v12, %v3279_v53  ;;  %v3782_v59 = vadd.f32 %v17555_v11, %v3695_v16  ;;  %v17558_v15 = vld [vmem:[#allocation2_spill] sm:$0xff]  ;;  %v17559_v53 = vld [vmem:[#allocation48_spill] sm:$0xff]  ;;  %v17565_v27 = vld [vmem:[#allocation135_spill] sm:$0xff] }
 0x496   :  { %v13950_v46 = vpop.f32.mrf.mxu2  ;;  %v3651_v50 = vadd.f32 %v17559_v53, %v3583_v61  ;;  %v17566_v61 = vld [vmem:[#allocation47_spill] sm:$0xff]  ;;  %v17567_v11 = vld [vmem:[#allocation34_spill] sm:$0xff]  ;;  %v17572_v53 = vld [vmem:[#allocation45_spill] sm:$0xff] }
 0x497   :  { %v3579_v45 = vadd.f32 %v17549_v17, %v3458_v38  ;;  %v3831_v54 = vadd.f32 %v17557_v1, %v3782_v59  ;;  %v17560_v38 = vld [vmem:[#allocation134_spill] sm:$0xff]  ;;  %v17570_v1 = vld [vmem:[#allocation139_spill] sm:$0xff] }
 0x498   :  { %v17568_v59 = vld [vmem:[#allocation138_spill] sm:$0xff] }
 0x499   :  { %v3646_v0 = vadd.f32 %v17553_v55, %v3579_v45  ;;  %v17563_v45 = vld [vmem:[#allocation46_spill] sm:$0xff]  ;;  %v13989_v14 = vpop.f32.mrf.mxu0 }
 0x49a   :  { %v3884_v12 = vadd.f32 %v17563_v45, %v3831_v54 }
 0x49b   :  { %v3701_v42 = vadd.f32 %v17560_v38, %v3646_v0  ;;  %v17573_v38 = vld [vmem:[#allocation136_spill] sm:$0xff] }
 0x49d   :  { %6396 = vmatmul.f32.gmra.mxu2 %v13816_v51  ;;  %6441 = vmatmul.f32.gmra.mxu3 %v13787_v3  ;;  %v17556_v3 = vld [vmem:[#allocation14_spill] sm:$0xff]  ;;  %v3786_v17 = vadd.f32 %v17562_v62, %v3701_v42 }
 0x49e   :  { %v3409_v20 = vadd.f32 %v17556_v3, %v3360_v19  ;;  %v3707_v19 = vadd.f32 %v17564_v56, %v3651_v50  ;;  %v4009_v3 = vadd.f32 %v17568_v59, %v3884_v12  ;;  %v17576_v56 = vld [vmem:[#allocation143_spill] sm:$0xff]  ;;  %v17578_v12 = vld [vmem:[#allocation41_spill] sm:$0xff]  ;;  %v17579_v59 = vld [vmem:[#allocation44_spill] sm:$0xff] }
 0x49f   :  { %v13971_v63 = vpop.f32.mrf.mxu2  ;;  %v3835_v16 = vadd.f32 %v17565_v27, %v3786_v17  ;;  %v17575_v17 = vld [vmem:[#allocation42_spill] sm:$0xff]  ;;  %v17577_v27 = vld [vmem:[#allocation140_spill] sm:$0xff] }
 0x4a0   :  { %v13973_v9 = vpop.f32.mrf.mxu3  ;;  %v3474_v6 = vadd.f32 %v17558_v15, %v3409_v20  ;;  %v14000_v20 = vpop.f32.mrf.mxu1  ;;  %v17571_v15 = vld [vmem:[#allocation137_spill] sm:$0xff]  ;;  %v4075_v50 = vadd.f32 %v17572_v53, %v4009_v3 }
 0x4a1   :  { %17569 = vst [vmem:[#allocation109_spill] sm:$0xff] %v14000_v20  ;;  %v3892_v54 = vadd.f32 %v17570_v1, %v3835_v16  ;;  %v17580_v1 = vld [vmem:[#allocation107_spill] sm:$0xff] }
 0x4a2   :  { %v3587_v29 = vadd.f32 %v17561_v13, %v3474_v6  ;;  %v17574_v13 = vld [vmem:[#allocation144_spill] sm:$0xff] }
 0x4a3   :  { %v4129_v62 = vadd.f32 %v17574_v13, %v4075_v50  ;;  %v17583_v50 = vld [vmem:[#allocation62_spill] sm:$0xff]  ;;  %v17585_v13 = vld [vmem:[#allocation43_spill] sm:$0xff] }
 0x4a4   :  { %v3656_v0 = vadd.f32 %v17566_v61, %v3587_v29  ;;  %v14010_v61 = vpop.f32.mrf.mxu0 }
 0x4a5   :  { %6445 = vmatmul.f32.gmra.mxu3 %v13816_v51  ;;  %v3790_v51 = vadd.f32 %v17567_v11, %v3707_v19  ;;  %v4013_v19 = vadd.f32 %v17577_v27, %v3892_v54  ;;  %v17587_v27 = vld [vmem:[#allocation50_spill] sm:$0xff] }
 0x4a6   :  { %v3713_v42 = vadd.f32 %v17573_v38, %v3656_v0  ;;  %v17582_v0 = vld [vmem:[#allocation58_spill] sm:$0xff] }
 0x4a7   :  { %v3839_v6 = vadd.f32 %v17571_v15, %v3790_v51  ;;  %v4080_v16 = vadd.f32 %v17579_v59, %v4013_v19  ;;  %v4216_v51 = vadd.f32 %v17580_v1, %v4129_v62  ;;  %v17589_v59 = vld [vmem:[#allocation78_spill] sm:$0xff] }
 0x4a8   :  { %v3794_v45 = vadd.f32 %v17575_v17, %v3713_v42  ;;  %v14021_v42 = vpop.f32.mrf.mxu1 }
 0x4a9   :  { %v13993_v55 = vpop.f32.mrf.mxu2  ;;  %v3900_v29 = vadd.f32 %v17576_v56, %v3839_v6  ;;  %v4135_v38 = vadd.f32 %v17583_v50, %v4080_v16  ;;  %v17584_v6 = vld [vmem:[#allocation149_spill] sm:$0xff]  ;;  %v17586_v56 = vld [vmem:[#allocation40_spill] sm:$0xff] }
 0x4aa   :  { %v13995_v18 = vpop.f32.mrf.mxu3  ;;  %v3843_v11 = vadd.f32 %v17578_v12, %v3794_v45  ;;  %v4265_v45 = vadd.f32 %v17586_v56, %v4216_v51  ;;  %v17588_v12 = vld [vmem:[#allocation93_spill] sm:$0xff] }
 0x4ab   :  { %v4017_v53 = vadd.f32 %v17582_v0, %v3900_v29  ;;  %v4220_v19 = vadd.f32 %v17587_v27, %v4135_v38  ;;  %v17591_v16 = vld [vmem:[#allocation61_spill] sm:$0xff] }
 0x4ac   :  { %v3908_v54 = vadd.f32 %v17584_v6, %v3843_v11  ;;  %v4318_v1 = vadd.f32 %v17589_v59, %v4265_v45  ;;  %v14031_v0 = vpop.f32.mrf.mxu0  ;;  %v17592_v6 = vld [vmem:[#allocation52_spill] sm:$0xff]  ;;  %v17594_v38 = vld [vmem:[#allocation77_spill] sm:$0xff] }
 0x4ad   :  { %v4085_v17 = vadd.f32 %v17585_v13, %v4017_v53  ;;  %v4269_v53 = vadd.f32 %v17592_v6, %v4220_v19  ;;  %v17596_v19 = vld [vmem:[#allocation65_spill] sm:$0xff]  ;;  %v17604_v6 = vld [vmem:[#allocation91_spill] sm:$0xff] }
 0x4ae   :  { %v4443_v29 = vadd.f32 %v13226_v44, %v4318_v1  ;;  %v17598_v1 = vld [vmem:[#allocation74_spill] sm:$0xff] }
 0x4af   :  { %v4141_v62 = vadd.f32 %v17588_v12, %v4085_v17  ;;  %v4326_v56 = vadd.f32 %v13224_v35, %v4269_v53  ;;  %v17605_v53 = vld [vmem:[#allocation89_spill] sm:$0xff] }
 0x4b1   :  { %v4224_v11 = vadd.f32 %v13201_v47, %v4141_v62  ;;  %v17597_v62 = vld [vmem:[#allocation79_spill] sm:$0xff] }
 0x4b3   :  { %v14015_v15 = vpop.f32.mrf.mxu2  ;;  %v4273_v44 = vadd.f32 %v13228_v31, %v4224_v11 }
 0x4b4   :  { %17581 = vst [vmem:[#allocation86_spill] sm:$0xff] %v14015_v15  ;;  %v14017_v3 = vpop.f32.mrf.mxu3  ;;  %v17590_v15 = vld [vmem:[#allocation151_spill] sm:$0xff] }
 0x4b5   :  { %v4021_v20 = vadd.f32 %v17590_v15, %v3908_v54  ;;  %v4509_v15 = vadd.f32 %v13314_v21, %v4443_v29  ;;  %v14043_v54 = vpop.f32.mrf.mxu1  ;;  %v4334_v45 = vadd.f32 %v13280_v4, %v4273_v44  ;;  %v17600_v21 = vld [vmem:[#allocation66_spill] sm:$0xff]  ;;  %v17608_v44 = vld [vmem:[#allocation81_spill] sm:$0xff] }
 0x4b6   :  { %17595 = vst [vmem:[#allocation54_spill] sm:$0xff] %v14043_v54 }
 0x4b7   :  { %v4090_v50 = vadd.f32 %v17591_v16, %v4021_v20  ;;  %v4447_v20 = vadd.f32 %v13282_v5, %v4326_v56  ;;  %v4563_v27 = vadd.f32 %v13326_v40, %v4509_v15  ;;  %v4451_v59 = vadd.f32 %v17597_v62, %v4334_v45  ;;  %v14053_v16 = vpop.f32.mrf.mxu0  ;;  %v17607_v56 = vld [vmem:[#allocation85_spill] sm:$0xff]  ;;  %v17609_v45 = vld [vmem:[#allocation142_spill] sm:$0xff] }
 0x4b8   :  { %17599 = vst [vmem:[#allocation110_spill] sm:$0xff] %v14053_v16  ;;  %v17611_v62 = vld [vmem:[#allocation141_spill] sm:$0xff] }
 0x4b9   :  { %v4147_v17 = vadd.f32 %v17594_v38, %v4090_v50  ;;  %v4514_v12 = vadd.f32 %v17596_v19, %v4447_v20  ;;  %v4650_v35 = vadd.f32 %v17598_v1, %v4563_v27  ;;  %v17601_v50 = vld [vmem:[#allocation83_spill] sm:$0xff]  ;;  %v4519_v40 = vadd.f32 %v17604_v6, %v4451_v59  ;;  %v17610_v27 = vld [vmem:[#allocation88_spill] sm:$0xff] }
 0x4ba   :  { %v17612_v59 = vld [vmem:[#allocation56_spill] sm:$0xff] }
 0x4bb   :  { %v4228_v47 = vadd.f32 %v13267_v24, %v4147_v17  ;;  %v4699_v31 = vadd.f32 %v17601_v50, %v4650_v35  ;;  %v17603_v24 = vld [vmem:[#allocation84_spill] sm:$0xff]  ;;  %v4569_v38 = vadd.f32 %v17605_v53, %v4514_v12  ;;  %v4575_v19 = vadd.f32 %v17610_v27, %v4519_v40  ;;  %v6498_v35 = vld [vmem:[%s16426_s5 + $0x168] sm:$0xff] }
 0x4bd   :  { %v14036_v13 = vpop.f32.mrf.mxu3  ;;  %v4277_v29 = vadd.f32 %v17600_v21, %v4228_v47  ;;  %v14064_v17 = vpop.f32.mrf.mxu1  ;;  %v4654_v20 = vadd.f32 %v17608_v44, %v4569_v38  ;;  %v4752_v47 = vadd.f32 %v17609_v45, %v4699_v31  ;;  %v14074_v21 = vand.u32 4294901760, %v6498_v35  ;;  %v6495_v31 = vld [vmem:[%s16426_s5 + $0x150] sm:$0xff]  ;;  %v17616_v38 = vld [vmem:[#allocation75_spill] sm:$0xff] }
 0x4be   :  { %17593 = vst [vmem:[#allocation55_spill] sm:$0xff] %v14036_v13  ;;  %v14038_v51 = vpop.f32.mrf.mxu2  ;;  %v14087_v53 = vand.u32 4294901760, %v6495_v31 }
 0x4bf   :  { %v4342_v4 = vadd.f32 %v17603_v24, %v4277_v29  ;;  %17606 = vst [vmem:[#allocation69_spill] sm:$0xff] %v14064_v17  ;;  %v4703_v1 = vadd.f32 %v17611_v62, %v4654_v20  ;;  %v17613_v29 = vld [vmem:[#allocation60_spill] sm:$0xff]  ;;  %v17614_v24 = vld [vmem:[#allocation57_spill] sm:$0xff]  ;;  %v14082_v6 = vpop.f32.mrf.mxu0  ;;  %v14085_v40 = vsub.f32 %v6498_v35, %v14074_v21  ;;  %6749 = vmatpush.msra.mxu3 %v14074_v21  ;;  %v17618_v20 = vld [vmem:[#allocation147_spill] sm:$0xff] }
 0x4c0   :  { %v4658_v50 = vadd.f32 %v17613_v29, %v4575_v19  ;;  %17615 = vst [vmem:[#allocation63_spill] sm:$0xff] %v14082_v6  ;;  %6502 = vmatpush.msra.mxu0 %v14074_v21  ;;  %v14103_v35 = vsub.f32 %v6495_v31, %v14087_v53 }
 0x4c1   :  { %v4455_v15 = vadd.f32 %v17607_v56, %v4342_v4  ;;  %v4877_v4 = vadd.f32 %v17614_v24, %v4752_v47  ;;  %v4760_v56 = vadd.f32 %v17616_v38, %v4703_v1  ;;  %v6492_v47 = vld [vmem:[%s16426_s5 + $0x138] sm:$0xff]  ;;  %v16625_v62 = vand.u32 4294901760, %v14085_v40  ;;  %6681 = vmatpush.msra.mxu2 %v14085_v40  ;;  %6751 = vmatpush.msra.mxu3 %v14087_v53  ;;  %v6489_v38 = vld [vmem:[%s16426_s5 + $0x120] sm:$0xff] }
 0x4c2   :  { %v14106_v1 = vand.u32 4294901760, %v6492_v47  ;;  %6504 = vmatpush.msra.mxu0 %v14087_v53 }
 0x4c3   :  { %v4524_v12 = vadd.f32 %v17612_v59, %v4455_v15  ;;  %v17617_v15 = vld [vmem:[#allocation64_spill] sm:$0xff]  ;;  %v4943_v45 = vadd.f32 %v17618_v20, %v4877_v4  ;;  %v17622_v59 = vld [vmem:[#allocation51_spill] sm:$0xff]  ;;  %v6569_v31 = vsub.f32 %v14085_v40, %v16625_v62  ;;  %6684 = vmatpush.msra.mxu2 %v14103_v35 }
 0x4c4   :  { %v4707_v44 = vadd.f32 %v17617_v15, %v4658_v50  ;;  %17621 = vst [vmem:[#allocation80_spill] sm:$0xff] %v14106_v1  ;;  %v17623_v50 = vld [vmem:[#allocation146_spill] sm:$0xff]  ;;  %v16626_v15 = vand.u32 4294901760, %v14103_v35  ;;  %v14122_v20 = vsub.f32 %v6492_v47, %v14106_v1  ;;  %6753 = vmatpush.msra.mxu3 %v14106_v1  ;;  %v6486_v62 = vld [vmem:[%s16426_s5 + $0x108] sm:$0xff]  ;;  %6506 = vmatpush.msra.mxu0 %v14106_v1  ;;  %v17636_v1 = vld [vmem:[#allocation36_spill] sm:$0xff] }
 0x4c5   :  { %v4581_v29 = vadd.f32 %v17622_v59, %v4524_v12  ;;  %v4997_v24 = vadd.f32 %v17623_v50, %v4943_v45  ;;  %v14111_v4 = vpop.f32.mrf.mxu1  ;;  %v14125_v12 = vand.u32 4294901760, %v6489_v38  ;;  %v17626_v45 = vld [vmem:[#allocation70_spill] sm:$0xff]  ;;  %v17627_v50 = vld [vmem:[#allocation145_spill] sm:$0xff]  ;;  %v6570_v47 = vand.u32 4294901760, %v6569_v31 }
 0x4c6   :  { %17624 = vst [vmem:[#allocation90_spill] sm:$0xff] %v14111_v4  ;;  %v4768_v4 = vadd.f32 %v17627_v50, %v4707_v44  ;;  %v16627_v17 = vand.u32 4294901760, %v14122_v20  ;;  %6687 = vmatpush.msra.mxu2 %v14122_v20  ;;  %v14147_v31 = vand.u32 4294901760, %v6486_v62 }
 0x4c7   :  { %v14057_v11 = vpop.f32.mrf.mxu2  ;;  %17625 = vst [vmem:[#allocation68_spill] sm:$0xff] %v14125_v12  ;;  %v4662_v59 = vadd.f32 %v17626_v45, %v4581_v29  ;;  %6755 = vmatpush.msra.mxu3 %v14125_v12  ;;  %v17631_v45 = vld [vmem:[#allocation106_spill] sm:$0xff]  ;;  %6508 = vmatpush.msra.mxu0 %v14125_v12 }
 0x4c8   :  { %17602 = vst [vmem:[#allocation101_spill] sm:$0xff] %v14057_v11  ;;  %v14059_v5 = vpop.f32.mrf.mxu3  ;;  %v14140_v11 = vsub.f32 %v6489_v38, %v14125_v12  ;;  %v5084_v50 = vadd.f32 %v17631_v45, %v4997_v24  ;;  %6571 = vmatpush.msra.mxu1 %v6570_v47  ;;  %v6581_v13 = vsub.f32 %v14122_v20, %v16627_v17  ;;  %v17633_v24 = vld [vmem:[#allocation152_spill] sm:$0xff]  ;;  %v6480_v47 = vld [vmem:[%s16426_s5 + $0xd8] sm:$0xff] }
 0x4c9   :  { %17632 = vst [vmem:[#allocation94_spill] sm:$0xff] %v14147_v31  ;;  %6757 = vmatpush.msra.mxu3 %v14147_v31  ;;  %6510 = vmatpush.msra.mxu0 %v14147_v31  ;;  %v4885_v16 = vadd.f32 %v17636_v1, %v4768_v4 }
 0x4ca   :  { %6690 = vmatpush.msra.mxu2 %v14140_v11  ;;  %v6582_v45 = vand.u32 4294901760, %v6581_v13  ;;  %v5133_v54 = vadd.f32 %v13804_v36, %v5084_v50  ;;  %v6477_v13 = vld [vmem:[%s16426_s5 + $0xc0] sm:$0xff]  ;;  %v17640_v50 = vld [vmem:[#allocation148_spill] sm:$0xff] }
 0x4cb   :  { %v14196_v4 = vand.u32 4294901760, %v6477_v13 }
 0x4cd   :  { %17639 = vst [vmem:[#allocation104_spill] sm:$0xff] %v14196_v4 }
 0x4d1   :  { %v14097_v27 = vpop.f32.mrf.mxu2 }
 0x4d2   :  { %17619 = vst [vmem:[#allocation114_spill] sm:$0xff] %v14097_v27  ;;  %v14099_v19 = vpop.f32.mrf.mxu3  ;;  %v17628_v27 = vld [vmem:[#allocation82_spill] sm:$0xff] }
 0x4d3   :  { %17620 = vst [vmem:[#allocation95_spill] sm:$0xff] %v14099_v19  ;;  %v4881_v6 = vadd.f32 %v17628_v27, %v4760_v56  ;;  %v6575_v19 = vsub.f32 %v14103_v35, %v16626_v15  ;;  %v17629_v56 = vld [vmem:[#allocation38_spill] sm:$0xff]  ;;  %v6483_v15 = vld [vmem:[%s16426_s5 + $0xf0] sm:$0xff] }
 0x4d4   :  { %v4711_v44 = vadd.f32 %v17629_v56, %v4662_v59  ;;  %v17630_v27 = vld [vmem:[#allocation150_spill] sm:$0xff]  ;;  %v16631_v59 = vand.u32 4294901760, %v14140_v11 }
 0x4d5   :  { %v4948_v29 = vadd.f32 %v17630_v27, %v4881_v6  ;;  %v6576_v38 = vand.u32 4294901760, %v6575_v19  ;;  %v14158_v6 = vand.u32 4294901760, %v6483_v15  ;;  %v14162_v27 = vsub.f32 %v6486_v62, %v14147_v31  ;;  %v14169_v19 = vpop.f32.mrf.mxu0  ;;  %v14201_v31 = vpop.f32.mrf.mxu1 }
 0x4d6   :  { %v6587_v17 = vsub.f32 %v14140_v11, %v16631_v59  ;;  %v14177_v62 = vand.u32 4294901760, %v6480_v47 }
 0x4d7   :  { %v5003_v56 = vadd.f32 %v17633_v24, %v4948_v29  ;;  %6577 = vmatpush.msra.mxu1 %v6576_v38  ;;  %v14175_v29 = vsub.f32 %v6483_v15, %v14158_v6  ;;  %v17635_v24 = vld [vmem:[#allocation59_spill] sm:$0xff]  ;;  %6693 = vmatpush.msra.mxu2 %v14162_v27 }
 0x4d8   :  { %17634 = vst [vmem:[#allocation87_spill] sm:$0xff] %v14177_v62  ;;  %v4776_v12 = vadd.f32 %v17635_v24, %v4711_v44  ;;  %6759 = vmatpush.msra.mxu3 %v14158_v6  ;;  %v6588_v44 = vand.u32 4294901760, %v6587_v17  ;;  %v14194_v36 = vsub.f32 %v6480_v47, %v14177_v62  ;;  %6512 = vmatpush.msra.mxu0 %v14158_v6  ;;  %v6474_v17 = vld [vmem:[%s16426_s5 + $0xa8] sm:$0xff] }
 0x4d9   :  { %6583 = vmatpush.msra.mxu1 %v6582_v45  ;;  %v16632_v1 = vand.u32 4294901760, %v14175_v29  ;;  %v4953_v24 = vadd.f32 %v17640_v50, %v4885_v16  ;;  %v5088_v59 = vadd.f32 %v13821_v26, %v5003_v56  ;;  %6696 = vmatpush.msra.mxu2 %v14175_v29  ;;  %v14216_v56 = vsub.f32 %v6477_v13, %v14196_v4 }
 0x4da   :  { %6761 = vmatpush.msra.mxu3 %v14177_v62  ;;  %v16634_v26 = vand.u32 4294901760, %v14194_v36  ;;  %v14218_v47 = vand.u32 4294901760, %v6474_v17  ;;  %6514 = vmatpush.msra.mxu0 %v14177_v62  ;;  %v5186_v50 = vadd.f32 %v13832_v30, %v5133_v54  ;;  %v17642_v30 = vld [vmem:[#allocation98_spill] sm:$0xff] }
 0x4db   :  { %v14188_v15 = vpop.f32.mrf.mxu2  ;;  %6589 = vmatpush.msra.mxu1 %v6588_v44  ;;  %v6599_v16 = vsub.f32 %v14175_v29, %v16632_v1  ;;  %6699 = vmatpush.msra.mxu2 %v14194_v36  ;;  %v6471_v44 = vld [vmem:[%s16426_s5 + $0x90] sm:$0xff]  ;;  %v4889_v54 = vadd.f32 %v17642_v30, %v4776_v12 }
 0x4dc   :  { %17637 = vst [vmem:[#allocation100_spill] sm:$0xff] %v14188_v15  ;;  %v14190_v38 = vpop.f32.mrf.mxu3  ;;  %v17641_v15 = vand.u32 4294901760, %v14162_v27  ;;  %6763 = vmatpush.msra.mxu3 %v14196_v4  ;;  %v6605_v13 = vsub.f32 %v14194_v36, %v16634_v26  ;;  %6516 = vmatpush.msra.mxu0 %v14196_v4  ;;  %v6468_v26 = vld [vmem:[%s16426_s5 + $0x78] sm:$0xff] }
 0x4dd   :  { %17638 = vst [vmem:[#allocation99_spill] sm:$0xff] %v14190_v38  ;;  %v6600_v1 = vand.u32 4294901760, %v6599_v16  ;;  %6702 = vmatpush.msra.mxu2 %v14216_v56  ;;  %v14240_v16 = vand.u32 4294901760, %v6471_v44  ;;  %v14249_v30 = vand.u32 4294901760, %v6468_v26 }
 0x4de   :  { %v6593_v45 = vsub.f32 %v14162_v27, %v17641_v15  ;;  %v5009_v15 = vadd.f32 %v13802_v60, %v4953_v24  ;;  %v14233_v60 = vsub.f32 %v6474_v17, %v14218_v47  ;;  %v5137_v24 = vadd.f32 %v13834_v8, %v5088_v59  ;;  %6765 = vmatpush.msra.mxu3 %v14218_v47 }
 0x4df   :  { %17643 = vst [vmem:[#allocation72_spill] sm:$0xff] %v14240_v16  ;;  %v6606_v62 = vand.u32 4294901760, %v6605_v13  ;;  %v17644_v17 = vand.u32 4294901760, %v14216_v56  ;;  %6518 = vmatpush.msra.mxu0 %v14218_v47  ;;  %v4958_v8 = vadd.f32 %v13800_v48, %v4889_v54  ;;  %v14256_v59 = vsub.f32 %v6471_v44, %v14240_v16 }
 0x4e0   :  { %v6594_v38 = vand.u32 4294901760, %v6593_v45  ;;  %v5311_v45 = vadd.f32 %v13860_v58, %v5186_v50  ;;  %v16636_v12 = vand.u32 4294901760, %v14233_v60  ;;  %17645 = vst [vmem:[#allocation102_spill] sm:$0xff] %v14249_v30  ;;  %v5092_v58 = vadd.f32 %v13850_v28, %v5009_v15  ;;  %6705 = vmatpush.msra.mxu2 %v14233_v60  ;;  %v14262_v50 = vpop.f32.mrf.mxu0  ;;  %6767 = vmatpush.msra.mxu3 %v14240_v16 }
 0x4e1   :  { %v6611_v4 = vsub.f32 %v14216_v56, %v17644_v17  ;;  %v14268_v48 = vsub.f32 %v6468_v26, %v14249_v30  ;;  %6520 = vmatpush.msra.mxu0 %v14240_v16  ;;  %v5194_v15 = vadd.f32 %v13858_v41, %v5137_v24  ;;  %v6462_v26 = vld [vmem:[%s16426_s5 + $0x48] sm:$0xff] }
 0x4e2   :  { %6595 = vmatpush.msra.mxu1 %v6594_v38  ;;  %v6465_v38 = vld [vmem:[%s16426_s5 + $0x60] sm:$0xff]  ;;  %v6617_v17 = vsub.f32 %v14233_v60, %v16636_v12  ;;  %v5377_v44 = vadd.f32 %v13916_v39, %v5311_v45  ;;  %6708 = vmatpush.msra.mxu2 %v14256_v59  ;;  %v14290_v39 = vand.u32 4294901760, %v6462_v26  ;;  %v14296_v45 = vpop.f32.mrf.mxu1 }
 0x4e3   :  { %v6612_v13 = vand.u32 4294901760, %v6611_v4  ;;  %v14270_v28 = vand.u32 4294901760, %v6465_v38  ;;  %v16638_v4 = vand.u32 4294901760, %v14256_v59  ;;  %6769 = vmatpush.msra.mxu3 %v14249_v30  ;;  %6522 = vmatpush.msra.mxu0 %v14249_v30  ;;  %v5315_v24 = vadd.f32 %v13894_v43, %v5194_v15 }
 0x4e4   :  { %6601 = vmatpush.msra.mxu1 %v6600_v1  ;;  %v5015_v1 = vadd.f32 %v13830_v33, %v4958_v8  ;;  %v6618_v16 = vand.u32 4294901760, %v6617_v17  ;;  %v16639_v33 = vand.u32 4294901760, %v14268_v48  ;;  %6711 = vmatpush.msra.mxu2 %v14268_v48  ;;  %v14310_v43 = vsub.f32 %v6462_v26, %v14290_v39  ;;  %v6456_v26 = vld [vmem:[%s16426_s5 + $0x18] sm:$0xff] }
 0x4e5   :  { %17646 = vst [vmem:[#allocation103_spill] sm:$0xff] %v14270_v28  ;;  %v14282_v54 = vpop.f32.mrf.mxu3  ;;  %v14288_v41 = vsub.f32 %v6465_v38, %v14270_v28  ;;  %v6623_v8 = vsub.f32 %v14256_v59, %v16638_v4  ;;  %v6459_v38 = vld [vmem:[%s16426_s5 + $0x30] sm:$0xff]  ;;  %6771 = vmatpush.msra.mxu3 %v14270_v28  ;;  %6524 = vmatpush.msra.mxu0 %v14270_v28 }
 0x4e6   :  { %6607 = vmatpush.msra.mxu1 %v6606_v62  ;;  %17647 = vst [vmem:[#allocation112_spill] sm:$0xff] %v14282_v54  ;;  %v14284_v12 = vpop.f32.mrf.mxu2  ;;  %v5141_v62 = vadd.f32 %v13863_v49, %v5092_v58  ;;  %v6629_v17 = vsub.f32 %v14268_v48, %v16639_v33  ;;  %v14312_v58 = vand.u32 4294901760, %v6459_v38  ;;  %v5431_v4 = vadd.f32 %v13929_v10, %v5377_v44  ;;  %v6453_v44 = vld [vmem:[%s16426_s5] sm:$0xff] }
 0x4e7   :  { %v16654_v49 = vand.u32 4294901760, %v14288_v41  ;;  %v6624_v54 = vand.u32 4294901760, %v6623_v8  ;;  %6714 = vmatpush.msra.mxu2 %v14288_v41  ;;  %v16650_v28 = vand.u32 4294901760, %v14310_v43  ;;  %6773 = vmatpush.msra.mxu3 %v14290_v39 }
 0x4e8   :  { %6613 = vmatpush.msra.mxu1 %v6612_v13  ;;  %v5096_v13 = vadd.f32 %v13881_v22, %v5015_v1  ;;  %v5202_v15 = vadd.f32 %v13892_v37, %v5141_v62  ;;  %v6630_v33 = vand.u32 4294901760, %v6629_v17  ;;  %v14328_v22 = vsub.f32 %v6459_v38, %v14312_v58  ;;  %6526 = vmatpush.msra.mxu0 %v14290_v39 }
 0x4e9   :  { %v6635_v30 = vsub.f32 %v14288_v41, %v16654_v49  ;;  %v5382_v37 = vadd.f32 %v13941_v34, %v5315_v24  ;;  %6717 = vmatpush.msra.mxu2 %v14310_v43  ;;  %v14336_v1 = vand.u32 4294901760, %v6456_v26  ;;  %v6641_v8 = vsub.f32 %v14310_v43, %v16650_v28  ;;  %6775 = vmatpush.msra.mxu3 %v14312_v58 }
 0x4ea   :  { %6619 = vmatpush.msra.mxu1 %v6618_v16  ;;  %v5319_v10 = vadd.f32 %v13924_v2, %v5202_v15  ;;  %v5518_v16 = vadd.f32 %v13950_v46, %v5431_v4  ;;  %v16648_v34 = vand.u32 4294901760, %v14328_v22  ;;  %v14345_v24 = vand.u32 4294901760, %v6453_v44  ;;  %6528 = vmatpush.msra.mxu0 %v14312_v58  ;;  %v14355_v4 = vpop.f32.mrf.mxu0 }
 0x4eb   :  { %v6636_v62 = vand.u32 4294901760, %v6635_v30  ;;  %v14351_v46 = vsub.f32 %v6456_v26, %v14336_v1  ;;  %6720 = vmatpush.msra.mxu2 %v14328_v22  ;;  %v5145_v30 = vadd.f32 %v13899_v57, %v5096_v13  ;;  %v6642_v38 = vand.u32 4294901760, %v6641_v8  ;;  %6777 = vmatpush.msra.mxu3 %v14336_v1 }
 0x4ec   :  { %6625 = vmatpush.msra.mxu1 %v6624_v54  ;;  %v5567_v2 = vadd.f32 %v13973_v9, %v5518_v16  ;;  %v6647_v17 = vsub.f32 %v14328_v22, %v16648_v34  ;;  %v14363_v15 = vsub.f32 %v6453_v44, %v14345_v24  ;;  %6530 = vmatpush.msra.mxu0 %v14336_v1 }
 0x4ed   :  { %v5437_v9 = vadd.f32 %v13954_v32, %v5382_v37  ;;  %v16647_v57 = vand.u32 4294901760, %v14351_v46  ;;  %6723 = vmatpush.msra.mxu2 %v14351_v46  ;;  %v5210_v13 = vadd.f32 %v13922_v25, %v5145_v30  ;;  %v5387_v26 = vadd.f32 %v13966_v7, %v5319_v10  ;;  %6779 = vmatpush.msra.mxu3 %v14345_v24  ;;  %v6499_v7 = vld [vmem:[%s16426_s5 + $0x170] sm:$0xff] }
 0x4ee   :  { %6631 = vmatpush.msra.mxu1 %v6630_v33  ;;  %v14357_v54 = vpop.f32.mrf.mxu3  ;;  %v6648_v16 = vand.u32 4294901760, %v6647_v17  ;;  %v16642_v44 = vand.u32 4294901760, %v14363_v15  ;;  %6532 = vmatpush.msra.mxu0 %v14345_v24  ;;  %v5620_v37 = vadd.f32 %v14010_v61, %v5567_v2  ;;  %v17648_v61 = vand.u32 4294901760, %v14085_v40 }
 0x4ef   :  { %v14368_v33 = vpop.f32.mrf.mxu2  ;;  %v5522_v32 = vadd.f32 %v13971_v63, %v5437_v9  ;;  %v6653_v25 = vsub.f32 %v14351_v46, %v16647_v57  ;;  %6726 = vmatpush.msra.mxu2 %v14363_v15  ;;  %v14391_v63 = vand.u32 4294901760, %v6499_v7  ;;  %v5323_v8 = vadd.f32 %v13948_v23, %v5210_v13  ;;  %v6493_v13 = vld [vmem:[%s16426_s5 + $0x140] sm:$0xff] }
 0x4f0   :  { %6637 = vmatpush.msra.mxu1 %v6636_v62  ;;  %v14379_v62 = vpop.f32.mrf.mxu1  ;;  %v6659_v10 = vsub.f32 %v14363_v15, %v16642_v44  ;;  %6808 = vmatpush.msrb.mxu0 %v17648_v61  ;;  %v5443_v17 = vadd.f32 %v13978_v52, %v5387_v26  ;;  %v17649_v23 = vand.u32 4294901760, %v14103_v35  ;;  %v17650_v35 = vand.u32 4294901760, %v14122_v20 }
 0x4f1   :  { %v5571_v2 = vadd.f32 %v13995_v18, %v5522_v32  ;;  %v6654_v30 = vand.u32 4294901760, %v6653_v25  ;;  %6936 = vmatpush.msrb.mxu2 %v14391_v63  ;;  %v14403_v44 = vsub.f32 %v6499_v7, %v14391_v63  ;;  %v5745_v18 = vadd.f32 %v14021_v42, %v5620_v37 }
 0x4f2   :  { %6643 = vmatpush.msra.mxu1 %v6642_v38  ;;  %v6496_v38 = vld [vmem:[%s16426_s5 + $0x158] sm:$0xff]  ;;  %v6660_v9 = vand.u32 4294901760, %v6659_v10  ;;  %6812 = vmatpush.msrb.mxu0 %v17649_v23  ;;  %v5526_v52 = vadd.f32 %v13993_v55, %v5443_v17  ;;  %v5392_v42 = vadd.f32 %v13989_v14, %v5323_v8  ;;  %v6490_v10 = vld [vmem:[%s16426_s5 + $0x128] sm:$0xff]  ;;  %v17653_v23 = vld [vmem:[#allocation54_spill] sm:$0xff] }
 0x4f3   :  { %v14405_v40 = vand.u32 4294901760, %v6496_v38  ;;  %v16645_v26 = vand.u32 4294901760, %v14403_v44  ;;  %v5628_v37 = vadd.f32 %v14031_v0, %v5571_v2  ;;  %v5811_v25 = vadd.f32 %v14038_v51, %v5745_v18  ;;  %v17652_v17 = vld [vmem:[#allocation109_spill] sm:$0xff] }
 0x4f4   :  { %6649 = vmatpush.msra.mxu1 %v6648_v16  ;;  %v14416_v16 = vand.u32 4294901760, %v6493_v13  ;;  %6816 = vmatpush.msrb.mxu0 %v17650_v35  ;;  %v5575_v61 = vadd.f32 %v14017_v3, %v5526_v52  ;;  %v14443_v20 = vand.u32 4294901760, %v6490_v10  ;;  %v6487_v3 = vld [vmem:[%s16426_s5 + $0x110] sm:$0xff]  ;;  %v17654_v35 = vand.u32 4294901760, %v14162_v27 }
 0x4f5   :  { %6938 = vmatpush.msrb.mxu2 %v14405_v40  ;;  %v14419_v32 = vsub.f32 %v6496_v38, %v14405_v40  ;;  %v7003_v14 = vsub.f32 %v14403_v44, %v16645_v26  ;;  %v5865_v51 = vadd.f32 %v14059_v5, %v5811_v25  ;;  %v14457_v5 = vand.u32 4294901760, %v6487_v3  ;;  %v17655_v25 = vld [vmem:[#allocation110_spill] sm:$0xff] }
 0x4f6   :  { %6655 = vmatpush.msra.mxu1 %v6654_v30  ;;  %v14434_v30 = vpop.f32.mrf.mxu0  ;;  %v14446_v8 = vsub.f32 %v6493_v13, %v14416_v16  ;;  %v5749_v18 = vadd.f32 %v17653_v23, %v5628_v37  ;;  %v14466_v52 = vsub.f32 %v6490_v10, %v14443_v20  ;;  %v17657_v10 = vld [vmem:[#allocation86_spill] sm:$0xff] }
 0x4f7   :  { %v14426_v7 = vpop.f32.mrf.mxu2  ;;  %v14428_v55 = vpop.f32.mrf.mxu3  ;;  %6940 = vmatpush.msrb.mxu2 %v14416_v16  ;;  %v16643_v0 = vand.u32 4294901760, %v14419_v32  ;;  %v7004_v2 = vand.u32 4294901760, %v7003_v14  ;;  %v17656_v14 = vld [vmem:[#allocation80_spill] sm:$0xff] }
 0x4f8   :  { %6661 = vmatpush.msra.mxu1 %v6660_v9  ;;  %v5449_v9 = vadd.f32 %v17652_v17, %v5392_v42  ;;  %v14461_v13 = vpop.f32.mrf.mxu1  ;;  %v5636_v42 = vadd.f32 %v17655_v25, %v5575_v61  ;;  %v14478_v17 = vsub.f32 %v6487_v3, %v14457_v5  ;;  %v16646_v61 = vand.u32 4294901760, %v14466_v52  ;;  %v17659_v3 = vld [vmem:[#allocation68_spill] sm:$0xff] }
 0x4f9   :  { %v7009_v38 = vsub.f32 %v14419_v32, %v16643_v0  ;;  %6942 = vmatpush.msrb.mxu2 %v14443_v20  ;;  %7005 = vmatpush.msrb.mxu3 %v7004_v2  ;;  %v5952_v0 = vadd.f32 %v14169_v19, %v5865_v51  ;;  %v6481_v2 = vld [vmem:[%s16426_s5 + $0xe0] sm:$0xff] }
 0x4fa   :  { %6887 = vmatpush.msrb.mxu1 %v14074_v21  ;;  %v17651_v21 = vand.u32 4294901760, %v14140_v11  ;;  %v16644_v11 = vand.u32 4294901760, %v14446_v8  ;;  %v5530_v23 = vadd.f32 %v17657_v10, %v5449_v9  ;;  %v16649_v19 = vand.u32 4294901760, %v14478_v17 }
 0x4fb   :  { %v7010_v37 = vand.u32 4294901760, %v7009_v38  ;;  %6944 = vmatpush.msrb.mxu2 %v14457_v5  ;;  %v17658_v38 = vand.u32 4294901760, %v14175_v29  ;;  %v14494_v51 = vand.u32 4294901760, %v6481_v2  ;;  %v7021_v29 = vsub.f32 %v14466_v52, %v16646_v61  ;;  %v17665_v61 = vld [vmem:[#allocation95_spill] sm:$0xff] }
 0x4fc   :  { %6820 = vmatpush.msrb.mxu0 %v17651_v21  ;;  %6889 = vmatpush.msrb.mxu1 %v14087_v53  ;;  %v6484_v53 = vld [vmem:[%s16426_s5 + $0xf8] sm:$0xff]  ;;  %v7015_v27 = vsub.f32 %v14446_v8, %v16644_v11  ;;  %v6001_v34 = vadd.f32 %v14201_v31, %v5952_v0  ;;  %v17666_v0 = vand.u32 4294901760, %v14216_v56 }
 0x4fd   :  { %v14475_v21 = vand.u32 4294901760, %v6484_v53  ;;  %7011 = vmatpush.msrb.mxu3 %v7010_v37  ;;  %v6478_v37 = vld [vmem:[%s16426_s5 + $0xc8] sm:$0xff] }
 0x4fe   :  { %6824 = vmatpush.msrb.mxu0 %v17654_v35  ;;  %6891 = vmatpush.msrb.mxu1 %v17656_v14  ;;  %v17660_v35 = vld [vmem:[#allocation55_spill] sm:$0xff]  ;;  %v17661_v14 = vld [vmem:[#allocation101_spill] sm:$0xff]  ;;  %v7016_v26 = vand.u32 4294901760, %v7015_v27  ;;  %v7027_v27 = vsub.f32 %v14478_v17, %v16649_v19  ;;  %v6054_v28 = vadd.f32 %v14284_v12, %v6001_v34  ;;  %v17670_v12 = vand.u32 4294901760, %v14233_v60 }
 0x4ff   :  { %v14497_v9 = vsub.f32 %v6484_v53, %v14475_v21  ;;  %v5579_v25 = vadd.f32 %v17660_v35, %v5530_v23  ;;  %v5816_v10 = vadd.f32 %v17661_v14, %v5749_v18  ;;  %v14501_v11 = vpop.f32.mrf.mxu2  ;;  %6946 = vmatpush.msrb.mxu2 %v14475_v21  ;;  %v17662_v53 = vand.u32 4294901760, %v14194_v36  ;;  %v17664_v18 = vld [vmem:[#allocation94_spill] sm:$0xff] }
 0x500   :  { %6828 = vmatpush.msrb.mxu0 %v17658_v38  ;;  %6893 = vmatpush.msrb.mxu1 %v17659_v3  ;;  %v17663_v38 = vld [vmem:[#allocation69_spill] sm:$0xff]  ;;  %v14513_v3 = vpop.f32.mrf.mxu3  ;;  %v14520_v14 = vand.u32 4294901760, %v6478_v37  ;;  %v7022_v36 = vand.u32 4294901760, %v7021_v29  ;;  %v17668_v29 = vld [vmem:[#allocation114_spill] sm:$0xff] }
 0x501   :  { %v5753_v23 = vadd.f32 %v17663_v38, %v5636_v42  ;;  %v16651_v35 = vand.u32 4294901760, %v14497_v9  ;;  %v5871_v57 = vadd.f32 %v17665_v61, %v5816_v10  ;;  %7017 = vmatpush.msrb.mxu3 %v7016_v26  ;;  %6948 = vmatpush.msrb.mxu2 %v14494_v51  ;;  %v14526_v42 = vsub.f32 %v6481_v2, %v14494_v51  ;;  %v6244_v38 = vpop.f32.mrf.mxu0  ;;  %v17667_v2 = vld [vmem:[#allocation63_spill] sm:$0xff] }
 0x502   :  { %6832 = vmatpush.msrb.mxu0 %v17662_v53  ;;  %6895 = vmatpush.msrb.mxu1 %v17664_v18  ;;  %v6475_v53 = vld [vmem:[%s16426_s5 + $0xb0] sm:$0xff]  ;;  %v7028_v18 = vand.u32 4294901760, %v7027_v27  ;;  %v14538_v26 = vsub.f32 %v6478_v37, %v14520_v14  ;;  %v5644_v10 = vadd.f32 %v17667_v2, %v5579_v25  ;;  %v6472_v27 = vld [vmem:[%s16426_s5 + $0x98] sm:$0xff]  ;;  %v17669_v37 = vld [vmem:[#allocation87_spill] sm:$0xff] }
 0x503   :  { %v7033_v61 = vsub.f32 %v14497_v9, %v16651_v35  ;;  %v14535_v31 = vand.u32 4294901760, %v6475_v53  ;;  %v5821_v19 = vadd.f32 %v17668_v29, %v5753_v23  ;;  %7023 = vmatpush.msrb.mxu3 %v7022_v36  ;;  %6950 = vmatpush.msrb.mxu2 %v14520_v14  ;;  %v5956_v34 = vadd.f32 %v14262_v50, %v5871_v57  ;;  %v6298_v23 = vpop.f32.mrf.mxu1  ;;  %v17671_v2 = vld [vmem:[#allocation104_spill] sm:$0xff] }
 0x504   :  { %6897 = vmatpush.msrb.mxu1 %v14158_v6  ;;  %6836 = vmatpush.msrb.mxu0 %v17666_v0  ;;  %v16653_v6 = vand.u32 4294901760, %v14526_v42  ;;  %v16652_v56 = vand.u32 4294901760, %v14538_v26  ;;  %v14552_v0 = vand.u32 4294901760, %v6472_v27  ;;  %v6179_v36 = vadd.f32 %v14357_v54, %v6054_v28 }
 0x505   :  { %v7034_v35 = vand.u32 4294901760, %v7033_v61  ;;  %v14555_v25 = vsub.f32 %v6475_v53, %v14535_v31  ;;  %7029 = vmatpush.msrb.mxu3 %v7028_v18  ;;  %6952 = vmatpush.msrb.mxu2 %v14535_v31  ;;  %v6469_v53 = vld [vmem:[%s16426_s5 + $0x80] sm:$0xff]  ;;  %v17672_v57 = vand.u32 4294901760, %v14256_v59 }
 0x506   :  { %6899 = vmatpush.msrb.mxu1 %v17669_v37  ;;  %6840 = vmatpush.msrb.mxu0 %v17670_v12  ;;  %v7039_v61 = vsub.f32 %v14526_v42, %v16653_v6  ;;  %v7045_v60 = vsub.f32 %v14538_v26, %v16652_v56  ;;  %v14573_v28 = vand.u32 4294901760, %v6469_v53  ;;  %v14576_v54 = vsub.f32 %v6472_v27, %v14552_v0  ;;  %v17673_v18 = vld [vmem:[#allocation90_spill] sm:$0xff]  ;;  %v17674_v37 = vld [vmem:[#allocation99_spill] sm:$0xff] }
 0x507   :  { %v16658_v50 = vand.u32 4294901760, %v14555_v25  ;;  %v5757_v29 = vadd.f32 %v17673_v18, %v5644_v10  ;;  %v5877_v12 = vadd.f32 %v17674_v37, %v5821_v19  ;;  %7035 = vmatpush.msrb.mxu3 %v7034_v35  ;;  %6954 = vmatpush.msrb.mxu2 %v14552_v0  ;;  %v6466_v56 = vld [vmem:[%s16426_s5 + $0x68] sm:$0xff]  ;;  %v17675_v10 = vand.u32 4294901760, %v14268_v48  ;;  %v17676_v18 = vld [vmem:[#allocation72_spill] sm:$0xff] }
 0x508   :  { %6901 = vmatpush.msrb.mxu1 %v17671_v2  ;;  %6844 = vmatpush.msrb.mxu0 %v17672_v57  ;;  %v7040_v2 = vand.u32 4294901760, %v7039_v61  ;;  %v14586_v6 = vpop.f32.mrf.mxu3  ;;  %v6385_v49 = vpop.f32.mrf.mxu2  ;;  %v7046_v27 = vand.u32 4294901760, %v7045_v60  ;;  %v16655_v19 = vand.u32 4294901760, %v14576_v54  ;;  %v14593_v35 = vand.u32 4294901760, %v6466_v56  ;;  %v6463_v60 = vld [vmem:[%s16426_s5 + $0x50] sm:$0xff] }
 0x509   :  { %v7051_v59 = vsub.f32 %v14555_v25, %v16658_v50  ;;  %v6005_v61 = vadd.f32 %v14296_v45, %v5956_v34  ;;  %v6245_v57 = vadd.f32 %v6244_v38, %v6179_v36  ;;  %6956 = vmatpush.msrb.mxu2 %v14573_v28  ;;  %v17677_v38 = vand.u32 4294901760, %v14288_v41  ;;  %v17678_v34 = vld [vmem:[#allocation100_spill] sm:$0xff] }
 0x50a   :  { %6903 = vmatpush.msrb.mxu1 %v14218_v47  ;;  %6848 = vmatpush.msrb.mxu0 %v17675_v10  ;;  %v14600_v47 = vsub.f32 %v6469_v53, %v14573_v28  ;;  %v7057_v48 = vsub.f32 %v14576_v54, %v16655_v19  ;;  %v14609_v10 = vand.u32 4294901760, %v6463_v60  ;;  %v14612_v45 = vsub.f32 %v6466_v56, %v14593_v35  ;;  %v6249_v56 = vpop.f32.mrf.mxu0  ;;  %v17679_v19 = vld [vmem:[#allocation102_spill] sm:$0xff] }
 0x50b   :  { %7041 = vmatpush.msrb.mxu3 %v7040_v2  ;;  %v7052_v37 = vand.u32 4294901760, %v7051_v59  ;;  %v5826_v36 = vadd.f32 %v17678_v34, %v5757_v29  ;;  %v5960_v53 = vadd.f32 %v14355_v4, %v5877_v12  ;;  %v6062_v2 = vadd.f32 %v14368_v33, %v6005_v61  ;;  %6958 = vmatpush.msrb.mxu2 %v14593_v35 }
 0x50c   :  { %6905 = vmatpush.msrb.mxu1 %v17676_v18  ;;  %6852 = vmatpush.msrb.mxu0 %v17677_v38  ;;  %v16656_v59 = vand.u32 4294901760, %v14600_v47  ;;  %v6460_v18 = vld [vmem:[%s16426_s5 + $0x38] sm:$0xff]  ;;  %v7058_v41 = vand.u32 4294901760, %v7057_v48  ;;  %v16657_v38 = vand.u32 4294901760, %v14612_v45  ;;  %v14629_v4 = vsub.f32 %v6463_v60, %v14609_v10  ;;  %v17681_v48 = vld [vmem:[#allocation103_spill] sm:$0xff] }
 0x50d   :  { %7047 = vmatpush.msrb.mxu3 %v7046_v27  ;;  %v14626_v29 = vand.u32 4294901760, %v6460_v18  ;;  %v17680_v33 = vand.u32 4294901760, %v14310_v43  ;;  %v6183_v12 = vadd.f32 %v14428_v55, %v6062_v2  ;;  %v6299_v27 = vadd.f32 %v6298_v23, %v6245_v57  ;;  %6960 = vmatpush.msrb.mxu2 %v14609_v10  ;;  %v6304_v2 = vpop.f32.mrf.mxu1 }
 0x50e   :  { %6907 = vmatpush.msrb.mxu1 %v17679_v19  ;;  %v7063_v61 = vsub.f32 %v14600_v47, %v16656_v59  ;;  %v6457_v19 = vld [vmem:[%s16426_s5 + $0x20] sm:$0xff]  ;;  %v7069_v43 = vsub.f32 %v14612_v45, %v16657_v38  ;;  %v7074_v55 = vand.u32 4294901760, %v14629_v4  ;;  %v17682_v60 = vand.u32 4294901760, %v14328_v22  ;;  %v6454_v38 = vld [vmem:[%s16426_s5 + $0x8] sm:$0xff] }
 0x50f   :  { %6856 = vmatpush.msrb.mxu0 %v17680_v33  ;;  %7053 = vmatpush.msrb.mxu3 %v7052_v37  ;;  %v14646_v23 = vand.u32 4294901760, %v6457_v19  ;;  %v14649_v57 = vsub.f32 %v6460_v18, %v14626_v29  ;;  %v17683_v37 = vld [vmem:[#allocation112_spill] sm:$0xff]  ;;  %v6009_v33 = vadd.f32 %v14379_v62, %v5960_v53  ;;  %v17684_v53 = vand.u32 4294901760, %v14351_v46 }
 0x510   :  { %6909 = vmatpush.msrb.mxu1 %v17681_v48  ;;  %v5883_v34 = vadd.f32 %v17683_v37, %v5826_v36  ;;  %v6386_v48 = vadd.f32 %v6385_v49, %v6299_v27  ;;  %v7064_v59 = vand.u32 4294901760, %v7063_v61  ;;  %6962 = vmatpush.msrb.mxu2 %v14626_v29  ;;  %v6389_v50 = vpop.f32.mrf.mxu2  ;;  %v6434_v18 = vpop.f32.mrf.mxu3  ;;  %v7070_v22 = vand.u32 4294901760, %v7069_v43 }
 0x511   :  { %6860 = vmatpush.msrb.mxu0 %v17682_v60  ;;  %7059 = vmatpush.msrb.mxu3 %v7058_v41  ;;  %v7075_v36 = vsub.f32 %v14629_v4, %v7074_v55  ;;  %v7080_v62 = vand.u32 4294901760, %v14649_v57  ;;  %v14664_v49 = vand.u32 4294901760, %v6454_v38  ;;  %v6250_v41 = vadd.f32 %v6249_v56, %v6183_v12 }
 0x512   :  { %6911 = vmatpush.msrb.mxu1 %v14290_v39  ;;  %v6435_v27 = vadd.f32 %v6434_v18, %v6386_v48  ;;  %6964 = vmatpush.msrb.mxu2 %v14646_v23  ;;  %v14670_v61 = vsub.f32 %v6457_v19, %v14646_v23  ;;  %v17685_v46 = vand.u32 4294901760, %v14363_v15 }
 0x513   :  { %6864 = vmatpush.msrb.mxu0 %v17684_v53  ;;  %7065 = vmatpush.msrb.mxu3 %v7064_v59  ;;  %v7076_v39 = vand.u32 4294901760, %v7075_v36  ;;  %v7081_v43 = vsub.f32 %v14649_v57, %v7080_v62  ;;  %v14677_v60 = vsub.f32 %v6454_v38, %v14664_v49  ;;  %v6070_v59 = vadd.f32 %v14426_v7, %v6009_v33  ;;  %v6254_v33 = vpop.f32.mrf.mxu0 }
 0x514   :  { %6913 = vmatpush.msrb.mxu1 %v14312_v58  ;;  %v6449_v56 = vmax.f32 %v6435_v27, 0.0  ;;  %6966 = vmatpush.msrb.mxu2 %v14664_v49  ;;  %v7086_v12 = vand.u32 4294901760, %v14670_v61  ;;  %v5964_v58 = vadd.f32 %v14434_v30, %v5883_v34  ;;  %v6305_v48 = vadd.f32 %v6304_v2, %v6250_v41 }
 0x515   :  { %6868 = vmatpush.msrb.mxu0 %v17685_v46  ;;  %7071 = vmatpush.msrb.mxu3 %v7070_v22  ;;  %v7082_v19 = vand.u32 4294901760, %v7081_v43  ;;  %v7092_v37 = vand.u32 4294901760, %v14677_v60  ;;  %v6187_v38 = vadd.f32 %v14513_v3, %v6070_v59  ;;  %v17686_v27 = vand.u32 4294901760, %v14403_v44 }
 0x516   :  { %6915 = vmatpush.msrb.mxu1 %v14336_v1  ;;  %v14688_v15 = vand.u32 4294901760, %v6449_v56  ;;  %v7087_v7 = vsub.f32 %v14670_v61, %v7086_v12  ;;  %v6390_v30 = vadd.f32 %v6389_v50, %v6305_v48  ;;  %v6013_v22 = vadd.f32 %v14461_v13, %v5964_v58  ;;  %v6310_v50 = vpop.f32.mrf.mxu1 }
 0x517   :  { %7077 = vmatpush.msrb.mxu3 %v7076_v39  ;;  %v7093_v1 = vsub.f32 %v14677_v60, %v7092_v37  ;;  %v6255_v36 = vadd.f32 %v6254_v33, %v6187_v38 }
 0x518   :  { %6917 = vmatpush.msrb.mxu1 %v14345_v24  ;;  %v14698_v34 = vsub.f32 %v6449_v56, %v14688_v15  ;;  %v7088_v3 = vand.u32 4294901760, %v7087_v7  ;;  %v6438_v2 = vpop.f32.mrf.mxu3  ;;  %v6393_v41 = vpop.f32.mrf.mxu2  ;;  %v6078_v39 = vadd.f32 %v14501_v11, %v6013_v22  ;;  %v17688_v7 = vand.u32 4294901760, %v14446_v8 }
 0x519   :  { %6663 = vmatmul.f32.vlgmr.msra.gmra.mxu1 %v14688_v15  ;;  %7083 = vmatpush.msrb.mxu3 %v7082_v19  ;;  %v7094_v18 = vand.u32 4294901760, %v7093_v1  ;;  %v6439_v24 = vadd.f32 %v6438_v2, %v6390_v30  ;;  %v6311_v59 = vadd.f32 %v6310_v50, %v6255_v36  ;;  %v17687_v19 = vand.u32 4294901760, %v14419_v32 }
 0x51a   :  { %7183 = vmatpush.msra.mxu1 %v14391_v63  ;;  %6729 = vmatmul.f32.vlgmr.msra.gmra.mxu2 %v14698_v34  ;;  %v14705_v53 = vand.u32 4294901760, %v14698_v34  ;;  %v6191_v46 = vadd.f32 %v14586_v6, %v6078_v39  ;;  %v17689_v30 = vand.u32 4294901760, %v14466_v52 }
 0x51b   :  { %7089 = vmatpush.msrb.mxu3 %v7088_v3  ;;  %7242 = vmatpush.msra.mxu2 %v17686_v27  ;;  %v6450_v43 = vmax.f32 %v6439_v24, 0.0  ;;  %v6394_v11 = vadd.f32 %v6393_v41, %v6311_v59  ;;  %v6259_v6 = vpop.f32.mrf.mxu0  ;;  %v17690_v24 = vand.u32 4294901760, %v14478_v17  ;;  %v17691_v41 = vand.u32 4294901760, %v14497_v9 }
 0x51c   :  { %7185 = vmatpush.msra.mxu1 %v14405_v40  ;;  %6783 = vmatmul.f32.vlgmr.msra.gmra.mxu3 %v14705_v53  ;;  %v6536_v13 = vsub.f32 %v14698_v34, %v14705_v53  ;;  %v6260_v33 = vadd.f32 %v6259_v6, %v6191_v46  ;;  %v6500_v46 = vld [vmem:[%s16426_s5 + $0x178] sm:$0xff]  ;;  %v17694_v59 = vand.u32 4294901760, %v14555_v25  ;;  %v17695_v6 = vand.u32 4294901760, %v14576_v54 }
 0x51d   :  { %7095 = vmatpush.msrb.mxu3 %v7094_v18  ;;  %v14716_v56 = vand.u32 4294901760, %v6450_v43  ;;  %7246 = vmatpush.msra.mxu2 %v17687_v19 }
 0x51e   :  { %7187 = vmatpush.msra.mxu1 %v14416_v16  ;;  %v14718_v58 = vand.u32 4294901760, %v6536_v13  ;;  %v6316_v2 = vpop.f32.mrf.mxu1  ;;  %v17693_v13 = vand.u32 4294901760, %v14538_v26 }
 0x51f   :  { %7321 = vmatpush.msra.mxu3 %v14391_v63  ;;  %v14725_v38 = vsub.f32 %v6450_v43, %v14716_v56  ;;  %7250 = vmatpush.msra.mxu2 %v17688_v7 }
 0x520   :  { %7189 = vmatpush.msra.mxu1 %v14443_v20  ;;  %6538 = vmatmul.f32.vlgmr.msra.gmra.mxu0 %v14718_v58  ;;  %v6442_v48 = vpop.f32.mrf.mxu3  ;;  %v6397_v18 = vpop.f32.mrf.mxu2 }
 0x521   :  { %6667 = vmatmul.f32.gmra.mxu1 %v14716_v56  ;;  %7323 = vmatpush.msra.mxu3 %v14405_v40  ;;  %v6443_v1 = vadd.f32 %v6442_v48, %v6394_v11  ;;  %v14734_v63 = vand.u32 4294901760, %v14725_v38  ;;  %v6494_v11 = vld [vmem:[%s16426_s5 + $0x148] sm:$0xff]  ;;  %v6491_v48 = vld [vmem:[%s16426_s5 + $0x130] sm:$0xff] }
 0x522   :  { %6734 = vmatmul.f32.gmra.mxu2 %v14725_v38  ;;  %7115 = vmatpush.msra.mxu0 %v14403_v44  ;;  %v6317_v44 = vadd.f32 %v6316_v2, %v6260_v33  ;;  %v14827_v7 = vand.u32 4294901760, %v6494_v11 }
 0x523   :  { %7191 = vmatpush.msra.mxu1 %v14457_v5  ;;  %7254 = vmatpush.msra.mxu2 %v17689_v30  ;;  %v6451_v3 = vmax.f32 %v6443_v1, 0.0  ;;  %v6544_v40 = vsub.f32 %v14725_v38, %v14734_v63  ;;  %v17697_v1 = vand.u32 4294901760, %v14600_v47  ;;  %v6488_v30 = vld [vmem:[%s16426_s5 + $0x118] sm:$0xff] }
 0x524   :  { %6789 = vmatmul.f32.gmra.mxu3 %v14734_v63  ;;  %7118 = vmatpush.msra.mxu0 %v14419_v32  ;;  %v6398_v32 = vadd.f32 %v6397_v18, %v6317_v44  ;;  %v14856_v2 = vand.u32 4294901760, %v6488_v30 }
 0x525   :  { %7325 = vmatpush.msra.mxu3 %v14416_v16  ;;  %7193 = vmatpush.msra.mxu1 %v14475_v21  ;;  %v14746_v22 = vand.u32 4294901760, %v6451_v3  ;;  %v14748_v36 = vand.u32 4294901760, %v6544_v40  ;;  %v17698_v40 = vand.u32 4294901760, %v14612_v45 }
 0x526   :  { %7258 = vmatpush.msra.mxu2 %v17690_v24  ;;  %7121 = vmatpush.msra.mxu0 %v14446_v8  ;;  %v17692_v8 = vand.u32 4294901760, %v14526_v42  ;;  %v6482_v24 = vld [vmem:[%s16426_s5 + $0xe8] sm:$0xff] }
 0x527   :  { %7327 = vmatpush.msra.mxu3 %v14443_v20  ;;  %7195 = vmatpush.msra.mxu1 %v14494_v51  ;;  %v14756_v50 = vsub.f32 %v6451_v3, %v14746_v22 }
 0x528   :  { %6546 = vmatmul.f32.gmra.mxu0 %v14748_v36  ;;  %v6446_v16 = vpop.f32.mrf.mxu3  ;;  %7262 = vmatpush.msra.mxu2 %v17691_v41 }
 0x529   :  { %6671 = vmatmul.f32.gmra.mxu1 %v14746_v22  ;;  %7329 = vmatpush.msra.mxu3 %v14457_v5  ;;  %v6447_v27 = vadd.f32 %v6446_v16, %v6398_v32  ;;  %v14765_v20 = vand.u32 4294901760, %v14756_v50  ;;  %v14881_v32 = vsub.f32 %v6488_v30, %v14856_v2 }
 0x52a   :  { %6739 = vmatmul.f32.gmra.mxu2 %v14756_v50  ;;  %7124 = vmatpush.msra.mxu0 %v14466_v52 }
 0x52b   :  { %7197 = vmatpush.msra.mxu1 %v14520_v14  ;;  %7266 = vmatpush.msra.mxu2 %v17692_v8  ;;  %v6452_v39 = vmax.f32 %v6447_v27, 0.0  ;;  %v6552_v43 = vsub.f32 %v14756_v50, %v14765_v20  ;;  %v6476_v27 = vld [vmem:[%s16426_s5 + $0xb8] sm:$0xff]  ;;  %v16669_v8 = vand.u32 4294901760, %v14881_v32 }
 0x52c   :  { %6795 = vmatmul.f32.gmra.mxu3 %v14765_v20  ;;  %7127 = vmatpush.msra.mxu0 %v14478_v17  ;;  %v14794_v17 = vand.u32 4294901760, %v6500_v46 }
 0x52d   :  { %7331 = vmatpush.msra.mxu3 %v14475_v21  ;;  %7199 = vmatpush.msra.mxu1 %v14535_v31  ;;  %v14777_v5 = vand.u32 4294901760, %v6452_v39  ;;  %v14779_v52 = vand.u32 4294901760, %v6552_v43 }
 0x52e   :  { %7270 = vmatpush.msra.mxu2 %v17693_v13  ;;  %7130 = vmatpush.msra.mxu0 %v14497_v9  ;;  %v6497_v9 = vld [vmem:[%s16426_s5 + $0x160] sm:$0xff] }
 0x52f   :  { %7333 = vmatpush.msra.mxu3 %v14494_v51  ;;  %7201 = vmatpush.msra.mxu1 %v14552_v0  ;;  %v14790_v21 = vsub.f32 %v6452_v39, %v14777_v5  ;;  %v14807_v19 = vand.u32 4294901760, %v6497_v9 }
 0x530   :  { %6554 = vmatmul.f32.gmra.mxu0 %v14779_v52  ;;  %7274 = vmatpush.msra.mxu2 %v17694_v59 }
 0x531   :  { %6675 = vmatmul.f32.gmra.mxu1 %v14777_v5  ;;  %7335 = vmatpush.msra.mxu3 %v14520_v14  ;;  %v14804_v51 = vand.u32 4294901760, %v14790_v21 }
 0x532   :  { %6744 = vmatmul.f32.gmra.mxu2 %v14790_v21  ;;  %7133 = vmatpush.msra.mxu0 %v14526_v42  ;;  %v14820_v42 = vsub.f32 %v6500_v46, %v14794_v17  ;;  %v14926_v46 = vand.u32 4294901760, %v6476_v27 }
 0x533   :  { %7203 = vmatpush.msra.mxu1 %v14573_v28  ;;  %7278 = vmatpush.msra.mxu2 %v17695_v6  ;;  %v6560_v14 = vsub.f32 %v14790_v21, %v14804_v51 }
 0x534   :  { %6801 = vmatmul.f32.gmra.mxu3 %v14804_v51  ;;  %7136 = vmatpush.msra.mxu0 %v14538_v26  ;;  %v14835_v26 = vsub.f32 %v6497_v9, %v14807_v19  ;;  %v16674_v3 = vand.u32 4294901760, %v14820_v42 }
 0x535   :  { %7337 = vmatpush.msra.mxu3 %v14535_v31  ;;  %7205 = vmatpush.msra.mxu1 %v14593_v35  ;;  %v14829_v33 = vand.u32 4294901760, %v6560_v14  ;;  %v14842_v31 = vand.u32 4294901760, %v6491_v48  ;;  %v14953_v14 = vsub.f32 %v6476_v27, %v14926_v46 }
 0x536   :  { %7282 = vmatpush.msra.mxu2 %v17697_v1  ;;  %7139 = vmatpush.msra.mxu0 %v14555_v25  ;;  %v6485_v25 = vld [vmem:[%s16426_s5 + $0x100] sm:$0xff]  ;;  %v16673_v18 = vand.u32 4294901760, %v14835_v26 }
 0x537   :  { %17696 = vst [vmem:[#allocation111_spill] sm:$0xff] %v14829_v33  ;;  %7339 = vmatpush.msra.mxu3 %v14552_v0  ;;  %7207 = vmatpush.msra.mxu1 %v14609_v10  ;;  %v14854_v0 = vsub.f32 %v6494_v11, %v14827_v7  ;;  %v14865_v44 = vsub.f32 %v6491_v48, %v14842_v31  ;;  %v6470_v11 = vld [vmem:[%s16426_s5 + $0x88] sm:$0xff] }
 0x538   :  { %6562 = vmatmul.f32.gmra.mxu0 %v14829_v33  ;;  %7286 = vmatpush.msra.mxu2 %v17698_v40  ;;  %v14962_v30 = vand.u32 4294901760, %v6470_v11 }
 0x539   :  { %6919 = vmatmul.f32.vlgmr.msrb.gmra.mxu1 %v14688_v15  ;;  %7341 = vmatpush.msra.mxu3 %v14573_v28  ;;  %v14867_v28 = vand.u32 4294901760, %v6485_v25  ;;  %v16671_v16 = vand.u32 4294901760, %v14865_v44 }
 0x53a   :  { %6972 = vmatmul.f32.vlgmr.msrb.gmra.mxu2 %v14718_v58  ;;  %7142 = vmatpush.msra.mxu0 %v14576_v54  ;;  %v7437_v54 = vsub.f32 %v14820_v42, %v16674_v3 }
 0x53b   :  { %7209 = vmatpush.msra.mxu1 %v14626_v29  ;;  %7290 = vmatpush.msra.mxu2 %v7074_v55  ;;  %v16672_v55 = vand.u32 4294901760, %v14854_v0  ;;  %v14896_v41 = vsub.f32 %v6485_v25, %v14867_v28 }
 0x53c   :  { %7097 = vmatmul.f32.vlgmr.msrb.gmra.mxu3 %v14688_v15  ;;  %7145 = vmatpush.msra.mxu0 %v14600_v47  ;;  %v7443_v47 = vsub.f32 %v14835_v26, %v16673_v18 }
 0x53d   :  { %7343 = vmatpush.msra.mxu3 %v14593_v35  ;;  %7211 = vmatpush.msra.mxu1 %v14646_v23  ;;  %v6479_v35 = vld [vmem:[%s16426_s5 + $0xd0] sm:$0xff] }
 0x53e   :  { %7294 = vmatpush.msra.mxu2 %v7080_v62  ;;  %7148 = vmatpush.msra.mxu0 %v14612_v45  ;;  %v14898_v62 = vand.u32 4294901760, %v6482_v24  ;;  %v7438_v45 = vand.u32 4294901760, %v7437_v54  ;;  %v14912_v39 = vand.u32 4294901760, %v6479_v35  ;;  %v7444_v43 = vand.u32 4294901760, %v7443_v47 }
 0x53f   :  { %7345 = vmatpush.msra.mxu3 %v14609_v10  ;;  %7213 = vmatpush.msra.mxu1 %v14664_v49  ;;  %v7449_v10 = vsub.f32 %v14854_v0, %v16672_v55 }
 0x540   :  { %6870 = vmatmul.f32.vlgmr.msrb.gmra.mxu0 %v14688_v15  ;;  %7298 = vmatpush.msra.mxu2 %v7086_v12  ;;  %v16668_v12 = vand.u32 4294901760, %v14896_v41  ;;  %v14924_v13 = vsub.f32 %v6482_v24, %v14898_v62  ;;  %v14938_v9 = vsub.f32 %v6479_v35, %v14912_v39  ;;  %v16659_v24 = vand.u32 4294901760, %v14953_v14 }
 0x541   :  { %6923 = vmatmul.f32.gmra.mxu1 %v14716_v56  ;;  %7347 = vmatpush.msra.mxu3 %v14626_v29  ;;  %v7455_v29 = vsub.f32 %v14865_v44, %v16671_v16  ;;  %v80_v16 = vld [vmem:[%s16427_s2 + $0x108] sm:$0xff] }
 0x542   :  { %6980 = vmatmul.f32.gmra.mxu2 %v14748_v36  ;;  %7151 = vmatpush.msra.mxu0 %v14629_v4  ;;  %v6473_v4 = vld [vmem:[%s16426_s5 + $0xa0] sm:$0xff]  ;;  %v16664_v6 = vand.u32 4294901760, %v14924_v13  ;;  %v16661_v1 = vand.u32 4294901760, %v14938_v9  ;;  %v15137_v18 = vand.u32 4294901760, %v80_v16 }
 0x543   :  { %7302 = vmatpush.msra.mxu2 %v7092_v37  ;;  %7349 = vmatpush.msra.mxu3 %v14646_v23  ;;  %v7450_v23 = vand.u32 4294901760, %v7449_v10  ;;  %v7461_v37 = vsub.f32 %v14881_v32, %v16669_v8  ;;  %v14941_v59 = vand.u32 4294901760, %v6473_v4  ;;  %v6461_v10 = vld [vmem:[%s16426_s5 + $0x40] sm:$0xff] }
 0x544   :  { %7101 = vmatmul.f32.gmra.mxu3 %v14716_v56  ;;  %7439 = vmatpush.msrb.mxu1 %v7438_v45  ;;  %v7473_v54 = vsub.f32 %v14924_v13, %v16664_v6  ;;  %v7479_v35 = vsub.f32 %v14938_v9, %v16661_v1  ;;  %v14986_v45 = vsub.f32 %v6470_v11, %v14962_v30 }
 0x545   :  { %7154 = vmatpush.msra.mxu0 %v14649_v57  ;;  %7351 = vmatpush.msra.mxu3 %v14664_v49  ;;  %v7456_v57 = vand.u32 4294901760, %v7455_v29  ;;  %v7467_v49 = vsub.f32 %v14896_v41, %v16668_v12  ;;  %v7462_v48 = vand.u32 4294901760, %v7461_v37  ;;  %v14967_v25 = vsub.f32 %v6473_v4, %v14941_v59  ;;  %v6458_v37 = vld [vmem:[%s16426_s5 + $0x28] sm:$0xff]  ;;  %17707 = vst [vmem:[#allocation92_spill] sm:$0xff] %v15137_v18 }
 0x546   :  { %7445 = vmatpush.msrb.mxu1 %v7444_v43  ;;  %7549 = vmatpush.msrb.mxu2 %v14820_v42  ;;  %v7474_v43 = vand.u32 4294901760, %v7473_v54  ;;  %v7485_v29 = vsub.f32 %v14953_v14, %v16659_v24  ;;  %v7480_v11 = vand.u32 4294901760, %v7479_v35  ;;  %v15023_v35 = vand.u32 4294901760, %v6458_v37  ;;  %v6455_v24 = vld [vmem:[%s16426_s5 + $0x10] sm:$0xff] }
 0x547   :  { %7157 = vmatpush.msra.mxu0 %v14670_v61  ;;  %7617 = vmatpush.msrb.mxu3 %v14794_v17  ;;  %v6467_v61 = vld [vmem:[%s16426_s5 + $0x70] sm:$0xff]  ;;  %v7468_v40 = vand.u32 4294901760, %v7467_v49  ;;  %v16660_v27 = vand.u32 4294901760, %v14967_v25  ;;  %v15011_v49 = vand.u32 4294901760, %v6461_v10 }
 0x548   :  { %6874 = vmatmul.f32.gmra.mxu0 %v14716_v56  ;;  %7451 = vmatpush.msrb.mxu1 %v7450_v23  ;;  %v14974_v47 = vand.u32 4294901760, %v6467_v61  ;;  %v15045_v1 = vsub.f32 %v6458_v37, %v15023_v35 }
 0x549   :  { %6927 = vmatmul.f32.gmra.mxu1 %v14746_v22  ;;  %7552 = vmatpush.msrb.mxu2 %v14835_v26 }
 0x54a   :  { %6988 = vmatmul.f32.gmra.mxu2 %v14779_v52  ;;  %7160 = vmatpush.msra.mxu0 %v14677_v60  ;;  %v6464_v60 = vld [vmem:[%s16426_s5 + $0x58] sm:$0xff]  ;;  %v14999_v4 = vsub.f32 %v6467_v61, %v14974_v47  ;;  %v7491_v61 = vsub.f32 %v14967_v25, %v16660_v27  ;;  %17700 = vst [vmem:[#allocation116_spill] sm:$0xff] %v15045_v1 }
 0x54b   :  { %7457 = vmatpush.msrb.mxu1 %v7456_v57  ;;  %7555 = vmatpush.msrb.mxu2 %v14854_v0  ;;  %v15001_v23 = vand.u32 4294901760, %v6464_v60  ;;  %v16662_v57 = vand.u32 4294901760, %v14986_v45 }
 0x54c   :  { %7105 = vmatmul.f32.gmra.mxu3 %v14746_v22  ;;  %7370 = vmatpush.msrb.mxu0 %v14794_v17 }
 0x54d   :  { %7619 = vmatpush.msrb.mxu3 %v14807_v19  ;;  %7463 = vmatpush.msrb.mxu1 %v7462_v48  ;;  %v7486_v48 = vand.u32 4294901760, %v7485_v29  ;;  %v15021_v54 = vsub.f32 %v6464_v60, %v15001_v23  ;;  %v15035_v60 = vsub.f32 %v6461_v10, %v15011_v49  ;;  %v7492_v29 = vand.u32 4294901760, %v7491_v61 }
 0x54e   :  { %7558 = vmatpush.msrb.mxu2 %v14865_v44  ;;  %7372 = vmatpush.msrb.mxu0 %v14807_v19 }
 0x54f   :  { %7621 = vmatpush.msrb.mxu3 %v14827_v7  ;;  %7469 = vmatpush.msrb.mxu1 %v7468_v40  ;;  %v16663_v40 = vand.u32 4294901760, %v14999_v4  ;;  %17699 = vst [vmem:[#allocation115_spill] sm:$0xff] %v15035_v60  ;;  %v16665_v61 = vand.u32 4294901760, %v15035_v60 }
 0x550   :  { %6878 = vmatmul.f32.gmra.mxu0 %v14746_v22  ;;  %7561 = vmatpush.msrb.mxu2 %v14881_v32 }
 0x551   :  { %6931 = vmatmul.f32.gmra.mxu1 %v14777_v5  ;;  %7623 = vmatpush.msrb.mxu3 %v14842_v31  ;;  %v7503_v27 = vsub.f32 %v14999_v4, %v16663_v40  ;;  %v16667_v40 = vand.u32 4294901760, %v15045_v1 }
 0x552   :  { %6996 = vmatmul.f32.gmra.mxu2 %v14829_v33  ;;  %7374 = vmatpush.msrb.mxu0 %v14827_v7 }
 0x553   :  { %7475 = vmatpush.msrb.mxu1 %v7474_v43  ;;  %7564 = vmatpush.msrb.mxu2 %v14896_v41  ;;  %v7497_v43 = vsub.f32 %v14986_v45, %v16662_v57  ;;  %v15047_v57 = vand.u32 4294901760, %v6455_v24  ;;  %v7504_v37 = vand.u32 4294901760, %v7503_v27  ;;  %v7515_v27 = vsub.f32 %v15035_v60, %v16665_v61 }
 0x554   :  { %7109 = vmatmul.f32.gmra.mxu3 %v14777_v5  ;;  %7376 = vmatpush.msrb.mxu0 %v14842_v31 }
 0x555   :  { %7625 = vmatpush.msrb.mxu3 %v14856_v2  ;;  %7481 = vmatpush.msrb.mxu1 %v7480_v11  ;;  %v16666_v11 = vand.u32 4294901760, %v15021_v54  ;;  %v7498_v10 = vand.u32 4294901760, %v7497_v43  ;;  %v15062_v6 = vsub.f32 %v6455_v24, %v15047_v57  ;;  %v92_v43 = vld [vmem:[%s16427_s2 + $0x168] sm:$0xff] }
 0x556   :  { %7567 = vmatpush.msrb.mxu2 %v14924_v13  ;;  %7378 = vmatpush.msrb.mxu0 %v14856_v2  ;;  %v15082_v61 = vand.u32 4294901760, %v92_v43 }
 0x557   :  { %7627 = vmatpush.msrb.mxu3 %v14867_v28  ;;  %7487 = vmatpush.msrb.mxu1 %v7486_v48  ;;  %v7509_v48 = vsub.f32 %v15021_v54, %v16666_v11  ;;  %17701 = vst [vmem:[#allocation117_spill] sm:$0xff] %v15062_v6  ;;  %v89_v11 = vld [vmem:[%s16427_s2 + $0x150] sm:$0xff] }
 0x558   :  { %6882 = vmatmul.f32.gmra.mxu0 %v14777_v5  ;;  %7570 = vmatpush.msrb.mxu2 %v14938_v9  ;;  %v15098_v8 = vand.u32 4294901760, %v89_v11 }
 0x559   :  { %7217 = vmatmul.f32.vlgmr.msra.gmra.mxu1 %v14705_v53  ;;  %7629 = vmatpush.msrb.mxu3 %v14898_v62  ;;  %v7510_v24 = vand.u32 4294901760, %v7509_v48  ;;  %v86_v48 = vld [vmem:[%s16427_s2 + $0x138] sm:$0xff] }
 0x55a   :  { %7304 = vmatmul.f32.vlgmr.msra.gmra.mxu2 %v14688_v15  ;;  %7380 = vmatpush.msrb.mxu0 %v14867_v28  ;;  %17702 = vst [vmem:[#allocation53_spill] sm:$0xff] %v15098_v8 }
 0x55b   :  { %7493 = vmatpush.msrb.mxu1 %v7492_v29  ;;  %7573 = vmatpush.msrb.mxu2 %v14953_v14  ;;  %v7521_v29 = vsub.f32 %v15045_v1, %v16667_v40 }
 0x55c   :  { %7353 = vmatmul.f32.vlgmr.msra.gmra.mxu3 %v14688_v15  ;;  %7382 = vmatpush.msrb.mxu0 %v14898_v62 }
 0x55d   :  { %7631 = vmatpush.msrb.mxu3 %v14912_v39  ;;  %7499 = vmatpush.msrb.mxu1 %v7498_v10  ;;  %v16670_v10 = vand.u32 4294901760, %v15062_v6  ;;  %v7522_v40 = vand.u32 4294901760, %v7521_v29  ;;  %v83_v29 = vld [vmem:[%s16427_s2 + $0x120] sm:$0xff] }
 0x55e   :  { %7576 = vmatpush.msrb.mxu2 %v14967_v25  ;;  %7384 = vmatpush.msrb.mxu0 %v14912_v39  ;;  %v15125_v55 = vand.u32 4294901760, %v83_v29 }
 0x55f   :  { %7633 = vmatpush.msrb.mxu3 %v14926_v46  ;;  %7505 = vmatpush.msrb.mxu1 %v7504_v37  ;;  %v7516_v37 = vand.u32 4294901760, %v7515_v27  ;;  %v7527_v12 = vsub.f32 %v15062_v6, %v16670_v10  ;;  %v15103_v27 = vsub.f32 %v92_v43, %v15082_v61  ;;  %v15115_v43 = vsub.f32 %v89_v11, %v15098_v8 }
 0x560   :  { %7163 = vmatmul.f32.vlgmr.msra.gmra.mxu0 %v14698_v34  ;;  %7579 = vmatpush.msrb.mxu2 %v14986_v45  ;;  %17705 = vst [vmem:[#allocation120_spill] sm:$0xff] %v15125_v55  ;;  %v15148_v3 = vsub.f32 %v83_v29, %v15125_v55  ;;  %v15163_v29 = vsub.f32 %v80_v16, %v15137_v18 }
 0x561   :  { %7223 = vmatmul.f32.gmra.mxu1 %v14734_v63  ;;  %7635 = vmatpush.msrb.mxu3 %v14941_v59  ;;  %17703 = vst [vmem:[#allocation119_spill] sm:$0xff] %v15103_v27  ;;  %v7528_v10 = vand.u32 4294901760, %v7527_v12 }
 0x562   :  { %7308 = vmatmul.f32.gmra.mxu2 %v14716_v56  ;;  %7386 = vmatpush.msrb.mxu0 %v14926_v46  ;;  %17704 = vst [vmem:[#allocation118_spill] sm:$0xff] %v15115_v43  ;;  %v17711_v33 = vand.u32 4294901760, %v15148_v3 }
 0x563   :  { %7511 = vmatpush.msrb.mxu1 %v7510_v24  ;;  %7582 = vmatpush.msrb.mxu2 %v14999_v4  ;;  %v15106_v24 = vand.u32 4294901760, %v86_v48  ;;  %17709 = vst [vmem:[#allocation12_spill] sm:$0xff] %v15163_v29 }
 0x564   :  { %7357 = vmatmul.f32.gmra.mxu3 %v14716_v56  ;;  %7388 = vmatpush.msrb.mxu0 %v14941_v59 }
 0x565   :  { %7637 = vmatpush.msrb.mxu3 %v14962_v30  ;;  %7517 = vmatpush.msrb.mxu1 %v7516_v37  ;;  %v16676_v37 = vand.u32 4294901760, %v15103_v27  ;;  %v15128_v12 = vsub.f32 %v86_v48, %v15106_v24 }
 0x566   :  { %7585 = vmatpush.msrb.mxu2 %v15021_v54  ;;  %7390 = vmatpush.msrb.mxu0 %v14962_v30 }
 0x567   :  { %7639 = vmatpush.msrb.mxu3 %v14974_v47  ;;  %7523 = vmatpush.msrb.mxu1 %v7522_v40  ;;  %17706 = vst [vmem:[#allocation67_spill] sm:$0xff] %v15128_v12  ;;  %v77_v40 = vld [vmem:[%s16427_s2 + $0xf0] sm:$0xff]  ;;  %v7871_v48 = vsub.f32 %v15103_v27, %v16676_v37  ;;  %v17708_v37 = vand.u32 4294901760, %v15115_v43  ;;  %v17710_v27 = vand.u32 4294901760, %v15128_v12 }
 0x568   :  { %7168 = vmatmul.f32.gmra.mxu0 %v14725_v38  ;;  %7588 = vmatpush.msrb.mxu2 %v15035_v60  ;;  %v15150_v11 = vand.u32 4294901760, %v77_v40 }
 0x569   :  { %7229 = vmatmul.f32.gmra.mxu1 %v14765_v20  ;;  %7641 = vmatpush.msrb.mxu3 %v15001_v23 }
 0x56a   :  { %7312 = vmatmul.f32.gmra.mxu2 %v14746_v22  ;;  %7392 = vmatpush.msrb.mxu0 %v14974_v47  ;;  %v15179_v60 = vsub.f32 %v77_v40, %v15150_v11 }
 0x56b   :  { %7529 = vmatpush.msrb.mxu1 %v7528_v10  ;;  %7591 = vmatpush.msrb.mxu2 %v15045_v1  ;;  %v74_v1 = vld [vmem:[%s16427_s2 + $0xd8] sm:$0xff]  ;;  %v7877_v10 = vsub.f32 %v15115_v43, %v17708_v37  ;;  %v7883_v37 = vsub.f32 %v15128_v12, %v17710_v27 }
 0x56c   :  { %7361 = vmatmul.f32.gmra.mxu3 %v14746_v22  ;;  %7394 = vmatpush.msrb.mxu0 %v15001_v23  ;;  %v15176_v43 = vand.u32 4294901760, %v74_v1 }
 0x56d   :  { %7643 = vmatpush.msrb.mxu3 %v15011_v49  ;;  %7594 = vmatpush.msrb.mxu2 %v15062_v6  ;;  %v71_v6 = vld [vmem:[%s16427_s2 + $0xc0] sm:$0xff]  ;;  %v7884_v12 = vand.u32 4294901760, %v7883_v37 }
 0x56e   :  { %7755 = vmatpush.msra.mxu1 %v14794_v17  ;;  %7396 = vmatpush.msrb.mxu0 %v15011_v49  ;;  %v7872_v17 = vand.u32 4294901760, %v7871_v48  ;;  %v68_v48 = vld [vmem:[%s16427_s2 + $0xa8] sm:$0xff]  ;;  %v15189_v16 = vand.u32 4294901760, %v71_v6  ;;  %v15201_v27 = vsub.f32 %v74_v1, %v15176_v43 }
 0x56f   :  { %7645 = vmatpush.msrb.mxu3 %v15023_v35  ;;  %7804 = vmatpush.msra.mxu2 %v15082_v61  ;;  %v15193_v40 = vand.u32 4294901760, %v68_v48 }
 0x570   :  { %7173 = vmatmul.f32.gmra.mxu0 %v14756_v50  ;;  %7757 = vmatpush.msra.mxu1 %v14807_v19  ;;  %v7878_v19 = vand.u32 4294901760, %v7877_v10  ;;  %v16692_v10 = vand.u32 4294901760, %v15179_v60  ;;  %v15219_v37 = vsub.f32 %v71_v6, %v15189_v16 }
 0x571   :  { %7235 = vmatmul.f32.gmra.mxu1 %v14804_v51  ;;  %7647 = vmatpush.msrb.mxu3 %v15047_v57 }
 0x572   :  { %7316 = vmatmul.f32.gmra.mxu2 %v14777_v5  ;;  %7398 = vmatpush.msrb.mxu0 %v15023_v35  ;;  %v7901_v6 = vsub.f32 %v15179_v60, %v16692_v10 }
 0x573   :  { %7759 = vmatpush.msra.mxu1 %v14827_v7  ;;  %7806 = vmatpush.msra.mxu2 %v15098_v8  ;;  %v7889_v7 = vsub.f32 %v15148_v3, %v17711_v33  ;;  %v15206_v8 = vld [vmem:[%s16423_s1] ss:$0 sm:$0xff]  ;;  %v17713_v33 = vand.u32 4294901760, %v15163_v29 }
 0x574   :  { %7365 = vmatmul.f32.gmra.mxu3 %v14777_v5  ;;  %7400 = vmatpush.msrb.mxu0 %v15047_v57 }
 0x575   :  { %7873 = vmatpush.msra.mxu3 %v7872_v17  ;;  %7761 = vmatpush.msra.mxu1 %v14842_v31  ;;  %v17712_v17 = vand.u32 4294901760, %v14820_v42  ;;  %v65_v31 = vld [vmem:[%s16427_s2 + $0x90] sm:$0xff]  ;;  %v7895_v1 = vsub.f32 %v15163_v29, %v17713_v33  ;;  %v15224_v42 = vsub.f32 %v68_v48, %v15193_v40  ;;  %v9214_v48 = vld [vmem:[%s16424_s0] sm:$0xff] }
 0x576   :  { %7808 = vmatpush.msra.mxu2 %v15106_v24  ;;  %v15234_v33 = vand.u32 4294901760, %v65_v31  ;;  %v34_v29 = vmul.f32 %v9214_v48, %v15206_v8 }
 0x577   :  { %7676 = vmatpush.msra.mxu0 %v17712_v17  ;;  %7879 = vmatpush.msra.mxu3 %v7878_v19  ;;  %v62_v19 = vld [vmem:[%s16427_s2 + $0x78] sm:$0xff]  ;;  %v7896_v10 = vand.u32 4294901760, %v7895_v1 }
 0x578   :  { %7763 = vmatpush.msra.mxu1 %v14856_v2  ;;  %7178 = vmatmul.f32.gmra.mxu0 %v14790_v21  ;;  %v7890_v2 = vand.u32 4294901760, %v7889_v7  ;;  %v59_v7 = vld [vmem:[%s16427_s2 + $0x60] sm:$0xff]  ;;  %v15254_v17 = vand.u32 4294901760, %v62_v19  ;;  %v15265_v1 = vsub.f32 %v65_v31, %v15234_v33 }
 0x579   :  { %7531 = vmatmul.f32.vlgmr.msrb.gmra.mxu1 %v14688_v15  ;;  %7810 = vmatpush.msra.mxu2 %v15125_v55  ;;  %v15243_v55 = vld [vmem:[%s16423_s1 + $0x1] ss:$0 sm:$0xff]  ;;  %v15267_v48 = vand.u32 4294901760, %v59_v7 }
 0x57a   :  { %7885 = vmatpush.msra.mxu3 %v7884_v12  ;;  %7597 = vmatmul.f32.vlgmr.msrb.gmra.mxu2 %v14698_v34  ;;  %v17714_v12 = vand.u32 4294901760, %v14835_v26  ;;  %v17715_v34 = vand.u32 4294901760, %v14854_v0  ;;  %v7918_v26 = vand.u32 4294901760, %v15224_v42  ;;  %v17717_v0 = vand.u32 4294901760, %v14865_v44 }
 0x57b   :  { %7765 = vmatpush.msra.mxu1 %v14867_v28  ;;  %7812 = vmatpush.msra.mxu2 %v15137_v18  ;;  %v17716_v28 = vand.u32 4294901760, %v15201_v27 }
 0x57c   :  { %7680 = vmatpush.msra.mxu0 %v17714_v12  ;;  %7651 = vmatmul.f32.vlgmr.msrb.gmra.mxu3 %v14705_v53  ;;  %v7902_v12 = vand.u32 4294901760, %v7901_v6  ;;  %v39_v53 = vadd.f32 %v15243_v55, %v34_v29  ;;  %v15281_v6 = vsub.f32 %v62_v19, %v15254_v17  ;;  %v7919_v44 = vsub.f32 %v15224_v42, %v7918_v26  ;;  %v53_v29 = vld [vmem:[%s16427_s2 + $0x30] sm:$0xff] }
 0x57d   :  { %7891 = vmatpush.msra.mxu3 %v7890_v2  ;;  %7767 = vmatpush.msra.mxu1 %v14898_v62  ;;  %v7907_v18 = vsub.f32 %v15201_v27, %v17716_v28  ;;  %v56_v62 = vld [vmem:[%s16427_s2 + $0x48] sm:$0xff]  ;;  %v17718_v2 = vand.u32 4294901760, %v15219_v37 }
 0x57e   :  { %7684 = vmatpush.msra.mxu0 %v17715_v34  ;;  %7814 = vmatpush.msra.mxu2 %v15150_v11  ;;  %v15293_v19 = vand.u32 4294901760, %v56_v62  ;;  %v43_v34 = vmax.f32 %v39_v53, 0.0  ;;  %v9215_v28 = vld [vmem:[%s16424_s0 + $0x8] sm:$0xff]  ;;  %v15311_v53 = vand.u32 4294901760, %v53_v29 }
 0x57f   :  { %7897 = vmatpush.msra.mxu3 %v7896_v10  ;;  %7769 = vmatpush.msra.mxu1 %v14912_v39  ;;  %v7913_v31 = vsub.f32 %v15219_v37, %v17718_v2  ;;  %v7908_v39 = vand.u32 4294901760, %v7907_v18  ;;  %v7924_v10 = vand.u32 4294901760, %v15265_v1  ;;  %v17719_v2 = vand.u32 4294901760, %v14881_v32  ;;  %v50_v18 = vld [vmem:[%s16427_s2 + $0x18] sm:$0xff] }
 0x580   :  { %7688 = vmatpush.msra.mxu0 %v17717_v0  ;;  %7816 = vmatpush.msra.mxu2 %v15176_v43  ;;  %v35_v0 = vmul.f32 %v9215_v28, %v15206_v8  ;;  %v7920_v32 = vand.u32 4294901760, %v7919_v44  ;;  %v47_v28 = vld [vmem:[%s16427_s2] sm:$0xff] }
 0x581   :  { %7406 = vmatmul.f32.vlgmr.msrb.gmra.mxu0 %v14718_v58  ;;  %7535 = vmatmul.f32.gmra.mxu1 %v14716_v56  ;;  %v15296_v58 = vsub.f32 %v59_v7, %v15267_v48  ;;  %v7914_v7 = vand.u32 4294901760, %v7913_v31 }
 0x582   :  { %7903 = vmatpush.msra.mxu3 %v7902_v12  ;;  %7602 = vmatmul.f32.gmra.mxu2 %v14725_v38  ;;  %v7930_v12 = vand.u32 4294901760, %v15281_v6  ;;  %v17720_v38 = vand.u32 4294901760, %v14896_v41  ;;  %v15329_v41 = vand.u32 4294901760, %v43_v34  ;;  %v40_v44 = vadd.f32 %v15243_v55, %v35_v0 }
 0x583   :  { %7692 = vmatpush.msra.mxu0 %v17719_v2  ;;  %7771 = vmatpush.msra.mxu1 %v14926_v46  ;;  %v7925_v46 = vsub.f32 %v15265_v1, %v7924_v10  ;;  %v7936_v31 = vand.u32 4294901760, %v15296_v58  ;;  %v15325_v2 = vsub.f32 %v56_v62, %v15293_v19  ;;  %v15340_v62 = vsub.f32 %v53_v29, %v15311_v53 }
 0x584   :  { %7818 = vmatpush.msra.mxu2 %v15189_v16  ;;  %7657 = vmatmul.f32.gmra.mxu3 %v14734_v63  ;;  %v15327_v63 = vand.u32 4294901760, %v50_v18  ;;  %v15355_v29 = vsub.f32 %v43_v34, %v15329_v41 }
 0x585   :  { %7696 = vmatpush.msra.mxu0 %v17720_v38  ;;  %7909 = vmatpush.msra.mxu3 %v7908_v39  ;;  %v17721_v39 = vand.u32 4294901760, %v14924_v13  ;;  %v15342_v38 = vand.u32 4294901760, %v47_v28  ;;  %v7926_v13 = vand.u32 4294901760, %v7925_v46  ;;  %v7942_v0 = vand.u32 4294901760, %v15325_v2 }
 0x586   :  { %7773 = vmatpush.msra.mxu1 %v14941_v59  ;;  %7820 = vmatpush.msra.mxu2 %v15193_v40  ;;  %v7931_v59 = vsub.f32 %v15281_v6, %v7930_v12  ;;  %17722 = vst [vmem:[#allocation33_spill] sm:$0xff] %v15355_v29  ;;  %v7948_v34 = vand.u32 4294901760, %v15340_v62 }
 0x587   :  { %7700 = vmatpush.msra.mxu0 %v17721_v39  ;;  %7915 = vmatpush.msra.mxu3 %v7914_v7  ;;  %v15352_v7 = vsub.f32 %v50_v18, %v15327_v63  ;;  %v44_v39 = vmax.f32 %v40_v44, 0.0  ;;  %v15368_v44 = vsub.f32 %v47_v28, %v15342_v38  ;;  %v17725_v28 = vand.u32 4294901760, %v14967_v25 }
 0x588   :  { %7775 = vmatpush.msra.mxu1 %v14962_v30  ;;  %7822 = vmatpush.msra.mxu2 %v15234_v33  ;;  %v7937_v30 = vsub.f32 %v15296_v58, %v7936_v31  ;;  %v7932_v18 = vand.u32 4294901760, %v7931_v59 }
 0x589   :  { %7414 = vmatmul.f32.gmra.mxu0 %v14748_v36  ;;  %7539 = vmatmul.f32.gmra.mxu1 %v14746_v22  ;;  %v17723_v36 = vand.u32 4294901760, %v14938_v9  ;;  %v7954_v59 = vand.u32 4294901760, %v15352_v7 }
 0x58a   :  { %7921 = vmatpush.msra.mxu3 %v7920_v32  ;;  %7607 = vmatmul.f32.gmra.mxu2 %v14756_v50  ;;  %v9216_v32 = vld [vmem:[%s16424_s0 + $0x10] sm:$0xff]  ;;  %v17724_v50 = vand.u32 4294901760, %v14953_v14  ;;  %v7938_v9 = vand.u32 4294901760, %v7937_v30 }
 0x58b   :  { %7704 = vmatpush.msra.mxu0 %v17723_v36  ;;  %v36_v46 = vmul.f32 %v9216_v32, %v15206_v8  ;;  %7777 = vmatpush.msra.mxu1 %v14974_v47  ;;  %v7943_v47 = vsub.f32 %v15325_v2, %v7942_v0  ;;  %v15378_v36 = vand.u32 4294901760, %v44_v39  ;;  %v7955_v30 = vsub.f32 %v15352_v7, %v7954_v59 }
 0x58c   :  { %7824 = vmatpush.msra.mxu2 %v15254_v17  ;;  %7663 = vmatmul.f32.gmra.mxu3 %v14765_v20  ;;  %v15384_v20 = vand.u32 4294901760, %v15355_v29 }
 0x58d   :  { %7708 = vmatpush.msra.mxu0 %v17724_v50  ;;  %7927 = vmatpush.msra.mxu3 %v7926_v13  ;;  %v41_v14 = vadd.f32 %v15243_v55, %v36_v46  ;;  %v7960_v13 = vand.u32 4294901760, %v15368_v44  ;;  %v7944_v25 = vand.u32 4294901760, %v7943_v47  ;;  %v17730_v47 = vand.u32 4294901760, %v15021_v54  ;;  %v17733_v54 = vld [vmem:[#allocation115_spill] sm:$0xff] }
 0x58e   :  { %7779 = vmatpush.msra.mxu1 %v15001_v23  ;;  %7826 = vmatpush.msra.mxu2 %v15267_v48  ;;  %17726 = vst [vmem:[#allocation73_spill] sm:$0xff] %v15384_v20  ;;  %v7949_v23 = vsub.f32 %v15340_v62, %v7948_v34  ;;  %v7838_v32 = vsub.f32 %v15355_v29, %v15384_v20 }
 0x58f   :  { %7712 = vmatpush.msra.mxu0 %v17725_v28  ;;  %7933 = vmatpush.msra.mxu3 %v7932_v18  ;;  %v45_v46 = vmax.f32 %v41_v14, 0.0  ;;  %v7961_v50 = vsub.f32 %v15368_v44, %v7960_v13  ;;  %v17732_v14 = vld [vmem:[#allocation111_spill] sm:$0xff] }
 0x590   :  { %7781 = vmatpush.msra.mxu1 %v15011_v49  ;;  %7828 = vmatpush.msra.mxu2 %v15293_v19  ;;  %v17727_v49 = vand.u32 4294901760, %v14986_v45  ;;  %v7950_v18 = vand.u32 4294901760, %v7949_v23  ;;  %v9217_v45 = vld [vmem:[%s16424_s0 + $0x18] sm:$0xff]  ;;  %v17734_v23 = vand.u32 4294901760, %v17733_v54 }
 0x591   :  { %7422 = vmatmul.f32.gmra.mxu0 %v14779_v52  ;;  %7543 = vmatmul.f32.gmra.mxu1 %v14777_v5  ;;  %v15404_v52 = vsub.f32 %v44_v39, %v15378_v36  ;;  %v37_v39 = vmul.f32 %v9217_v45, %v15206_v8  ;;  %v15429_v28 = vand.u32 4294901760, %v45_v46  ;;  %v7962_v8 = vand.u32 4294901760, %v7961_v50  ;;  %v17746_v54 = vld [vmem:[#allocation53_spill] sm:$0xff] }
 0x592   :  { %7939 = vmatpush.msra.mxu3 %v7938_v9  ;;  %7612 = vmatmul.f32.gmra.mxu2 %v14790_v21  ;;  %v17728_v21 = vand.u32 4294901760, %v14999_v4 }
 0x593   :  { %7716 = vmatpush.msra.mxu0 %v17727_v49  ;;  %7783 = vmatpush.msra.mxu1 %v15023_v35  ;;  %v7956_v35 = vand.u32 4294901760, %v7955_v30  ;;  %v15427_v4 = vand.u32 4294901760, %v15404_v52  ;;  %v17735_v30 = vld [vmem:[#allocation119_spill] sm:$0xff] }
 0x594   :  { %7830 = vmatpush.msra.mxu2 %v15311_v53  ;;  %7669 = vmatmul.f32.gmra.mxu3 %v14804_v51  ;;  %v15424_v51 = vand.u32 4294901760, %v7838_v32  ;;  %v17736_v49 = vand.u32 4294901760, %v17735_v30  ;;  %v15444_v32 = vsub.f32 %v45_v46, %v15429_v28 }
 0x595   :  { %7720 = vmatpush.msra.mxu0 %v17728_v21  ;;  %7945 = vmatpush.msra.mxu3 %v7944_v25  ;;  %17731 = vst [vmem:[#allocation31_spill] sm:$0xff] %v15427_v4  ;;  %v7846_v25 = vsub.f32 %v15404_v52, %v15427_v4 }
 0x596   :  { %v15418_v9 = vpop.f32.mrf.mxu1  ;;  %7785 = vmatpush.msra.mxu1 %v15047_v57  ;;  %7832 = vmatpush.msra.mxu2 %v15327_v63  ;;  %v42_v57 = vadd.f32 %v15243_v55, %v37_v39  ;;  %v17737_v55 = vld [vmem:[#allocation116_spill] sm:$0xff]  ;;  %v17741_v39 = vld [vmem:[#allocation118_spill] sm:$0xff] }
 0x597   :  { %17729 = vst [vmem:[#allocation96_spill] sm:$0xff] %v15418_v9  ;;  %7724 = vmatpush.msra.mxu0 %v17730_v47  ;;  %7951 = vmatpush.msra.mxu3 %v7950_v18  ;;  %v17738_v18 = vand.u32 4294901760, %v17737_v55  ;;  %v15469_v55 = vand.u32 4294901760, %v15444_v32 }
 0x598   :  { %8051 = vmatpush.msrb.mxu1 %v15082_v61  ;;  %7834 = vmatpush.msra.mxu2 %v15342_v38  ;;  %v46_v50 = vmax.f32 %v42_v57, 0.0  ;;  %v17748_v57 = vld [vmem:[#allocation67_spill] sm:$0xff] }
 0x599   :  { %7430 = vmatmul.f32.gmra.mxu0 %v17732_v14  ;;  %7787 = vmatmul.f32.vlgmr.msra.gmra.mxu1 %v14688_v15  ;;  %v15460_v14 = vand.u32 4294901760, %v7846_v25  ;;  %v17751_v25 = vand.u32 4294901760, %v15148_v3 }
 0x59a   :  { %7957 = vmatpush.msra.mxu3 %v7956_v35  ;;  %7840 = vmatmul.f32.vlgmr.msra.gmra.mxu2 %v15424_v51  ;;  %v17742_v35 = vand.u32 4294901760, %v17741_v39 }
 0x59b   :  { %7728 = vmatpush.msra.mxu0 %v17734_v23  ;;  %8110 = vmatpush.msrb.mxu2 %v17736_v49  ;;  %v17749_v49 = vand.u32 4294901760, %v17748_v57 }
 0x59c   :  { %7963 = vmatpush.msra.mxu3 %v7962_v8  ;;  %v17744_v8 = vld [vmem:[#allocation117_spill] sm:$0xff]  ;;  %8053 = vmatpush.msrb.mxu1 %v17746_v54 }
 0x59d   :  { %7965 = vmatmul.f32.vlgmr.msra.gmra.mxu3 %v15329_v41  ;;  %7732 = vmatpush.msra.mxu0 %v17738_v18  ;;  %v15449_v21 = vpop.f32.mrf.mxu0  ;;  %v15456_v47 = vpop.f32.mrf.mxu2  ;;  %v17745_v46 = vand.u32 4294901760, %v17744_v8  ;;  %v17752_v18 = vld [vmem:[#allocation12_spill] sm:$0xff] }
 0x59e   :  { %17739 = vst [vmem:[#allocation97_spill] sm:$0xff] %v15449_v21  ;;  %v15451_v45 = vpop.f32.mrf.mxu1  ;;  %8114 = vmatpush.msrb.mxu2 %v17742_v35  ;;  %8189 = vmatpush.msrb.mxu3 %v15082_v61  ;;  %v15473_v61 = vand.u32 4294901760, %v46_v50  ;;  %v17753_v35 = vand.u32 4294901760, %v17752_v18  ;;  %v17754_v8 = vld [vmem:[#allocation120_spill] sm:$0xff] }
 0x59f   :  { %17740 = vst [vmem:[#allocation105_spill] sm:$0xff] %v15451_v45  ;;  %7736 = vmatpush.msra.mxu0 %v17745_v46  ;;  %v15463_v23 = vpop.f32.mrf.mxu3  ;;  %8055 = vmatpush.msrb.mxu1 %v15106_v24 }
 0x5a0   :  { %17743 = vst [vmem:[#allocation71_spill] sm:$0xff] %v15456_v47  ;;  %8118 = vmatpush.msrb.mxu2 %v17749_v49  ;;  %8191 = vmatpush.msrb.mxu3 %v17746_v54  ;;  %v17758_v49 = vand.u32 4294901760, %v15179_v60 }
 0x5a1   :  { %17747 = vst [vmem:[#allocation108_spill] sm:$0xff] %v15463_v23  ;;  %7738 = vmatmul.f32.vlgmr.msra.gmra.mxu0 %v14688_v15  ;;  %7791 = vmatmul.f32.gmra.mxu1 %v14716_v56  ;;  %v7854_v15 = vsub.f32 %v15444_v32, %v15469_v55 }
 0x5a2   :  { %17750 = vst [vmem:[#allocation113_spill] sm:$0xff] %v15473_v61  ;;  %7983 = vmatpush.msrb.mxu0 %v17735_v30  ;;  %8122 = vmatpush.msrb.mxu2 %v17751_v25  ;;  %v17759_v25 = vld [vmem:[#allocation92_spill] sm:$0xff] }
 0x5a3   :  { %8193 = vmatpush.msrb.mxu3 %v15106_v24  ;;  %7848 = vmatmul.f32.gmra.mxu2 %v15460_v14  ;;  %v15505_v24 = vand.u32 4294901760, %v7854_v15 }
 0x5a4   :  { %7986 = vmatpush.msrb.mxu0 %v17741_v39  ;;  %8126 = vmatpush.msrb.mxu2 %v17753_v35  ;;  %v15494_v39 = vsub.f32 %v46_v50, %v15473_v61 }
 0x5a5   :  { %8195 = vmatpush.msrb.mxu3 %v17754_v8  ;;  %v15488_v30 = vpop.f32.mrf.mxu0  ;;  %v15496_v54 = vpop.f32.mrf.mxu2  ;;  %8057 = vmatpush.msrb.mxu1 %v17754_v8 }
 0x5a6   :  { %7969 = vmatmul.f32.gmra.mxu3 %v15378_v36  ;;  %17755 = vst [vmem:[#allocation17_spill] sm:$0xff] %v15488_v30  ;;  %v15490_v46 = vpop.f32.mrf.mxu1  ;;  %7989 = vmatpush.msrb.mxu0 %v17748_v57  ;;  %v17761_v57 = vand.u32 4294901760, %v15201_v27  ;;  %v15513_v50 = vand.u32 4294901760, %v15494_v39 }
 0x5a7   :  { %17756 = vst [vmem:[#allocation8_spill] sm:$0xff] %v15490_v46  ;;  %8130 = vmatpush.msrb.mxu2 %v17758_v49  ;;  %8197 = vmatpush.msrb.mxu3 %v17759_v25  ;;  %v15501_v35 = vpop.f32.mrf.mxu3 }
 0x5a8   :  { %17757 = vst [vmem:[#allocation3_spill] sm:$0xff] %v15496_v54  ;;  %7992 = vmatpush.msrb.mxu0 %v15148_v3  ;;  %v17762_v3 = vand.u32 4294901760, %v15219_v37  ;;  %8059 = vmatpush.msrb.mxu1 %v17759_v25 }
 0x5a9   :  { %17760 = vst [vmem:[#allocation76_spill] sm:$0xff] %v15501_v35  ;;  %8134 = vmatpush.msrb.mxu2 %v17761_v57  ;;  %8199 = vmatpush.msrb.mxu3 %v15150_v11 }
 0x5aa   :  { %7742 = vmatmul.f32.gmra.mxu0 %v14716_v56  ;;  %7795 = vmatmul.f32.gmra.mxu1 %v14746_v22 }
 0x5ab   :  { %7995 = vmatpush.msrb.mxu0 %v17752_v18  ;;  %8138 = vmatpush.msrb.mxu2 %v17762_v3  ;;  %v7862_v18 = vsub.f32 %v15494_v39, %v15513_v50 }
 0x5ac   :  { %8201 = vmatpush.msrb.mxu3 %v15176_v43  ;;  %7856 = vmatmul.f32.gmra.mxu2 %v15505_v24 }
 0x5ad   :  { %7998 = vmatpush.msrb.mxu0 %v15179_v60  ;;  %8142 = vmatpush.msrb.mxu2 %v7918_v26  ;;  %v15525_v56 = vpop.f32.mrf.mxu0  ;;  %v15532_v8 = vpop.f32.mrf.mxu2  ;;  %v15545_v26 = vand.u32 4294901760, %v7862_v18  ;;  %v72_v18 = vld [vmem:[%s16427_s2 + $0xc8] sm:$0xff] }
 0x5ae   :  { %8203 = vmatpush.msrb.mxu3 %v15189_v16  ;;  %17763 = vst [vmem:[#allocation28_spill] sm:$0xff] %v15525_v56  ;;  %v15527_v15 = vpop.f32.mrf.mxu1  ;;  %8061 = vmatpush.msrb.mxu1 %v15150_v11  ;;  %v15686_v3 = vand.u32 4294901760, %v72_v18 }
 0x5af   :  { %17764 = vst [vmem:[#allocation20_spill] sm:$0xff] %v15527_v15  ;;  %7973 = vmatmul.f32.gmra.mxu3 %v15429_v28  ;;  %8001 = vmatpush.msrb.mxu0 %v15201_v27  ;;  %v15538_v60 = vpop.f32.mrf.mxu3 }
 0x5b0   :  { %17765 = vst [vmem:[#allocation123_spill] sm:$0xff] %v15532_v8  ;;  %8146 = vmatpush.msrb.mxu2 %v7924_v10  ;;  %8205 = vmatpush.msrb.mxu3 %v15193_v40 }
 0x5b1   :  { %17766 = vst [vmem:[#allocation122_spill] sm:$0xff] %v15538_v60  ;;  %8004 = vmatpush.msrb.mxu0 %v15219_v37  ;;  %8063 = vmatpush.msrb.mxu1 %v15176_v43  ;;  %v90_v37 = vld [vmem:[%s16427_s2 + $0x158] sm:$0xff] }
 0x5b2   :  { %8150 = vmatpush.msrb.mxu2 %v7930_v12  ;;  %17767 = vst [vmem:[#allocation15_spill] sm:$0xff] %v15545_v26  ;;  %8207 = vmatpush.msrb.mxu3 %v15234_v33 }
 0x5b3   :  { %7746 = vmatmul.f32.gmra.mxu0 %v14746_v22  ;;  %7799 = vmatmul.f32.gmra.mxu1 %v14777_v5  ;;  %v93_v22 = vld [vmem:[%s16427_s2 + $0x170] sm:$0xff] }
 0x5b4   :  { %8007 = vmatpush.msrb.mxu0 %v15224_v42  ;;  %8065 = vmatpush.msrb.mxu1 %v15189_v16  ;;  %v15577_v42 = vand.u32 4294901760, %v93_v22 }
 0x5b5   :  { %8154 = vmatpush.msrb.mxu2 %v7936_v31  ;;  %8209 = vmatpush.msrb.mxu3 %v15254_v17  ;;  %v15556_v43 = vpop.f32.mrf.mxu0  ;;  %v15565_v16 = vpop.f32.mrf.mxu2 }
 0x5b6   :  { %7864 = vmatmul.f32.gmra.mxu2 %v15545_v26  ;;  %17768 = vst [vmem:[#allocation16_spill] sm:$0xff] %v15556_v43  ;;  %v15558_v11 = vpop.f32.mrf.mxu1  ;;  %8010 = vmatpush.msrb.mxu0 %v15265_v1  ;;  %v15587_v1 = vand.u32 4294901760, %v90_v37 }
 0x5b7   :  { %17769 = vst [vmem:[#allocation24_spill] sm:$0xff] %v15558_v11  ;;  %8067 = vmatpush.msrb.mxu1 %v15193_v40  ;;  %8158 = vmatpush.msrb.mxu2 %v7942_v0  ;;  %v15570_v27 = vpop.f32.mrf.mxu3  ;;  %v87_v40 = vld [vmem:[%s16427_s2 + $0x140] sm:$0xff]  ;;  %v81_v0 = vld [vmem:[%s16427_s2 + $0x110] sm:$0xff]  ;;  %v48_v11 = vld [vmem:[%s16427_s2 + $0x8] sm:$0xff] }
 0x5b8   :  { %17770 = vst [vmem:[#allocation121_spill] sm:$0xff] %v15565_v16  ;;  %8211 = vmatpush.msrb.mxu3 %v15267_v48  ;;  %8013 = vmatpush.msrb.mxu0 %v15281_v6  ;;  %v15598_v6 = vsub.f32 %v93_v22, %v15577_v42  ;;  %v15600_v10 = vand.u32 4294901760, %v87_v40  ;;  %v15645_v49 = vand.u32 4294901760, %v81_v0  ;;  %v15843_v23 = vand.u32 4294901760, %v48_v11 }
 0x5b9   :  { %17771 = vst [vmem:[#allocation125_spill] sm:$0xff] %v15570_v27  ;;  %7977 = vmatmul.f32.gmra.mxu3 %v15473_v61  ;;  %8069 = vmatpush.msrb.mxu1 %v15234_v33  ;;  %v84_v33 = vld [vmem:[%s16427_s2 + $0x128] sm:$0xff] }
 0x5ba   :  { %8162 = vmatpush.msrb.mxu2 %v7948_v34  ;;  %8213 = vmatpush.msrb.mxu3 %v15293_v19  ;;  %v15616_v31 = vand.u32 4294901760, %v84_v33  ;;  %v15629_v34 = vsub.f32 %v87_v40, %v15600_v10 }
 0x5bb   :  { %8016 = vmatpush.msrb.mxu0 %v15296_v58  ;;  %8071 = vmatpush.msrb.mxu1 %v15254_v17 }
 0x5bc   :  { %8166 = vmatpush.msrb.mxu2 %v7954_v59  ;;  %8215 = vmatpush.msrb.mxu3 %v15311_v53  ;;  %v16697_v25 = vand.u32 4294901760, %v15629_v34 }
 0x5bd   :  { %7750 = vmatmul.f32.gmra.mxu0 %v14777_v5  ;;  %8073 = vmatpush.msrb.mxu1 %v15267_v48  ;;  %v15604_v17 = vpop.f32.mrf.mxu0  ;;  %v15611_v12 = vpop.f32.mrf.mxu2  ;;  %v15614_v5 = vsub.f32 %v90_v37, %v15587_v1  ;;  %v15673_v37 = vsub.f32 %v81_v0, %v15645_v49 }
 0x5be   :  { %8019 = vmatpush.msrb.mxu0 %v15325_v2  ;;  %17772 = vst [vmem:[#allocation26_spill] sm:$0xff] %v15604_v17  ;;  %v15606_v58 = vpop.f32.mrf.mxu1  ;;  %8170 = vmatpush.msrb.mxu2 %v7960_v13  ;;  %v16696_v2 = vand.u32 4294901760, %v15598_v6 }
 0x5bf   :  { %17773 = vst [vmem:[#allocation124_spill] sm:$0xff] %v15606_v58  ;;  %8217 = vmatpush.msrb.mxu3 %v15327_v63  ;;  %8172 = vmatmul.f32.vlgmr.msrb.gmra.mxu2 %v15329_v41  ;;  %v15621_v48 = vpop.f32.mrf.mxu3  ;;  %v16695_v59 = vand.u32 4294901760, %v15614_v5 }
 0x5c0   :  { %17774 = vst [vmem:[#allocation21_spill] sm:$0xff] %v15611_v12  ;;  %8022 = vmatpush.msrb.mxu0 %v15340_v62  ;;  %8075 = vmatpush.msrb.mxu1 %v15293_v19  ;;  %v78_v62 = vld [vmem:[%s16427_s2 + $0xf8] sm:$0xff]  ;;  %v15640_v19 = vsub.f32 %v84_v33, %v15616_v31  ;;  %v8305_v13 = vsub.f32 %v15598_v6, %v16696_v2 }
 0x5c1   :  { %17775 = vst [vmem:[#allocation130_spill] sm:$0xff] %v15621_v48  ;;  %8219 = vmatpush.msrb.mxu3 %v15342_v38  ;;  %8417 = vmatpush.msra.mxu2 %v15598_v6  ;;  %v15658_v57 = vand.u32 4294901760, %v78_v62  ;;  %v8317_v33 = vsub.f32 %v15629_v34, %v16697_v25 }
 0x5c2   :  { %8221 = vmatmul.f32.vlgmr.msrb.gmra.mxu3 %v15329_v41  ;;  %8025 = vmatpush.msrb.mxu0 %v15352_v7  ;;  %v75_v7 = vld [vmem:[%s16427_s2 + $0xe0] sm:$0xff] }
 0x5c3   :  { %8077 = vmatpush.msrb.mxu1 %v15311_v53  ;;  %8420 = vmatpush.msra.mxu2 %v15614_v5  ;;  %v8311_v53 = vsub.f32 %v15614_v5, %v16695_v59  ;;  %v15680_v59 = vand.u32 4294901760, %v75_v7  ;;  %v15691_v0 = vsub.f32 %v78_v62, %v15658_v57 }
 0x5c4   :  { %8485 = vmatpush.msra.mxu3 %v15577_v42  ;;  %8028 = vmatpush.msrb.mxu0 %v15368_v44 }
 0x5c5   :  { %8079 = vmatpush.msrb.mxu1 %v15327_v63  ;;  %8423 = vmatpush.msra.mxu2 %v15629_v34  ;;  %v15666_v22 = vpop.f32.mrf.mxu0  ;;  %v8306_v63 = vand.u32 4294901760, %v8305_v13  ;;  %v15675_v40 = vpop.f32.mrf.mxu2  ;;  %v17780_v13 = vand.u32 4294901760, %v15640_v19  ;;  %v15704_v62 = vsub.f32 %v75_v7, %v15680_v59  ;;  %v17781_v7 = vand.u32 4294901760, %v15673_v37 }
 0x5c6   :  { %8487 = vmatpush.msra.mxu3 %v15587_v1  ;;  %17776 = vst [vmem:[#allocation126_spill] sm:$0xff] %v15666_v22  ;;  %v15668_v44 = vpop.f32.mrf.mxu1  ;;  %8031 = vmatmul.f32.vlgmr.msrb.gmra.mxu0 %v15355_v29 }
 0x5c7   :  { %17777 = vst [vmem:[#allocation23_spill] sm:$0xff] %v15668_v44  ;;  %8081 = vmatpush.msrb.mxu1 %v15342_v38  ;;  %8238 = vmatpush.msra.mxu0 %v15577_v42  ;;  %v15684_v2 = vpop.f32.mrf.mxu3  ;;  %v8312_v38 = vand.u32 4294901760, %v8311_v53  ;;  %v8323_v25 = vsub.f32 %v15640_v19, %v17780_v13  ;;  %v8318_v53 = vand.u32 4294901760, %v8317_v33  ;;  %v66_v13 = vld [vmem:[%s16427_s2 + $0x98] sm:$0xff]  ;;  %v8329_v33 = vsub.f32 %v15673_v37, %v17781_v7 }
 0x5c8   :  { %17778 = vst [vmem:[#allocation128_spill] sm:$0xff] %v15675_v40  ;;  %8426 = vmatpush.msra.mxu2 %v15640_v19  ;;  %8489 = vmatpush.msra.mxu3 %v15600_v10  ;;  %v15713_v40 = vsub.f32 %v72_v18, %v15686_v3  ;;  %v15728_v44 = vand.u32 4294901760, %v66_v13  ;;  %v17786_v7 = vand.u32 4294901760, %v15691_v0 }
 0x5c9   :  { %17779 = vst [vmem:[#allocation5_spill] sm:$0xff] %v15684_v2  ;;  %8085 = vmatmul.f32.vlgmr.msrb.gmra.mxu1 %v15384_v20  ;;  %8176 = vmatmul.f32.gmra.mxu2 %v15378_v36  ;;  %v69_v2 = vld [vmem:[%s16427_s2 + $0xb0] sm:$0xff] }
 0x5ca   :  { %8240 = vmatpush.msra.mxu0 %v15587_v1  ;;  %8307 = vmatpush.msra.mxu1 %v8306_v63  ;;  %v8324_v63 = vand.u32 4294901760, %v8323_v25  ;;  %v15719_v48 = vand.u32 4294901760, %v69_v2  ;;  %17784 = vst [vmem:[#allocation25_spill] sm:$0xff] %v15728_v44  ;;  %v63_v25 = vld [vmem:[%s16427_s2 + $0x80] sm:$0xff]  ;;  %v8335_v12 = vsub.f32 %v15691_v0, %v17786_v7  ;;  %v17788_v7 = vand.u32 4294901760, %v15704_v62 }
 0x5cb   :  { %8429 = vmatpush.msra.mxu2 %v15673_v37  ;;  %8491 = vmatpush.msra.mxu3 %v15616_v31  ;;  %v15754_v15 = vand.u32 4294901760, %v63_v25  ;;  %v15759_v43 = vsub.f32 %v66_v13, %v15728_v44  ;;  %v57_v13 = vld [vmem:[%s16427_s2 + $0x50] sm:$0xff] }
 0x5cc   :  { %8242 = vmatpush.msra.mxu0 %v15600_v10  ;;  %8225 = vmatmul.f32.gmra.mxu3 %v15378_v36  ;;  %v8341_v16 = vsub.f32 %v15704_v62, %v17788_v7  ;;  %v15798_v46 = vand.u32 4294901760, %v57_v13 }
 0x5cd   :  { %8313 = vmatpush.msra.mxu1 %v8312_v38  ;;  %8432 = vmatpush.msra.mxu2 %v15691_v0  ;;  %v15724_v27 = vpop.f32.mrf.mxu0  ;;  %v15734_v38 = vpop.f32.mrf.mxu2  ;;  %17789 = vst [vmem:[#allocation6_spill] sm:$0xff] %v15754_v15  ;;  %v15777_v58 = vsub.f32 %v63_v25, %v15754_v15 }
 0x5ce   :  { %8493 = vmatpush.msra.mxu3 %v15645_v49  ;;  %17782 = vst [vmem:[#allocation132_spill] sm:$0xff] %v15724_v27  ;;  %v15726_v18 = vpop.f32.mrf.mxu1  ;;  %8244 = vmatpush.msra.mxu0 %v15616_v31  ;;  %v15834_v35 = vsub.f32 %v57_v13, %v15798_v46 }
 0x5cf   :  { %17783 = vst [vmem:[#allocation18_spill] sm:$0xff] %v15726_v18  ;;  %8319 = vmatpush.msra.mxu1 %v8318_v53  ;;  %v60_v18 = vld [vmem:[%s16427_s2 + $0x68] sm:$0xff]  ;;  %8435 = vmatpush.msra.mxu2 %v15704_v62  ;;  %v15745_v27 = vpop.f32.mrf.mxu3  ;;  %v8330_v53 = vand.u32 4294901760, %v8329_v33  ;;  %v17801_v54 = vand.u32 4294901760, %v15777_v58 }
 0x5d0   :  { %17785 = vst [vmem:[#allocation10_spill] sm:$0xff] %v15734_v38  ;;  %8495 = vmatpush.msra.mxu3 %v15658_v57  ;;  %8036 = vmatmul.f32.gmra.mxu0 %v15404_v52  ;;  %v15749_v38 = vsub.f32 %v69_v2, %v15719_v48  ;;  %v8336_v2 = vand.u32 4294901760, %v8335_v12  ;;  %v8342_v12 = vand.u32 4294901760, %v8341_v16  ;;  %v54_v16 = vld [vmem:[%s16427_s2 + $0x38] sm:$0xff] }
 0x5d1   :  { %17787 = vst [vmem:[#allocation129_spill] sm:$0xff] %v15745_v27  ;;  %8325 = vmatpush.msra.mxu1 %v8324_v63  ;;  %8246 = vmatpush.msra.mxu0 %v15645_v49  ;;  %v15761_v27 = vand.u32 4294901760, %v60_v18  ;;  %v17791_v63 = vand.u32 4294901760, %v15713_v40  ;;  %v8365_v17 = vsub.f32 %v15777_v58, %v17801_v54 }
 0x5d2   :  { %8438 = vmatpush.msra.mxu2 %v15713_v40  ;;  %8497 = vmatpush.msra.mxu3 %v15680_v59  ;;  %v17795_v60 = vand.u32 4294901760, %v15749_v38  ;;  %17796 = vst [vmem:[#allocation29_spill] sm:$0xff] %v15798_v46 }
 0x5d3   :  { %17790 = vst [vmem:[#allocation32_spill] sm:$0xff] %v15761_v27  ;;  %8091 = vmatmul.f32.gmra.mxu1 %v15427_v4  ;;  %v8347_v33 = vsub.f32 %v15713_v40, %v17791_v63  ;;  %8180 = vmatmul.f32.gmra.mxu2 %v15429_v28  ;;  %v94_v63 = vld [vmem:[%s16427_s2 + $0x178] sm:$0xff]  ;;  %v15785_v7 = vsub.f32 %v60_v18, %v15761_v27 }
 0x5d4   :  { %8248 = vmatpush.msra.mxu0 %v15658_v57  ;;  %8331 = vmatpush.msra.mxu1 %v8330_v53  ;;  %v8353_v22 = vsub.f32 %v15749_v38, %v17795_v60  ;;  %v51_v60 = vld [vmem:[%s16427_s2 + $0x20] sm:$0xff]  ;;  %17800 = vst [vmem:[#allocation4_spill] sm:$0xff] %v15834_v35 }
 0x5d5   :  { %8441 = vmatpush.msra.mxu2 %v15749_v38  ;;  %8499 = vmatpush.msra.mxu3 %v15686_v3  ;;  %17792 = vst [vmem:[#allocation13_spill] sm:$0xff] %v15785_v7  ;;  %v15787_v8 = vpop.f32.mrf.mxu0  ;;  %v8348_v25 = vand.u32 4294901760, %v8347_v33  ;;  %v15800_v18 = vpop.f32.mrf.mxu2  ;;  %v15839_v45 = vand.u32 4294901760, %v51_v60  ;;  %v17804_v54 = vand.u32 4294901760, %v15785_v7 }
 0x5d6   :  { %8250 = vmatpush.msra.mxu0 %v15680_v59  ;;  %17793 = vst [vmem:[#allocation22_spill] sm:$0xff] %v15787_v8  ;;  %v15789_v53 = vpop.f32.mrf.mxu1  ;;  %8229 = vmatmul.f32.gmra.mxu3 %v15429_v28  ;;  %v15819_v8 = vand.u32 4294901760, %v54_v16 }
 0x5d7   :  { %17794 = vst [vmem:[#allocation30_spill] sm:$0xff] %v15789_v53  ;;  %8337 = vmatpush.msra.mxu1 %v8336_v2  ;;  %v91_v53 = vld [vmem:[%s16427_s2 + $0x160] sm:$0xff]  ;;  %8444 = vmatpush.msra.mxu2 %v15759_v43  ;;  %v17798_v2 = vand.u32 4294901760, %v15759_v43  ;;  %v15811_v56 = vpop.f32.mrf.mxu3  ;;  %v8371_v13 = vsub.f32 %v15785_v7, %v17804_v54  ;;  %v8366_v54 = vand.u32 4294901760, %v8365_v17 }
 0x5d8   :  { %17797 = vst [vmem:[#allocation7_spill] sm:$0xff] %v15800_v18  ;;  %8501 = vmatpush.msra.mxu3 %v15719_v48  ;;  %v15816_v18 = vand.u32 4294901760, %v94_v63  ;;  %8252 = vmatpush.msra.mxu0 %v15686_v3 }
 0x5d9   :  { %v8359_v33 = vsub.f32 %v15759_v43, %v17798_v2  ;;  %17799 = vst [vmem:[#allocation19_spill] sm:$0xff] %v15811_v56  ;;  %8343 = vmatpush.msra.mxu1 %v8342_v12  ;;  %8447 = vmatpush.msra.mxu2 %v15777_v58  ;;  %v15827_v2 = vand.u32 4294901760, %v91_v53  ;;  %v88_v56 = vld [vmem:[%s16427_s2 + $0x148] sm:$0xff]  ;;  %v8354_v12 = vand.u32 4294901760, %v8353_v22  ;;  %v15851_v22 = vsub.f32 %v54_v16, %v15819_v8 }
 0x5da   :  { %8503 = vmatpush.msra.mxu3 %v15728_v44  ;;  %8041 = vmatmul.f32.gmra.mxu0 %v15444_v32  ;;  %v15846_v47 = vsub.f32 %v94_v63, %v15816_v18  ;;  %v15857_v9 = vand.u32 4294901760, %v88_v56  ;;  %v85_v63 = vld [vmem:[%s16427_s2 + $0x130] sm:$0xff] }
 0x5db   :  { %8349 = vmatpush.msra.mxu1 %v8348_v25  ;;  %8254 = vmatpush.msra.mxu0 %v15719_v48  ;;  %v8360_v30 = vand.u32 4294901760, %v8359_v33  ;;  %17803 = vst [vmem:[#allocation27_spill] sm:$0xff] %v15851_v22  ;;  %v15869_v21 = vsub.f32 %v91_v53, %v15827_v2  ;;  %v15873_v25 = vsub.f32 %v51_v60, %v15839_v45  ;;  %v15889_v60 = vand.u32 4294901760, %v85_v63 }
 0x5dc   :  { %8450 = vmatpush.msra.mxu2 %v15785_v7  ;;  %17802 = vst [vmem:[#allocation11_spill] sm:$0xff] %v15846_v47  ;;  %8505 = vmatpush.msra.mxu3 %v15754_v15  ;;  %v15884_v53 = vsub.f32 %v48_v11, %v15843_v23  ;;  %v16707_v17 = vand.u32 4294901760, %v15846_v47  ;;  %v8372_v7 = vand.u32 4294901760, %v8371_v13  ;;  %v79_v11 = vld [vmem:[%s16427_s2 + $0x100] sm:$0xff] }
 0x5dd   :  { %8097 = vmatmul.f32.gmra.mxu1 %v15469_v55  ;;  %17805 = vst [vmem:[#allocation133_spill] sm:$0xff] %v15857_v9  ;;  %8184 = vmatmul.f32.gmra.mxu2 %v15473_v61  ;;  %v15864_v33 = vpop.f32.mrf.mxu0  ;;  %v15875_v26 = vpop.f32.mrf.mxu2 }
 0x5de   :  { %8256 = vmatpush.msra.mxu0 %v15728_v44  ;;  %17806 = vst [vmem:[#allocation49_spill] sm:$0xff] %v15864_v33  ;;  %v15866_v16 = vpop.f32.mrf.mxu1  ;;  %8355 = vmatpush.msra.mxu1 %v8354_v12  ;;  %v82_v33 = vld [vmem:[%s16427_s2 + $0x118] sm:$0xff]  ;;  %v17815_v44 = vand.u32 4294901760, %v15873_v25 }
 0x5df   :  { %17807 = vst [vmem:[#allocation39_spill] sm:$0xff] %v15866_v16  ;;  %8453 = vmatpush.msra.mxu2 %v15834_v35  ;;  %8507 = vmatpush.msra.mxu3 %v15761_v27  ;;  %v15887_v12 = vpop.f32.mrf.mxu3  ;;  %v17812_v16 = vand.u32 4294901760, %v15834_v35  ;;  %v15905_v13 = vand.u32 4294901760, %v82_v33 }
 0x5e0   :  { %17808 = vst [vmem:[#allocation37_spill] sm:$0xff] %v15869_v21  ;;  %8258 = vmatpush.msra.mxu0 %v15754_v15  ;;  %8233 = vmatmul.f32.gmra.mxu3 %v15473_v61  ;;  %v15897_v15 = vsub.f32 %v88_v56, %v15857_v9  ;;  %v15920_v61 = vand.u32 4294901760, %v79_v11 }
 0x5e1   :  { %17809 = vst [vmem:[#allocation14_spill] sm:$0xff] %v15873_v25  ;;  %8361 = vmatpush.msra.mxu1 %v8360_v30  ;;  %8456 = vmatpush.msra.mxu2 %v15851_v22  ;;  %v15918_v30 = vsub.f32 %v85_v63, %v15889_v60  ;;  %v17816_v63 = vand.u32 4294901760, %v15869_v21 }
 0x5e2   :  { %17810 = vst [vmem:[#allocation9_spill] sm:$0xff] %v15875_v26  ;;  %v8377_v26 = vsub.f32 %v15834_v35, %v17812_v16  ;;  %8509 = vmatpush.msra.mxu3 %v15798_v46  ;;  %8260 = vmatpush.msra.mxu0 %v15761_v27  ;;  %v17814_v16 = vand.u32 4294901760, %v15851_v22 }
 0x5e3   :  { %17811 = vst [vmem:[#allocation2_spill] sm:$0xff] %v15887_v12  ;;  %8367 = vmatpush.msra.mxu1 %v8366_v54  ;;  %8459 = vmatpush.msra.mxu2 %v15873_v25  ;;  %v8739_v12 = vsub.f32 %v15846_v47, %v16707_v17  ;;  %v76_v54 = vld [vmem:[%s16427_s2 + $0xe8] sm:$0xff]  ;;  %v8745_v17 = vsub.f32 %v15869_v21, %v17816_v63  ;;  %v73_v63 = vld [vmem:[%s16427_s2 + $0xd0] sm:$0xff] }
 0x5e4   :  { %17813 = vst [vmem:[#allocation48_spill] sm:$0xff] %v15897_v15  ;;  %v8383_v56 = vsub.f32 %v15851_v22, %v17814_v16  ;;  %8511 = vmatpush.msra.mxu3 %v15819_v8  ;;  %8046 = vmatmul.f32.gmra.mxu0 %v15494_v39  ;;  %v8378_v16 = vand.u32 4294901760, %v8377_v26  ;;  %v8389_v22 = vsub.f32 %v15873_v25, %v17815_v44 }
 0x5e5   :  { %8373 = vmatpush.msra.mxu1 %v8372_v7  ;;  %8262 = vmatpush.msra.mxu0 %v15798_v46  ;;  %v15935_v47 = vpop.f32.mrf.mxu0  ;;  %v15940_v26 = vsub.f32 %v82_v33, %v15905_v13  ;;  %v17820_v7 = vand.u32 4294901760, %v15884_v53  ;;  %v15947_v25 = vpop.f32.mrf.mxu2  ;;  %v15949_v46 = vand.u32 4294901760, %v76_v54  ;;  %v8740_v33 = vand.u32 4294901760, %v8739_v12 }
 0x5e6   :  { %8462 = vmatpush.msra.mxu2 %v15884_v53  ;;  %17817 = vst [vmem:[#allocation134_spill] sm:$0xff] %v15935_v47  ;;  %v15937_v27 = vpop.f32.mrf.mxu1  ;;  %8513 = vmatpush.msra.mxu3 %v15839_v45  ;;  %v8384_v44 = vand.u32 4294901760, %v8383_v56  ;;  %v15960_v47 = vsub.f32 %v79_v11, %v15920_v61  ;;  %v8746_v12 = vand.u32 4294901760, %v8745_v17  ;;  %v17824_v17 = vand.u32 4294901760, %v15918_v30 }
 0x5e7   :  { %17818 = vst [vmem:[#allocation127_spill] sm:$0xff] %v15937_v27  ;;  %8103 = vmatmul.f32.gmra.mxu1 %v15513_v50  ;;  %v8395_v35 = vsub.f32 %v15884_v53, %v17820_v7  ;;  %8465 = vmatmul.f32.vlgmr.msra.gmra.mxu2 %v15355_v29  ;;  %v15957_v56 = vpop.f32.mrf.mxu3  ;;  %v8390_v7 = vand.u32 4294901760, %v8389_v22  ;;  %v70_v29 = vld [vmem:[%s16427_s2 + $0xb8] sm:$0xff]  ;;  %v15972_v27 = vand.u32 4294901760, %v73_v63 }
 0x5e8   :  { %17819 = vst [vmem:[#allocation131_spill] sm:$0xff] %v15940_v26  ;;  %8264 = vmatpush.msra.mxu0 %v15819_v8  ;;  %8379 = vmatpush.msra.mxu1 %v8378_v16  ;;  %v15976_v16 = vsub.f32 %v76_v54, %v15949_v46  ;;  %v8757_v11 = vsub.f32 %v15918_v30, %v17824_v17  ;;  %v17825_v54 = vand.u32 4294901760, %v15940_v26 }
 0x5e9   :  { %17821 = vst [vmem:[#allocation46_spill] sm:$0xff] %v15947_v25  ;;  %8515 = vmatpush.msra.mxu3 %v15843_v23  ;;  %v17823_v25 = vand.u32 4294901760, %v15897_v15  ;;  %8672 = vmatpush.msrb.mxu2 %v15816_v18  ;;  %v8396_v22 = vand.u32 4294901760, %v8395_v35 }
 0x5ea   :  { %17822 = vst [vmem:[#allocation35_spill] sm:$0xff] %v15957_v56  ;;  %8519 = vmatmul.f32.vlgmr.msra.gmra.mxu3 %v15384_v20  ;;  %8266 = vmatpush.msra.mxu0 %v15839_v45  ;;  %v15986_v20 = vand.u32 4294901760, %v70_v29 }
 0x5eb   :  { %v8751_v21 = vsub.f32 %v15897_v15, %v17823_v25  ;;  %8385 = vmatpush.msra.mxu1 %v8384_v44  ;;  %v67_v25 = vld [vmem:[%s16427_s2 + $0xa0] sm:$0xff]  ;;  %8674 = vmatpush.msrb.mxu2 %v15827_v2  ;;  %v8763_v44 = vsub.f32 %v15940_v26, %v17825_v54  ;;  %v8758_v54 = vand.u32 4294901760, %v8757_v11  ;;  %v17832_v11 = vand.u32 4294901760, %v15614_v5 }
 0x5ec   :  { %8741 = vmatpush.msrb.mxu3 %v8740_v33  ;;  %8268 = vmatpush.msra.mxu0 %v15843_v23  ;;  %v15994_v33 = vsub.f32 %v73_v63, %v15972_v27  ;;  %v16000_v56 = vand.u32 4294901760, %v67_v25  ;;  %v17829_v63 = vand.u32 4294901760, %v15598_v6  ;;  %v16016_v26 = vsub.f32 %v70_v29, %v15986_v20  ;;  %v61_v6 = vld [vmem:[%s16427_s2 + $0x70] sm:$0xff] }
 0x5ed   :  { %8391 = vmatpush.msra.mxu1 %v8390_v7  ;;  %v8752_v35 = vand.u32 4294901760, %v8751_v21  ;;  %8676 = vmatpush.msrb.mxu2 %v15857_v9  ;;  %v15996_v15 = vpop.f32.mrf.mxu0  ;;  %v64_v21 = vld [vmem:[%s16427_s2 + $0x88] sm:$0xff]  ;;  %v16723_v7 = vand.u32 4294901760, %v15976_v16  ;;  %v17833_v5 = vand.u32 4294901760, %v15629_v34 }
 0x5ee   :  { %8747 = vmatpush.msrb.mxu3 %v8746_v12  ;;  %17826 = vst [vmem:[#allocation135_spill] sm:$0xff] %v15996_v15  ;;  %v15998_v17 = vpop.f32.mrf.mxu1  ;;  %8274 = vmatmul.f32.vlgmr.msra.gmra.mxu0 %v15424_v51  ;;  %v16007_v12 = vpop.f32.mrf.mxu2  ;;  %v16724_v29 = vand.u32 4294901760, %v15994_v33 }
 0x5ef   :  { %17827 = vst [vmem:[#allocation47_spill] sm:$0xff] %v15998_v17  ;;  %8397 = vmatpush.msra.mxu1 %v8396_v22  ;;  %8544 = vmatpush.msrb.mxu0 %v17829_v63  ;;  %v17830_v17 = vand.u32 4294901760, %v15960_v47  ;;  %v16018_v9 = vpop.f32.mrf.mxu3  ;;  %v16021_v22 = vand.u32 4294901760, %v64_v21  ;;  %v16031_v63 = vsub.f32 %v67_v25, %v16000_v56 }
 0x5f0   :  { %17828 = vst [vmem:[#allocation34_spill] sm:$0xff] %v16007_v12  ;;  %8678 = vmatpush.msrb.mxu2 %v15889_v60  ;;  %8753 = vmatpush.msrb.mxu3 %v8752_v35  ;;  %v8775_v35 = vsub.f32 %v15976_v16, %v16723_v7  ;;  %v55_v7 = vld [vmem:[%s16427_s2 + $0x40] sm:$0xff] }
 0x5f1   :  { %v8769_v15 = vsub.f32 %v15960_v47, %v17830_v17  ;;  %17831 = vst [vmem:[#allocation138_spill] sm:$0xff] %v16018_v9  ;;  %8399 = vmatmul.f32.vlgmr.msra.gmra.mxu1 %v15329_v41  ;;  %8470 = vmatmul.f32.gmra.mxu2 %v15404_v52  ;;  %v8764_v17 = vand.u32 4294901760, %v8763_v44  ;;  %v58_v9 = vld [vmem:[%s16427_s2 + $0x58] sm:$0xff] }
 0x5f2   :  { %8548 = vmatpush.msrb.mxu0 %v17832_v11  ;;  %8623 = vmatpush.msrb.mxu1 %v15577_v42  ;;  %v16044_v11 = vand.u32 4294901760, %v61_v6  ;;  %v16049_v42 = vsub.f32 %v64_v21, %v16021_v22  ;;  %v17835_v21 = vand.u32 4294901760, %v15640_v19  ;;  %v8776_v25 = vand.u32 4294901760, %v8775_v35 }
 0x5f3   :  { %8680 = vmatpush.msrb.mxu2 %v15905_v13  ;;  %8759 = vmatpush.msrb.mxu3 %v8758_v54  ;;  %v8770_v44 = vand.u32 4294901760, %v8769_v15  ;;  %v8781_v15 = vsub.f32 %v15994_v33, %v16724_v29  ;;  %v16059_v54 = vand.u32 4294901760, %v58_v9  ;;  %v17839_v35 = vand.u32 4294901760, %v15673_v37 }
 0x5f4   :  { %8552 = vmatpush.msrb.mxu0 %v17833_v5  ;;  %8525 = vmatmul.f32.gmra.mxu3 %v15427_v4  ;;  %v16073_v34 = vsub.f32 %v61_v6, %v16044_v11  ;;  %v16726_v19 = vand.u32 4294901760, %v16049_v42  ;;  %v17841_v37 = vand.u32 4294901760, %v15691_v0  ;;  %v17842_v0 = vand.u32 4294901760, %v15704_v62 }
 0x5f5   :  { %8625 = vmatpush.msrb.mxu1 %v15587_v1  ;;  %8682 = vmatpush.msrb.mxu2 %v15920_v61  ;;  %v16061_v5 = vpop.f32.mrf.mxu0  ;;  %v8782_v6 = vand.u32 4294901760, %v8781_v15 }
 0x5f6   :  { %8765 = vmatpush.msrb.mxu3 %v8764_v17  ;;  %17834 = vst [vmem:[#allocation139_spill] sm:$0xff] %v16061_v5  ;;  %v7532_v1 = vpop.f32.mrf.mxu1  ;;  %8556 = vmatpush.msrb.mxu0 %v17835_v21  ;;  %v16066_v12 = vpop.f32.mrf.mxu2  ;;  %v17837_v17 = vand.u32 4294901760, %v16016_v26  ;;  %v16075_v5 = vand.u32 4294901760, %v55_v7 }
 0x5f7   :  { %8627 = vmatpush.msrb.mxu1 %v15600_v10  ;;  %17836 = vst [vmem:[#allocation137_spill] sm:$0xff] %v16066_v12  ;;  %8684 = vmatpush.msrb.mxu2 %v15949_v46  ;;  %v16077_v4 = vpop.f32.mrf.mxu3  ;;  %v52_v10 = vld [vmem:[%s16427_s2 + $0x28] sm:$0xff] }
 0x5f8   :  { %8771 = vmatpush.msrb.mxu3 %v8770_v44  ;;  %v8787_v29 = vsub.f32 %v16016_v26, %v17837_v17  ;;  %17838 = vst [vmem:[#allocation45_spill] sm:$0xff] %v16077_v4  ;;  %8282 = vmatmul.f32.gmra.mxu0 %v15460_v14  ;;  %v17840_v44 = vand.u32 4294901760, %v16031_v63  ;;  %v16092_v17 = vsub.f32 %v58_v9, %v16059_v54  ;;  %v49_v4 = vld [vmem:[%s16427_s2 + $0x10] sm:$0xff] }
 0x5f9   :  { %8629 = vmatpush.msrb.mxu1 %v15616_v31  ;;  %8560 = vmatpush.msrb.mxu0 %v17839_v35  ;;  %v16098_v31 = vand.u32 4294901760, %v52_v10  ;;  %v16105_v9 = vsub.f32 %v55_v7, %v16075_v5 }
 0x5fa   :  { %8686 = vmatpush.msrb.mxu2 %v15972_v27  ;;  %v8793_v21 = vsub.f32 %v16031_v63, %v17840_v44  ;;  %8777 = vmatpush.msrb.mxu3 %v8776_v25  ;;  %v8788_v15 = vand.u32 4294901760, %v8787_v29  ;;  %v8799_v25 = vsub.f32 %v16049_v42, %v16726_v19  ;;  %v16112_v44 = vand.u32 4294901760, %v49_v4 }
 0x5fb   :  { %8403 = vmatmul.f32.gmra.mxu1 %v15378_v36  ;;  %8475 = vmatmul.f32.gmra.mxu2 %v15444_v32 }
 0x5fc   :  { %8564 = vmatpush.msrb.mxu0 %v17841_v37  ;;  %8631 = vmatpush.msrb.mxu1 %v15645_v49  ;;  %v8794_v29 = vand.u32 4294901760, %v8793_v21  ;;  %v16120_v49 = vsub.f32 %v52_v10, %v16098_v31  ;;  %v8816_v21 = vand.u32 4294901760, %v16105_v9  ;;  %v17844_v37 = vand.u32 4294901760, %v15713_v40 }
 0x5fd   :  { %8688 = vmatpush.msrb.mxu2 %v15986_v20  ;;  %8783 = vmatpush.msrb.mxu3 %v8782_v6  ;;  %v17843_v6 = vand.u32 4294901760, %v16073_v34 }
 0x5fe   :  { %8568 = vmatpush.msrb.mxu0 %v17842_v0  ;;  %v7407_v35 = vpop.f32.mrf.mxu0  ;;  %8531 = vmatmul.f32.gmra.mxu3 %v15469_v55  ;;  %v7598_v12 = vpop.f32.mrf.mxu2  ;;  %v8822_v40 = vand.u32 4294901760, %v16120_v49 }
 0x5ff   :  { %8633 = vmatpush.msrb.mxu1 %v15658_v57  ;;  %v7533_v7 = vadd.f32 %v7532_v1, %v7407_v35  ;;  %8690 = vmatpush.msrb.mxu2 %v16000_v56  ;;  %v8805_v62 = vsub.f32 %v16073_v34, %v17843_v6  ;;  %v7536_v0 = vpop.f32.mrf.mxu1  ;;  %v7652_v19 = vpop.f32.mrf.mxu3  ;;  %v8800_v57 = vand.u32 4294901760, %v8799_v25  ;;  %v16131_v1 = vsub.f32 %v49_v4, %v16112_v44 }
 0x600   :  { %8789 = vmatpush.msrb.mxu3 %v8788_v15  ;;  %8572 = vmatpush.msrb.mxu0 %v17844_v37  ;;  %v17845_v15 = vand.u32 4294901760, %v16092_v17 }
 0x601   :  { %8635 = vmatpush.msrb.mxu1 %v15680_v59  ;;  %v7599_v10 = vadd.f32 %v7598_v12, %v7533_v7  ;;  %8692 = vmatpush.msrb.mxu2 %v16021_v22  ;;  %v17846_v59 = vand.u32 4294901760, %v15749_v38  ;;  %v8806_v4 = vand.u32 4294901760, %v8805_v62  ;;  %v8817_v12 = vsub.f32 %v16105_v9, %v8816_v21 }
 0x602   :  { %8795 = vmatpush.msrb.mxu3 %v8794_v29  ;;  %v8811_v35 = vsub.f32 %v16092_v17, %v17845_v15  ;;  %8290 = vmatmul.f32.gmra.mxu0 %v15505_v24  ;;  %v8828_v25 = vand.u32 4294901760, %v16131_v1  ;;  %v8823_v29 = vsub.f32 %v16120_v49, %v8822_v40  ;;  %v17848_v62 = vand.u32 4294901760, %v15777_v58  ;;  %v17852_v58 = vld [vmem:[#allocation6_spill] sm:$0xff] }
 0x603   :  { %8637 = vmatpush.msrb.mxu1 %v15686_v3  ;;  %v16140_v37 = vadd.f32 %v7652_v19, %v7599_v10  ;;  %8576 = vmatpush.msrb.mxu0 %v17846_v59  ;;  %v17847_v3 = vand.u32 4294901760, %v15759_v43  ;;  %v17849_v43 = vld [vmem:[#allocation25_spill] sm:$0xff] }
 0x604   :  { %8694 = vmatpush.msrb.mxu2 %v16044_v11  ;;  %8801 = vmatpush.msrb.mxu3 %v8800_v57  ;;  %v8812_v19 = vand.u32 4294901760, %v8811_v35  ;;  %v8818_v57 = vand.u32 4294901760, %v8817_v12  ;;  %v17850_v35 = vld [vmem:[#allocation13_spill] sm:$0xff] }
 0x605   :  { %8407 = vmatmul.f32.gmra.mxu1 %v15429_v28  ;;  %8480 = vmatmul.f32.gmra.mxu2 %v15494_v39  ;;  %v17851_v59 = vand.u32 4294901760, %v17850_v35 }
 0x606   :  { %8580 = vmatpush.msrb.mxu0 %v17847_v3  ;;  %v7415_v38 = vpop.f32.mrf.mxu0  ;;  %8639 = vmatpush.msrb.mxu1 %v15719_v48  ;;  %v7603_v6 = vpop.f32.mrf.mxu2  ;;  %v8829_v48 = vsub.f32 %v16131_v1, %v8828_v25  ;;  %v17853_v3 = vld [vmem:[#allocation15_spill] sm:$0xff] }
 0x607   :  { %8696 = vmatpush.msrb.mxu2 %v16059_v54  ;;  %v7537_v7 = vadd.f32 %v7536_v0, %v7415_v38  ;;  %8807 = vmatpush.msrb.mxu3 %v8806_v4  ;;  %v7658_v10 = vpop.f32.mrf.mxu3  ;;  %v7540_v0 = vpop.f32.mrf.mxu1  ;;  %v8824_v4 = vand.u32 4294901760, %v8823_v29  ;;  %v17854_v38 = vld [vmem:[#allocation32_spill] sm:$0xff] }
 0x608   :  { %8584 = vmatpush.msrb.mxu0 %v17848_v62  ;;  %8537 = vmatmul.f32.gmra.mxu3 %v15513_v50 }
 0x609   :  { %8641 = vmatpush.msrb.mxu1 %v17849_v43  ;;  %v7604_v15 = vadd.f32 %v7603_v6, %v7537_v7  ;;  %8698 = vmatpush.msrb.mxu2 %v16075_v5  ;;  %v8830_v7 = vand.u32 4294901760, %v8829_v48  ;;  %v17855_v6 = vld [vmem:[#allocation4_spill] sm:$0xff]  ;;  %v17857_v43 = vld [vmem:[#allocation113_spill] sm:$0xff] }
 0x60a   :  { %8813 = vmatpush.msrb.mxu3 %v8812_v19  ;;  %8588 = vmatpush.msrb.mxu0 %v17851_v59  ;;  %v17856_v62 = vand.u32 4294901760, %v17855_v6  ;;  %v17860_v59 = vld [vmem:[#allocation29_spill] sm:$0xff] }
 0x60b   :  { %8643 = vmatpush.msrb.mxu1 %v17852_v58  ;;  %v16169_v12 = vadd.f32 %v7658_v10, %v7604_v15  ;;  %8700 = vmatpush.msrb.mxu2 %v16098_v31  ;;  %v17858_v15 = vld [vmem:[#allocation27_spill] sm:$0xff]  ;;  %v17861_v58 = vld [vmem:[#allocation14_spill] sm:$0xff] }
 0x60c   :  { %8819 = vmatpush.msrb.mxu3 %v8818_v57  ;;  %8298 = vmatmul.f32.gmra.mxu0 %v17853_v3  ;;  %v17859_v57 = vand.u32 4294901760, %v17858_v15  ;;  %v17868_v15 = vld [vmem:[#allocation48_spill] sm:$0xff] }
 0x60d   :  { %8645 = vmatpush.msrb.mxu1 %v17854_v38  ;;  %8592 = vmatpush.msrb.mxu0 %v17856_v62  ;;  %v17862_v38 = vand.u32 4294901760, %v17861_v58 }
 0x60e   :  { %8702 = vmatpush.msrb.mxu2 %v16112_v44  ;;  %v7423_v19 = vpop.f32.mrf.mxu0  ;;  %8825 = vmatpush.msrb.mxu3 %v8824_v4  ;;  %v7608_v10 = vpop.f32.mrf.mxu2  ;;  %v17863_v4 = vld [vmem:[#allocation11_spill] sm:$0xff] }
 0x60f   :  { %8411 = vmatmul.f32.gmra.mxu1 %v17857_v43  ;;  %v7541_v29 = vadd.f32 %v7540_v0, %v7423_v19  ;;  %8708 = vmatmul.f32.vlgmr.msrb.gmra.mxu2 %v15424_v51  ;;  %v7664_v35 = vpop.f32.mrf.mxu3  ;;  %v17864_v0 = vand.u32 4294901760, %v17863_v4  ;;  %v17865_v51 = vand.u32 4294901760, %v15884_v53  ;;  %v7544_v62 = vpop.f32.mrf.mxu1 }
 0x610   :  { %8596 = vmatpush.msrb.mxu0 %v17859_v57  ;;  %8647 = vmatpush.msrb.mxu1 %v17860_v59  ;;  %v17869_v57 = vand.u32 4294901760, %v17868_v15 }
 0x611   :  { %8831 = vmatpush.msrb.mxu3 %v8830_v7  ;;  %v7609_v48 = vadd.f32 %v7608_v10, %v7541_v29  ;;  %8978 = vmatpush.msra.mxu2 %v17864_v0  ;;  %v17866_v7 = vld [vmem:[#allocation37_spill] sm:$0xff] }
 0x612   :  { %8833 = vmatmul.f32.vlgmr.msrb.gmra.mxu3 %v15329_v41  ;;  %8600 = vmatpush.msrb.mxu0 %v17862_v38  ;;  %v17867_v19 = vand.u32 4294901760, %v17866_v7 }
 0x613   :  { %8649 = vmatpush.msrb.mxu1 %v15819_v8  ;;  %v16188_v6 = vadd.f32 %v7664_v35, %v7609_v48  ;;  %9057 = vmatpush.msra.mxu3 %v15816_v18  ;;  %v17870_v35 = vand.u32 4294901760, %v15918_v30 }
 0x614   :  { %8604 = vmatpush.msrb.mxu0 %v17865_v51  ;;  %8982 = vmatpush.msra.mxu2 %v17867_v19  ;;  %v17884_v19 = vld [vmem:[#allocation71_spill] sm:$0xff] }
 0x615   :  { %8651 = vmatpush.msrb.mxu1 %v15839_v45  ;;  %8606 = vmatmul.f32.vlgmr.msrb.gmra.mxu0 %v15329_v41 }
 0x616   :  { %8851 = vmatpush.msra.mxu0 %v17863_v4  ;;  %v7431_v8 = vpop.f32.mrf.mxu0  ;;  %9059 = vmatpush.msra.mxu3 %v15827_v2  ;;  %v7613_v53 = vpop.f32.mrf.mxu2 }
 0x617   :  { %8653 = vmatpush.msrb.mxu1 %v15843_v23  ;;  %v7545_v29 = vadd.f32 %v7544_v62, %v7431_v8  ;;  %8716 = vmatmul.f32.gmra.mxu2 %v15460_v14  ;;  %v7670_v10 = vpop.f32.mrf.mxu3  ;;  %v17871_v14 = vld [vmem:[#allocation133_spill] sm:$0xff]  ;;  %v7788_v48 = vpop.f32.mrf.mxu1 }
 0x618   :  { %8655 = vmatmul.f32.vlgmr.msrb.gmra.mxu1 %v15329_v41  ;;  %8854 = vmatpush.msra.mxu0 %v17866_v7 }
 0x619   :  { %8919 = vmatpush.msra.mxu1 %v15816_v18  ;;  %v7614_v45 = vadd.f32 %v7613_v53, %v7545_v29  ;;  %8986 = vmatpush.msra.mxu2 %v17869_v57  ;;  %v17872_v18 = vld [vmem:[#allocation131_spill] sm:$0xff]  ;;  %v17888_v53 = vld [vmem:[#allocation26_spill] sm:$0xff] }
 0x61a   :  { %8837 = vmatmul.f32.gmra.mxu3 %v15378_v36  ;;  %8857 = vmatpush.msra.mxu0 %v17868_v15  ;;  %v17873_v59 = vand.u32 4294901760, %v17872_v18 }
 0x61b   :  { %8921 = vmatpush.msra.mxu1 %v15827_v2  ;;  %v16209_v23 = vadd.f32 %v7670_v10, %v7614_v45  ;;  %8990 = vmatpush.msra.mxu2 %v17870_v35  ;;  %v17891_v45 = vld [vmem:[#allocation24_spill] sm:$0xff]  ;;  %v17892_v35 = vld [vmem:[#allocation73_spill] sm:$0xff] }
 0x61c   :  { %9061 = vmatpush.msra.mxu3 %v17871_v14  ;;  %8860 = vmatpush.msra.mxu0 %v15918_v30  ;;  %v17874_v30 = vand.u32 4294901760, %v15960_v47 }
 0x61d   :  { %8923 = vmatpush.msra.mxu1 %v17871_v14  ;;  %8994 = vmatpush.msra.mxu2 %v17873_v59  ;;  %v17895_v59 = vld [vmem:[#allocation8_spill] sm:$0xff] }
 0x61e   :  { %9063 = vmatpush.msra.mxu3 %v15889_v60  ;;  %v7739_v58 = vpop.f32.mrf.mxu0  ;;  %8610 = vmatmul.f32.gmra.mxu0 %v15378_v36  ;;  %v16222_v38 = vpop.f32.mrf.mxu2 }
 0x61f   :  { %8925 = vmatpush.msra.mxu1 %v15889_v60  ;;  %v7740_v2 = vadd.f32 %v7739_v58, %v16140_v37  ;;  %8863 = vmatpush.msra.mxu0 %v17872_v18  ;;  %v17875_v60 = vand.u32 4294901760, %v15976_v16  ;;  %v17876_v37 = vand.u32 4294901760, %v15994_v33  ;;  %v17896_v58 = vld [vmem:[#allocation126_spill] sm:$0xff] }
 0x620   :  { %8998 = vmatpush.msra.mxu2 %v17874_v30  ;;  %9065 = vmatpush.msra.mxu3 %v15905_v13  ;;  %v16229_v4 = vpop.f32.mrf.mxu3 }
 0x621   :  { %8659 = vmatmul.f32.gmra.mxu1 %v15378_v36  ;;  %v16231_v0 = vadd.f32 %v7788_v48, %v7740_v2  ;;  %8724 = vmatmul.f32.gmra.mxu2 %v15505_v24  ;;  %v17877_v24 = vand.u32 4294901760, %v16016_v26 }
 0x622   :  { %8866 = vmatpush.msra.mxu0 %v15960_v47  ;;  %8927 = vmatpush.msra.mxu1 %v15905_v13  ;;  %v7792_v13 = vpop.f32.mrf.mxu1 }
 0x623   :  { %9002 = vmatpush.msra.mxu2 %v17875_v60  ;;  %9067 = vmatpush.msra.mxu3 %v15920_v61 }
 0x624   :  { %8869 = vmatpush.msra.mxu0 %v15976_v16  ;;  %8841 = vmatmul.f32.gmra.mxu3 %v15429_v28 }
 0x625   :  { %8929 = vmatpush.msra.mxu1 %v15920_v61  ;;  %9006 = vmatpush.msra.mxu2 %v17876_v37  ;;  %v17897_v37 = vld [vmem:[#allocation31_spill] sm:$0xff] }
 0x626   :  { %9069 = vmatpush.msra.mxu3 %v15949_v46  ;;  %8872 = vmatpush.msra.mxu0 %v15994_v33  ;;  %v16253_v61 = vpop.f32.mrf.mxu2  ;;  %v17878_v33 = vand.u32 4294901760, %v16031_v63 }
 0x627   :  { %8931 = vmatpush.msra.mxu1 %v15949_v46  ;;  %v7743_v47 = vpop.f32.mrf.mxu0  ;;  %9010 = vmatpush.msra.mxu2 %v17877_v24 }
 0x628   :  { %9071 = vmatpush.msra.mxu3 %v15972_v27  ;;  %v7744_v16 = vadd.f32 %v7743_v47, %v16169_v12  ;;  %8614 = vmatmul.f32.gmra.mxu0 %v15429_v28  ;;  %v17881_v12 = vld [vmem:[#allocation96_spill] sm:$0xff]  ;;  %v17898_v47 = vld [vmem:[#allocation123_spill] sm:$0xff] }
 0x629   :  { %8933 = vmatpush.msra.mxu1 %v15972_v27  ;;  %8875 = vmatpush.msra.mxu0 %v16016_v26  ;;  %v16262_v51 = vpop.f32.mrf.mxu3  ;;  %v17879_v27 = vand.u32 4294901760, %v16049_v42  ;;  %v17880_v26 = vld [vmem:[#allocation97_spill] sm:$0xff] }
 0x62a   :  { %9014 = vmatpush.msra.mxu2 %v17878_v33  ;;  %v16258_v46 = vadd.f32 %v7792_v13, %v7744_v16  ;;  %9073 = vmatpush.msra.mxu3 %v15986_v20  ;;  %v6665_v62 = vadd.f32 %v17881_v12, %v17880_v26  ;;  %v7796_v7 = vpop.f32.mrf.mxu1  ;;  %v17899_v13 = vld [vmem:[#allocation124_spill] sm:$0xff] }
 0x62b   :  { %8663 = vmatmul.f32.gmra.mxu1 %v15429_v28  ;;  %8732 = vmatmul.f32.gmra.mxu2 %v17853_v3  ;;  %v17882_v3 = vand.u32 4294901760, %v16073_v34 }
 0x62c   :  { %8878 = vmatpush.msra.mxu0 %v16031_v63  ;;  %8935 = vmatpush.msra.mxu1 %v15986_v20 }
 0x62d   :  { %9018 = vmatpush.msra.mxu2 %v17879_v27  ;;  %9075 = vmatpush.msra.mxu3 %v16000_v56 }
 0x62e   :  { %8881 = vmatpush.msra.mxu0 %v16049_v42  ;;  %8845 = vmatmul.f32.gmra.mxu3 %v17857_v43  ;;  %v17883_v42 = vand.u32 4294901760, %v16092_v17 }
 0x62f   :  { %8937 = vmatpush.msra.mxu1 %v16000_v56  ;;  %9022 = vmatpush.msra.mxu2 %v17882_v3  ;;  %v6731_v56 = vadd.f32 %v17884_v19, %v6665_v62  ;;  %v16287_v8 = vpop.f32.mrf.mxu2  ;;  %v17901_v3 = vld [vmem:[#allocation16_spill] sm:$0xff] }
 0x630   :  { %9077 = vmatpush.msra.mxu3 %v16021_v22  ;;  %v7747_v20 = vpop.f32.mrf.mxu0  ;;  %8884 = vmatpush.msra.mxu0 %v16073_v34 }
 0x631   :  { %8939 = vmatpush.msra.mxu1 %v16021_v22  ;;  %v7748_v63 = vadd.f32 %v7747_v20, %v16188_v6  ;;  %9026 = vmatpush.msra.mxu2 %v17883_v42  ;;  %v17902_v20 = vld [vmem:[#allocation20_spill] sm:$0xff] }
 0x632   :  { %9079 = vmatpush.msra.mxu3 %v16044_v11  ;;  %8618 = vmatmul.f32.gmra.mxu0 %v17857_v43  ;;  %v16296_v22 = vpop.f32.mrf.mxu3  ;;  %v17903_v42 = vld [vmem:[#allocation132_spill] sm:$0xff] }
 0x633   :  { %8941 = vmatpush.msra.mxu1 %v16044_v11  ;;  %v16289_v29 = vadd.f32 %v7796_v7, %v7748_v63  ;;  %8887 = vmatpush.msra.mxu0 %v16092_v17  ;;  %v17885_v11 = vld [vmem:[#allocation108_spill] sm:$0xff]  ;;  %v17886_v17 = vld [vmem:[#allocation17_spill] sm:$0xff]  ;;  %v6677_v63 = vadd.f32 %v17902_v20, %v17901_v3 }
 0x634   :  { %9030 = vmatpush.msra.mxu2 %v8816_v21  ;;  %9081 = vmatpush.msra.mxu3 %v16059_v54  ;;  %v6785_v34 = vadd.f32 %v17885_v11, %v6731_v56  ;;  %v17887_v21 = vld [vmem:[#allocation105_spill] sm:$0xff] }
 0x635   :  { %8667 = vmatmul.f32.gmra.mxu1 %v17857_v43  ;;  %8890 = vmatpush.msra.mxu0 %v16105_v9  ;;  %v6669_v6 = vadd.f32 %v17887_v21, %v17886_v17  ;;  %v17889_v9 = vld [vmem:[#allocation33_spill] sm:$0xff]  ;;  %v17905_v17 = vld [vmem:[#allocation23_spill] sm:$0xff] }
 0x636   :  { %8943 = vmatpush.msra.mxu1 %v16059_v54  ;;  %9034 = vmatpush.msra.mxu2 %v8822_v40  ;;  %v6872_v10 = vadd.f32 %v17888_v53, %v6785_v34  ;;  %v17890_v40 = vld [vmem:[#allocation3_spill] sm:$0xff]  ;;  %v17904_v34 = vld [vmem:[#allocation121_spill] sm:$0xff] }
 0x637   :  { %9083 = vmatpush.msra.mxu3 %v16075_v5  ;;  %8893 = vmatpush.msra.mxu0 %v16120_v49  ;;  %v7800_v49 = vpop.f32.mrf.mxu1  ;;  %v17914_v3 = vld [vmem:[#allocation5_spill] sm:$0xff] }
 0x638   :  { %8945 = vmatpush.msra.mxu1 %v16075_v5  ;;  %9038 = vmatpush.msra.mxu2 %v8828_v25  ;;  %v6736_v25 = vadd.f32 %v17890_v40, %v6669_v6  ;;  %v6921_v15 = vadd.f32 %v17891_v45, %v6872_v10 }
 0x639   :  { %9085 = vmatpush.msra.mxu3 %v16098_v31  ;;  %9040 = vmatmul.f32.vlgmr.msra.gmra.mxu2 %v15329_v41  ;;  %v7865_v57 = vpop.f32.mrf.mxu2 }
 0x63a   :  { %8896 = vmatpush.msra.mxu0 %v16131_v1  ;;  %v7751_v54 = vpop.f32.mrf.mxu0  ;;  %8947 = vmatpush.msra.mxu1 %v16098_v31  ;;  %v7842_v31 = vadd.f32 %v16222_v38, %v6921_v15  ;;  %v17908_v15 = vld [vmem:[#allocation18_spill] sm:$0xff] }
 0x63b   :  { %9087 = vmatpush.msra.mxu3 %v16112_v44  ;;  %v7752_v5 = vadd.f32 %v7751_v54, %v16209_v23  ;;  %8899 = vmatmul.f32.vlgmr.msra.gmra.mxu0 %v17889_v9  ;;  %v17893_v23 = vld [vmem:[#allocation76_spill] sm:$0xff]  ;;  %v17907_v9 = vld [vmem:[#allocation22_spill] sm:$0xff] }
 0x63c   :  { %9089 = vmatmul.f32.vlgmr.msra.gmra.mxu3 %v15329_v41  ;;  %8949 = vmatpush.msra.mxu1 %v16112_v44  ;;  %v7978_v14 = vpop.f32.mrf.mxu3  ;;  %v6791_v18 = vadd.f32 %v17893_v23, %v6736_v25  ;;  %v17894_v41 = vld [vmem:[#allocation28_spill] sm:$0xff]  ;;  %v7967_v30 = vadd.f32 %v16229_v4, %v7842_v31 }
 0x63d   :  { %v16322_v1 = vadd.f32 %v7800_v49, %v7752_v5  ;;  %8953 = vmatmul.f32.vlgmr.msra.gmra.mxu1 %v17892_v35  ;;  %v6673_v48 = vadd.f32 %v17895_v59, %v17894_v41 }
 0x63e   :  { %v6876_v2 = vadd.f32 %v17896_v58, %v6791_v18 }
 0x63f   :  { %v6741_v24 = vadd.f32 %v17898_v47, %v6673_v48  ;;  %v17909_v47 = vld [vmem:[#allocation21_spill] sm:$0xff] }
 0x640   :  { %v6925_v16 = vadd.f32 %v17899_v13, %v6876_v2 }
 0x641   :  { %9044 = vmatmul.f32.gmra.mxu2 %v15378_v36 }
 0x642   :  { %v8173_v33 = vpop.f32.mrf.mxu2  ;;  %v7850_v26 = vadd.f32 %v16253_v61, %v6925_v16 }
 0x643   :  { %8904 = vmatmul.f32.gmra.mxu0 %v15404_v52  ;;  %v8032_v44 = vpop.f32.mrf.mxu0  ;;  %v17900_v52 = vld [vmem:[#allocation122_spill] sm:$0xff] }
 0x644   :  { %9093 = vmatmul.f32.gmra.mxu3 %v15378_v36  ;;  %v8033_v60 = vadd.f32 %v8032_v44, %v7967_v30  ;;  %v6797_v4 = vadd.f32 %v17900_v52, %v6741_v24  ;;  %v7971_v19 = vadd.f32 %v16262_v51, %v7850_v26  ;;  %v17910_v24 = vld [vmem:[#allocation130_spill] sm:$0xff] }
 0x645   :  { %8959 = vmatmul.f32.gmra.mxu1 %v17897_v37  ;;  %v8222_v62 = vpop.f32.mrf.mxu3  ;;  %v7099_v13 = vadd.f32 %v17910_v24, %v17909_v47  ;;  %v17929_v47 = vld [vmem:[#allocation138_spill] sm:$0xff] }
 0x646   :  { %v8086_v38 = vpop.f32.mrf.mxu1  ;;  %v6880_v7 = vadd.f32 %v17903_v42, %v6797_v4 }
 0x647   :  { %v8087_v27 = vadd.f32 %v8086_v38, %v8033_v60 }
 0x649   :  { %v8174_v12 = vadd.f32 %v8173_v33, %v8087_v27  ;;  %9048 = vmatmul.f32.gmra.mxu2 %v15429_v28  ;;  %v17911_v33 = vld [vmem:[#allocation49_spill] sm:$0xff] }
 0x64a   :  { %v7165_v27 = vadd.f32 %v17911_v33, %v7099_v13 }
 0x64b   :  { %v8223_v36 = vadd.f32 %v8222_v62, %v8174_v12  ;;  %8909 = vmatmul.f32.gmra.mxu0 %v15444_v32  ;;  %v6746_v32 = vadd.f32 %v17904_v34, %v6677_v63  ;;  %v17912_v62 = vld [vmem:[#allocation30_spill] sm:$0xff]  ;;  %v17915_v63 = vld [vmem:[#allocation9_spill] sm:$0xff] }
 0x64c   :  { %9097 = vmatmul.f32.gmra.mxu3 %v15429_v28  ;;  %v6929_v28 = vadd.f32 %v17905_v17, %v6880_v7  ;;  %v8177_v21 = vpop.f32.mrf.mxu2  ;;  %v7219_v52 = vadd.f32 %v17912_v62, %v7165_v27  ;;  %v17918_v17 = vld [vmem:[#allocation39_spill] sm:$0xff] }
 0x64d   :  { %9105 = vst [vmem:[%s16428_s6] sm:$0xff] %v8223_v36  ;;  %8965 = vmatmul.f32.gmra.mxu1 %v15469_v55  ;;  %v8037_v61 = vpop.f32.mrf.mxu0  ;;  %v17906_v55 = vld [vmem:[#allocation125_spill] sm:$0xff]  ;;  %v17913_v36 = vld [vmem:[#allocation128_spill] sm:$0xff] }
 0x64e   :  { %v8038_v56 = vadd.f32 %v8037_v61, %v7971_v19  ;;  %v7858_v53 = vadd.f32 %v16287_v8, %v6929_v28  ;;  %v6803_v54 = vadd.f32 %v17906_v55, %v6746_v32  ;;  %v7103_v20 = vadd.f32 %v17914_v3, %v17913_v36  ;;  %v17916_v19 = vld [vmem:[#allocation134_spill] sm:$0xff] }
 0x64f   :  { %v8226_v10 = vpop.f32.mrf.mxu3  ;;  %v7306_v42 = vadd.f32 %v17915_v63, %v7219_v52  ;;  %v17921_v55 = vld [vmem:[#allocation46_spill] sm:$0xff] }
 0x650   :  { %v8092_v11 = vpop.f32.mrf.mxu1  ;;  %v6884_v49 = vadd.f32 %v17907_v9, %v6803_v54  ;;  %v7975_v40 = vadd.f32 %v16296_v22, %v7858_v53  ;;  %v7170_v61 = vadd.f32 %v17916_v19, %v7103_v20  ;;  %v17919_v53 = vld [vmem:[#allocation10_spill] sm:$0xff]  ;;  %v17932_v19 = vld [vmem:[#allocation45_spill] sm:$0xff] }
 0x651   :  { %v8093_v6 = vadd.f32 %v8092_v11, %v8038_v56  ;;  %9052 = vmatmul.f32.gmra.mxu2 %v17857_v43  ;;  %v17917_v11 = vld [vmem:[#allocation2_spill] sm:$0xff] }
 0x652   :  { %v7355_v34 = vadd.f32 %v17917_v11, %v7306_v42  ;;  %v7225_v28 = vadd.f32 %v17918_v17, %v7170_v61 }
 0x653   :  { %v8178_v51 = vadd.f32 %v8177_v21, %v8093_v6  ;;  %8914 = vmatmul.f32.gmra.mxu0 %v15494_v39  ;;  %v6933_v39 = vadd.f32 %v17908_v15, %v6884_v49  ;;  %v17922_v49 = vld [vmem:[#allocation135_spill] sm:$0xff] }
 0x654   :  { %9101 = vmatmul.f32.gmra.mxu3 %v17857_v43  ;;  %v7310_v54 = vadd.f32 %v17921_v55, %v7225_v28 }
 0x655   :  { %v8227_v5 = vadd.f32 %v8226_v10, %v8178_v51  ;;  %8971 = vmatmul.f32.gmra.mxu1 %v15513_v50  ;;  %v7866_v31 = vadd.f32 %v7865_v57, %v6933_v39  ;;  %v17920_v51 = vld [vmem:[#allocation129_spill] sm:$0xff] }
 0x656   :  { %v8181_v35 = vpop.f32.mrf.mxu2  ;;  %v7107_v10 = vadd.f32 %v17920_v51, %v17919_v53 }
 0x657   :  { %9108 = vst [vmem:[%s16428_s6 + $0x18] sm:$0xff] %v8227_v5  ;;  %v8042_v8 = vpop.f32.mrf.mxu0  ;;  %v7979_v50 = vadd.f32 %v7978_v14, %v7866_v31 }
 0x658   :  { %v8043_v25 = vadd.f32 %v8042_v8, %v7975_v40  ;;  %v7175_v40 = vadd.f32 %v17922_v49, %v7107_v10 }
 0x659   :  { %v8230_v18 = vpop.f32.mrf.mxu3 }
 0x65a   :  { %v8098_v45 = vpop.f32.mrf.mxu1 }
 0x65b   :  { %v8099_v43 = vadd.f32 %v8098_v45, %v8043_v25  ;;  %v17923_v25 = vld [vmem:[#allocation35_spill] sm:$0xff] }
 0x65c   :  { %v7359_v45 = vadd.f32 %v17923_v25, %v7310_v54 }
 0x65d   :  { %v8182_v23 = vadd.f32 %v8181_v35, %v8099_v43  ;;  %v17924_v35 = vld [vmem:[#allocation127_spill] sm:$0xff] }
 0x65e   :  { %v7231_v43 = vadd.f32 %v17924_v35, %v7175_v40 }
 0x65f   :  { %v8231_v41 = vadd.f32 %v8230_v18, %v8182_v23 }
 0x660   :  { %v8185_v58 = vpop.f32.mrf.mxu2 }
 0x661   :  { %9111 = vst [vmem:[%s16428_s6 + $0x30] sm:$0xff] %v8231_v41  ;;  %v8047_v22 = vpop.f32.mrf.mxu0 }
 0x662   :  { %v8048_v59 = vadd.f32 %v8047_v22, %v7979_v50  ;;  %v17925_v50 = vld [vmem:[#allocation7_spill] sm:$0xff] }
 0x663   :  { %v8234_v44 = vpop.f32.mrf.mxu3  ;;  %v17926_v22 = vld [vmem:[#allocation19_spill] sm:$0xff] }
 0x664   :  { %v8104_v48 = vpop.f32.mrf.mxu1 }
 0x665   :  { %v8105_v2 = vadd.f32 %v8104_v48, %v8048_v59  ;;  %v7111_v59 = vadd.f32 %v17926_v22, %v17925_v50  ;;  %v17927_v48 = vld [vmem:[#allocation34_spill] sm:$0xff] }
 0x667   :  { %v8186_v30 = vadd.f32 %v8185_v58, %v8105_v2  ;;  %v7314_v58 = vadd.f32 %v17927_v48, %v7231_v43 }
 0x669   :  { %v8235_v60 = vadd.f32 %v8234_v44, %v8186_v30  ;;  %v17928_v44 = vld [vmem:[#allocation139_spill] sm:$0xff] }
 0x66a   :  { %v8466_v38 = vpop.f32.mrf.mxu2 }
 0x66b   :  { %9114 = vst [vmem:[%s16428_s6 + $0x48] sm:$0xff] %v8235_v60  ;;  %v8275_v57 = vpop.f32.mrf.mxu0  ;;  %v7180_v60 = vadd.f32 %v17928_v44, %v7111_v59 }
 0x66c   :  { %v8276_v21 = vadd.f32 %v8275_v57, %v7355_v34 }
 0x66d   :  { %v8520_v14 = vpop.f32.mrf.mxu3 }
 0x66e   :  { %v8400_v37 = vpop.f32.mrf.mxu1 }
 0x66f   :  { %v8401_v5 = vadd.f32 %v8400_v37, %v8276_v21 }
 0x671   :  { %v8467_v15 = vadd.f32 %v8466_v38, %v8401_v5  ;;  %v7363_v38 = vadd.f32 %v17929_v47, %v7314_v58 }
 0x673   :  { %v8521_v18 = vadd.f32 %v8520_v14, %v8467_v15  ;;  %v17930_v14 = vld [vmem:[#allocation47_spill] sm:$0xff] }
 0x674   :  { %v8471_v12 = vpop.f32.mrf.mxu2 }
 0x675   :  { %v8283_v16 = vpop.f32.mrf.mxu0 }
 0x676   :  { %v8284_v31 = vadd.f32 %v8283_v16, %v7359_v45  ;;  %v7237_v16 = vadd.f32 %v17930_v14, %v7180_v60 }
 0x677   :  { %v8526_v4 = vpop.f32.mrf.mxu3 }
 0x678   :  { %v8404_v26 = vpop.f32.mrf.mxu1 }
 0x679   :  { %v8405_v2 = vadd.f32 %v8404_v26, %v8284_v31  ;;  %v17931_v26 = vld [vmem:[#allocation137_spill] sm:$0xff] }
 0x67a   :  { %v7318_v36 = vadd.f32 %v17931_v26, %v7237_v16 }
 0x67b   :  { %v8472_v24 = vadd.f32 %v8471_v12, %v8405_v2 }
 0x67c   :  { %v7367_v61 = vadd.f32 %v17932_v19, %v7318_v36 }
 0x67d   :  { %v8527_v62 = vadd.f32 %v8526_v4, %v8472_v24 }
 0x67e   :  { %v8476_v32 = vpop.f32.mrf.mxu2 }
 0x67f   :  { %v8291_v7 = vpop.f32.mrf.mxu0 }
 0x680   :  { %v8292_v33 = vadd.f32 %v8291_v7, %v7363_v38 }
 0x681   :  { %v8532_v6 = vpop.f32.mrf.mxu3 }
 0x682   :  { %v8408_v56 = vpop.f32.mrf.mxu1 }
 0x683   :  { %v8409_v3 = vadd.f32 %v8408_v56, %v8292_v33 }
 0x685   :  { %v8477_v12 = vadd.f32 %v8476_v32, %v8409_v3 }
 0x687   :  { %v8533_v7 = vadd.f32 %v8532_v6, %v8477_v12 }
 0x688   :  { %v8481_v39 = vpop.f32.mrf.mxu2 }
 0x689   :  { %v8299_v9 = vpop.f32.mrf.mxu0 }
 0x68a   :  { %v8300_v34 = vadd.f32 %v8299_v9, %v7367_v61 }
 0x68b   :  { %v8538_v23 = vpop.f32.mrf.mxu3 }
 0x68c   :  { %v8412_v8 = vpop.f32.mrf.mxu1 }
 0x68d   :  { %v8413_v4 = vadd.f32 %v8412_v8, %v8300_v34 }
 0x68f   :  { %v8482_v56 = vadd.f32 %v8481_v39, %v8413_v4 }
 0x691   :  { %v8539_v55 = vadd.f32 %v8538_v23, %v8482_v56 }
 0x692   :  { %v8607_v41 = vpop.f32.mrf.mxu0  ;;  %v8709_v13 = vpop.f32.mrf.mxu2 }
 0x693   :  { %v8608_v30 = vadd.f32 %v8607_v41, %v8521_v18  ;;  %v8710_v9 = vadd.f32 %v8709_v13, %v16231_v0 }
 0x695   :  { %v8656_v57 = vpop.f32.mrf.mxu1  ;;  %v8834_v27 = vpop.f32.mrf.mxu3 }
 0x696   :  { %v8657_v37 = vadd.f32 %v8656_v57, %v8608_v30  ;;  %v8835_v25 = vadd.f32 %v8834_v27, %v8710_v9 }
 0x698   :  { %9106 = vst [vmem:[%s16428_s6 + $0x8] sm:$0xff] %v8657_v37 }
 0x69a   :  { %v8717_v11 = vpop.f32.mrf.mxu2 }
 0x69b   :  { %v8611_v52 = vpop.f32.mrf.mxu0  ;;  %v8718_v35 = vadd.f32 %v8717_v11, %v16258_v46 }
 0x69c   :  { %v8612_v20 = vadd.f32 %v8611_v52, %v8527_v62 }
 0x69d   :  { %v8838_v17 = vpop.f32.mrf.mxu3 }
 0x69e   :  { %v8660_v63 = vpop.f32.mrf.mxu1  ;;  %v8839_v41 = vadd.f32 %v8838_v17, %v8718_v35 }
 0x69f   :  { %v8661_v42 = vadd.f32 %v8660_v63, %v8612_v20 }
 0x6a1   :  { %9109 = vst [vmem:[%s16428_s6 + $0x20] sm:$0xff] %v8661_v42 }
 0x6a4   :  { %v8725_v10 = vpop.f32.mrf.mxu2 }
 0x6a5   :  { %v8615_v28 = vpop.f32.mrf.mxu0  ;;  %v8726_v48 = vadd.f32 %v8725_v10, %v16289_v29 }
 0x6a6   :  { %v8616_v21 = vadd.f32 %v8615_v28, %v8533_v7 }
 0x6a7   :  { %v8842_v32 = vpop.f32.mrf.mxu3 }
 0x6a8   :  { %v8664_v53 = vpop.f32.mrf.mxu1  ;;  %v8843_v46 = vadd.f32 %v8842_v32, %v8726_v48 }
 0x6a9   :  { %v8665_v51 = vadd.f32 %v8664_v53, %v8616_v21 }
 0x6ab   :  { %9112 = vst [vmem:[%s16428_s6 + $0x38] sm:$0xff] %v8665_v51 }
 0x6ae   :  { %v8733_v6 = vpop.f32.mrf.mxu2 }
 0x6af   :  { %v8619_v54 = vpop.f32.mrf.mxu0  ;;  %v8734_v38 = vadd.f32 %v8733_v6, %v16322_v1 }
 0x6b0   :  { %v8620_v5 = vadd.f32 %v8619_v54, %v8539_v55 }
 0x6b1   :  { %v8846_v8 = vpop.f32.mrf.mxu3 }
 0x6b2   :  { %v8668_v49 = vpop.f32.mrf.mxu1  ;;  %v8847_v29 = vadd.f32 %v8846_v8, %v8734_v38 }
 0x6b3   :  { %v8669_v40 = vadd.f32 %v8668_v49, %v8620_v5 }
 0x6b5   :  { %9115 = vst [vmem:[%s16428_s6 + $0x50] sm:$0xff] %v8669_v40 }
 0x6b8   :  { %v8900_v45 = vpop.f32.mrf.mxu0 }
 0x6b9   :  { %v8901_v15 = vadd.f32 %v8900_v45, %v8835_v25 }
 0x6ba   :  { %v8954_v39 = vpop.f32.mrf.mxu1 }
 0x6bb   :  { %v8955_v43 = vadd.f32 %v8954_v39, %v8901_v15 }
 0x6bc   :  { %v9041_v31 = vpop.f32.mrf.mxu2 }
 0x6bd   :  { %v9042_v23 = vadd.f32 %v9041_v31, %v8955_v43 }
 0x6bf   :  { %v9090_v18 = vpop.f32.mrf.mxu3 }
 0x6c0   :  { %v9091_v50 = vadd.f32 %v9090_v18, %v9042_v23  ;;  %v8905_v22 = vpop.f32.mrf.mxu0 }
 0x6c1   :  { %v8906_v0 = vadd.f32 %v8905_v22, %v8839_v41 }
 0x6c2   :  { %9107 = vst [vmem:[%s16428_s6 + $0x10] sm:$0xff] %v9091_v50  ;;  %v8960_v59 = vpop.f32.mrf.mxu1 }
 0x6c3   :  { %v8961_v58 = vadd.f32 %v8960_v59, %v8906_v0 }
 0x6c4   :  { %v9045_v2 = vpop.f32.mrf.mxu2 }
 0x6c5   :  { %v9046_v30 = vadd.f32 %v9045_v2, %v8961_v58 }
 0x6c7   :  { %v9094_v44 = vpop.f32.mrf.mxu3 }
 0x6c8   :  { %v9095_v60 = vadd.f32 %v9094_v44, %v9046_v30  ;;  %v8910_v57 = vpop.f32.mrf.mxu0 }
 0x6c9   :  { %v8911_v37 = vadd.f32 %v8910_v57, %v8843_v46 }
 0x6ca   :  { %9110 = vst [vmem:[%s16428_s6 + $0x28] sm:$0xff] %v9095_v60  ;;  %v8966_v47 = vpop.f32.mrf.mxu1 }
 0x6cb   :  { %v8967_v24 = vadd.f32 %v8966_v47, %v8911_v37 }
 0x6cc   :  { %v9049_v13 = vpop.f32.mrf.mxu2 }
 0x6cd   :  { %v9050_v14 = vadd.f32 %v9049_v13, %v8967_v24 }
 0x6cf   :  { %v9098_v16 = vpop.f32.mrf.mxu3 }
 0x6d0   :  { %v9099_v33 = vadd.f32 %v9098_v16, %v9050_v14  ;;  %v8915_v27 = vpop.f32.mrf.mxu0 }
 0x6d1   :  { %v8916_v62 = vadd.f32 %v8915_v27, %v8847_v29 }
 0x6d2   :  { %9113 = vst [vmem:[%s16428_s6 + $0x40] sm:$0xff] %v9099_v33  ;;  %v8972_v52 = vpop.f32.mrf.mxu1 }
 0x6d3   :  { %v8973_v26 = vadd.f32 %v8972_v52, %v8916_v62 }
 0x6d4   :  { %v9053_v36 = vpop.f32.mrf.mxu2 }
 0x6d5   :  { %v9054_v3 = vadd.f32 %v9053_v36, %v8973_v26 }
 0x6d7   :  { %v9102_v20 = vpop.f32.mrf.mxu3 }
 0x6d8   :  { %v9103_v63 = vadd.f32 %v9102_v20, %v9054_v3 }
 0x6da   :  { %9116 = vst [vmem:[%s16428_s6 + $0x58] sm:$0xff] %v9103_v63 }

</bundles_post_ra>
